<compile_context>
chip_gen: v7x
topology: tpu7x:2x2x1
jax: 0.10.0
libtpu: 0.0.40
codegen_flags: <defaults>
</compile_context>

<pallas_src>
import functools

import numpy as np
import jax
import jax.numpy as jnp
from jax.experimental import pallas as pl
from jax.experimental.pallas import tpu as pltpu

BN_EPS = 1e-5


# ------------------------------ in-kernel helpers ------------------------------

def _conv3x3(srcs, w_ref, cout, Wp, L):
    """3x3 / stride-1 / pad-1 conv in channel-first padded-flat layout.

    srcs: list of (buf_ref, cin, weight_col_offset).  buf_ref rows [0:cin] hold a
    zero-padded image flattened with row stride Wp (real pixel (i, j) at flat
    column (i+1)*Wp + (j+1)).
    w_ref: (9*cout, cin_total) bf16, rows grouped per tap t = a*3 + b.
    Returns (cout, L) f32 in "conv output" layout (column q = i*Wp + j).
    """
    acc = jnp.zeros((cout, L), jnp.float32)
    for a in range(3):
        for b in range(3):
            t = a * 3 + b
            off = a * Wp + b
            for (buf, cin, coff) in srcs:
                wt = w_ref[t * cout:(t + 1) * cout, coff:coff + cin]
                tap = buf[0:cin, off:off + L]
                acc = acc + jnp.dot(wt.astype(jnp.bfloat16),
                                    tap.astype(jnp.bfloat16),
                                    preferred_element_type=jnp.float32)
    return acc


def _basic_block(srcs, prm, cout, Wp, L, mask_ref, h_buf):
    """BasicBlock: conv3x3+BN+ReLU -> conv3x3+BN, (1x1 conv + BN) downsample of
    the input, residual add, ReLU.  Returns (cout, L) f32."""
    (w1, s1, b1, w2, s2, b2, wd, sd, bd) = prm

    # conv1 + bn1 + relu
    h = _conv3x3(srcs, w1, cout, Wp, L)
    h = jnp.maximum(h * s1[...] + b1[...], 0.0)
    # stash h into a zero-padded buffer so conv2 can read shifted taps
    h_buf[0:cout, Wp + 1:Wp + 1 + L] = h * mask_ref[...]

    # downsample: 1x1 conv + bn on the block input (accumulated over sources)
    idn = jnp.zeros((cout, L), jnp.float32)
    for (buf, cin, coff) in srcs:
        idn = idn + jnp.dot(wd[:, coff:coff + cin].astype(jnp.bfloat16),
                            buf[0:cin, Wp + 1:Wp + 1 + L].astype(jnp.bfloat16),
                            preferred_element_type=jnp.float32)
    idn = idn * sd[...] + bd[...]

    # conv2 + bn2 + residual + relu
    y = _conv3x3([(h_buf, cout, 0)], w2, cout, Wp, L)
    return jnp.maximum(y * s2[...] + b2[...] + idn, 0.0)


# ----------------------------------- kernel ------------------------------------

def _seg2_kernel(*refs, C, H, W):
    C1, C2, C4 = C, 2 * C, 4 * C
    Wp, L, P = W + 2, H * (W + 2), (H + 3) * (W + 2)
    H2, W2 = H // 2, W // 2
    Wp2, L2 = W2 + 2, H2 * (W2 + 2)

    assert len(refs) == 8 + 36 + 1 + 7
    (x_ref, s_pool_ref, s_up_ref, mhi_ref, mlo_ref,
     wup_ref, ups_ref, upb_ref) = refs[0:8]
    blk = [refs[8 + 9 * i: 8 + 9 * (i + 1)] for i in range(4)]
    o_ref = refs[44]
    (buf_x0, buf_x1, buf_hh, buf_up, buf_x3, buf_p1, buf_hl) = refs[45:52]

    # zero the padded buffers whose border zeros the conv taps rely on
    for b in (buf_x0, buf_x1, buf_hh, buf_x3, buf_hl):
        b[...] = jnp.zeros(b.shape, b.dtype)

    # ---- input (C, H*W) -> zero-padded channel-first buffer ----
    x = x_ref[...]
    for i in range(H):
        buf_x0[0:C1, (i + 1) * Wp + 1:(i + 1) * Wp + 1 + W] = x[:, i * W:(i + 1) * W]

    # ---- conv1 block: C -> 2C (full res) ----
    x1 = _basic_block([(buf_x0, C1, 0)], blk[0], C2, Wp, L, mhi_ref, buf_hh)
    buf_x1[0:C2, Wp + 1:Wp + 1 + L] = x1 * mhi_ref[...]

    # ---- 2x2 max pool -> half-res padded layout (0/1 selection matmul) ----
    m = jnp.maximum(
        jnp.maximum(buf_x1[0:C2, 0:L], buf_x1[0:C2, 1:1 + L]),
        jnp.maximum(buf_x1[0:C2, Wp:Wp + L], buf_x1[0:C2, Wp + 1:Wp + 1 + L]))
    buf_p1[...] = jnp.dot(m, s_pool_ref[...], preferred_element_type=jnp.float32)

    # ---- conv2 block: 2C -> 4C (half res) ----
    x2 = _basic_block([(buf_p1, C2, 0)], blk[1], C4, Wp2, L2, mlo_ref, buf_hl)

    # ---- up_pool3: ConvTranspose2d(k=2,s=2) + BN + ReLU, scatter to full res ----
    up = jnp.zeros((C2, P), jnp.float32)
    for g in range(4):
        wg = wup_ref[g * C2:(g + 1) * C2, :]
        yg = jnp.dot(wg.astype(jnp.bfloat16), x2.astype(jnp.bfloat16),
                     preferred_element_type=jnp.float32)
        yg = jnp.maximum(yg * ups_ref[...] + upb_ref[...], 0.0)
        up = up + jnp.dot(yg, s_up_ref[g * L2:(g + 1) * L2, :],
                          preferred_element_type=jnp.float32)
    buf_up[...] = up

    # ---- conv3 block: cat([up, x1]) (4C) -> 2C via column-split weights ----
    x3 = _basic_block([(buf_up, C2, 0), (buf_x1, C2, C2)], blk[2], C2, Wp, L,
                      mhi_ref, buf_hh)
    buf_x3[0:C2, Wp + 1:Wp + 1 + L] = x3 * mhi_ref[...]

    # ---- conv4 block: 2C -> C ----
    x4 = _basic_block([(buf_x3, C2, 0)], blk[3], C1, Wp, L, mhi_ref, buf_hh)

    # ---- softmax over channels (unrolled over C rows), lane-dense output ----
    mx = x4[0:1, :]
    for c in range(1, C1):
        mx = jnp.maximum(mx, x4[c:c + 1, :])
    e = jnp.exp(x4 - mx)
    den = e[0:1, :]
    for c in range(1, C1):
        den = den + e[c:c + 1, :]
    sm = e / den
    for i in range(H):
        o_ref[:, i * W:(i + 1) * W] = sm[:, i * Wp:i * Wp + W]


# --------------------------------- JAX wrapper ----------------------------------

def segmentation2_forward(x_nchw, flat_params):
    N, C, H, W = x_nchw.shape
    HW = H * W
    P = (H + 3) * (W + 2)
    P2 = (H // 2 + 3) * (W // 2 + 2)

    in_specs = [pl.BlockSpec((None, C, HW), lambda n: (n, 0, 0))]
    in_specs += [pl.BlockSpec(a.shape, lambda n: (0, 0)) for a in flat_params]

    out = pl.pallas_call(
        functools.partial(_seg2_kernel, C=C, H=H, W=W),
        grid=(N,),
        in_specs=in_specs,
        out_specs=pl.BlockSpec((None, C, HW), lambda n: (n, 0, 0)),
        out_shape=jax.ShapeDtypeStruct((N, C, HW), jnp.float32),
        scratch_shapes=[
            pltpu.VMEM((C, P), jnp.float32),       # buf_x0  padded input
            pltpu.VMEM((2 * C, P), jnp.float32),   # buf_x1  skip connection
            pltpu.VMEM((2 * C, P), jnp.float32),   # buf_hh  full-res conv1 temp
            pltpu.VMEM((2 * C, P), jnp.float32),   # buf_up  up-pooled activation
            pltpu.VMEM((2 * C, P), jnp.float32),   # buf_x3  conv3 output
            pltpu.VMEM((2 * C, P2), jnp.float32),  # buf_p1  pooled activation
            pltpu.VMEM((4 * C, P2), jnp.float32),  # buf_hl  half-res conv1 temp
        ],
        compiler_params=pltpu.CompilerParams(
            dimension_semantics=("parallel",)),
    )(x_nchw.reshape(N, C, HW), *flat_params)
    return out.reshape(N, C, H, W)


# ------------------------------ parameter building ------------------------------

def _kaiming_conv_packed(key, kh, kw, cin, cout):
    # kaiming_normal_(mode='fan_out', nonlinearity='relu'): std = sqrt(2/(cout*kh*kw))
    fan_out = cout * kh * kw
    std = (2.0 / fan_out) ** 0.5
    w = jax.random.normal(key, (cout, cin, kh, kw), jnp.float32) * std
    # pack rows per tap t = a*kw + b : rows [t*cout:(t+1)*cout] = W[:, :, a, b]
    return jnp.transpose(w, (2, 3, 0, 1)).reshape(kh * kw * cout, cin)


def _make_block_params(key, cin, cout):
    k1, k2, k3 = jax.random.split(key, 3)
    inv = 1.0 / float(np.sqrt(1.0 + BN_EPS))
    col = lambda v: jnp.full((cout, 1), v, jnp.float32)
    w1 = _kaiming_conv_packed(k1, 3, 3, cin, cout).astype(jnp.bfloat16)
    w2 = _kaiming_conv_packed(k2, 3, 3, cout, cout).astype(jnp.bfloat16)
    wd = _kaiming_conv_packed(k3, 1, 1, cin, cout).astype(jnp.bfloat16)  # (cout, cin)
    return (w1, col(inv), col(0.0),      # conv1 3x3 + bn1 (gamma=1)
            w2, col(0.0), col(0.0),      # conv2 3x3 + bn2 (gamma=0, zero-init)
            wd, col(inv), col(0.0))      # downsample 1x1 + bn (gamma=1)


def _make_up_params(key, cin, cout):
    kw_, kb = jax.random.split(key)
    inv = 1.0 / float(np.sqrt(1.0 + BN_EPS))
    # ConvTranspose2d default init: kaiming_uniform(a=sqrt(5)), fan_in = cout*2*2
    fan_in = cout * 4
    bound = 1.0 / (fan_in ** 0.5)
    wt = jax.random.uniform(kw_, (cin, cout, 2, 2), jnp.float32, -bound, bound)
    bt = jax.random.uniform(kb, (cout,), jnp.float32, -bound, bound)
    # rows grouped per output-pixel offset g = di*2 + dj : Wg[co, ci] = wt[ci, co, di, dj]
    w = jnp.transpose(wt, (2, 3, 1, 0)).reshape(4 * cout, cin).astype(jnp.bfloat16)
    scale = jnp.full((cout, 1), inv, jnp.float32)          # BN gamma=1 fold
    bias = (bt * inv).reshape(cout, 1).astype(jnp.float32)  # conv-T bias through BN
    return (w, scale, bias)


def _make_layout_consts(H, W):
    """0/1 gather/scatter matrices + garbage-column masks for padded-flat layout."""
    Wp, L, P = W + 2, H * (W + 2), (H + 3) * (W + 2)
    H2, W2 = H // 2, W // 2
    Wp2, L2, P2 = W2 + 2, H2 * (W2 + 2), (H2 + 3) * (W2 + 2)

    s_pool = np.zeros((L, P2), np.float32)          # pool subsample -> half-res padded
    for i2 in range(H2):
        for j2 in range(W2):
            s_pool[(2 * i2 + 1) * Wp + (2 * j2 + 1), (i2 + 1) * Wp2 + (j2 + 1)] = 1.0

    s_up = np.zeros((4 * L2, P), np.float32)        # conv-T pixel scatter -> full-res padded
    for di in range(2):
        for dj in range(2):
            g = di * 2 + dj
            for i in range(H2):
                for j in range(W2):
                    s_up[g * L2 + i * Wp2 + j,
                         (2 * i + di + 1) * Wp + (2 * j + dj + 1)] = 1.0

    q = np.arange(L)
    mask_hi = (q % Wp < W).astype(np.float32).reshape(1, L)
    q2 = np.arange(L2)
    mask_lo = (q2 % Wp2 < W2).astype(np.float32).reshape(1, L2)
    return (jnp.asarray(s_pool), jnp.asarray(s_up),
            jnp.asarray(mask_hi), jnp.asarray(mask_lo))


# -------------------------------------- main ------------------------------------

if __name__ == "__main__":
    key = jax.random.PRNGKey(0)
    kx, k1, k2, k3, k4, ku = jax.random.split(key, 6)

    C = 4               # in_channels == out_channels
    N, H, W = 2, 16, 16
    x = jax.random.normal(kx, (N, C, H, W), jnp.float32)   # NCHW like PyTorch

    consts = _make_layout_consts(H, W)
    blocks = (_make_block_params(k1, C, 2 * C)
              + _make_block_params(k2, 2 * C, 4 * C)
              + _make_block_params(k3, 4 * C, 2 * C)
              + _make_block_params(k4, 2 * C, C))
    up = _make_up_params(ku, 4 * C, 2 * C)
    flat_params = list(consts) + list(up) + list(blocks)

    fwd = jax.jit(segmentation2_forward)
    out = jax.block_until_ready(fwd(x, flat_params))

    assert out.shape == (N, C, H, W), out.shape
    assert bool(jnp.all(jnp.isfinite(out)))
    # softmax over the channel dim must sum to 1
    assert jnp.allclose(jnp.sum(out, axis=1), 1.0, atol=1e-4)
    print("KERNEL_OK")
</pallas_src>

<mosaic_0001>
module attributes {stable_mosaic.version = 11 : i64} {
  func.func @_seg2_kernel(%arg0: i32, %arg1: memref<1x4x256xf32, #tpu.memory_space<vmem>>, %arg2: memref<288x110xf32, #tpu.memory_space<vmem>>, %arg3: memref<320x342xf32, #tpu.memory_space<vmem>>, %arg4: memref<1x288xf32, #tpu.memory_space<vmem>>, %arg5: memref<1x80xf32, #tpu.memory_space<vmem>>, %arg6: memref<32x16xbf16, #tpu.memory_space<vmem>>, %arg7: memref<8x1xf32, #tpu.memory_space<vmem>>, %arg8: memref<8x1xf32, #tpu.memory_space<vmem>>, %arg9: memref<72x4xbf16, #tpu.memory_space<vmem>>, %arg10: memref<8x1xf32, #tpu.memory_space<vmem>>, %arg11: memref<8x1xf32, #tpu.memory_space<vmem>>, %arg12: memref<72x8xbf16, #tpu.memory_space<vmem>>, %arg13: memref<8x1xf32, #tpu.memory_space<vmem>>, %arg14: memref<8x1xf32, #tpu.memory_space<vmem>>, %arg15: memref<8x4xbf16, #tpu.memory_space<vmem>>, %arg16: memref<8x1xf32, #tpu.memory_space<vmem>>, %arg17: memref<8x1xf32, #tpu.memory_space<vmem>>, %arg18: memref<144x8xbf16, #tpu.memory_space<vmem>>, %arg19: memref<16x1xf32, #tpu.memory_space<vmem>>, %arg20: memref<16x1xf32, #tpu.memory_space<vmem>>, %arg21: memref<144x16xbf16, #tpu.memory_space<vmem>>, %arg22: memref<16x1xf32, #tpu.memory_space<vmem>>, %arg23: memref<16x1xf32, #tpu.memory_space<vmem>>, %arg24: memref<16x8xbf16, #tpu.memory_space<vmem>>, %arg25: memref<16x1xf32, #tpu.memory_space<vmem>>, %arg26: memref<16x1xf32, #tpu.memory_space<vmem>>, %arg27: memref<72x16xbf16, #tpu.memory_space<vmem>>, %arg28: memref<8x1xf32, #tpu.memory_space<vmem>>, %arg29: memref<8x1xf32, #tpu.memory_space<vmem>>, %arg30: memref<72x8xbf16, #tpu.memory_space<vmem>>, %arg31: memref<8x1xf32, #tpu.memory_space<vmem>>, %arg32: memref<8x1xf32, #tpu.memory_space<vmem>>, %arg33: memref<8x16xbf16, #tpu.memory_space<vmem>>, %arg34: memref<8x1xf32, #tpu.memory_space<vmem>>, %arg35: memref<8x1xf32, #tpu.memory_space<vmem>>, %arg36: memref<36x8xbf16, #tpu.memory_space<vmem>>, %arg37: memref<4x1xf32, #tpu.memory_space<vmem>>, %arg38: memref<4x1xf32, #tpu.memory_space<vmem>>, %arg39: memref<36x4xbf16, #tpu.memory_space<vmem>>, %arg40: memref<4x1xf32, #tpu.memory_space<vmem>>, %arg41: memref<4x1xf32, #tpu.memory_space<vmem>>, %arg42: memref<4x8xbf16, #tpu.memory_space<vmem>>, %arg43: memref<4x1xf32, #tpu.memory_space<vmem>>, %arg44: memref<4x1xf32, #tpu.memory_space<vmem>>, %arg45: memref<1x4x256xf32, #tpu.memory_space<vmem>>, %arg46: memref<4x342xf32, #tpu.memory_space<vmem>>, %arg47: memref<8x342xf32, #tpu.memory_space<vmem>>, %arg48: memref<8x342xf32, #tpu.memory_space<vmem>>, %arg49: memref<8x342xf32, #tpu.memory_space<vmem>>, %arg50: memref<8x342xf32, #tpu.memory_space<vmem>>, %arg51: memref<8x110xf32, #tpu.memory_space<vmem>>, %arg52: memref<16x110xf32, #tpu.memory_space<vmem>>) attributes {dimension_semantics = [#tpu.dimension_semantics<parallel>], iteration_bounds = array<i64: 2>, scalar_prefetch = 0 : i64, scratch_operands = 7 : i64, tpu.core_type = #tpu.core_type<tc>, window_params = [{transform_indices = @transform_0, window_bounds = array<i64: 1, 4, 256>}, {pipeline_mode = #tpu.pipeline_mode<synchronous>, transform_indices = @transform_1, window_bounds = array<i64: 288, 110>}, {pipeline_mode = #tpu.pipeline_mode<synchronous>, transform_indices = @transform_2, window_bounds = array<i64: 320, 342>}, {pipeline_mode = #tpu.pipeline_mode<synchronous>, transform_indices = @transform_3, window_bounds = array<i64: 1, 288>}, {pipeline_mode = #tpu.pipeline_mode<synchronous>, transform_indices = @transform_4, window_bounds = array<i64: 1, 80>}, {pipeline_mode = #tpu.pipeline_mode<synchronous>, transform_indices = @transform_5, window_bounds = array<i64: 32, 16>}, {pipeline_mode = #tpu.pipeline_mode<synchronous>, transform_indices = @transform_6, window_bounds = array<i64: 8, 1>}, {pipeline_mode = #tpu.pipeline_mode<synchronous>, transform_indices = @transform_7, window_bounds = array<i64: 8, 1>}, {pipeline_mode = #tpu.pipeline_mode<synchronous>, transform_indices = @transform_8, window_bounds = array<i64: 72, 4>}, {pipeline_mode = #tpu.pipeline_mode<synchronous>, transform_indices = @transform_9, window_bounds = array<i64: 8, 1>}, {pipeline_mode = #tpu.pipeline_mode<synchronous>, transform_indices = @transform_10, window_bounds = array<i64: 8, 1>}, {pipeline_mode = #tpu.pipeline_mode<synchronous>, transform_indices = @transform_11, window_bounds = array<i64: 72, 8>}, {pipeline_mode = #tpu.pipeline_mode<synchronous>, transform_indices = @transform_12, window_bounds = array<i64: 8, 1>}, {pipeline_mode = #tpu.pipeline_mode<synchronous>, transform_indices = @transform_13, window_bounds = array<i64: 8, 1>}, {pipeline_mode = #tpu.pipeline_mode<synchronous>, transform_indices = @transform_14, window_bounds = array<i64: 8, 4>}, {pipeline_mode = #tpu.pipeline_mode<synchronous>, transform_indices = @transform_15, window_bounds = array<i64: 8, 1>}, {pipeline_mode = #tpu.pipeline_mode<synchronous>, transform_indices = @transform_16, window_bounds = array<i64: 8, 1>}, {pipeline_mode = #tpu.pipeline_mode<synchronous>, transform_indices = @transform_17, window_bounds = array<i64: 144, 8>}, {pipeline_mode = #tpu.pipeline_mode<synchronous>, transform_indices = @transform_18, window_bounds = array<i64: 16, 1>}, {pipeline_mode = #tpu.pipeline_mode<synchronous>, transform_indices = @transform_19, window_bounds = array<i64: 16, 1>}, {pipeline_mode = #tpu.pipeline_mode<synchronous>, transform_indices = @transform_20, window_bounds = array<i64: 144, 16>}, {pipeline_mode = #tpu.pipeline_mode<synchronous>, transform_indices = @transform_21, window_bounds = array<i64: 16, 1>}, {pipeline_mode = #tpu.pipeline_mode<synchronous>, transform_indices = @transform_22, window_bounds = array<i64: 16, 1>}, {pipeline_mode = #tpu.pipeline_mode<synchronous>, transform_indices = @transform_23, window_bounds = array<i64: 16, 8>}, {pipeline_mode = #tpu.pipeline_mode<synchronous>, transform_indices = @transform_24, window_bounds = array<i64: 16, 1>}, {pipeline_mode = #tpu.pipeline_mode<synchronous>, transform_indices = @transform_25, window_bounds = array<i64: 16, 1>}, {pipeline_mode = #tpu.pipeline_mode<synchronous>, transform_indices = @transform_26, window_bounds = array<i64: 72, 16>}, {pipeline_mode = #tpu.pipeline_mode<synchronous>, transform_indices = @transform_27, window_bounds = array<i64: 8, 1>}, {pipeline_mode = #tpu.pipeline_mode<synchronous>, transform_indices = @transform_28, window_bounds = array<i64: 8, 1>}, {pipeline_mode = #tpu.pipeline_mode<synchronous>, transform_indices = @transform_29, window_bounds = array<i64: 72, 8>}, {pipeline_mode = #tpu.pipeline_mode<synchronous>, transform_indices = @transform_30, window_bounds = array<i64: 8, 1>}, {pipeline_mode = #tpu.pipeline_mode<synchronous>, transform_indices = @transform_31, window_bounds = array<i64: 8, 1>}, {pipeline_mode = #tpu.pipeline_mode<synchronous>, transform_indices = @transform_32, window_bounds = array<i64: 8, 16>}, {pipeline_mode = #tpu.pipeline_mode<synchronous>, transform_indices = @transform_33, window_bounds = array<i64: 8, 1>}, {pipeline_mode = #tpu.pipeline_mode<synchronous>, transform_indices = @transform_34, window_bounds = array<i64: 8, 1>}, {pipeline_mode = #tpu.pipeline_mode<synchronous>, transform_indices = @transform_35, window_bounds = array<i64: 36, 8>}, {pipeline_mode = #tpu.pipeline_mode<synchronous>, transform_indices = @transform_36, window_bounds = array<i64: 4, 1>}, {pipeline_mode = #tpu.pipeline_mode<synchronous>, transform_indices = @transform_37, window_bounds = array<i64: 4, 1>}, {pipeline_mode = #tpu.pipeline_mode<synchronous>, transform_indices = @transform_38, window_bounds = array<i64: 36, 4>}, {pipeline_mode = #tpu.pipeline_mode<synchronous>, transform_indices = @transform_39, window_bounds = array<i64: 4, 1>}, {pipeline_mode = #tpu.pipeline_mode<synchronous>, transform_indices = @transform_40, window_bounds = array<i64: 4, 1>}, {pipeline_mode = #tpu.pipeline_mode<synchronous>, transform_indices = @transform_41, window_bounds = array<i64: 4, 8>}, {pipeline_mode = #tpu.pipeline_mode<synchronous>, transform_indices = @transform_42, window_bounds = array<i64: 4, 1>}, {pipeline_mode = #tpu.pipeline_mode<synchronous>, transform_indices = @transform_43, window_bounds = array<i64: 4, 1>}, {transform_indices = @transform_44, window_bounds = array<i64: 1, 4, 256>}]} {
    %cst = arith.constant 0.000000e+00 : f32
    %0 = vector.broadcast %cst : f32 to vector<4x342xf32>
    %c0 = arith.constant 0 : index
    %c0_0 = arith.constant 0 : index
    %1 = vector.load %arg46[%c0, %c0_0] : memref<4x342xf32, #tpu.memory_space<vmem>>, vector<4x342xf32>
    tpu.vector_store %arg46[%c0, %c0_0], %0 {strides = array<i32>} : memref<4x342xf32, #tpu.memory_space<vmem>>, vector<4x342xf32>,
    %cst_1 = arith.constant 0.000000e+00 : f32
    %2 = vector.broadcast %cst_1 : f32 to vector<8x342xf32>
    %c0_2 = arith.constant 0 : index
    %c0_3 = arith.constant 0 : index
    %3 = vector.load %arg47[%c0_2, %c0_3] : memref<8x342xf32, #tpu.memory_space<vmem>>, vector<8x342xf32>
    tpu.vector_store %arg47[%c0_2, %c0_3], %2 {strides = array<i32>} : memref<8x342xf32, #tpu.memory_space<vmem>>, vector<8x342xf32>,
    %cst_4 = arith.constant 0.000000e+00 : f32
    %4 = vector.broadcast %cst_4 : f32 to vector<8x342xf32>
    %c0_5 = arith.constant 0 : index
    %c0_6 = arith.constant 0 : index
    %5 = vector.load %arg48[%c0_5, %c0_6] : memref<8x342xf32, #tpu.memory_space<vmem>>, vector<8x342xf32>
    tpu.vector_store %arg48[%c0_5, %c0_6], %4 {strides = array<i32>} : memref<8x342xf32, #tpu.memory_space<vmem>>, vector<8x342xf32>,
    %cst_7 = arith.constant 0.000000e+00 : f32
    %6 = vector.broadcast %cst_7 : f32 to vector<8x342xf32>
    %c0_8 = arith.constant 0 : index
    %c0_9 = arith.constant 0 : index
    %7 = vector.load %arg50[%c0_8, %c0_9] : memref<8x342xf32, #tpu.memory_space<vmem>>, vector<8x342xf32>
    tpu.vector_store %arg50[%c0_8, %c0_9], %6 {strides = array<i32>} : memref<8x342xf32, #tpu.memory_space<vmem>>, vector<8x342xf32>,
    %cst_10 = arith.constant 0.000000e+00 : f32
    %8 = vector.broadcast %cst_10 : f32 to vector<16x110xf32>
    %c0_11 = arith.constant 0 : index
    %c0_12 = arith.constant 0 : index
    %9 = vector.load %arg52[%c0_11, %c0_12] : memref<16x110xf32, #tpu.memory_space<vmem>>, vector<16x110xf32>
    tpu.vector_store %arg52[%c0_11, %c0_12], %8 {strides = array<i32>} : memref<16x110xf32, #tpu.memory_space<vmem>>, vector<16x110xf32>,
    %c0_13 = arith.constant 0 : index
    %c0_14 = arith.constant 0 : index
    %c0_15 = arith.constant 0 : index
    %10 = vector.load %arg1[%c0_13, %c0_14, %c0_15] : memref<1x4x256xf32, #tpu.memory_space<vmem>>, vector<1x4x256xf32>
    %11 = vector.shape_cast %10 : vector<1x4x256xf32> to vector<4x256xf32>
    %12 = vector.extract_strided_slice %11 {offsets = [0, 0], sizes = [4, 16], strides = [1, 1]} : vector<4x256xf32> to vector<4x16xf32>
    %c0_16 = arith.constant 0 : index
    %c19 = arith.constant 19 : index
    %13 = vector.load %arg46[%c0_16, %c19] : memref<4x342xf32, #tpu.memory_space<vmem>>, vector<4x16xf32>
    tpu.vector_store %arg46[%c0_16, %c19], %12 {strides = array<i32>} : memref<4x342xf32, #tpu.memory_space<vmem>>, vector<4x16xf32>,
    %14 = vector.extract_strided_slice %11 {offsets = [0, 16], sizes = [4, 16], strides = [1, 1]} : vector<4x256xf32> to vector<4x16xf32>
    %c0_17 = arith.constant 0 : index
    %c37 = arith.constant 37 : index
    %15 = vector.load %arg46[%c0_17, %c37] : memref<4x342xf32, #tpu.memory_space<vmem>>, vector<4x16xf32>
    tpu.vector_store %arg46[%c0_17, %c37], %14 {strides = array<i32>} : memref<4x342xf32, #tpu.memory_space<vmem>>, vector<4x16xf32>,
    %16 = vector.extract_strided_slice %11 {offsets = [0, 32], sizes = [4, 16], strides = [1, 1]} : vector<4x256xf32> to vector<4x16xf32>
    %c0_18 = arith.constant 0 : index
    %c55 = arith.constant 55 : index
    %17 = vector.load %arg46[%c0_18, %c55] : memref<4x342xf32, #tpu.memory_space<vmem>>, vector<4x16xf32>
    tpu.vector_store %arg46[%c0_18, %c55], %16 {strides = array<i32>} : memref<4x342xf32, #tpu.memory_space<vmem>>, vector<4x16xf32>,
    %18 = vector.extract_strided_slice %11 {offsets = [0, 48], sizes = [4, 16], strides = [1, 1]} : vector<4x256xf32> to vector<4x16xf32>
    %c0_19 = arith.constant 0 : index
    %c73 = arith.constant 73 : index
    %19 = vector.load %arg46[%c0_19, %c73] : memref<4x342xf32, #tpu.memory_space<vmem>>, vector<4x16xf32>
    tpu.vector_store %arg46[%c0_19, %c73], %18 {strides = array<i32>} : memref<4x342xf32, #tpu.memory_space<vmem>>, vector<4x16xf32>,
    %20 = vector.extract_strided_slice %11 {offsets = [0, 64], sizes = [4, 16], strides = [1, 1]} : vector<4x256xf32> to vector<4x16xf32>
    %c0_20 = arith.constant 0 : index
    %c91 = arith.constant 91 : index
    %21 = vector.load %arg46[%c0_20, %c91] : memref<4x342xf32, #tpu.memory_space<vmem>>, vector<4x16xf32>
    tpu.vector_store %arg46[%c0_20, %c91], %20 {strides = array<i32>} : memref<4x342xf32, #tpu.memory_space<vmem>>, vector<4x16xf32>,
    %22 = vector.extract_strided_slice %11 {offsets = [0, 80], sizes = [4, 16], strides = [1, 1]} : vector<4x256xf32> to vector<4x16xf32>
    %c0_21 = arith.constant 0 : index
    %c109 = arith.constant 109 : index
    %23 = vector.load %arg46[%c0_21, %c109] : memref<4x342xf32, #tpu.memory_space<vmem>>, vector<4x16xf32>
    tpu.vector_store %arg46[%c0_21, %c109], %22 {strides = array<i32>} : memref<4x342xf32, #tpu.memory_space<vmem>>, vector<4x16xf32>,
    %24 = vector.extract_strided_slice %11 {offsets = [0, 96], sizes = [4, 16], strides = [1, 1]} : vector<4x256xf32> to vector<4x16xf32>
    %c0_22 = arith.constant 0 : index
    %c127 = arith.constant 127 : index
    %25 = vector.load %arg46[%c0_22, %c127] : memref<4x342xf32, #tpu.memory_space<vmem>>, vector<4x16xf32>
    tpu.vector_store %arg46[%c0_22, %c127], %24 {strides = array<i32>} : memref<4x342xf32, #tpu.memory_space<vmem>>, vector<4x16xf32>,
    %26 = vector.extract_strided_slice %11 {offsets = [0, 112], sizes = [4, 16], strides = [1, 1]} : vector<4x256xf32> to vector<4x16xf32>
    %c0_23 = arith.constant 0 : index
    %c145 = arith.constant 145 : index
    %27 = vector.load %arg46[%c0_23, %c145] : memref<4x342xf32, #tpu.memory_space<vmem>>, vector<4x16xf32>
    tpu.vector_store %arg46[%c0_23, %c145], %26 {strides = array<i32>} : memref<4x342xf32, #tpu.memory_space<vmem>>, vector<4x16xf32>,
    %28 = vector.extract_strided_slice %11 {offsets = [0, 128], sizes = [4, 16], strides = [1, 1]} : vector<4x256xf32> to vector<4x16xf32>
    %c0_24 = arith.constant 0 : index
    %c163 = arith.constant 163 : index
    %29 = vector.load %arg46[%c0_24, %c163] : memref<4x342xf32, #tpu.memory_space<vmem>>, vector<4x16xf32>
    tpu.vector_store %arg46[%c0_24, %c163], %28 {strides = array<i32>} : memref<4x342xf32, #tpu.memory_space<vmem>>, vector<4x16xf32>,
    %30 = vector.extract_strided_slice %11 {offsets = [0, 144], sizes = [4, 16], strides = [1, 1]} : vector<4x256xf32> to vector<4x16xf32>
    %c0_25 = arith.constant 0 : index
    %c181 = arith.constant 181 : index
    %31 = vector.load %arg46[%c0_25, %c181] : memref<4x342xf32, #tpu.memory_space<vmem>>, vector<4x16xf32>
    tpu.vector_store %arg46[%c0_25, %c181], %30 {strides = array<i32>} : memref<4x342xf32, #tpu.memory_space<vmem>>, vector<4x16xf32>,
    %32 = vector.extract_strided_slice %11 {offsets = [0, 160], sizes = [4, 16], strides = [1, 1]} : vector<4x256xf32> to vector<4x16xf32>
    %c0_26 = arith.constant 0 : index
    %c199 = arith.constant 199 : index
    %33 = vector.load %arg46[%c0_26, %c199] : memref<4x342xf32, #tpu.memory_space<vmem>>, vector<4x16xf32>
    tpu.vector_store %arg46[%c0_26, %c199], %32 {strides = array<i32>} : memref<4x342xf32, #tpu.memory_space<vmem>>, vector<4x16xf32>,
    %34 = vector.extract_strided_slice %11 {offsets = [0, 176], sizes = [4, 16], strides = [1, 1]} : vector<4x256xf32> to vector<4x16xf32>
    %c0_27 = arith.constant 0 : index
    %c217 = arith.constant 217 : index
    %35 = vector.load %arg46[%c0_27, %c217] : memref<4x342xf32, #tpu.memory_space<vmem>>, vector<4x16xf32>
    tpu.vector_store %arg46[%c0_27, %c217], %34 {strides = array<i32>} : memref<4x342xf32, #tpu.memory_space<vmem>>, vector<4x16xf32>,
    %36 = vector.extract_strided_slice %11 {offsets = [0, 192], sizes = [4, 16], strides = [1, 1]} : vector<4x256xf32> to vector<4x16xf32>
    %c0_28 = arith.constant 0 : index
    %c235 = arith.constant 235 : index
    %37 = vector.load %arg46[%c0_28, %c235] : memref<4x342xf32, #tpu.memory_space<vmem>>, vector<4x16xf32>
    tpu.vector_store %arg46[%c0_28, %c235], %36 {strides = array<i32>} : memref<4x342xf32, #tpu.memory_space<vmem>>, vector<4x16xf32>,
    %38 = vector.extract_strided_slice %11 {offsets = [0, 208], sizes = [4, 16], strides = [1, 1]} : vector<4x256xf32> to vector<4x16xf32>
    %c0_29 = arith.constant 0 : index
    %c253 = arith.constant 253 : index
    %39 = vector.load %arg46[%c0_29, %c253] : memref<4x342xf32, #tpu.memory_space<vmem>>, vector<4x16xf32>
    tpu.vector_store %arg46[%c0_29, %c253], %38 {strides = array<i32>} : memref<4x342xf32, #tpu.memory_space<vmem>>, vector<4x16xf32>,
    %40 = vector.extract_strided_slice %11 {offsets = [0, 224], sizes = [4, 16], strides = [1, 1]} : vector<4x256xf32> to vector<4x16xf32>
    %c0_30 = arith.constant 0 : index
    %c271 = arith.constant 271 : index
    %41 = vector.load %arg46[%c0_30, %c271] : memref<4x342xf32, #tpu.memory_space<vmem>>, vector<4x16xf32>
    tpu.vector_store %arg46[%c0_30, %c271], %40 {strides = array<i32>} : memref<4x342xf32, #tpu.memory_space<vmem>>, vector<4x16xf32>,
    %42 = vector.extract_strided_slice %11 {offsets = [0, 240], sizes = [4, 16], strides = [1, 1]} : vector<4x256xf32> to vector<4x16xf32>
    %c0_31 = arith.constant 0 : index
    %c289 = arith.constant 289 : index
    %43 = vector.load %arg46[%c0_31, %c289] : memref<4x342xf32, #tpu.memory_space<vmem>>, vector<4x16xf32>
    tpu.vector_store %arg46[%c0_31, %c289], %42 {strides = array<i32>} : memref<4x342xf32, #tpu.memory_space<vmem>>, vector<4x16xf32>,
    %cst_32 = arith.constant 0.000000e+00 : f32
    %44 = vector.broadcast %cst_32 : f32 to vector<8x288xf32>
    %c0_33 = arith.constant 0 : index
    %c0_34 = arith.constant 0 : index
    %45 = vector.load %arg9[%c0_33, %c0_34] : memref<72x4xbf16, #tpu.memory_space<vmem>>, vector<8x4xbf16>
    %c0_35 = arith.constant 0 : index
    %c0_36 = arith.constant 0 : index
    %46 = vector.load %arg46[%c0_35, %c0_36] : memref<4x342xf32, #tpu.memory_space<vmem>>, vector<4x288xf32>
    %47 = arith.truncf %46 : vector<4x288xf32> to vector<4x288xbf16>
    %cst_37 = arith.constant dense<0.000000e+00> : vector<8x288xf32>
    %48 = tpu.matmul %45, %47, %cst_37 {dimension_numbers = #tpu.dot_dimension_numbers<[1], [0], [0], [1], [0, 0, 1, 1], [], []>} : vector<8x4xbf16>, vector<4x288xbf16>, vector<8x288xf32> -> vector<8x288xf32>
    %49 = arith.addf %44, %48 : vector<8x288xf32>
    %c8 = arith.constant 8 : index
    %c0_38 = arith.constant 0 : index
    %50 = vector.load %arg9[%c8, %c0_38] : memref<72x4xbf16, #tpu.memory_space<vmem>>, vector<8x4xbf16>
    %c0_39 = arith.constant 0 : index
    %c1 = arith.constant 1 : index
    %51 = vector.load %arg46[%c0_39, %c1] : memref<4x342xf32, #tpu.memory_space<vmem>>, vector<4x288xf32>
    %52 = arith.truncf %51 : vector<4x288xf32> to vector<4x288xbf16>
    %cst_40 = arith.constant dense<0.000000e+00> : vector<8x288xf32>
    %53 = tpu.matmul %50, %52, %cst_40 {dimension_numbers = #tpu.dot_dimension_numbers<[1], [0], [0], [1], [0, 0, 1, 1], [], []>} : vector<8x4xbf16>, vector<4x288xbf16>, vector<8x288xf32> -> vector<8x288xf32>
    %54 = arith.addf %49, %53 : vector<8x288xf32>
    %c16 = arith.constant 16 : index
    %c0_41 = arith.constant 0 : index
    %55 = vector.load %arg9[%c16, %c0_41] : memref<72x4xbf16, #tpu.memory_space<vmem>>, vector<8x4xbf16>
    %c0_42 = arith.constant 0 : index
    %c2 = arith.constant 2 : index
    %56 = vector.load %arg46[%c0_42, %c2] : memref<4x342xf32, #tpu.memory_space<vmem>>, vector<4x288xf32>
    %57 = arith.truncf %56 : vector<4x288xf32> to vector<4x288xbf16>
    %cst_43 = arith.constant dense<0.000000e+00> : vector<8x288xf32>
    %58 = tpu.matmul %55, %57, %cst_43 {dimension_numbers = #tpu.dot_dimension_numbers<[1], [0], [0], [1], [0, 0, 1, 1], [], []>} : vector<8x4xbf16>, vector<4x288xbf16>, vector<8x288xf32> -> vector<8x288xf32>
    %59 = arith.addf %54, %58 : vector<8x288xf32>
    %c24 = arith.constant 24 : index
    %c0_44 = arith.constant 0 : index
    %60 = vector.load %arg9[%c24, %c0_44] : memref<72x4xbf16, #tpu.memory_space<vmem>>, vector<8x4xbf16>
    %c0_45 = arith.constant 0 : index
    %c18 = arith.constant 18 : index
    %61 = vector.load %arg46[%c0_45, %c18] : memref<4x342xf32, #tpu.memory_space<vmem>>, vector<4x288xf32>
    %62 = arith.truncf %61 : vector<4x288xf32> to vector<4x288xbf16>
    %cst_46 = arith.constant dense<0.000000e+00> : vector<8x288xf32>
    %63 = tpu.matmul %60, %62, %cst_46 {dimension_numbers = #tpu.dot_dimension_numbers<[1], [0], [0], [1], [0, 0, 1, 1], [], []>} : vector<8x4xbf16>, vector<4x288xbf16>, vector<8x288xf32> -> vector<8x288xf32>
    %64 = arith.addf %59, %63 : vector<8x288xf32>
    %c32 = arith.constant 32 : index
    %c0_47 = arith.constant 0 : index
    %65 = vector.load %arg9[%c32, %c0_47] : memref<72x4xbf16, #tpu.memory_space<vmem>>, vector<8x4xbf16>
    %c0_48 = arith.constant 0 : index
    %c19_49 = arith.constant 19 : index
    %66 = vector.load %arg46[%c0_48, %c19_49] : memref<4x342xf32, #tpu.memory_space<vmem>>, vector<4x288xf32>
    %67 = arith.truncf %66 : vector<4x288xf32> to vector<4x288xbf16>
    %cst_50 = arith.constant dense<0.000000e+00> : vector<8x288xf32>
    %68 = tpu.matmul %65, %67, %cst_50 {dimension_numbers = #tpu.dot_dimension_numbers<[1], [0], [0], [1], [0, 0, 1, 1], [], []>} : vector<8x4xbf16>, vector<4x288xbf16>, vector<8x288xf32> -> vector<8x288xf32>
    %69 = arith.addf %64, %68 : vector<8x288xf32>
    %c40 = arith.constant 40 : index
    %c0_51 = arith.constant 0 : index
    %70 = vector.load %arg9[%c40, %c0_51] : memref<72x4xbf16, #tpu.memory_space<vmem>>, vector<8x4xbf16>
    %c0_52 = arith.constant 0 : index
    %c20 = arith.constant 20 : index
    %71 = vector.load %arg46[%c0_52, %c20] : memref<4x342xf32, #tpu.memory_space<vmem>>, vector<4x288xf32>
    %72 = arith.truncf %71 : vector<4x288xf32> to vector<4x288xbf16>
    %cst_53 = arith.constant dense<0.000000e+00> : vector<8x288xf32>
    %73 = tpu.matmul %70, %72, %cst_53 {dimension_numbers = #tpu.dot_dimension_numbers<[1], [0], [0], [1], [0, 0, 1, 1], [], []>} : vector<8x4xbf16>, vector<4x288xbf16>, vector<8x288xf32> -> vector<8x288xf32>
    %74 = arith.addf %69, %73 : vector<8x288xf32>
    %c48 = arith.constant 48 : index
    %c0_54 = arith.constant 0 : index
    %75 = vector.load %arg9[%c48, %c0_54] : memref<72x4xbf16, #tpu.memory_space<vmem>>, vector<8x4xbf16>
    %c0_55 = arith.constant 0 : index
    %c36 = arith.constant 36 : index
    %76 = vector.load %arg46[%c0_55, %c36] : memref<4x342xf32, #tpu.memory_space<vmem>>, vector<4x288xf32>
    %77 = arith.truncf %76 : vector<4x288xf32> to vector<4x288xbf16>
    %cst_56 = arith.constant dense<0.000000e+00> : vector<8x288xf32>
    %78 = tpu.matmul %75, %77, %cst_56 {dimension_numbers = #tpu.dot_dimension_numbers<[1], [0], [0], [1], [0, 0, 1, 1], [], []>} : vector<8x4xbf16>, vector<4x288xbf16>, vector<8x288xf32> -> vector<8x288xf32>
    %79 = arith.addf %74, %78 : vector<8x288xf32>
    %c56 = arith.constant 56 : index
    %c0_57 = arith.constant 0 : index
    %80 = vector.load %arg9[%c56, %c0_57] : memref<72x4xbf16, #tpu.memory_space<vmem>>, vector<8x4xbf16>
    %c0_58 = arith.constant 0 : index
    %c37_59 = arith.constant 37 : index
    %81 = vector.load %arg46[%c0_58, %c37_59] : memref<4x342xf32, #tpu.memory_space<vmem>>, vector<4x288xf32>
    %82 = arith.truncf %81 : vector<4x288xf32> to vector<4x288xbf16>
    %cst_60 = arith.constant dense<0.000000e+00> : vector<8x288xf32>
    %83 = tpu.matmul %80, %82, %cst_60 {dimension_numbers = #tpu.dot_dimension_numbers<[1], [0], [0], [1], [0, 0, 1, 1], [], []>} : vector<8x4xbf16>, vector<4x288xbf16>, vector<8x288xf32> -> vector<8x288xf32>
    %84 = arith.addf %79, %83 : vector<8x288xf32>
    %c64 = arith.constant 64 : index
    %c0_61 = arith.constant 0 : index
    %85 = vector.load %arg9[%c64, %c0_61] : memref<72x4xbf16, #tpu.memory_space<vmem>>, vector<8x4xbf16>
    %c0_62 = arith.constant 0 : index
    %c38 = arith.constant 38 : index
    %86 = vector.load %arg46[%c0_62, %c38] : memref<4x342xf32, #tpu.memory_space<vmem>>, vector<4x288xf32>
    %87 = arith.truncf %86 : vector<4x288xf32> to vector<4x288xbf16>
    %cst_63 = arith.constant dense<0.000000e+00> : vector<8x288xf32>
    %88 = tpu.matmul %85, %87, %cst_63 {dimension_numbers = #tpu.dot_dimension_numbers<[1], [0], [0], [1], [0, 0, 1, 1], [], []>} : vector<8x4xbf16>, vector<4x288xbf16>, vector<8x288xf32> -> vector<8x288xf32>
    %89 = arith.addf %84, %88 : vector<8x288xf32>
    %c0_64 = arith.constant 0 : index
    %c0_65 = arith.constant 0 : index
    %90 = vector.load %arg10[%c0_64, %c0_65] : memref<8x1xf32, #tpu.memory_space<vmem>>, vector<8x1xf32>
    %91 = vector.broadcast %90 : vector<8x1xf32> to vector<8x288xf32>
    %92 = arith.mulf %89, %91 : vector<8x288xf32>
    %c0_66 = arith.constant 0 : index
    %c0_67 = arith.constant 0 : index
    %93 = vector.load %arg11[%c0_66, %c0_67] : memref<8x1xf32, #tpu.memory_space<vmem>>, vector<8x1xf32>
    %94 = vector.broadcast %93 : vector<8x1xf32> to vector<8x288xf32>
    %95 = arith.addf %92, %94 : vector<8x288xf32>
    %cst_68 = arith.constant 0.000000e+00 : f32
    %96 = vector.broadcast %cst_68 : f32 to vector<8x288xf32>
    %97 = arith.maximumf %95, %96 : vector<8x288xf32>
    %c0_69 = arith.constant 0 : index
    %c0_70 = arith.constant 0 : index
    %98 = vector.load %arg4[%c0_69, %c0_70] : memref<1x288xf32, #tpu.memory_space<vmem>>, vector<1x288xf32>
    %99 = vector.broadcast %98 : vector<1x288xf32> to vector<8x288xf32>
    %100 = arith.mulf %97, %99 : vector<8x288xf32>
    %c0_71 = arith.constant 0 : index
    %c19_72 = arith.constant 19 : index
    %101 = vector.load %arg48[%c0_71, %c19_72] : memref<8x342xf32, #tpu.memory_space<vmem>>, vector<8x288xf32>
    tpu.vector_store %arg48[%c0_71, %c19_72], %100 {strides = array<i32>} : memref<8x342xf32, #tpu.memory_space<vmem>>, vector<8x288xf32>,
    %cst_73 = arith.constant 0.000000e+00 : f32
    %102 = vector.broadcast %cst_73 : f32 to vector<8x288xf32>
    %c0_74 = arith.constant 0 : index
    %c0_75 = arith.constant 0 : index
    %103 = vector.load %arg15[%c0_74, %c0_75] : memref<8x4xbf16, #tpu.memory_space<vmem>>, vector<8x4xbf16>
    %c0_76 = arith.constant 0 : index
    %c19_77 = arith.constant 19 : index
    %104 = vector.load %arg46[%c0_76, %c19_77] : memref<4x342xf32, #tpu.memory_space<vmem>>, vector<4x288xf32>
    %105 = arith.truncf %104 : vector<4x288xf32> to vector<4x288xbf16>
    %cst_78 = arith.constant dense<0.000000e+00> : vector<8x288xf32>
    %106 = tpu.matmul %103, %105, %cst_78 {dimension_numbers = #tpu.dot_dimension_numbers<[1], [0], [0], [1], [0, 0, 1, 1], [], []>} : vector<8x4xbf16>, vector<4x288xbf16>, vector<8x288xf32> -> vector<8x288xf32>
    %107 = arith.addf %102, %106 : vector<8x288xf32>
    %c0_79 = arith.constant 0 : index
    %c0_80 = arith.constant 0 : index
    %108 = vector.load %arg16[%c0_79, %c0_80] : memref<8x1xf32, #tpu.memory_space<vmem>>, vector<8x1xf32>
    %109 = vector.broadcast %108 : vector<8x1xf32> to vector<8x288xf32>
    %110 = arith.mulf %107, %109 : vector<8x288xf32>
    %c0_81 = arith.constant 0 : index
    %c0_82 = arith.constant 0 : index
    %111 = vector.load %arg17[%c0_81, %c0_82] : memref<8x1xf32, #tpu.memory_space<vmem>>, vector<8x1xf32>
    %112 = vector.broadcast %111 : vector<8x1xf32> to vector<8x288xf32>
    %113 = arith.addf %110, %112 : vector<8x288xf32>
    %cst_83 = arith.constant 0.000000e+00 : f32
    %114 = vector.broadcast %cst_83 : f32 to vector<8x288xf32>
    %c0_84 = arith.constant 0 : index
    %c0_85 = arith.constant 0 : index
    %115 = vector.load %arg12[%c0_84, %c0_85] : memref<72x8xbf16, #tpu.memory_space<vmem>>, vector<8x8xbf16>
    %c0_86 = arith.constant 0 : index
    %c0_87 = arith.constant 0 : index
    %116 = vector.load %arg48[%c0_86, %c0_87] : memref<8x342xf32, #tpu.memory_space<vmem>>, vector<8x288xf32>
    %117 = arith.truncf %116 : vector<8x288xf32> to vector<8x288xbf16>
    %cst_88 = arith.constant dense<0.000000e+00> : vector<8x288xf32>
    %118 = tpu.matmul %115, %117, %cst_88 {dimension_numbers = #tpu.dot_dimension_numbers<[1], [0], [0], [1], [0, 0, 1, 1], [], []>} : vector<8x8xbf16>, vector<8x288xbf16>, vector<8x288xf32> -> vector<8x288xf32>
    %119 = arith.addf %114, %118 : vector<8x288xf32>
    %c8_89 = arith.constant 8 : index
    %c0_90 = arith.constant 0 : index
    %120 = vector.load %arg12[%c8_89, %c0_90] : memref<72x8xbf16, #tpu.memory_space<vmem>>, vector<8x8xbf16>
    %c0_91 = arith.constant 0 : index
    %c1_92 = arith.constant 1 : index
    %121 = vector.load %arg48[%c0_91, %c1_92] : memref<8x342xf32, #tpu.memory_space<vmem>>, vector<8x288xf32>
    %122 = arith.truncf %121 : vector<8x288xf32> to vector<8x288xbf16>
    %cst_93 = arith.constant dense<0.000000e+00> : vector<8x288xf32>
    %123 = tpu.matmul %120, %122, %cst_93 {dimension_numbers = #tpu.dot_dimension_numbers<[1], [0], [0], [1], [0, 0, 1, 1], [], []>} : vector<8x8xbf16>, vector<8x288xbf16>, vector<8x288xf32> -> vector<8x288xf32>
    %124 = arith.addf %119, %123 : vector<8x288xf32>
    %c16_94 = arith.constant 16 : index
    %c0_95 = arith.constant 0 : index
    %125 = vector.load %arg12[%c16_94, %c0_95] : memref<72x8xbf16, #tpu.memory_space<vmem>>, vector<8x8xbf16>
    %c0_96 = arith.constant 0 : index
    %c2_97 = arith.constant 2 : index
    %126 = vector.load %arg48[%c0_96, %c2_97] : memref<8x342xf32, #tpu.memory_space<vmem>>, vector<8x288xf32>
    %127 = arith.truncf %126 : vector<8x288xf32> to vector<8x288xbf16>
    %cst_98 = arith.constant dense<0.000000e+00> : vector<8x288xf32>
    %128 = tpu.matmul %125, %127, %cst_98 {dimension_numbers = #tpu.dot_dimension_numbers<[1], [0], [0], [1], [0, 0, 1, 1], [], []>} : vector<8x8xbf16>, vector<8x288xbf16>, vector<8x288xf32> -> vector<8x288xf32>
    %129 = arith.addf %124, %128 : vector<8x288xf32>
    %c24_99 = arith.constant 24 : index
    %c0_100 = arith.constant 0 : index
    %130 = vector.load %arg12[%c24_99, %c0_100] : memref<72x8xbf16, #tpu.memory_space<vmem>>, vector<8x8xbf16>
    %c0_101 = arith.constant 0 : index
    %c18_102 = arith.constant 18 : index
    %131 = vector.load %arg48[%c0_101, %c18_102] : memref<8x342xf32, #tpu.memory_space<vmem>>, vector<8x288xf32>
    %132 = arith.truncf %131 : vector<8x288xf32> to vector<8x288xbf16>
    %cst_103 = arith.constant dense<0.000000e+00> : vector<8x288xf32>
    %133 = tpu.matmul %130, %132, %cst_103 {dimension_numbers = #tpu.dot_dimension_numbers<[1], [0], [0], [1], [0, 0, 1, 1], [], []>} : vector<8x8xbf16>, vector<8x288xbf16>, vector<8x288xf32> -> vector<8x288xf32>
    %134 = arith.addf %129, %133 : vector<8x288xf32>
    %c32_104 = arith.constant 32 : index
    %c0_105 = arith.constant 0 : index
    %135 = vector.load %arg12[%c32_104, %c0_105] : memref<72x8xbf16, #tpu.memory_space<vmem>>, vector<8x8xbf16>
    %c0_106 = arith.constant 0 : index
    %c19_107 = arith.constant 19 : index
    %136 = vector.load %arg48[%c0_106, %c19_107] : memref<8x342xf32, #tpu.memory_space<vmem>>, vector<8x288xf32>
    %137 = arith.truncf %136 : vector<8x288xf32> to vector<8x288xbf16>
    %cst_108 = arith.constant dense<0.000000e+00> : vector<8x288xf32>
    %138 = tpu.matmul %135, %137, %cst_108 {dimension_numbers = #tpu.dot_dimension_numbers<[1], [0], [0], [1], [0, 0, 1, 1], [], []>} : vector<8x8xbf16>, vector<8x288xbf16>, vector<8x288xf32> -> vector<8x288xf32>
    %139 = arith.addf %134, %138 : vector<8x288xf32>
    %c40_109 = arith.constant 40 : index
    %c0_110 = arith.constant 0 : index
    %140 = vector.load %arg12[%c40_109, %c0_110] : memref<72x8xbf16, #tpu.memory_space<vmem>>, vector<8x8xbf16>
    %c0_111 = arith.constant 0 : index
    %c20_112 = arith.constant 20 : index
    %141 = vector.load %arg48[%c0_111, %c20_112] : memref<8x342xf32, #tpu.memory_space<vmem>>, vector<8x288xf32>
    %142 = arith.truncf %141 : vector<8x288xf32> to vector<8x288xbf16>
    %cst_113 = arith.constant dense<0.000000e+00> : vector<8x288xf32>
    %143 = tpu.matmul %140, %142, %cst_113 {dimension_numbers = #tpu.dot_dimension_numbers<[1], [0], [0], [1], [0, 0, 1, 1], [], []>} : vector<8x8xbf16>, vector<8x288xbf16>, vector<8x288xf32> -> vector<8x288xf32>
    %144 = arith.addf %139, %143 : vector<8x288xf32>
    %c48_114 = arith.constant 48 : index
    %c0_115 = arith.constant 0 : index
    %145 = vector.load %arg12[%c48_114, %c0_115] : memref<72x8xbf16, #tpu.memory_space<vmem>>, vector<8x8xbf16>
    %c0_116 = arith.constant 0 : index
    %c36_117 = arith.constant 36 : index
    %146 = vector.load %arg48[%c0_116, %c36_117] : memref<8x342xf32, #tpu.memory_space<vmem>>, vector<8x288xf32>
    %147 = arith.truncf %146 : vector<8x288xf32> to vector<8x288xbf16>
    %cst_118 = arith.constant dense<0.000000e+00> : vector<8x288xf32>
    %148 = tpu.matmul %145, %147, %cst_118 {dimension_numbers = #tpu.dot_dimension_numbers<[1], [0], [0], [1], [0, 0, 1, 1], [], []>} : vector<8x8xbf16>, vector<8x288xbf16>, vector<8x288xf32> -> vector<8x288xf32>
    %149 = arith.addf %144, %148 : vector<8x288xf32>
    %c56_119 = arith.constant 56 : index
    %c0_120 = arith.constant 0 : index
    %150 = vector.load %arg12[%c56_119, %c0_120] : memref<72x8xbf16, #tpu.memory_space<vmem>>, vector<8x8xbf16>
    %c0_121 = arith.constant 0 : index
    %c37_122 = arith.constant 37 : index
    %151 = vector.load %arg48[%c0_121, %c37_122] : memref<8x342xf32, #tpu.memory_space<vmem>>, vector<8x288xf32>
    %152 = arith.truncf %151 : vector<8x288xf32> to vector<8x288xbf16>
    %cst_123 = arith.constant dense<0.000000e+00> : vector<8x288xf32>
    %153 = tpu.matmul %150, %152, %cst_123 {dimension_numbers = #tpu.dot_dimension_numbers<[1], [0], [0], [1], [0, 0, 1, 1], [], []>} : vector<8x8xbf16>, vector<8x288xbf16>, vector<8x288xf32> -> vector<8x288xf32>
    %154 = arith.addf %149, %153 : vector<8x288xf32>
    %c64_124 = arith.constant 64 : index
    %c0_125 = arith.constant 0 : index
    %155 = vector.load %arg12[%c64_124, %c0_125] : memref<72x8xbf16, #tpu.memory_space<vmem>>, vector<8x8xbf16>
    %c0_126 = arith.constant 0 : index
    %c38_127 = arith.constant 38 : index
    %156 = vector.load %arg48[%c0_126, %c38_127] : memref<8x342xf32, #tpu.memory_space<vmem>>, vector<8x288xf32>
    %157 = arith.truncf %156 : vector<8x288xf32> to vector<8x288xbf16>
    %cst_128 = arith.constant dense<0.000000e+00> : vector<8x288xf32>
    %158 = tpu.matmul %155, %157, %cst_128 {dimension_numbers = #tpu.dot_dimension_numbers<[1], [0], [0], [1], [0, 0, 1, 1], [], []>} : vector<8x8xbf16>, vector<8x288xbf16>, vector<8x288xf32> -> vector<8x288xf32>
    %159 = arith.addf %154, %158 : vector<8x288xf32>
    %c0_129 = arith.constant 0 : index
    %c0_130 = arith.constant 0 : index
    %160 = vector.load %arg13[%c0_129, %c0_130] : memref<8x1xf32, #tpu.memory_space<vmem>>, vector<8x1xf32>
    %161 = vector.broadcast %160 : vector<8x1xf32> to vector<8x288xf32>
    %162 = arith.mulf %159, %161 : vector<8x288xf32>
    %c0_131 = arith.constant 0 : index
    %c0_132 = arith.constant 0 : index
    %163 = vector.load %arg14[%c0_131, %c0_132] : memref<8x1xf32, #tpu.memory_space<vmem>>, vector<8x1xf32>
    %164 = vector.broadcast %163 : vector<8x1xf32> to vector<8x288xf32>
    %165 = arith.addf %162, %164 : vector<8x288xf32>
    %166 = arith.addf %165, %113 : vector<8x288xf32>
    %cst_133 = arith.constant 0.000000e+00 : f32
    %167 = vector.broadcast %cst_133 : f32 to vector<8x288xf32>
    %168 = arith.maximumf %166, %167 : vector<8x288xf32>
    %c0_134 = arith.constant 0 : index
    %c0_135 = arith.constant 0 : index
    %169 = vector.load %arg4[%c0_134, %c0_135] : memref<1x288xf32, #tpu.memory_space<vmem>>, vector<1x288xf32>
    %170 = vector.broadcast %169 : vector<1x288xf32> to vector<8x288xf32>
    %171 = arith.mulf %168, %170 : vector<8x288xf32>
    %c0_136 = arith.constant 0 : index
    %c19_137 = arith.constant 19 : index
    %172 = vector.load %arg47[%c0_136, %c19_137] : memref<8x342xf32, #tpu.memory_space<vmem>>, vector<8x288xf32>
    tpu.vector_store %arg47[%c0_136, %c19_137], %171 {strides = array<i32>} : memref<8x342xf32, #tpu.memory_space<vmem>>, vector<8x288xf32>,
    %c0_138 = arith.constant 0 : index
    %c0_139 = arith.constant 0 : index
    %173 = vector.load %arg47[%c0_138, %c0_139] : memref<8x342xf32, #tpu.memory_space<vmem>>, vector<8x288xf32>
    %c0_140 = arith.constant 0 : index
    %c1_141 = arith.constant 1 : index
    %174 = vector.load %arg47[%c0_140, %c1_141] : memref<8x342xf32, #tpu.memory_space<vmem>>, vector<8x288xf32>
    %175 = arith.maximumf %173, %174 : vector<8x288xf32>
    %c0_142 = arith.constant 0 : index
    %c18_143 = arith.constant 18 : index
    %176 = vector.load %arg47[%c0_142, %c18_143] : memref<8x342xf32, #tpu.memory_space<vmem>>, vector<8x288xf32>
    %c0_144 = arith.constant 0 : index
    %c19_145 = arith.constant 19 : index
    %177 = vector.load %arg47[%c0_144, %c19_145] : memref<8x342xf32, #tpu.memory_space<vmem>>, vector<8x288xf32>
    %178 = arith.maximumf %176, %177 : vector<8x288xf32>
    %179 = arith.maximumf %175, %178 : vector<8x288xf32>
    %c0_146 = arith.constant 0 : index
    %c0_147 = arith.constant 0 : index
    %180 = vector.load %arg2[%c0_146, %c0_147] : memref<288x110xf32, #tpu.memory_space<vmem>>, vector<288x110xf32>
    %cst_148 = arith.constant dense<0.000000e+00> : vector<8x110xf32>
    %181 = tpu.matmul %179, %180, %cst_148 {dimension_numbers = #tpu.dot_dimension_numbers<[1], [0], [0], [1], [0, 0, 1, 1], [], []>} : vector<8x288xf32>, vector<288x110xf32>, vector<8x110xf32> -> vector<8x110xf32>
    %c0_149 = arith.constant 0 : index
    %c0_150 = arith.constant 0 : index
    %182 = vector.load %arg51[%c0_149, %c0_150] : memref<8x110xf32, #tpu.memory_space<vmem>>, vector<8x110xf32>
    tpu.vector_store %arg51[%c0_149, %c0_150], %181 {strides = array<i32>} : memref<8x110xf32, #tpu.memory_space<vmem>>, vector<8x110xf32>,
    %cst_151 = arith.constant 0.000000e+00 : f32
    %183 = vector.broadcast %cst_151 : f32 to vector<16x80xf32>
    %c0_152 = arith.constant 0 : index
    %c0_153 = arith.constant 0 : index
    %184 = vector.load %arg18[%c0_152, %c0_153] : memref<144x8xbf16, #tpu.memory_space<vmem>>, vector<16x8xbf16>
    %c0_154 = arith.constant 0 : index
    %c0_155 = arith.constant 0 : index
    %185 = vector.load %arg51[%c0_154, %c0_155] : memref<8x110xf32, #tpu.memory_space<vmem>>, vector<8x80xf32>
    %186 = arith.truncf %185 : vector<8x80xf32> to vector<8x80xbf16>
    %cst_156 = arith.constant dense<0.000000e+00> : vector<16x80xf32>
    %187 = tpu.matmul %184, %186, %cst_156 {dimension_numbers = #tpu.dot_dimension_numbers<[1], [0], [0], [1], [0, 0, 1, 1], [], []>} : vector<16x8xbf16>, vector<8x80xbf16>, vector<16x80xf32> -> vector<16x80xf32>
    %188 = arith.addf %183, %187 : vector<16x80xf32>
    %c16_157 = arith.constant 16 : index
    %c0_158 = arith.constant 0 : index
    %189 = vector.load %arg18[%c16_157, %c0_158] : memref<144x8xbf16, #tpu.memory_space<vmem>>, vector<16x8xbf16>
    %c0_159 = arith.constant 0 : index
    %c1_160 = arith.constant 1 : index
    %190 = vector.load %arg51[%c0_159, %c1_160] : memref<8x110xf32, #tpu.memory_space<vmem>>, vector<8x80xf32>
    %191 = arith.truncf %190 : vector<8x80xf32> to vector<8x80xbf16>
    %cst_161 = arith.constant dense<0.000000e+00> : vector<16x80xf32>
    %192 = tpu.matmul %189, %191, %cst_161 {dimension_numbers = #tpu.dot_dimension_numbers<[1], [0], [0], [1], [0, 0, 1, 1], [], []>} : vector<16x8xbf16>, vector<8x80xbf16>, vector<16x80xf32> -> vector<16x80xf32>
    %193 = arith.addf %188, %192 : vector<16x80xf32>
    %c32_162 = arith.constant 32 : index
    %c0_163 = arith.constant 0 : index
    %194 = vector.load %arg18[%c32_162, %c0_163] : memref<144x8xbf16, #tpu.memory_space<vmem>>, vector<16x8xbf16>
    %c0_164 = arith.constant 0 : index
    %c2_165 = arith.constant 2 : index
    %195 = vector.load %arg51[%c0_164, %c2_165] : memref<8x110xf32, #tpu.memory_space<vmem>>, vector<8x80xf32>
    %196 = arith.truncf %195 : vector<8x80xf32> to vector<8x80xbf16>
    %cst_166 = arith.constant dense<0.000000e+00> : vector<16x80xf32>
    %197 = tpu.matmul %194, %196, %cst_166 {dimension_numbers = #tpu.dot_dimension_numbers<[1], [0], [0], [1], [0, 0, 1, 1], [], []>} : vector<16x8xbf16>, vector<8x80xbf16>, vector<16x80xf32> -> vector<16x80xf32>
    %198 = arith.addf %193, %197 : vector<16x80xf32>
    %c48_167 = arith.constant 48 : index
    %c0_168 = arith.constant 0 : index
    %199 = vector.load %arg18[%c48_167, %c0_168] : memref<144x8xbf16, #tpu.memory_space<vmem>>, vector<16x8xbf16>
    %c0_169 = arith.constant 0 : index
    %c10 = arith.constant 10 : index
    %200 = vector.load %arg51[%c0_169, %c10] : memref<8x110xf32, #tpu.memory_space<vmem>>, vector<8x80xf32>
    %201 = arith.truncf %200 : vector<8x80xf32> to vector<8x80xbf16>
    %cst_170 = arith.constant dense<0.000000e+00> : vector<16x80xf32>
    %202 = tpu.matmul %199, %201, %cst_170 {dimension_numbers = #tpu.dot_dimension_numbers<[1], [0], [0], [1], [0, 0, 1, 1], [], []>} : vector<16x8xbf16>, vector<8x80xbf16>, vector<16x80xf32> -> vector<16x80xf32>
    %203 = arith.addf %198, %202 : vector<16x80xf32>
    %c64_171 = arith.constant 64 : index
    %c0_172 = arith.constant 0 : index
    %204 = vector.load %arg18[%c64_171, %c0_172] : memref<144x8xbf16, #tpu.memory_space<vmem>>, vector<16x8xbf16>
    %c0_173 = arith.constant 0 : index
    %c11 = arith.constant 11 : index
    %205 = vector.load %arg51[%c0_173, %c11] : memref<8x110xf32, #tpu.memory_space<vmem>>, vector<8x80xf32>
    %206 = arith.truncf %205 : vector<8x80xf32> to vector<8x80xbf16>
    %cst_174 = arith.constant dense<0.000000e+00> : vector<16x80xf32>
    %207 = tpu.matmul %204, %206, %cst_174 {dimension_numbers = #tpu.dot_dimension_numbers<[1], [0], [0], [1], [0, 0, 1, 1], [], []>} : vector<16x8xbf16>, vector<8x80xbf16>, vector<16x80xf32> -> vector<16x80xf32>
    %208 = arith.addf %203, %207 : vector<16x80xf32>
    %c80 = arith.constant 80 : index
    %c0_175 = arith.constant 0 : index
    %209 = vector.load %arg18[%c80, %c0_175] : memref<144x8xbf16, #tpu.memory_space<vmem>>, vector<16x8xbf16>
    %c0_176 = arith.constant 0 : index
    %c12 = arith.constant 12 : index
    %210 = vector.load %arg51[%c0_176, %c12] : memref<8x110xf32, #tpu.memory_space<vmem>>, vector<8x80xf32>
    %211 = arith.truncf %210 : vector<8x80xf32> to vector<8x80xbf16>
    %cst_177 = arith.constant dense<0.000000e+00> : vector<16x80xf32>
    %212 = tpu.matmul %209, %211, %cst_177 {dimension_numbers = #tpu.dot_dimension_numbers<[1], [0], [0], [1], [0, 0, 1, 1], [], []>} : vector<16x8xbf16>, vector<8x80xbf16>, vector<16x80xf32> -> vector<16x80xf32>
    %213 = arith.addf %208, %212 : vector<16x80xf32>
    %c96 = arith.constant 96 : index
    %c0_178 = arith.constant 0 : index
    %214 = vector.load %arg18[%c96, %c0_178] : memref<144x8xbf16, #tpu.memory_space<vmem>>, vector<16x8xbf16>
    %c0_179 = arith.constant 0 : index
    %c20_180 = arith.constant 20 : index
    %215 = vector.load %arg51[%c0_179, %c20_180] : memref<8x110xf32, #tpu.memory_space<vmem>>, vector<8x80xf32>
    %216 = arith.truncf %215 : vector<8x80xf32> to vector<8x80xbf16>
    %cst_181 = arith.constant dense<0.000000e+00> : vector<16x80xf32>
    %217 = tpu.matmul %214, %216, %cst_181 {dimension_numbers = #tpu.dot_dimension_numbers<[1], [0], [0], [1], [0, 0, 1, 1], [], []>} : vector<16x8xbf16>, vector<8x80xbf16>, vector<16x80xf32> -> vector<16x80xf32>
    %218 = arith.addf %213, %217 : vector<16x80xf32>
    %c112 = arith.constant 112 : index
    %c0_182 = arith.constant 0 : index
    %219 = vector.load %arg18[%c112, %c0_182] : memref<144x8xbf16, #tpu.memory_space<vmem>>, vector<16x8xbf16>
    %c0_183 = arith.constant 0 : index
    %c21 = arith.constant 21 : index
    %220 = vector.load %arg51[%c0_183, %c21] : memref<8x110xf32, #tpu.memory_space<vmem>>, vector<8x80xf32>
    %221 = arith.truncf %220 : vector<8x80xf32> to vector<8x80xbf16>
    %cst_184 = arith.constant dense<0.000000e+00> : vector<16x80xf32>
    %222 = tpu.matmul %219, %221, %cst_184 {dimension_numbers = #tpu.dot_dimension_numbers<[1], [0], [0], [1], [0, 0, 1, 1], [], []>} : vector<16x8xbf16>, vector<8x80xbf16>, vector<16x80xf32> -> vector<16x80xf32>
    %223 = arith.addf %218, %222 : vector<16x80xf32>
    %c128 = arith.constant 128 : index
    %c0_185 = arith.constant 0 : index
    %224 = vector.load %arg18[%c128, %c0_185] : memref<144x8xbf16, #tpu.memory_space<vmem>>, vector<16x8xbf16>
    %c0_186 = arith.constant 0 : index
    %c22 = arith.constant 22 : index
    %225 = vector.load %arg51[%c0_186, %c22] : memref<8x110xf32, #tpu.memory_space<vmem>>, vector<8x80xf32>
    %226 = arith.truncf %225 : vector<8x80xf32> to vector<8x80xbf16>
    %cst_187 = arith.constant dense<0.000000e+00> : vector<16x80xf32>
    %227 = tpu.matmul %224, %226, %cst_187 {dimension_numbers = #tpu.dot_dimension_numbers<[1], [0], [0], [1], [0, 0, 1, 1], [], []>} : vector<16x8xbf16>, vector<8x80xbf16>, vector<16x80xf32> -> vector<16x80xf32>
    %228 = arith.addf %223, %227 : vector<16x80xf32>
    %c0_188 = arith.constant 0 : index
    %c0_189 = arith.constant 0 : index
    %229 = vector.load %arg19[%c0_188, %c0_189] : memref<16x1xf32, #tpu.memory_space<vmem>>, vector<16x1xf32>
    %230 = vector.broadcast %229 : vector<16x1xf32> to vector<16x80xf32>
    %231 = arith.mulf %228, %230 : vector<16x80xf32>
    %c0_190 = arith.constant 0 : index
    %c0_191 = arith.constant 0 : index
    %232 = vector.load %arg20[%c0_190, %c0_191] : memref<16x1xf32, #tpu.memory_space<vmem>>, vector<16x1xf32>
    %233 = vector.broadcast %232 : vector<16x1xf32> to vector<16x80xf32>
    %234 = arith.addf %231, %233 : vector<16x80xf32>
    %cst_192 = arith.constant 0.000000e+00 : f32
    %235 = vector.broadcast %cst_192 : f32 to vector<16x80xf32>
    %236 = arith.maximumf %234, %235 : vector<16x80xf32>
    %c0_193 = arith.constant 0 : index
    %c0_194 = arith.constant 0 : index
    %237 = vector.load %arg5[%c0_193, %c0_194] : memref<1x80xf32, #tpu.memory_space<vmem>>, vector<1x80xf32>
    %238 = vector.broadcast %237 : vector<1x80xf32> to vector<16x80xf32>
    %239 = arith.mulf %236, %238 : vector<16x80xf32>
    %c0_195 = arith.constant 0 : index
    %c11_196 = arith.constant 11 : index
    %240 = vector.load %arg52[%c0_195, %c11_196] : memref<16x110xf32, #tpu.memory_space<vmem>>, vector<16x80xf32>
    tpu.vector_store %arg52[%c0_195, %c11_196], %239 {strides = array<i32>} : memref<16x110xf32, #tpu.memory_space<vmem>>, vector<16x80xf32>,
    %cst_197 = arith.constant 0.000000e+00 : f32
    %241 = vector.broadcast %cst_197 : f32 to vector<16x80xf32>
    %c0_198 = arith.constant 0 : index
    %c0_199 = arith.constant 0 : index
    %242 = vector.load %arg24[%c0_198, %c0_199] : memref<16x8xbf16, #tpu.memory_space<vmem>>, vector<16x8xbf16>
    %c0_200 = arith.constant 0 : index
    %c11_201 = arith.constant 11 : index
    %243 = vector.load %arg51[%c0_200, %c11_201] : memref<8x110xf32, #tpu.memory_space<vmem>>, vector<8x80xf32>
    %244 = arith.truncf %243 : vector<8x80xf32> to vector<8x80xbf16>
    %cst_202 = arith.constant dense<0.000000e+00> : vector<16x80xf32>
    %245 = tpu.matmul %242, %244, %cst_202 {dimension_numbers = #tpu.dot_dimension_numbers<[1], [0], [0], [1], [0, 0, 1, 1], [], []>} : vector<16x8xbf16>, vector<8x80xbf16>, vector<16x80xf32> -> vector<16x80xf32>
    %246 = arith.addf %241, %245 : vector<16x80xf32>
    %c0_203 = arith.constant 0 : index
    %c0_204 = arith.constant 0 : index
    %247 = vector.load %arg25[%c0_203, %c0_204] : memref<16x1xf32, #tpu.memory_space<vmem>>, vector<16x1xf32>
    %248 = vector.broadcast %247 : vector<16x1xf32> to vector<16x80xf32>
    %249 = arith.mulf %246, %248 : vector<16x80xf32>
    %c0_205 = arith.constant 0 : index
    %c0_206 = arith.constant 0 : index
    %250 = vector.load %arg26[%c0_205, %c0_206] : memref<16x1xf32, #tpu.memory_space<vmem>>, vector<16x1xf32>
    %251 = vector.broadcast %250 : vector<16x1xf32> to vector<16x80xf32>
    %252 = arith.addf %249, %251 : vector<16x80xf32>
    %cst_207 = arith.constant 0.000000e+00 : f32
    %253 = vector.broadcast %cst_207 : f32 to vector<16x80xf32>
    %c0_208 = arith.constant 0 : index
    %c0_209 = arith.constant 0 : index
    %254 = vector.load %arg21[%c0_208, %c0_209] : memref<144x16xbf16, #tpu.memory_space<vmem>>, vector<16x16xbf16>
    %c0_210 = arith.constant 0 : index
    %c0_211 = arith.constant 0 : index
    %255 = vector.load %arg52[%c0_210, %c0_211] : memref<16x110xf32, #tpu.memory_space<vmem>>, vector<16x80xf32>
    %256 = arith.truncf %255 : vector<16x80xf32> to vector<16x80xbf16>
    %cst_212 = arith.constant dense<0.000000e+00> : vector<16x80xf32>
    %257 = tpu.matmul %254, %256, %cst_212 {dimension_numbers = #tpu.dot_dimension_numbers<[1], [0], [0], [1], [0, 0, 1, 1], [], []>} : vector<16x16xbf16>, vector<16x80xbf16>, vector<16x80xf32> -> vector<16x80xf32>
    %258 = arith.addf %253, %257 : vector<16x80xf32>
    %c16_213 = arith.constant 16 : index
    %c0_214 = arith.constant 0 : index
    %259 = vector.load %arg21[%c16_213, %c0_214] : memref<144x16xbf16, #tpu.memory_space<vmem>>, vector<16x16xbf16>
    %c0_215 = arith.constant 0 : index
    %c1_216 = arith.constant 1 : index
    %260 = vector.load %arg52[%c0_215, %c1_216] : memref<16x110xf32, #tpu.memory_space<vmem>>, vector<16x80xf32>
    %261 = arith.truncf %260 : vector<16x80xf32> to vector<16x80xbf16>
    %cst_217 = arith.constant dense<0.000000e+00> : vector<16x80xf32>
    %262 = tpu.matmul %259, %261, %cst_217 {dimension_numbers = #tpu.dot_dimension_numbers<[1], [0], [0], [1], [0, 0, 1, 1], [], []>} : vector<16x16xbf16>, vector<16x80xbf16>, vector<16x80xf32> -> vector<16x80xf32>
    %263 = arith.addf %258, %262 : vector<16x80xf32>
    %c32_218 = arith.constant 32 : index
    %c0_219 = arith.constant 0 : index
    %264 = vector.load %arg21[%c32_218, %c0_219] : memref<144x16xbf16, #tpu.memory_space<vmem>>, vector<16x16xbf16>
    %c0_220 = arith.constant 0 : index
    %c2_221 = arith.constant 2 : index
    %265 = vector.load %arg52[%c0_220, %c2_221] : memref<16x110xf32, #tpu.memory_space<vmem>>, vector<16x80xf32>
    %266 = arith.truncf %265 : vector<16x80xf32> to vector<16x80xbf16>
    %cst_222 = arith.constant dense<0.000000e+00> : vector<16x80xf32>
    %267 = tpu.matmul %264, %266, %cst_222 {dimension_numbers = #tpu.dot_dimension_numbers<[1], [0], [0], [1], [0, 0, 1, 1], [], []>} : vector<16x16xbf16>, vector<16x80xbf16>, vector<16x80xf32> -> vector<16x80xf32>
    %268 = arith.addf %263, %267 : vector<16x80xf32>
    %c48_223 = arith.constant 48 : index
    %c0_224 = arith.constant 0 : index
    %269 = vector.load %arg21[%c48_223, %c0_224] : memref<144x16xbf16, #tpu.memory_space<vmem>>, vector<16x16xbf16>
    %c0_225 = arith.constant 0 : index
    %c10_226 = arith.constant 10 : index
    %270 = vector.load %arg52[%c0_225, %c10_226] : memref<16x110xf32, #tpu.memory_space<vmem>>, vector<16x80xf32>
    %271 = arith.truncf %270 : vector<16x80xf32> to vector<16x80xbf16>
    %cst_227 = arith.constant dense<0.000000e+00> : vector<16x80xf32>
    %272 = tpu.matmul %269, %271, %cst_227 {dimension_numbers = #tpu.dot_dimension_numbers<[1], [0], [0], [1], [0, 0, 1, 1], [], []>} : vector<16x16xbf16>, vector<16x80xbf16>, vector<16x80xf32> -> vector<16x80xf32>
    %273 = arith.addf %268, %272 : vector<16x80xf32>
    %c64_228 = arith.constant 64 : index
    %c0_229 = arith.constant 0 : index
    %274 = vector.load %arg21[%c64_228, %c0_229] : memref<144x16xbf16, #tpu.memory_space<vmem>>, vector<16x16xbf16>
    %c0_230 = arith.constant 0 : index
    %c11_231 = arith.constant 11 : index
    %275 = vector.load %arg52[%c0_230, %c11_231] : memref<16x110xf32, #tpu.memory_space<vmem>>, vector<16x80xf32>
    %276 = arith.truncf %275 : vector<16x80xf32> to vector<16x80xbf16>
    %cst_232 = arith.constant dense<0.000000e+00> : vector<16x80xf32>
    %277 = tpu.matmul %274, %276, %cst_232 {dimension_numbers = #tpu.dot_dimension_numbers<[1], [0], [0], [1], [0, 0, 1, 1], [], []>} : vector<16x16xbf16>, vector<16x80xbf16>, vector<16x80xf32> -> vector<16x80xf32>
    %278 = arith.addf %273, %277 : vector<16x80xf32>
    %c80_233 = arith.constant 80 : index
    %c0_234 = arith.constant 0 : index
    %279 = vector.load %arg21[%c80_233, %c0_234] : memref<144x16xbf16, #tpu.memory_space<vmem>>, vector<16x16xbf16>
    %c0_235 = arith.constant 0 : index
    %c12_236 = arith.constant 12 : index
    %280 = vector.load %arg52[%c0_235, %c12_236] : memref<16x110xf32, #tpu.memory_space<vmem>>, vector<16x80xf32>
    %281 = arith.truncf %280 : vector<16x80xf32> to vector<16x80xbf16>
    %cst_237 = arith.constant dense<0.000000e+00> : vector<16x80xf32>
    %282 = tpu.matmul %279, %281, %cst_237 {dimension_numbers = #tpu.dot_dimension_numbers<[1], [0], [0], [1], [0, 0, 1, 1], [], []>} : vector<16x16xbf16>, vector<16x80xbf16>, vector<16x80xf32> -> vector<16x80xf32>
    %283 = arith.addf %278, %282 : vector<16x80xf32>
    %c96_238 = arith.constant 96 : index
    %c0_239 = arith.constant 0 : index
    %284 = vector.load %arg21[%c96_238, %c0_239] : memref<144x16xbf16, #tpu.memory_space<vmem>>, vector<16x16xbf16>
    %c0_240 = arith.constant 0 : index
    %c20_241 = arith.constant 20 : index
    %285 = vector.load %arg52[%c0_240, %c20_241] : memref<16x110xf32, #tpu.memory_space<vmem>>, vector<16x80xf32>
    %286 = arith.truncf %285 : vector<16x80xf32> to vector<16x80xbf16>
    %cst_242 = arith.constant dense<0.000000e+00> : vector<16x80xf32>
    %287 = tpu.matmul %284, %286, %cst_242 {dimension_numbers = #tpu.dot_dimension_numbers<[1], [0], [0], [1], [0, 0, 1, 1], [], []>} : vector<16x16xbf16>, vector<16x80xbf16>, vector<16x80xf32> -> vector<16x80xf32>
    %288 = arith.addf %283, %287 : vector<16x80xf32>
    %c112_243 = arith.constant 112 : index
    %c0_244 = arith.constant 0 : index
    %289 = vector.load %arg21[%c112_243, %c0_244] : memref<144x16xbf16, #tpu.memory_space<vmem>>, vector<16x16xbf16>
    %c0_245 = arith.constant 0 : index
    %c21_246 = arith.constant 21 : index
    %290 = vector.load %arg52[%c0_245, %c21_246] : memref<16x110xf32, #tpu.memory_space<vmem>>, vector<16x80xf32>
    %291 = arith.truncf %290 : vector<16x80xf32> to vector<16x80xbf16>
    %cst_247 = arith.constant dense<0.000000e+00> : vector<16x80xf32>
    %292 = tpu.matmul %289, %291, %cst_247 {dimension_numbers = #tpu.dot_dimension_numbers<[1], [0], [0], [1], [0, 0, 1, 1], [], []>} : vector<16x16xbf16>, vector<16x80xbf16>, vector<16x80xf32> -> vector<16x80xf32>
    %293 = arith.addf %288, %292 : vector<16x80xf32>
    %c128_248 = arith.constant 128 : index
    %c0_249 = arith.constant 0 : index
    %294 = vector.load %arg21[%c128_248, %c0_249] : memref<144x16xbf16, #tpu.memory_space<vmem>>, vector<16x16xbf16>
    %c0_250 = arith.constant 0 : index
    %c22_251 = arith.constant 22 : index
    %295 = vector.load %arg52[%c0_250, %c22_251] : memref<16x110xf32, #tpu.memory_space<vmem>>, vector<16x80xf32>
    %296 = arith.truncf %295 : vector<16x80xf32> to vector<16x80xbf16>
    %cst_252 = arith.constant dense<0.000000e+00> : vector<16x80xf32>
    %297 = tpu.matmul %294, %296, %cst_252 {dimension_numbers = #tpu.dot_dimension_numbers<[1], [0], [0], [1], [0, 0, 1, 1], [], []>} : vector<16x16xbf16>, vector<16x80xbf16>, vector<16x80xf32> -> vector<16x80xf32>
    %298 = arith.addf %293, %297 : vector<16x80xf32>
    %c0_253 = arith.constant 0 : index
    %c0_254 = arith.constant 0 : index
    %299 = vector.load %arg22[%c0_253, %c0_254] : memref<16x1xf32, #tpu.memory_space<vmem>>, vector<16x1xf32>
    %300 = vector.broadcast %299 : vector<16x1xf32> to vector<16x80xf32>
    %301 = arith.mulf %298, %300 : vector<16x80xf32>
    %c0_255 = arith.constant 0 : index
    %c0_256 = arith.constant 0 : index
    %302 = vector.load %arg23[%c0_255, %c0_256] : memref<16x1xf32, #tpu.memory_space<vmem>>, vector<16x1xf32>
    %303 = vector.broadcast %302 : vector<16x1xf32> to vector<16x80xf32>
    %304 = arith.addf %301, %303 : vector<16x80xf32>
    %305 = arith.addf %304, %252 : vector<16x80xf32>
    %cst_257 = arith.constant 0.000000e+00 : f32
    %306 = vector.broadcast %cst_257 : f32 to vector<16x80xf32>
    %307 = arith.maximumf %305, %306 : vector<16x80xf32>
    %cst_258 = arith.constant 0.000000e+00 : f32
    %308 = vector.broadcast %cst_258 : f32 to vector<8x342xf32>
    %c0_259 = arith.constant 0 : index
    %c0_260 = arith.constant 0 : index
    %309 = vector.load %arg6[%c0_259, %c0_260] : memref<32x16xbf16, #tpu.memory_space<vmem>>, vector<8x16xbf16>
    %310 = arith.truncf %307 : vector<16x80xf32> to vector<16x80xbf16>
    %cst_261 = arith.constant dense<0.000000e+00> : vector<8x80xf32>
    %311 = tpu.matmul %309, %310, %cst_261 {dimension_numbers = #tpu.dot_dimension_numbers<[1], [0], [0], [1], [0, 0, 1, 1], [], []>} : vector<8x16xbf16>, vector<16x80xbf16>, vector<8x80xf32> -> vector<8x80xf32>
    %c0_262 = arith.constant 0 : index
    %c0_263 = arith.constant 0 : index
    %312 = vector.load %arg7[%c0_262, %c0_263] : memref<8x1xf32, #tpu.memory_space<vmem>>, vector<8x1xf32>
    %313 = vector.broadcast %312 : vector<8x1xf32> to vector<8x80xf32>
    %314 = arith.mulf %311, %313 : vector<8x80xf32>
    %c0_264 = arith.constant 0 : index
    %c0_265 = arith.constant 0 : index
    %315 = vector.load %arg8[%c0_264, %c0_265] : memref<8x1xf32, #tpu.memory_space<vmem>>, vector<8x1xf32>
    %316 = vector.broadcast %315 : vector<8x1xf32> to vector<8x80xf32>
    %317 = arith.addf %314, %316 : vector<8x80xf32>
    %cst_266 = arith.constant 0.000000e+00 : f32
    %318 = vector.broadcast %cst_266 : f32 to vector<8x80xf32>
    %319 = arith.maximumf %317, %318 : vector<8x80xf32>
    %c0_267 = arith.constant 0 : index
    %c0_268 = arith.constant 0 : index
    %320 = vector.load %arg3[%c0_267, %c0_268] : memref<320x342xf32, #tpu.memory_space<vmem>>, vector<80x342xf32>
    %cst_269 = arith.constant dense<0.000000e+00> : vector<8x342xf32>
    %321 = tpu.matmul %319, %320, %cst_269 {dimension_numbers = #tpu.dot_dimension_numbers<[1], [0], [0], [1], [0, 0, 1, 1], [], []>} : vector<8x80xf32>, vector<80x342xf32>, vector<8x342xf32> -> vector<8x342xf32>
    %322 = arith.addf %308, %321 : vector<8x342xf32>
    %c8_270 = arith.constant 8 : index
    %c0_271 = arith.constant 0 : index
    %323 = vector.load %arg6[%c8_270, %c0_271] : memref<32x16xbf16, #tpu.memory_space<vmem>>, vector<8x16xbf16>
    %324 = arith.truncf %307 : vector<16x80xf32> to vector<16x80xbf16>
    %cst_272 = arith.constant dense<0.000000e+00> : vector<8x80xf32>
    %325 = tpu.matmul %323, %324, %cst_272 {dimension_numbers = #tpu.dot_dimension_numbers<[1], [0], [0], [1], [0, 0, 1, 1], [], []>} : vector<8x16xbf16>, vector<16x80xbf16>, vector<8x80xf32> -> vector<8x80xf32>
    %c0_273 = arith.constant 0 : index
    %c0_274 = arith.constant 0 : index
    %326 = vector.load %arg7[%c0_273, %c0_274] : memref<8x1xf32, #tpu.memory_space<vmem>>, vector<8x1xf32>
    %327 = vector.broadcast %326 : vector<8x1xf32> to vector<8x80xf32>
    %328 = arith.mulf %325, %327 : vector<8x80xf32>
    %c0_275 = arith.constant 0 : index
    %c0_276 = arith.constant 0 : index
    %329 = vector.load %arg8[%c0_275, %c0_276] : memref<8x1xf32, #tpu.memory_space<vmem>>, vector<8x1xf32>
    %330 = vector.broadcast %329 : vector<8x1xf32> to vector<8x80xf32>
    %331 = arith.addf %328, %330 : vector<8x80xf32>
    %cst_277 = arith.constant 0.000000e+00 : f32
    %332 = vector.broadcast %cst_277 : f32 to vector<8x80xf32>
    %333 = arith.maximumf %331, %332 : vector<8x80xf32>
    %c80_278 = arith.constant 80 : index
    %c0_279 = arith.constant 0 : index
    %334 = vector.load %arg3[%c80_278, %c0_279] : memref<320x342xf32, #tpu.memory_space<vmem>>, vector<80x342xf32>
    %cst_280 = arith.constant dense<0.000000e+00> : vector<8x342xf32>
    %335 = tpu.matmul %333, %334, %cst_280 {dimension_numbers = #tpu.dot_dimension_numbers<[1], [0], [0], [1], [0, 0, 1, 1], [], []>} : vector<8x80xf32>, vector<80x342xf32>, vector<8x342xf32> -> vector<8x342xf32>
    %336 = arith.addf %322, %335 : vector<8x342xf32>
    %c16_281 = arith.constant 16 : index
    %c0_282 = arith.constant 0 : index
    %337 = vector.load %arg6[%c16_281, %c0_282] : memref<32x16xbf16, #tpu.memory_space<vmem>>, vector<8x16xbf16>
    %338 = arith.truncf %307 : vector<16x80xf32> to vector<16x80xbf16>
    %cst_283 = arith.constant dense<0.000000e+00> : vector<8x80xf32>
    %339 = tpu.matmul %337, %338, %cst_283 {dimension_numbers = #tpu.dot_dimension_numbers<[1], [0], [0], [1], [0, 0, 1, 1], [], []>} : vector<8x16xbf16>, vector<16x80xbf16>, vector<8x80xf32> -> vector<8x80xf32>
    %c0_284 = arith.constant 0 : index
    %c0_285 = arith.constant 0 : index
    %340 = vector.load %arg7[%c0_284, %c0_285] : memref<8x1xf32, #tpu.memory_space<vmem>>, vector<8x1xf32>
    %341 = vector.broadcast %340 : vector<8x1xf32> to vector<8x80xf32>
    %342 = arith.mulf %339, %341 : vector<8x80xf32>
    %c0_286 = arith.constant 0 : index
    %c0_287 = arith.constant 0 : index
    %343 = vector.load %arg8[%c0_286, %c0_287] : memref<8x1xf32, #tpu.memory_space<vmem>>, vector<8x1xf32>
    %344 = vector.broadcast %343 : vector<8x1xf32> to vector<8x80xf32>
    %345 = arith.addf %342, %344 : vector<8x80xf32>
    %cst_288 = arith.constant 0.000000e+00 : f32
    %346 = vector.broadcast %cst_288 : f32 to vector<8x80xf32>
    %347 = arith.maximumf %345, %346 : vector<8x80xf32>
    %c160 = arith.constant 160 : index
    %c0_289 = arith.constant 0 : index
    %348 = vector.load %arg3[%c160, %c0_289] : memref<320x342xf32, #tpu.memory_space<vmem>>, vector<80x342xf32>
    %cst_290 = arith.constant dense<0.000000e+00> : vector<8x342xf32>
    %349 = tpu.matmul %347, %348, %cst_290 {dimension_numbers = #tpu.dot_dimension_numbers<[1], [0], [0], [1], [0, 0, 1, 1], [], []>} : vector<8x80xf32>, vector<80x342xf32>, vector<8x342xf32> -> vector<8x342xf32>
    %350 = arith.addf %336, %349 : vector<8x342xf32>
    %c24_291 = arith.constant 24 : index
    %c0_292 = arith.constant 0 : index
    %351 = vector.load %arg6[%c24_291, %c0_292] : memref<32x16xbf16, #tpu.memory_space<vmem>>, vector<8x16xbf16>
    %352 = arith.truncf %307 : vector<16x80xf32> to vector<16x80xbf16>
    %cst_293 = arith.constant dense<0.000000e+00> : vector<8x80xf32>
    %353 = tpu.matmul %351, %352, %cst_293 {dimension_numbers = #tpu.dot_dimension_numbers<[1], [0], [0], [1], [0, 0, 1, 1], [], []>} : vector<8x16xbf16>, vector<16x80xbf16>, vector<8x80xf32> -> vector<8x80xf32>
    %c0_294 = arith.constant 0 : index
    %c0_295 = arith.constant 0 : index
    %354 = vector.load %arg7[%c0_294, %c0_295] : memref<8x1xf32, #tpu.memory_space<vmem>>, vector<8x1xf32>
    %355 = vector.broadcast %354 : vector<8x1xf32> to vector<8x80xf32>
    %356 = arith.mulf %353, %355 : vector<8x80xf32>
    %c0_296 = arith.constant 0 : index
    %c0_297 = arith.constant 0 : index
    %357 = vector.load %arg8[%c0_296, %c0_297] : memref<8x1xf32, #tpu.memory_space<vmem>>, vector<8x1xf32>
    %358 = vector.broadcast %357 : vector<8x1xf32> to vector<8x80xf32>
    %359 = arith.addf %356, %358 : vector<8x80xf32>
    %cst_298 = arith.constant 0.000000e+00 : f32
    %360 = vector.broadcast %cst_298 : f32 to vector<8x80xf32>
    %361 = arith.maximumf %359, %360 : vector<8x80xf32>
    %c240 = arith.constant 240 : index
    %c0_299 = arith.constant 0 : index
    %362 = vector.load %arg3[%c240, %c0_299] : memref<320x342xf32, #tpu.memory_space<vmem>>, vector<80x342xf32>
    %cst_300 = arith.constant dense<0.000000e+00> : vector<8x342xf32>
    %363 = tpu.matmul %361, %362, %cst_300 {dimension_numbers = #tpu.dot_dimension_numbers<[1], [0], [0], [1], [0, 0, 1, 1], [], []>} : vector<8x80xf32>, vector<80x342xf32>, vector<8x342xf32> -> vector<8x342xf32>
    %364 = arith.addf %350, %363 : vector<8x342xf32>
    %c0_301 = arith.constant 0 : index
    %c0_302 = arith.constant 0 : index
    %365 = vector.load %arg49[%c0_301, %c0_302] : memref<8x342xf32, #tpu.memory_space<vmem>>, vector<8x342xf32>
    tpu.vector_store %arg49[%c0_301, %c0_302], %364 {strides = array<i32>} : memref<8x342xf32, #tpu.memory_space<vmem>>, vector<8x342xf32>,
    %cst_303 = arith.constant 0.000000e+00 : f32
    %366 = vector.broadcast %cst_303 : f32 to vector<8x288xf32>
    %c0_304 = arith.constant 0 : index
    %c0_305 = arith.constant 0 : index
    %367 = vector.load %arg27[%c0_304, %c0_305] : memref<72x16xbf16, #tpu.memory_space<vmem>>, vector<8x8xbf16>
    %c0_306 = arith.constant 0 : index
    %c0_307 = arith.constant 0 : index
    %368 = vector.load %arg49[%c0_306, %c0_307] : memref<8x342xf32, #tpu.memory_space<vmem>>, vector<8x288xf32>
    %369 = arith.truncf %368 : vector<8x288xf32> to vector<8x288xbf16>
    %cst_308 = arith.constant dense<0.000000e+00> : vector<8x288xf32>
    %370 = tpu.matmul %367, %369, %cst_308 {dimension_numbers = #tpu.dot_dimension_numbers<[1], [0], [0], [1], [0, 0, 1, 1], [], []>} : vector<8x8xbf16>, vector<8x288xbf16>, vector<8x288xf32> -> vector<8x288xf32>
    %371 = arith.addf %366, %370 : vector<8x288xf32>
    %c0_309 = arith.constant 0 : index
    %c8_310 = arith.constant 8 : index
    %372 = vector.load %arg27[%c0_309, %c8_310] : memref<72x16xbf16, #tpu.memory_space<vmem>>, vector<8x8xbf16>
    %c0_311 = arith.constant 0 : index
    %c0_312 = arith.constant 0 : index
    %373 = vector.load %arg47[%c0_311, %c0_312] : memref<8x342xf32, #tpu.memory_space<vmem>>, vector<8x288xf32>
    %374 = arith.truncf %373 : vector<8x288xf32> to vector<8x288xbf16>
    %cst_313 = arith.constant dense<0.000000e+00> : vector<8x288xf32>
    %375 = tpu.matmul %372, %374, %cst_313 {dimension_numbers = #tpu.dot_dimension_numbers<[1], [0], [0], [1], [0, 0, 1, 1], [], []>} : vector<8x8xbf16>, vector<8x288xbf16>, vector<8x288xf32> -> vector<8x288xf32>
    %376 = arith.addf %371, %375 : vector<8x288xf32>
    %c8_314 = arith.constant 8 : index
    %c0_315 = arith.constant 0 : index
    %377 = vector.load %arg27[%c8_314, %c0_315] : memref<72x16xbf16, #tpu.memory_space<vmem>>, vector<8x8xbf16>
    %c0_316 = arith.constant 0 : index
    %c1_317 = arith.constant 1 : index
    %378 = vector.load %arg49[%c0_316, %c1_317] : memref<8x342xf32, #tpu.memory_space<vmem>>, vector<8x288xf32>
    %379 = arith.truncf %378 : vector<8x288xf32> to vector<8x288xbf16>
    %cst_318 = arith.constant dense<0.000000e+00> : vector<8x288xf32>
    %380 = tpu.matmul %377, %379, %cst_318 {dimension_numbers = #tpu.dot_dimension_numbers<[1], [0], [0], [1], [0, 0, 1, 1], [], []>} : vector<8x8xbf16>, vector<8x288xbf16>, vector<8x288xf32> -> vector<8x288xf32>
    %381 = arith.addf %376, %380 : vector<8x288xf32>
    %c8_319 = arith.constant 8 : index
    %c8_320 = arith.constant 8 : index
    %382 = vector.load %arg27[%c8_319, %c8_320] : memref<72x16xbf16, #tpu.memory_space<vmem>>, vector<8x8xbf16>
    %c0_321 = arith.constant 0 : index
    %c1_322 = arith.constant 1 : index
    %383 = vector.load %arg47[%c0_321, %c1_322] : memref<8x342xf32, #tpu.memory_space<vmem>>, vector<8x288xf32>
    %384 = arith.truncf %383 : vector<8x288xf32> to vector<8x288xbf16>
    %cst_323 = arith.constant dense<0.000000e+00> : vector<8x288xf32>
    %385 = tpu.matmul %382, %384, %cst_323 {dimension_numbers = #tpu.dot_dimension_numbers<[1], [0], [0], [1], [0, 0, 1, 1], [], []>} : vector<8x8xbf16>, vector<8x288xbf16>, vector<8x288xf32> -> vector<8x288xf32>
    %386 = arith.addf %381, %385 : vector<8x288xf32>
    %c16_324 = arith.constant 16 : index
    %c0_325 = arith.constant 0 : index
    %387 = vector.load %arg27[%c16_324, %c0_325] : memref<72x16xbf16, #tpu.memory_space<vmem>>, vector<8x8xbf16>
    %c0_326 = arith.constant 0 : index
    %c2_327 = arith.constant 2 : index
    %388 = vector.load %arg49[%c0_326, %c2_327] : memref<8x342xf32, #tpu.memory_space<vmem>>, vector<8x288xf32>
    %389 = arith.truncf %388 : vector<8x288xf32> to vector<8x288xbf16>
    %cst_328 = arith.constant dense<0.000000e+00> : vector<8x288xf32>
    %390 = tpu.matmul %387, %389, %cst_328 {dimension_numbers = #tpu.dot_dimension_numbers<[1], [0], [0], [1], [0, 0, 1, 1], [], []>} : vector<8x8xbf16>, vector<8x288xbf16>, vector<8x288xf32> -> vector<8x288xf32>
    %391 = arith.addf %386, %390 : vector<8x288xf32>
    %c16_329 = arith.constant 16 : index
    %c8_330 = arith.constant 8 : index
    %392 = vector.load %arg27[%c16_329, %c8_330] : memref<72x16xbf16, #tpu.memory_space<vmem>>, vector<8x8xbf16>
    %c0_331 = arith.constant 0 : index
    %c2_332 = arith.constant 2 : index
    %393 = vector.load %arg47[%c0_331, %c2_332] : memref<8x342xf32, #tpu.memory_space<vmem>>, vector<8x288xf32>
    %394 = arith.truncf %393 : vector<8x288xf32> to vector<8x288xbf16>
    %cst_333 = arith.constant dense<0.000000e+00> : vector<8x288xf32>
    %395 = tpu.matmul %392, %394, %cst_333 {dimension_numbers = #tpu.dot_dimension_numbers<[1], [0], [0], [1], [0, 0, 1, 1], [], []>} : vector<8x8xbf16>, vector<8x288xbf16>, vector<8x288xf32> -> vector<8x288xf32>
    %396 = arith.addf %391, %395 : vector<8x288xf32>
    %c24_334 = arith.constant 24 : index
    %c0_335 = arith.constant 0 : index
    %397 = vector.load %arg27[%c24_334, %c0_335] : memref<72x16xbf16, #tpu.memory_space<vmem>>, vector<8x8xbf16>
    %c0_336 = arith.constant 0 : index
    %c18_337 = arith.constant 18 : index
    %398 = vector.load %arg49[%c0_336, %c18_337] : memref<8x342xf32, #tpu.memory_space<vmem>>, vector<8x288xf32>
    %399 = arith.truncf %398 : vector<8x288xf32> to vector<8x288xbf16>
    %cst_338 = arith.constant dense<0.000000e+00> : vector<8x288xf32>
    %400 = tpu.matmul %397, %399, %cst_338 {dimension_numbers = #tpu.dot_dimension_numbers<[1], [0], [0], [1], [0, 0, 1, 1], [], []>} : vector<8x8xbf16>, vector<8x288xbf16>, vector<8x288xf32> -> vector<8x288xf32>
    %401 = arith.addf %396, %400 : vector<8x288xf32>
    %c24_339 = arith.constant 24 : index
    %c8_340 = arith.constant 8 : index
    %402 = vector.load %arg27[%c24_339, %c8_340] : memref<72x16xbf16, #tpu.memory_space<vmem>>, vector<8x8xbf16>
    %c0_341 = arith.constant 0 : index
    %c18_342 = arith.constant 18 : index
    %403 = vector.load %arg47[%c0_341, %c18_342] : memref<8x342xf32, #tpu.memory_space<vmem>>, vector<8x288xf32>
    %404 = arith.truncf %403 : vector<8x288xf32> to vector<8x288xbf16>
    %cst_343 = arith.constant dense<0.000000e+00> : vector<8x288xf32>
    %405 = tpu.matmul %402, %404, %cst_343 {dimension_numbers = #tpu.dot_dimension_numbers<[1], [0], [0], [1], [0, 0, 1, 1], [], []>} : vector<8x8xbf16>, vector<8x288xbf16>, vector<8x288xf32> -> vector<8x288xf32>
    %406 = arith.addf %401, %405 : vector<8x288xf32>
    %c32_344 = arith.constant 32 : index
    %c0_345 = arith.constant 0 : index
    %407 = vector.load %arg27[%c32_344, %c0_345] : memref<72x16xbf16, #tpu.memory_space<vmem>>, vector<8x8xbf16>
    %c0_346 = arith.constant 0 : index
    %c19_347 = arith.constant 19 : index
    %408 = vector.load %arg49[%c0_346, %c19_347] : memref<8x342xf32, #tpu.memory_space<vmem>>, vector<8x288xf32>
    %409 = arith.truncf %408 : vector<8x288xf32> to vector<8x288xbf16>
    %cst_348 = arith.constant dense<0.000000e+00> : vector<8x288xf32>
    %410 = tpu.matmul %407, %409, %cst_348 {dimension_numbers = #tpu.dot_dimension_numbers<[1], [0], [0], [1], [0, 0, 1, 1], [], []>} : vector<8x8xbf16>, vector<8x288xbf16>, vector<8x288xf32> -> vector<8x288xf32>
    %411 = arith.addf %406, %410 : vector<8x288xf32>
    %c32_349 = arith.constant 32 : index
    %c8_350 = arith.constant 8 : index
    %412 = vector.load %arg27[%c32_349, %c8_350] : memref<72x16xbf16, #tpu.memory_space<vmem>>, vector<8x8xbf16>
    %c0_351 = arith.constant 0 : index
    %c19_352 = arith.constant 19 : index
    %413 = vector.load %arg47[%c0_351, %c19_352] : memref<8x342xf32, #tpu.memory_space<vmem>>, vector<8x288xf32>
    %414 = arith.truncf %413 : vector<8x288xf32> to vector<8x288xbf16>
    %cst_353 = arith.constant dense<0.000000e+00> : vector<8x288xf32>
    %415 = tpu.matmul %412, %414, %cst_353 {dimension_numbers = #tpu.dot_dimension_numbers<[1], [0], [0], [1], [0, 0, 1, 1], [], []>} : vector<8x8xbf16>, vector<8x288xbf16>, vector<8x288xf32> -> vector<8x288xf32>
    %416 = arith.addf %411, %415 : vector<8x288xf32>
    %c40_354 = arith.constant 40 : index
    %c0_355 = arith.constant 0 : index
    %417 = vector.load %arg27[%c40_354, %c0_355] : memref<72x16xbf16, #tpu.memory_space<vmem>>, vector<8x8xbf16>
    %c0_356 = arith.constant 0 : index
    %c20_357 = arith.constant 20 : index
    %418 = vector.load %arg49[%c0_356, %c20_357] : memref<8x342xf32, #tpu.memory_space<vmem>>, vector<8x288xf32>
    %419 = arith.truncf %418 : vector<8x288xf32> to vector<8x288xbf16>
    %cst_358 = arith.constant dense<0.000000e+00> : vector<8x288xf32>
    %420 = tpu.matmul %417, %419, %cst_358 {dimension_numbers = #tpu.dot_dimension_numbers<[1], [0], [0], [1], [0, 0, 1, 1], [], []>} : vector<8x8xbf16>, vector<8x288xbf16>, vector<8x288xf32> -> vector<8x288xf32>
    %421 = arith.addf %416, %420 : vector<8x288xf32>
    %c40_359 = arith.constant 40 : index
    %c8_360 = arith.constant 8 : index
    %422 = vector.load %arg27[%c40_359, %c8_360] : memref<72x16xbf16, #tpu.memory_space<vmem>>, vector<8x8xbf16>
    %c0_361 = arith.constant 0 : index
    %c20_362 = arith.constant 20 : index
    %423 = vector.load %arg47[%c0_361, %c20_362] : memref<8x342xf32, #tpu.memory_space<vmem>>, vector<8x288xf32>
    %424 = arith.truncf %423 : vector<8x288xf32> to vector<8x288xbf16>
    %cst_363 = arith.constant dense<0.000000e+00> : vector<8x288xf32>
    %425 = tpu.matmul %422, %424, %cst_363 {dimension_numbers = #tpu.dot_dimension_numbers<[1], [0], [0], [1], [0, 0, 1, 1], [], []>} : vector<8x8xbf16>, vector<8x288xbf16>, vector<8x288xf32> -> vector<8x288xf32>
    %426 = arith.addf %421, %425 : vector<8x288xf32>
    %c48_364 = arith.constant 48 : index
    %c0_365 = arith.constant 0 : index
    %427 = vector.load %arg27[%c48_364, %c0_365] : memref<72x16xbf16, #tpu.memory_space<vmem>>, vector<8x8xbf16>
    %c0_366 = arith.constant 0 : index
    %c36_367 = arith.constant 36 : index
    %428 = vector.load %arg49[%c0_366, %c36_367] : memref<8x342xf32, #tpu.memory_space<vmem>>, vector<8x288xf32>
    %429 = arith.truncf %428 : vector<8x288xf32> to vector<8x288xbf16>
    %cst_368 = arith.constant dense<0.000000e+00> : vector<8x288xf32>
    %430 = tpu.matmul %427, %429, %cst_368 {dimension_numbers = #tpu.dot_dimension_numbers<[1], [0], [0], [1], [0, 0, 1, 1], [], []>} : vector<8x8xbf16>, vector<8x288xbf16>, vector<8x288xf32> -> vector<8x288xf32>
    %431 = arith.addf %426, %430 : vector<8x288xf32>
    %c48_369 = arith.constant 48 : index
    %c8_370 = arith.constant 8 : index
    %432 = vector.load %arg27[%c48_369, %c8_370] : memref<72x16xbf16, #tpu.memory_space<vmem>>, vector<8x8xbf16>
    %c0_371 = arith.constant 0 : index
    %c36_372 = arith.constant 36 : index
    %433 = vector.load %arg47[%c0_371, %c36_372] : memref<8x342xf32, #tpu.memory_space<vmem>>, vector<8x288xf32>
    %434 = arith.truncf %433 : vector<8x288xf32> to vector<8x288xbf16>
    %cst_373 = arith.constant dense<0.000000e+00> : vector<8x288xf32>
    %435 = tpu.matmul %432, %434, %cst_373 {dimension_numbers = #tpu.dot_dimension_numbers<[1], [0], [0], [1], [0, 0, 1, 1], [], []>} : vector<8x8xbf16>, vector<8x288xbf16>, vector<8x288xf32> -> vector<8x288xf32>
    %436 = arith.addf %431, %435 : vector<8x288xf32>
    %c56_374 = arith.constant 56 : index
    %c0_375 = arith.constant 0 : index
    %437 = vector.load %arg27[%c56_374, %c0_375] : memref<72x16xbf16, #tpu.memory_space<vmem>>, vector<8x8xbf16>
    %c0_376 = arith.constant 0 : index
    %c37_377 = arith.constant 37 : index
    %438 = vector.load %arg49[%c0_376, %c37_377] : memref<8x342xf32, #tpu.memory_space<vmem>>, vector<8x288xf32>
    %439 = arith.truncf %438 : vector<8x288xf32> to vector<8x288xbf16>
    %cst_378 = arith.constant dense<0.000000e+00> : vector<8x288xf32>
    %440 = tpu.matmul %437, %439, %cst_378 {dimension_numbers = #tpu.dot_dimension_numbers<[1], [0], [0], [1], [0, 0, 1, 1], [], []>} : vector<8x8xbf16>, vector<8x288xbf16>, vector<8x288xf32> -> vector<8x288xf32>
    %441 = arith.addf %436, %440 : vector<8x288xf32>
    %c56_379 = arith.constant 56 : index
    %c8_380 = arith.constant 8 : index
    %442 = vector.load %arg27[%c56_379, %c8_380] : memref<72x16xbf16, #tpu.memory_space<vmem>>, vector<8x8xbf16>
    %c0_381 = arith.constant 0 : index
    %c37_382 = arith.constant 37 : index
    %443 = vector.load %arg47[%c0_381, %c37_382] : memref<8x342xf32, #tpu.memory_space<vmem>>, vector<8x288xf32>
    %444 = arith.truncf %443 : vector<8x288xf32> to vector<8x288xbf16>
    %cst_383 = arith.constant dense<0.000000e+00> : vector<8x288xf32>
    %445 = tpu.matmul %442, %444, %cst_383 {dimension_numbers = #tpu.dot_dimension_numbers<[1], [0], [0], [1], [0, 0, 1, 1], [], []>} : vector<8x8xbf16>, vector<8x288xbf16>, vector<8x288xf32> -> vector<8x288xf32>
    %446 = arith.addf %441, %445 : vector<8x288xf32>
    %c64_384 = arith.constant 64 : index
    %c0_385 = arith.constant 0 : index
    %447 = vector.load %arg27[%c64_384, %c0_385] : memref<72x16xbf16, #tpu.memory_space<vmem>>, vector<8x8xbf16>
    %c0_386 = arith.constant 0 : index
    %c38_387 = arith.constant 38 : index
    %448 = vector.load %arg49[%c0_386, %c38_387] : memref<8x342xf32, #tpu.memory_space<vmem>>, vector<8x288xf32>
    %449 = arith.truncf %448 : vector<8x288xf32> to vector<8x288xbf16>
    %cst_388 = arith.constant dense<0.000000e+00> : vector<8x288xf32>
    %450 = tpu.matmul %447, %449, %cst_388 {dimension_numbers = #tpu.dot_dimension_numbers<[1], [0], [0], [1], [0, 0, 1, 1], [], []>} : vector<8x8xbf16>, vector<8x288xbf16>, vector<8x288xf32> -> vector<8x288xf32>
    %451 = arith.addf %446, %450 : vector<8x288xf32>
    %c64_389 = arith.constant 64 : index
    %c8_390 = arith.constant 8 : index
    %452 = vector.load %arg27[%c64_389, %c8_390] : memref<72x16xbf16, #tpu.memory_space<vmem>>, vector<8x8xbf16>
    %c0_391 = arith.constant 0 : index
    %c38_392 = arith.constant 38 : index
    %453 = vector.load %arg47[%c0_391, %c38_392] : memref<8x342xf32, #tpu.memory_space<vmem>>, vector<8x288xf32>
    %454 = arith.truncf %453 : vector<8x288xf32> to vector<8x288xbf16>
    %cst_393 = arith.constant dense<0.000000e+00> : vector<8x288xf32>
    %455 = tpu.matmul %452, %454, %cst_393 {dimension_numbers = #tpu.dot_dimension_numbers<[1], [0], [0], [1], [0, 0, 1, 1], [], []>} : vector<8x8xbf16>, vector<8x288xbf16>, vector<8x288xf32> -> vector<8x288xf32>
    %456 = arith.addf %451, %455 : vector<8x288xf32>
    %c0_394 = arith.constant 0 : index
    %c0_395 = arith.constant 0 : index
    %457 = vector.load %arg28[%c0_394, %c0_395] : memref<8x1xf32, #tpu.memory_space<vmem>>, vector<8x1xf32>
    %458 = vector.broadcast %457 : vector<8x1xf32> to vector<8x288xf32>
    %459 = arith.mulf %456, %458 : vector<8x288xf32>
    %c0_396 = arith.constant 0 : index
    %c0_397 = arith.constant 0 : index
    %460 = vector.load %arg29[%c0_396, %c0_397] : memref<8x1xf32, #tpu.memory_space<vmem>>, vector<8x1xf32>
    %461 = vector.broadcast %460 : vector<8x1xf32> to vector<8x288xf32>
    %462 = arith.addf %459, %461 : vector<8x288xf32>
    %cst_398 = arith.constant 0.000000e+00 : f32
    %463 = vector.broadcast %cst_398 : f32 to vector<8x288xf32>
    %464 = arith.maximumf %462, %463 : vector<8x288xf32>
    %c0_399 = arith.constant 0 : index
    %c0_400 = arith.constant 0 : index
    %465 = vector.load %arg4[%c0_399, %c0_400] : memref<1x288xf32, #tpu.memory_space<vmem>>, vector<1x288xf32>
    %466 = vector.broadcast %465 : vector<1x288xf32> to vector<8x288xf32>
    %467 = arith.mulf %464, %466 : vector<8x288xf32>
    %c0_401 = arith.constant 0 : index
    %c19_402 = arith.constant 19 : index
    %468 = vector.load %arg48[%c0_401, %c19_402] : memref<8x342xf32, #tpu.memory_space<vmem>>, vector<8x288xf32>
    tpu.vector_store %arg48[%c0_401, %c19_402], %467 {strides = array<i32>} : memref<8x342xf32, #tpu.memory_space<vmem>>, vector<8x288xf32>,
    %cst_403 = arith.constant 0.000000e+00 : f32
    %469 = vector.broadcast %cst_403 : f32 to vector<8x288xf32>
    %c0_404 = arith.constant 0 : index
    %c0_405 = arith.constant 0 : index
    %470 = vector.load %arg33[%c0_404, %c0_405] : memref<8x16xbf16, #tpu.memory_space<vmem>>, vector<8x8xbf16>
    %c0_406 = arith.constant 0 : index
    %c19_407 = arith.constant 19 : index
    %471 = vector.load %arg49[%c0_406, %c19_407] : memref<8x342xf32, #tpu.memory_space<vmem>>, vector<8x288xf32>
    %472 = arith.truncf %471 : vector<8x288xf32> to vector<8x288xbf16>
    %cst_408 = arith.constant dense<0.000000e+00> : vector<8x288xf32>
    %473 = tpu.matmul %470, %472, %cst_408 {dimension_numbers = #tpu.dot_dimension_numbers<[1], [0], [0], [1], [0, 0, 1, 1], [], []>} : vector<8x8xbf16>, vector<8x288xbf16>, vector<8x288xf32> -> vector<8x288xf32>
    %474 = arith.addf %469, %473 : vector<8x288xf32>
    %c0_409 = arith.constant 0 : index
    %c8_410 = arith.constant 8 : index
    %475 = vector.load %arg33[%c0_409, %c8_410] : memref<8x16xbf16, #tpu.memory_space<vmem>>, vector<8x8xbf16>
    %c0_411 = arith.constant 0 : index
    %c19_412 = arith.constant 19 : index
    %476 = vector.load %arg47[%c0_411, %c19_412] : memref<8x342xf32, #tpu.memory_space<vmem>>, vector<8x288xf32>
    %477 = arith.truncf %476 : vector<8x288xf32> to vector<8x288xbf16>
    %cst_413 = arith.constant dense<0.000000e+00> : vector<8x288xf32>
    %478 = tpu.matmul %475, %477, %cst_413 {dimension_numbers = #tpu.dot_dimension_numbers<[1], [0], [0], [1], [0, 0, 1, 1], [], []>} : vector<8x8xbf16>, vector<8x288xbf16>, vector<8x288xf32> -> vector<8x288xf32>
    %479 = arith.addf %474, %478 : vector<8x288xf32>
    %c0_414 = arith.constant 0 : index
    %c0_415 = arith.constant 0 : index
    %480 = vector.load %arg34[%c0_414, %c0_415] : memref<8x1xf32, #tpu.memory_space<vmem>>, vector<8x1xf32>
    %481 = vector.broadcast %480 : vector<8x1xf32> to vector<8x288xf32>
    %482 = arith.mulf %479, %481 : vector<8x288xf32>
    %c0_416 = arith.constant 0 : index
    %c0_417 = arith.constant 0 : index
    %483 = vector.load %arg35[%c0_416, %c0_417] : memref<8x1xf32, #tpu.memory_space<vmem>>, vector<8x1xf32>
    %484 = vector.broadcast %483 : vector<8x1xf32> to vector<8x288xf32>
    %485 = arith.addf %482, %484 : vector<8x288xf32>
    %cst_418 = arith.constant 0.000000e+00 : f32
    %486 = vector.broadcast %cst_418 : f32 to vector<8x288xf32>
    %c0_419 = arith.constant 0 : index
    %c0_420 = arith.constant 0 : index
    %487 = vector.load %arg30[%c0_419, %c0_420] : memref<72x8xbf16, #tpu.memory_space<vmem>>, vector<8x8xbf16>
    %c0_421 = arith.constant 0 : index
    %c0_422 = arith.constant 0 : index
    %488 = vector.load %arg48[%c0_421, %c0_422] : memref<8x342xf32, #tpu.memory_space<vmem>>, vector<8x288xf32>
    %489 = arith.truncf %488 : vector<8x288xf32> to vector<8x288xbf16>
    %cst_423 = arith.constant dense<0.000000e+00> : vector<8x288xf32>
    %490 = tpu.matmul %487, %489, %cst_423 {dimension_numbers = #tpu.dot_dimension_numbers<[1], [0], [0], [1], [0, 0, 1, 1], [], []>} : vector<8x8xbf16>, vector<8x288xbf16>, vector<8x288xf32> -> vector<8x288xf32>
    %491 = arith.addf %486, %490 : vector<8x288xf32>
    %c8_424 = arith.constant 8 : index
    %c0_425 = arith.constant 0 : index
    %492 = vector.load %arg30[%c8_424, %c0_425] : memref<72x8xbf16, #tpu.memory_space<vmem>>, vector<8x8xbf16>
    %c0_426 = arith.constant 0 : index
    %c1_427 = arith.constant 1 : index
    %493 = vector.load %arg48[%c0_426, %c1_427] : memref<8x342xf32, #tpu.memory_space<vmem>>, vector<8x288xf32>
    %494 = arith.truncf %493 : vector<8x288xf32> to vector<8x288xbf16>
    %cst_428 = arith.constant dense<0.000000e+00> : vector<8x288xf32>
    %495 = tpu.matmul %492, %494, %cst_428 {dimension_numbers = #tpu.dot_dimension_numbers<[1], [0], [0], [1], [0, 0, 1, 1], [], []>} : vector<8x8xbf16>, vector<8x288xbf16>, vector<8x288xf32> -> vector<8x288xf32>
    %496 = arith.addf %491, %495 : vector<8x288xf32>
    %c16_429 = arith.constant 16 : index
    %c0_430 = arith.constant 0 : index
    %497 = vector.load %arg30[%c16_429, %c0_430] : memref<72x8xbf16, #tpu.memory_space<vmem>>, vector<8x8xbf16>
    %c0_431 = arith.constant 0 : index
    %c2_432 = arith.constant 2 : index
    %498 = vector.load %arg48[%c0_431, %c2_432] : memref<8x342xf32, #tpu.memory_space<vmem>>, vector<8x288xf32>
    %499 = arith.truncf %498 : vector<8x288xf32> to vector<8x288xbf16>
    %cst_433 = arith.constant dense<0.000000e+00> : vector<8x288xf32>
    %500 = tpu.matmul %497, %499, %cst_433 {dimension_numbers = #tpu.dot_dimension_numbers<[1], [0], [0], [1], [0, 0, 1, 1], [], []>} : vector<8x8xbf16>, vector<8x288xbf16>, vector<8x288xf32> -> vector<8x288xf32>
    %501 = arith.addf %496, %500 : vector<8x288xf32>
    %c24_434 = arith.constant 24 : index
    %c0_435 = arith.constant 0 : index
    %502 = vector.load %arg30[%c24_434, %c0_435] : memref<72x8xbf16, #tpu.memory_space<vmem>>, vector<8x8xbf16>
    %c0_436 = arith.constant 0 : index
    %c18_437 = arith.constant 18 : index
    %503 = vector.load %arg48[%c0_436, %c18_437] : memref<8x342xf32, #tpu.memory_space<vmem>>, vector<8x288xf32>
    %504 = arith.truncf %503 : vector<8x288xf32> to vector<8x288xbf16>
    %cst_438 = arith.constant dense<0.000000e+00> : vector<8x288xf32>
    %505 = tpu.matmul %502, %504, %cst_438 {dimension_numbers = #tpu.dot_dimension_numbers<[1], [0], [0], [1], [0, 0, 1, 1], [], []>} : vector<8x8xbf16>, vector<8x288xbf16>, vector<8x288xf32> -> vector<8x288xf32>
    %506 = arith.addf %501, %505 : vector<8x288xf32>
    %c32_439 = arith.constant 32 : index
    %c0_440 = arith.constant 0 : index
    %507 = vector.load %arg30[%c32_439, %c0_440] : memref<72x8xbf16, #tpu.memory_space<vmem>>, vector<8x8xbf16>
    %c0_441 = arith.constant 0 : index
    %c19_442 = arith.constant 19 : index
    %508 = vector.load %arg48[%c0_441, %c19_442] : memref<8x342xf32, #tpu.memory_space<vmem>>, vector<8x288xf32>
    %509 = arith.truncf %508 : vector<8x288xf32> to vector<8x288xbf16>
    %cst_443 = arith.constant dense<0.000000e+00> : vector<8x288xf32>
    %510 = tpu.matmul %507, %509, %cst_443 {dimension_numbers = #tpu.dot_dimension_numbers<[1], [0], [0], [1], [0, 0, 1, 1], [], []>} : vector<8x8xbf16>, vector<8x288xbf16>, vector<8x288xf32> -> vector<8x288xf32>
    %511 = arith.addf %506, %510 : vector<8x288xf32>
    %c40_444 = arith.constant 40 : index
    %c0_445 = arith.constant 0 : index
    %512 = vector.load %arg30[%c40_444, %c0_445] : memref<72x8xbf16, #tpu.memory_space<vmem>>, vector<8x8xbf16>
    %c0_446 = arith.constant 0 : index
    %c20_447 = arith.constant 20 : index
    %513 = vector.load %arg48[%c0_446, %c20_447] : memref<8x342xf32, #tpu.memory_space<vmem>>, vector<8x288xf32>
    %514 = arith.truncf %513 : vector<8x288xf32> to vector<8x288xbf16>
    %cst_448 = arith.constant dense<0.000000e+00> : vector<8x288xf32>
    %515 = tpu.matmul %512, %514, %cst_448 {dimension_numbers = #tpu.dot_dimension_numbers<[1], [0], [0], [1], [0, 0, 1, 1], [], []>} : vector<8x8xbf16>, vector<8x288xbf16>, vector<8x288xf32> -> vector<8x288xf32>
    %516 = arith.addf %511, %515 : vector<8x288xf32>
    %c48_449 = arith.constant 48 : index
    %c0_450 = arith.constant 0 : index
    %517 = vector.load %arg30[%c48_449, %c0_450] : memref<72x8xbf16, #tpu.memory_space<vmem>>, vector<8x8xbf16>
    %c0_451 = arith.constant 0 : index
    %c36_452 = arith.constant 36 : index
    %518 = vector.load %arg48[%c0_451, %c36_452] : memref<8x342xf32, #tpu.memory_space<vmem>>, vector<8x288xf32>
    %519 = arith.truncf %518 : vector<8x288xf32> to vector<8x288xbf16>
    %cst_453 = arith.constant dense<0.000000e+00> : vector<8x288xf32>
    %520 = tpu.matmul %517, %519, %cst_453 {dimension_numbers = #tpu.dot_dimension_numbers<[1], [0], [0], [1], [0, 0, 1, 1], [], []>} : vector<8x8xbf16>, vector<8x288xbf16>, vector<8x288xf32> -> vector<8x288xf32>
    %521 = arith.addf %516, %520 : vector<8x288xf32>
    %c56_454 = arith.constant 56 : index
    %c0_455 = arith.constant 0 : index
    %522 = vector.load %arg30[%c56_454, %c0_455] : memref<72x8xbf16, #tpu.memory_space<vmem>>, vector<8x8xbf16>
    %c0_456 = arith.constant 0 : index
    %c37_457 = arith.constant 37 : index
    %523 = vector.load %arg48[%c0_456, %c37_457] : memref<8x342xf32, #tpu.memory_space<vmem>>, vector<8x288xf32>
    %524 = arith.truncf %523 : vector<8x288xf32> to vector<8x288xbf16>
    %cst_458 = arith.constant dense<0.000000e+00> : vector<8x288xf32>
    %525 = tpu.matmul %522, %524, %cst_458 {dimension_numbers = #tpu.dot_dimension_numbers<[1], [0], [0], [1], [0, 0, 1, 1], [], []>} : vector<8x8xbf16>, vector<8x288xbf16>, vector<8x288xf32> -> vector<8x288xf32>
    %526 = arith.addf %521, %525 : vector<8x288xf32>
    %c64_459 = arith.constant 64 : index
    %c0_460 = arith.constant 0 : index
    %527 = vector.load %arg30[%c64_459, %c0_460] : memref<72x8xbf16, #tpu.memory_space<vmem>>, vector<8x8xbf16>
    %c0_461 = arith.constant 0 : index
    %c38_462 = arith.constant 38 : index
    %528 = vector.load %arg48[%c0_461, %c38_462] : memref<8x342xf32, #tpu.memory_space<vmem>>, vector<8x288xf32>
    %529 = arith.truncf %528 : vector<8x288xf32> to vector<8x288xbf16>
    %cst_463 = arith.constant dense<0.000000e+00> : vector<8x288xf32>
    %530 = tpu.matmul %527, %529, %cst_463 {dimension_numbers = #tpu.dot_dimension_numbers<[1], [0], [0], [1], [0, 0, 1, 1], [], []>} : vector<8x8xbf16>, vector<8x288xbf16>, vector<8x288xf32> -> vector<8x288xf32>
    %531 = arith.addf %526, %530 : vector<8x288xf32>
    %c0_464 = arith.constant 0 : index
    %c0_465 = arith.constant 0 : index
    %532 = vector.load %arg31[%c0_464, %c0_465] : memref<8x1xf32, #tpu.memory_space<vmem>>, vector<8x1xf32>
    %533 = vector.broadcast %532 : vector<8x1xf32> to vector<8x288xf32>
    %534 = arith.mulf %531, %533 : vector<8x288xf32>
    %c0_466 = arith.constant 0 : index
    %c0_467 = arith.constant 0 : index
    %535 = vector.load %arg32[%c0_466, %c0_467] : memref<8x1xf32, #tpu.memory_space<vmem>>, vector<8x1xf32>
    %536 = vector.broadcast %535 : vector<8x1xf32> to vector<8x288xf32>
    %537 = arith.addf %534, %536 : vector<8x288xf32>
    %538 = arith.addf %537, %485 : vector<8x288xf32>
    %cst_468 = arith.constant 0.000000e+00 : f32
    %539 = vector.broadcast %cst_468 : f32 to vector<8x288xf32>
    %540 = arith.maximumf %538, %539 : vector<8x288xf32>
    %c0_469 = arith.constant 0 : index
    %c0_470 = arith.constant 0 : index
    %541 = vector.load %arg4[%c0_469, %c0_470] : memref<1x288xf32, #tpu.memory_space<vmem>>, vector<1x288xf32>
    %542 = vector.broadcast %541 : vector<1x288xf32> to vector<8x288xf32>
    %543 = arith.mulf %540, %542 : vector<8x288xf32>
    %c0_471 = arith.constant 0 : index
    %c19_472 = arith.constant 19 : index
    %544 = vector.load %arg50[%c0_471, %c19_472] : memref<8x342xf32, #tpu.memory_space<vmem>>, vector<8x288xf32>
    tpu.vector_store %arg50[%c0_471, %c19_472], %543 {strides = array<i32>} : memref<8x342xf32, #tpu.memory_space<vmem>>, vector<8x288xf32>,
    %cst_473 = arith.constant 0.000000e+00 : f32
    %545 = vector.broadcast %cst_473 : f32 to vector<4x288xf32>
    %c0_474 = arith.constant 0 : index
    %c0_475 = arith.constant 0 : index
    %546 = vector.load %arg36[%c0_474, %c0_475] : memref<36x8xbf16, #tpu.memory_space<vmem>>, vector<4x8xbf16>
    %c0_476 = arith.constant 0 : index
    %c0_477 = arith.constant 0 : index
    %547 = vector.load %arg50[%c0_476, %c0_477] : memref<8x342xf32, #tpu.memory_space<vmem>>, vector<8x288xf32>
    %548 = arith.truncf %547 : vector<8x288xf32> to vector<8x288xbf16>
    %cst_478 = arith.constant dense<0.000000e+00> : vector<4x288xf32>
    %549 = tpu.matmul %546, %548, %cst_478 {dimension_numbers = #tpu.dot_dimension_numbers<[1], [0], [0], [1], [0, 0, 1, 1], [], []>} : vector<4x8xbf16>, vector<8x288xbf16>, vector<4x288xf32> -> vector<4x288xf32>
    %550 = arith.addf %545, %549 : vector<4x288xf32>
    %c4 = arith.constant 4 : index
    %c0_479 = arith.constant 0 : index
    %551 = vector.load %arg36[%c4, %c0_479] : memref<36x8xbf16, #tpu.memory_space<vmem>>, vector<4x8xbf16>
    %c0_480 = arith.constant 0 : index
    %c1_481 = arith.constant 1 : index
    %552 = vector.load %arg50[%c0_480, %c1_481] : memref<8x342xf32, #tpu.memory_space<vmem>>, vector<8x288xf32>
    %553 = arith.truncf %552 : vector<8x288xf32> to vector<8x288xbf16>
    %cst_482 = arith.constant dense<0.000000e+00> : vector<4x288xf32>
    %554 = tpu.matmul %551, %553, %cst_482 {dimension_numbers = #tpu.dot_dimension_numbers<[1], [0], [0], [1], [0, 0, 1, 1], [], []>} : vector<4x8xbf16>, vector<8x288xbf16>, vector<4x288xf32> -> vector<4x288xf32>
    %555 = arith.addf %550, %554 : vector<4x288xf32>
    %c8_483 = arith.constant 8 : index
    %c0_484 = arith.constant 0 : index
    %556 = vector.load %arg36[%c8_483, %c0_484] : memref<36x8xbf16, #tpu.memory_space<vmem>>, vector<4x8xbf16>
    %c0_485 = arith.constant 0 : index
    %c2_486 = arith.constant 2 : index
    %557 = vector.load %arg50[%c0_485, %c2_486] : memref<8x342xf32, #tpu.memory_space<vmem>>, vector<8x288xf32>
    %558 = arith.truncf %557 : vector<8x288xf32> to vector<8x288xbf16>
    %cst_487 = arith.constant dense<0.000000e+00> : vector<4x288xf32>
    %559 = tpu.matmul %556, %558, %cst_487 {dimension_numbers = #tpu.dot_dimension_numbers<[1], [0], [0], [1], [0, 0, 1, 1], [], []>} : vector<4x8xbf16>, vector<8x288xbf16>, vector<4x288xf32> -> vector<4x288xf32>
    %560 = arith.addf %555, %559 : vector<4x288xf32>
    %c12_488 = arith.constant 12 : index
    %c0_489 = arith.constant 0 : index
    %561 = vector.load %arg36[%c12_488, %c0_489] : memref<36x8xbf16, #tpu.memory_space<vmem>>, vector<4x8xbf16>
    %c0_490 = arith.constant 0 : index
    %c18_491 = arith.constant 18 : index
    %562 = vector.load %arg50[%c0_490, %c18_491] : memref<8x342xf32, #tpu.memory_space<vmem>>, vector<8x288xf32>
    %563 = arith.truncf %562 : vector<8x288xf32> to vector<8x288xbf16>
    %cst_492 = arith.constant dense<0.000000e+00> : vector<4x288xf32>
    %564 = tpu.matmul %561, %563, %cst_492 {dimension_numbers = #tpu.dot_dimension_numbers<[1], [0], [0], [1], [0, 0, 1, 1], [], []>} : vector<4x8xbf16>, vector<8x288xbf16>, vector<4x288xf32> -> vector<4x288xf32>
    %565 = arith.addf %560, %564 : vector<4x288xf32>
    %c16_493 = arith.constant 16 : index
    %c0_494 = arith.constant 0 : index
    %566 = vector.load %arg36[%c16_493, %c0_494] : memref<36x8xbf16, #tpu.memory_space<vmem>>, vector<4x8xbf16>
    %c0_495 = arith.constant 0 : index
    %c19_496 = arith.constant 19 : index
    %567 = vector.load %arg50[%c0_495, %c19_496] : memref<8x342xf32, #tpu.memory_space<vmem>>, vector<8x288xf32>
    %568 = arith.truncf %567 : vector<8x288xf32> to vector<8x288xbf16>
    %cst_497 = arith.constant dense<0.000000e+00> : vector<4x288xf32>
    %569 = tpu.matmul %566, %568, %cst_497 {dimension_numbers = #tpu.dot_dimension_numbers<[1], [0], [0], [1], [0, 0, 1, 1], [], []>} : vector<4x8xbf16>, vector<8x288xbf16>, vector<4x288xf32> -> vector<4x288xf32>
    %570 = arith.addf %565, %569 : vector<4x288xf32>
    %c20_498 = arith.constant 20 : index
    %c0_499 = arith.constant 0 : index
    %571 = vector.load %arg36[%c20_498, %c0_499] : memref<36x8xbf16, #tpu.memory_space<vmem>>, vector<4x8xbf16>
    %c0_500 = arith.constant 0 : index
    %c20_501 = arith.constant 20 : index
    %572 = vector.load %arg50[%c0_500, %c20_501] : memref<8x342xf32, #tpu.memory_space<vmem>>, vector<8x288xf32>
    %573 = arith.truncf %572 : vector<8x288xf32> to vector<8x288xbf16>
    %cst_502 = arith.constant dense<0.000000e+00> : vector<4x288xf32>
    %574 = tpu.matmul %571, %573, %cst_502 {dimension_numbers = #tpu.dot_dimension_numbers<[1], [0], [0], [1], [0, 0, 1, 1], [], []>} : vector<4x8xbf16>, vector<8x288xbf16>, vector<4x288xf32> -> vector<4x288xf32>
    %575 = arith.addf %570, %574 : vector<4x288xf32>
    %c24_503 = arith.constant 24 : index
    %c0_504 = arith.constant 0 : index
    %576 = vector.load %arg36[%c24_503, %c0_504] : memref<36x8xbf16, #tpu.memory_space<vmem>>, vector<4x8xbf16>
    %c0_505 = arith.constant 0 : index
    %c36_506 = arith.constant 36 : index
    %577 = vector.load %arg50[%c0_505, %c36_506] : memref<8x342xf32, #tpu.memory_space<vmem>>, vector<8x288xf32>
    %578 = arith.truncf %577 : vector<8x288xf32> to vector<8x288xbf16>
    %cst_507 = arith.constant dense<0.000000e+00> : vector<4x288xf32>
    %579 = tpu.matmul %576, %578, %cst_507 {dimension_numbers = #tpu.dot_dimension_numbers<[1], [0], [0], [1], [0, 0, 1, 1], [], []>} : vector<4x8xbf16>, vector<8x288xbf16>, vector<4x288xf32> -> vector<4x288xf32>
    %580 = arith.addf %575, %579 : vector<4x288xf32>
    %c28 = arith.constant 28 : index
    %c0_508 = arith.constant 0 : index
    %581 = vector.load %arg36[%c28, %c0_508] : memref<36x8xbf16, #tpu.memory_space<vmem>>, vector<4x8xbf16>
    %c0_509 = arith.constant 0 : index
    %c37_510 = arith.constant 37 : index
    %582 = vector.load %arg50[%c0_509, %c37_510] : memref<8x342xf32, #tpu.memory_space<vmem>>, vector<8x288xf32>
    %583 = arith.truncf %582 : vector<8x288xf32> to vector<8x288xbf16>
    %cst_511 = arith.constant dense<0.000000e+00> : vector<4x288xf32>
    %584 = tpu.matmul %581, %583, %cst_511 {dimension_numbers = #tpu.dot_dimension_numbers<[1], [0], [0], [1], [0, 0, 1, 1], [], []>} : vector<4x8xbf16>, vector<8x288xbf16>, vector<4x288xf32> -> vector<4x288xf32>
    %585 = arith.addf %580, %584 : vector<4x288xf32>
    %c32_512 = arith.constant 32 : index
    %c0_513 = arith.constant 0 : index
    %586 = vector.load %arg36[%c32_512, %c0_513] : memref<36x8xbf16, #tpu.memory_space<vmem>>, vector<4x8xbf16>
    %c0_514 = arith.constant 0 : index
    %c38_515 = arith.constant 38 : index
    %587 = vector.load %arg50[%c0_514, %c38_515] : memref<8x342xf32, #tpu.memory_space<vmem>>, vector<8x288xf32>
    %588 = arith.truncf %587 : vector<8x288xf32> to vector<8x288xbf16>
    %cst_516 = arith.constant dense<0.000000e+00> : vector<4x288xf32>
    %589 = tpu.matmul %586, %588, %cst_516 {dimension_numbers = #tpu.dot_dimension_numbers<[1], [0], [0], [1], [0, 0, 1, 1], [], []>} : vector<4x8xbf16>, vector<8x288xbf16>, vector<4x288xf32> -> vector<4x288xf32>
    %590 = arith.addf %585, %589 : vector<4x288xf32>
    %c0_517 = arith.constant 0 : index
    %c0_518 = arith.constant 0 : index
    %591 = vector.load %arg37[%c0_517, %c0_518] : memref<4x1xf32, #tpu.memory_space<vmem>>, vector<4x1xf32>
    %592 = vector.broadcast %591 : vector<4x1xf32> to vector<4x288xf32>
    %593 = arith.mulf %590, %592 : vector<4x288xf32>
    %c0_519 = arith.constant 0 : index
    %c0_520 = arith.constant 0 : index
    %594 = vector.load %arg38[%c0_519, %c0_520] : memref<4x1xf32, #tpu.memory_space<vmem>>, vector<4x1xf32>
    %595 = vector.broadcast %594 : vector<4x1xf32> to vector<4x288xf32>
    %596 = arith.addf %593, %595 : vector<4x288xf32>
    %cst_521 = arith.constant 0.000000e+00 : f32
    %597 = vector.broadcast %cst_521 : f32 to vector<4x288xf32>
    %598 = arith.maximumf %596, %597 : vector<4x288xf32>
    %c0_522 = arith.constant 0 : index
    %c0_523 = arith.constant 0 : index
    %599 = vector.load %arg4[%c0_522, %c0_523] : memref<1x288xf32, #tpu.memory_space<vmem>>, vector<1x288xf32>
    %600 = vector.broadcast %599 : vector<1x288xf32> to vector<4x288xf32>
    %601 = arith.mulf %598, %600 : vector<4x288xf32>
    %c0_524 = arith.constant 0 : index
    %c19_525 = arith.constant 19 : index
    %602 = vector.load %arg48[%c0_524, %c19_525] : memref<8x342xf32, #tpu.memory_space<vmem>>, vector<4x288xf32>
    tpu.vector_store %arg48[%c0_524, %c19_525], %601 {strides = array<i32>} : memref<8x342xf32, #tpu.memory_space<vmem>>, vector<4x288xf32>,
    %cst_526 = arith.constant 0.000000e+00 : f32
    %603 = vector.broadcast %cst_526 : f32 to vector<4x288xf32>
    %c0_527 = arith.constant 0 : index
    %c0_528 = arith.constant 0 : index
    %604 = vector.load %arg42[%c0_527, %c0_528] : memref<4x8xbf16, #tpu.memory_space<vmem>>, vector<4x8xbf16>
    %c0_529 = arith.constant 0 : index
    %c19_530 = arith.constant 19 : index
    %605 = vector.load %arg50[%c0_529, %c19_530] : memref<8x342xf32, #tpu.memory_space<vmem>>, vector<8x288xf32>
    %606 = arith.truncf %605 : vector<8x288xf32> to vector<8x288xbf16>
    %cst_531 = arith.constant dense<0.000000e+00> : vector<4x288xf32>
    %607 = tpu.matmul %604, %606, %cst_531 {dimension_numbers = #tpu.dot_dimension_numbers<[1], [0], [0], [1], [0, 0, 1, 1], [], []>} : vector<4x8xbf16>, vector<8x288xbf16>, vector<4x288xf32> -> vector<4x288xf32>
    %608 = arith.addf %603, %607 : vector<4x288xf32>
    %c0_532 = arith.constant 0 : index
    %c0_533 = arith.constant 0 : index
    %609 = vector.load %arg43[%c0_532, %c0_533] : memref<4x1xf32, #tpu.memory_space<vmem>>, vector<4x1xf32>
    %610 = vector.broadcast %609 : vector<4x1xf32> to vector<4x288xf32>
    %611 = arith.mulf %608, %610 : vector<4x288xf32>
    %c0_534 = arith.constant 0 : index
    %c0_535 = arith.constant 0 : index
    %612 = vector.load %arg44[%c0_534, %c0_535] : memref<4x1xf32, #tpu.memory_space<vmem>>, vector<4x1xf32>
    %613 = vector.broadcast %612 : vector<4x1xf32> to vector<4x288xf32>
    %614 = arith.addf %611, %613 : vector<4x288xf32>
    %cst_536 = arith.constant 0.000000e+00 : f32
    %615 = vector.broadcast %cst_536 : f32 to vector<4x288xf32>
    %c0_537 = arith.constant 0 : index
    %c0_538 = arith.constant 0 : index
    %616 = vector.load %arg39[%c0_537, %c0_538] : memref<36x4xbf16, #tpu.memory_space<vmem>>, vector<4x4xbf16>
    %c0_539 = arith.constant 0 : index
    %c0_540 = arith.constant 0 : index
    %617 = vector.load %arg48[%c0_539, %c0_540] : memref<8x342xf32, #tpu.memory_space<vmem>>, vector<4x288xf32>
    %618 = arith.truncf %617 : vector<4x288xf32> to vector<4x288xbf16>
    %cst_541 = arith.constant dense<0.000000e+00> : vector<4x288xf32>
    %619 = tpu.matmul %616, %618, %cst_541 {dimension_numbers = #tpu.dot_dimension_numbers<[1], [0], [0], [1], [0, 0, 1, 1], [], []>} : vector<4x4xbf16>, vector<4x288xbf16>, vector<4x288xf32> -> vector<4x288xf32>
    %620 = arith.addf %615, %619 : vector<4x288xf32>
    %c4_542 = arith.constant 4 : index
    %c0_543 = arith.constant 0 : index
    %621 = vector.load %arg39[%c4_542, %c0_543] : memref<36x4xbf16, #tpu.memory_space<vmem>>, vector<4x4xbf16>
    %c0_544 = arith.constant 0 : index
    %c1_545 = arith.constant 1 : index
    %622 = vector.load %arg48[%c0_544, %c1_545] : memref<8x342xf32, #tpu.memory_space<vmem>>, vector<4x288xf32>
    %623 = arith.truncf %622 : vector<4x288xf32> to vector<4x288xbf16>
    %cst_546 = arith.constant dense<0.000000e+00> : vector<4x288xf32>
    %624 = tpu.matmul %621, %623, %cst_546 {dimension_numbers = #tpu.dot_dimension_numbers<[1], [0], [0], [1], [0, 0, 1, 1], [], []>} : vector<4x4xbf16>, vector<4x288xbf16>, vector<4x288xf32> -> vector<4x288xf32>
    %625 = arith.addf %620, %624 : vector<4x288xf32>
    %c8_547 = arith.constant 8 : index
    %c0_548 = arith.constant 0 : index
    %626 = vector.load %arg39[%c8_547, %c0_548] : memref<36x4xbf16, #tpu.memory_space<vmem>>, vector<4x4xbf16>
    %c0_549 = arith.constant 0 : index
    %c2_550 = arith.constant 2 : index
    %627 = vector.load %arg48[%c0_549, %c2_550] : memref<8x342xf32, #tpu.memory_space<vmem>>, vector<4x288xf32>
    %628 = arith.truncf %627 : vector<4x288xf32> to vector<4x288xbf16>
    %cst_551 = arith.constant dense<0.000000e+00> : vector<4x288xf32>
    %629 = tpu.matmul %626, %628, %cst_551 {dimension_numbers = #tpu.dot_dimension_numbers<[1], [0], [0], [1], [0, 0, 1, 1], [], []>} : vector<4x4xbf16>, vector<4x288xbf16>, vector<4x288xf32> -> vector<4x288xf32>
    %630 = arith.addf %625, %629 : vector<4x288xf32>
    %c12_552 = arith.constant 12 : index
    %c0_553 = arith.constant 0 : index
    %631 = vector.load %arg39[%c12_552, %c0_553] : memref<36x4xbf16, #tpu.memory_space<vmem>>, vector<4x4xbf16>
    %c0_554 = arith.constant 0 : index
    %c18_555 = arith.constant 18 : index
    %632 = vector.load %arg48[%c0_554, %c18_555] : memref<8x342xf32, #tpu.memory_space<vmem>>, vector<4x288xf32>
    %633 = arith.truncf %632 : vector<4x288xf32> to vector<4x288xbf16>
    %cst_556 = arith.constant dense<0.000000e+00> : vector<4x288xf32>
    %634 = tpu.matmul %631, %633, %cst_556 {dimension_numbers = #tpu.dot_dimension_numbers<[1], [0], [0], [1], [0, 0, 1, 1], [], []>} : vector<4x4xbf16>, vector<4x288xbf16>, vector<4x288xf32> -> vector<4x288xf32>
    %635 = arith.addf %630, %634 : vector<4x288xf32>
    %c16_557 = arith.constant 16 : index
    %c0_558 = arith.constant 0 : index
    %636 = vector.load %arg39[%c16_557, %c0_558] : memref<36x4xbf16, #tpu.memory_space<vmem>>, vector<4x4xbf16>
    %c0_559 = arith.constant 0 : index
    %c19_560 = arith.constant 19 : index
    %637 = vector.load %arg48[%c0_559, %c19_560] : memref<8x342xf32, #tpu.memory_space<vmem>>, vector<4x288xf32>
    %638 = arith.truncf %637 : vector<4x288xf32> to vector<4x288xbf16>
    %cst_561 = arith.constant dense<0.000000e+00> : vector<4x288xf32>
    %639 = tpu.matmul %636, %638, %cst_561 {dimension_numbers = #tpu.dot_dimension_numbers<[1], [0], [0], [1], [0, 0, 1, 1], [], []>} : vector<4x4xbf16>, vector<4x288xbf16>, vector<4x288xf32> -> vector<4x288xf32>
    %640 = arith.addf %635, %639 : vector<4x288xf32>
    %c20_562 = arith.constant 20 : index
    %c0_563 = arith.constant 0 : index
    %641 = vector.load %arg39[%c20_562, %c0_563] : memref<36x4xbf16, #tpu.memory_space<vmem>>, vector<4x4xbf16>
    %c0_564 = arith.constant 0 : index
    %c20_565 = arith.constant 20 : index
    %642 = vector.load %arg48[%c0_564, %c20_565] : memref<8x342xf32, #tpu.memory_space<vmem>>, vector<4x288xf32>
    %643 = arith.truncf %642 : vector<4x288xf32> to vector<4x288xbf16>
    %cst_566 = arith.constant dense<0.000000e+00> : vector<4x288xf32>
    %644 = tpu.matmul %641, %643, %cst_566 {dimension_numbers = #tpu.dot_dimension_numbers<[1], [0], [0], [1], [0, 0, 1, 1], [], []>} : vector<4x4xbf16>, vector<4x288xbf16>, vector<4x288xf32> -> vector<4x288xf32>
    %645 = arith.addf %640, %644 : vector<4x288xf32>
    %c24_567 = arith.constant 24 : index
    %c0_568 = arith.constant 0 : index
    %646 = vector.load %arg39[%c24_567, %c0_568] : memref<36x4xbf16, #tpu.memory_space<vmem>>, vector<4x4xbf16>
    %c0_569 = arith.constant 0 : index
    %c36_570 = arith.constant 36 : index
    %647 = vector.load %arg48[%c0_569, %c36_570] : memref<8x342xf32, #tpu.memory_space<vmem>>, vector<4x288xf32>
    %648 = arith.truncf %647 : vector<4x288xf32> to vector<4x288xbf16>
    %cst_571 = arith.constant dense<0.000000e+00> : vector<4x288xf32>
    %649 = tpu.matmul %646, %648, %cst_571 {dimension_numbers = #tpu.dot_dimension_numbers<[1], [0], [0], [1], [0, 0, 1, 1], [], []>} : vector<4x4xbf16>, vector<4x288xbf16>, vector<4x288xf32> -> vector<4x288xf32>
    %650 = arith.addf %645, %649 : vector<4x288xf32>
    %c28_572 = arith.constant 28 : index
    %c0_573 = arith.constant 0 : index
    %651 = vector.load %arg39[%c28_572, %c0_573] : memref<36x4xbf16, #tpu.memory_space<vmem>>, vector<4x4xbf16>
    %c0_574 = arith.constant 0 : index
    %c37_575 = arith.constant 37 : index
    %652 = vector.load %arg48[%c0_574, %c37_575] : memref<8x342xf32, #tpu.memory_space<vmem>>, vector<4x288xf32>
    %653 = arith.truncf %652 : vector<4x288xf32> to vector<4x288xbf16>
    %cst_576 = arith.constant dense<0.000000e+00> : vector<4x288xf32>
    %654 = tpu.matmul %651, %653, %cst_576 {dimension_numbers = #tpu.dot_dimension_numbers<[1], [0], [0], [1], [0, 0, 1, 1], [], []>} : vector<4x4xbf16>, vector<4x288xbf16>, vector<4x288xf32> -> vector<4x288xf32>
    %655 = arith.addf %650, %654 : vector<4x288xf32>
    %c32_577 = arith.constant 32 : index
    %c0_578 = arith.constant 0 : index
    %656 = vector.load %arg39[%c32_577, %c0_578] : memref<36x4xbf16, #tpu.memory_space<vmem>>, vector<4x4xbf16>
    %c0_579 = arith.constant 0 : index
    %c38_580 = arith.constant 38 : index
    %657 = vector.load %arg48[%c0_579, %c38_580] : memref<8x342xf32, #tpu.memory_space<vmem>>, vector<4x288xf32>
    %658 = arith.truncf %657 : vector<4x288xf32> to vector<4x288xbf16>
    %cst_581 = arith.constant dense<0.000000e+00> : vector<4x288xf32>
    %659 = tpu.matmul %656, %658, %cst_581 {dimension_numbers = #tpu.dot_dimension_numbers<[1], [0], [0], [1], [0, 0, 1, 1], [], []>} : vector<4x4xbf16>, vector<4x288xbf16>, vector<4x288xf32> -> vector<4x288xf32>
    %660 = arith.addf %655, %659 : vector<4x288xf32>
    %c0_582 = arith.constant 0 : index
    %c0_583 = arith.constant 0 : index
    %661 = vector.load %arg40[%c0_582, %c0_583] : memref<4x1xf32, #tpu.memory_space<vmem>>, vector<4x1xf32>
    %662 = vector.broadcast %661 : vector<4x1xf32> to vector<4x288xf32>
    %663 = arith.mulf %660, %662 : vector<4x288xf32>
    %c0_584 = arith.constant 0 : index
    %c0_585 = arith.constant 0 : index
    %664 = vector.load %arg41[%c0_584, %c0_585] : memref<4x1xf32, #tpu.memory_space<vmem>>, vector<4x1xf32>
    %665 = vector.broadcast %664 : vector<4x1xf32> to vector<4x288xf32>
    %666 = arith.addf %663, %665 : vector<4x288xf32>
    %667 = arith.addf %666, %614 : vector<4x288xf32>
    %cst_586 = arith.constant 0.000000e+00 : f32
    %668 = vector.broadcast %cst_586 : f32 to vector<4x288xf32>
    %669 = arith.maximumf %667, %668 : vector<4x288xf32>
    %670 = vector.extract_strided_slice %669 {offsets = [0, 0], sizes = [1, 288], strides = [1, 1]} : vector<4x288xf32> to vector<1x288xf32>
    %671 = vector.extract_strided_slice %669 {offsets = [1, 0], sizes = [1, 288], strides = [1, 1]} : vector<4x288xf32> to vector<1x288xf32>
    %672 = arith.maximumf %670, %671 : vector<1x288xf32>
    %673 = vector.extract_strided_slice %669 {offsets = [2, 0], sizes = [1, 288], strides = [1, 1]} : vector<4x288xf32> to vector<1x288xf32>
    %674 = arith.maximumf %672, %673 : vector<1x288xf32>
    %675 = vector.extract_strided_slice %669 {offsets = [3, 0], sizes = [1, 288], strides = [1, 1]} : vector<4x288xf32> to vector<1x288xf32>
    %676 = arith.maximumf %674, %675 : vector<1x288xf32>
    %677 = vector.broadcast %676 : vector<1x288xf32> to vector<4x288xf32>
    %678 = arith.subf %669, %677 : vector<4x288xf32>
    %679 = math.exp %678 : vector<4x288xf32>
    %680 = vector.extract_strided_slice %679 {offsets = [0, 0], sizes = [1, 288], strides = [1, 1]} : vector<4x288xf32> to vector<1x288xf32>
    %681 = vector.extract_strided_slice %679 {offsets = [1, 0], sizes = [1, 288], strides = [1, 1]} : vector<4x288xf32> to vector<1x288xf32>
    %682 = arith.addf %680, %681 : vector<1x288xf32>
    %683 = vector.extract_strided_slice %679 {offsets = [2, 0], sizes = [1, 288], strides = [1, 1]} : vector<4x288xf32> to vector<1x288xf32>
    %684 = arith.addf %682, %683 : vector<1x288xf32>
    %685 = vector.extract_strided_slice %679 {offsets = [3, 0], sizes = [1, 288], strides = [1, 1]} : vector<4x288xf32> to vector<1x288xf32>
    %686 = arith.addf %684, %685 : vector<1x288xf32>
    %687 = vector.broadcast %686 : vector<1x288xf32> to vector<4x288xf32>
    %688 = arith.divf %679, %687 : vector<4x288xf32>
    %689 = vector.extract_strided_slice %688 {offsets = [0, 0], sizes = [4, 16], strides = [1, 1]} : vector<4x288xf32> to vector<4x16xf32>
    %c0_587 = arith.constant 0 : index
    %c0_588 = arith.constant 0 : index
    %c0_589 = arith.constant 0 : index
    %690 = vector.load %arg45[%c0_587, %c0_588, %c0_589] : memref<1x4x256xf32, #tpu.memory_space<vmem>>, vector<1x4x16xf32>
    %691 = vector.shape_cast %690 : vector<1x4x16xf32> to vector<4x16xf32>
    %692 = vector.shape_cast %689 : vector<4x16xf32> to vector<1x4x16xf32>
    tpu.vector_store %arg45[%c0_587, %c0_588, %c0_589], %692 {strides = array<i32>} : memref<1x4x256xf32, #tpu.memory_space<vmem>>, vector<1x4x16xf32>,
    %693 = vector.extract_strided_slice %688 {offsets = [0, 18], sizes = [4, 16], strides = [1, 1]} : vector<4x288xf32> to vector<4x16xf32>
    %c0_590 = arith.constant 0 : index
    %c0_591 = arith.constant 0 : index
    %c16_592 = arith.constant 16 : index
    %694 = vector.load %arg45[%c0_590, %c0_591, %c16_592] : memref<1x4x256xf32, #tpu.memory_space<vmem>>, vector<1x4x16xf32>
    %695 = vector.shape_cast %694 : vector<1x4x16xf32> to vector<4x16xf32>
    %696 = vector.shape_cast %693 : vector<4x16xf32> to vector<1x4x16xf32>
    tpu.vector_store %arg45[%c0_590, %c0_591, %c16_592], %696 {strides = array<i32>} : memref<1x4x256xf32, #tpu.memory_space<vmem>>, vector<1x4x16xf32>,
    %697 = vector.extract_strided_slice %688 {offsets = [0, 36], sizes = [4, 16], strides = [1, 1]} : vector<4x288xf32> to vector<4x16xf32>
    %c0_593 = arith.constant 0 : index
    %c0_594 = arith.constant 0 : index
    %c32_595 = arith.constant 32 : index
    %698 = vector.load %arg45[%c0_593, %c0_594, %c32_595] : memref<1x4x256xf32, #tpu.memory_space<vmem>>, vector<1x4x16xf32>
    %699 = vector.shape_cast %698 : vector<1x4x16xf32> to vector<4x16xf32>
    %700 = vector.shape_cast %697 : vector<4x16xf32> to vector<1x4x16xf32>
    tpu.vector_store %arg45[%c0_593, %c0_594, %c32_595], %700 {strides = array<i32>} : memref<1x4x256xf32, #tpu.memory_space<vmem>>, vector<1x4x16xf32>,
    %701 = vector.extract_strided_slice %688 {offsets = [0, 54], sizes = [4, 16], strides = [1, 1]} : vector<4x288xf32> to vector<4x16xf32>
    %c0_596 = arith.constant 0 : index
    %c0_597 = arith.constant 0 : index
    %c48_598 = arith.constant 48 : index
    %702 = vector.load %arg45[%c0_596, %c0_597, %c48_598] : memref<1x4x256xf32, #tpu.memory_space<vmem>>, vector<1x4x16xf32>
    %703 = vector.shape_cast %702 : vector<1x4x16xf32> to vector<4x16xf32>
    %704 = vector.shape_cast %701 : vector<4x16xf32> to vector<1x4x16xf32>
    tpu.vector_store %arg45[%c0_596, %c0_597, %c48_598], %704 {strides = array<i32>} : memref<1x4x256xf32, #tpu.memory_space<vmem>>, vector<1x4x16xf32>,
    %705 = vector.extract_strided_slice %688 {offsets = [0, 72], sizes = [4, 16], strides = [1, 1]} : vector<4x288xf32> to vector<4x16xf32>
    %c0_599 = arith.constant 0 : index
    %c0_600 = arith.constant 0 : index
    %c64_601 = arith.constant 64 : index
    %706 = vector.load %arg45[%c0_599, %c0_600, %c64_601] : memref<1x4x256xf32, #tpu.memory_space<vmem>>, vector<1x4x16xf32>
    %707 = vector.shape_cast %706 : vector<1x4x16xf32> to vector<4x16xf32>
    %708 = vector.shape_cast %705 : vector<4x16xf32> to vector<1x4x16xf32>
    tpu.vector_store %arg45[%c0_599, %c0_600, %c64_601], %708 {strides = array<i32>} : memref<1x4x256xf32, #tpu.memory_space<vmem>>, vector<1x4x16xf32>,
    %709 = vector.extract_strided_slice %688 {offsets = [0, 90], sizes = [4, 16], strides = [1, 1]} : vector<4x288xf32> to vector<4x16xf32>
    %c0_602 = arith.constant 0 : index
    %c0_603 = arith.constant 0 : index
    %c80_604 = arith.constant 80 : index
    %710 = vector.load %arg45[%c0_602, %c0_603, %c80_604] : memref<1x4x256xf32, #tpu.memory_space<vmem>>, vector<1x4x16xf32>
    %711 = vector.shape_cast %710 : vector<1x4x16xf32> to vector<4x16xf32>
    %712 = vector.shape_cast %709 : vector<4x16xf32> to vector<1x4x16xf32>
    tpu.vector_store %arg45[%c0_602, %c0_603, %c80_604], %712 {strides = array<i32>} : memref<1x4x256xf32, #tpu.memory_space<vmem>>, vector<1x4x16xf32>,
    %713 = vector.extract_strided_slice %688 {offsets = [0, 108], sizes = [4, 16], strides = [1, 1]} : vector<4x288xf32> to vector<4x16xf32>
    %c0_605 = arith.constant 0 : index
    %c0_606 = arith.constant 0 : index
    %c96_607 = arith.constant 96 : index
    %714 = vector.load %arg45[%c0_605, %c0_606, %c96_607] : memref<1x4x256xf32, #tpu.memory_space<vmem>>, vector<1x4x16xf32>
    %715 = vector.shape_cast %714 : vector<1x4x16xf32> to vector<4x16xf32>
    %716 = vector.shape_cast %713 : vector<4x16xf32> to vector<1x4x16xf32>
    tpu.vector_store %arg45[%c0_605, %c0_606, %c96_607], %716 {strides = array<i32>} : memref<1x4x256xf32, #tpu.memory_space<vmem>>, vector<1x4x16xf32>,
    %717 = vector.extract_strided_slice %688 {offsets = [0, 126], sizes = [4, 16], strides = [1, 1]} : vector<4x288xf32> to vector<4x16xf32>
    %c0_608 = arith.constant 0 : index
    %c0_609 = arith.constant 0 : index
    %c112_610 = arith.constant 112 : index
    %718 = vector.load %arg45[%c0_608, %c0_609, %c112_610] : memref<1x4x256xf32, #tpu.memory_space<vmem>>, vector<1x4x16xf32>
    %719 = vector.shape_cast %718 : vector<1x4x16xf32> to vector<4x16xf32>
    %720 = vector.shape_cast %717 : vector<4x16xf32> to vector<1x4x16xf32>
    tpu.vector_store %arg45[%c0_608, %c0_609, %c112_610], %720 {strides = array<i32>} : memref<1x4x256xf32, #tpu.memory_space<vmem>>, vector<1x4x16xf32>,
    %721 = vector.extract_strided_slice %688 {offsets = [0, 144], sizes = [4, 16], strides = [1, 1]} : vector<4x288xf32> to vector<4x16xf32>
    %c0_611 = arith.constant 0 : index
    %c0_612 = arith.constant 0 : index
    %c128_613 = arith.constant 128 : index
    %722 = vector.load %arg45[%c0_611, %c0_612, %c128_613] : memref<1x4x256xf32, #tpu.memory_space<vmem>>, vector<1x4x16xf32>
    %723 = vector.shape_cast %722 : vector<1x4x16xf32> to vector<4x16xf32>
    %724 = vector.shape_cast %721 : vector<4x16xf32> to vector<1x4x16xf32>
    tpu.vector_store %arg45[%c0_611, %c0_612, %c128_613], %724 {strides = array<i32>} : memref<1x4x256xf32, #tpu.memory_space<vmem>>, vector<1x4x16xf32>,
    %725 = vector.extract_strided_slice %688 {offsets = [0, 162], sizes = [4, 16], strides = [1, 1]} : vector<4x288xf32> to vector<4x16xf32>
    %c0_614 = arith.constant 0 : index
    %c0_615 = arith.constant 0 : index
    %c144 = arith.constant 144 : index
    %726 = vector.load %arg45[%c0_614, %c0_615, %c144] : memref<1x4x256xf32, #tpu.memory_space<vmem>>, vector<1x4x16xf32>
    %727 = vector.shape_cast %726 : vector<1x4x16xf32> to vector<4x16xf32>
    %728 = vector.shape_cast %725 : vector<4x16xf32> to vector<1x4x16xf32>
    tpu.vector_store %arg45[%c0_614, %c0_615, %c144], %728 {strides = array<i32>} : memref<1x4x256xf32, #tpu.memory_space<vmem>>, vector<1x4x16xf32>,
    %729 = vector.extract_strided_slice %688 {offsets = [0, 180], sizes = [4, 16], strides = [1, 1]} : vector<4x288xf32> to vector<4x16xf32>
    %c0_616 = arith.constant 0 : index
    %c0_617 = arith.constant 0 : index
    %c160_618 = arith.constant 160 : index
    %730 = vector.load %arg45[%c0_616, %c0_617, %c160_618] : memref<1x4x256xf32, #tpu.memory_space<vmem>>, vector<1x4x16xf32>
    %731 = vector.shape_cast %730 : vector<1x4x16xf32> to vector<4x16xf32>
    %732 = vector.shape_cast %729 : vector<4x16xf32> to vector<1x4x16xf32>
    tpu.vector_store %arg45[%c0_616, %c0_617, %c160_618], %732 {strides = array<i32>} : memref<1x4x256xf32, #tpu.memory_space<vmem>>, vector<1x4x16xf32>,
    %733 = vector.extract_strided_slice %688 {offsets = [0, 198], sizes = [4, 16], strides = [1, 1]} : vector<4x288xf32> to vector<4x16xf32>
    %c0_619 = arith.constant 0 : index
    %c0_620 = arith.constant 0 : index
    %c176 = arith.constant 176 : index
    %734 = vector.load %arg45[%c0_619, %c0_620, %c176] : memref<1x4x256xf32, #tpu.memory_space<vmem>>, vector<1x4x16xf32>
    %735 = vector.shape_cast %734 : vector<1x4x16xf32> to vector<4x16xf32>
    %736 = vector.shape_cast %733 : vector<4x16xf32> to vector<1x4x16xf32>
    tpu.vector_store %arg45[%c0_619, %c0_620, %c176], %736 {strides = array<i32>} : memref<1x4x256xf32, #tpu.memory_space<vmem>>, vector<1x4x16xf32>,
    %737 = vector.extract_strided_slice %688 {offsets = [0, 216], sizes = [4, 16], strides = [1, 1]} : vector<4x288xf32> to vector<4x16xf32>
    %c0_621 = arith.constant 0 : index
    %c0_622 = arith.constant 0 : index
    %c192 = arith.constant 192 : index
    %738 = vector.load %arg45[%c0_621, %c0_622, %c192] : memref<1x4x256xf32, #tpu.memory_space<vmem>>, vector<1x4x16xf32>
    %739 = vector.shape_cast %738 : vector<1x4x16xf32> to vector<4x16xf32>
    %740 = vector.shape_cast %737 : vector<4x16xf32> to vector<1x4x16xf32>
    tpu.vector_store %arg45[%c0_621, %c0_622, %c192], %740 {strides = array<i32>} : memref<1x4x256xf32, #tpu.memory_space<vmem>>, vector<1x4x16xf32>,
    %741 = vector.extract_strided_slice %688 {offsets = [0, 234], sizes = [4, 16], strides = [1, 1]} : vector<4x288xf32> to vector<4x16xf32>
    %c0_623 = arith.constant 0 : index
    %c0_624 = arith.constant 0 : index
    %c208 = arith.constant 208 : index
    %742 = vector.load %arg45[%c0_623, %c0_624, %c208] : memref<1x4x256xf32, #tpu.memory_space<vmem>>, vector<1x4x16xf32>
    %743 = vector.shape_cast %742 : vector<1x4x16xf32> to vector<4x16xf32>
    %744 = vector.shape_cast %741 : vector<4x16xf32> to vector<1x4x16xf32>
    tpu.vector_store %arg45[%c0_623, %c0_624, %c208], %744 {strides = array<i32>} : memref<1x4x256xf32, #tpu.memory_space<vmem>>, vector<1x4x16xf32>,
    %745 = vector.extract_strided_slice %688 {offsets = [0, 252], sizes = [4, 16], strides = [1, 1]} : vector<4x288xf32> to vector<4x16xf32>
    %c0_625 = arith.constant 0 : index
    %c0_626 = arith.constant 0 : index
    %c224 = arith.constant 224 : index
    %746 = vector.load %arg45[%c0_625, %c0_626, %c224] : memref<1x4x256xf32, #tpu.memory_space<vmem>>, vector<1x4x16xf32>
    %747 = vector.shape_cast %746 : vector<1x4x16xf32> to vector<4x16xf32>
    %748 = vector.shape_cast %745 : vector<4x16xf32> to vector<1x4x16xf32>
    tpu.vector_store %arg45[%c0_625, %c0_626, %c224], %748 {strides = array<i32>} : memref<1x4x256xf32, #tpu.memory_space<vmem>>, vector<1x4x16xf32>,
    %749 = vector.extract_strided_slice %688 {offsets = [0, 270], sizes = [4, 16], strides = [1, 1]} : vector<4x288xf32> to vector<4x16xf32>
    %c0_627 = arith.constant 0 : index
    %c0_628 = arith.constant 0 : index
    %c240_629 = arith.constant 240 : index
    %750 = vector.load %arg45[%c0_627, %c0_628, %c240_629] : memref<1x4x256xf32, #tpu.memory_space<vmem>>, vector<1x4x16xf32>
    %751 = vector.shape_cast %750 : vector<1x4x16xf32> to vector<4x16xf32>
    %752 = vector.shape_cast %749 : vector<4x16xf32> to vector<1x4x16xf32>
    tpu.vector_store %arg45[%c0_627, %c0_628, %c240_629], %752 {strides = array<i32>} : memref<1x4x256xf32, #tpu.memory_space<vmem>>, vector<1x4x16xf32>,
    return
  }
  func.func @transform_0(%arg0: i32) -> (i32, i32, i32) {
    %c0_i32 = arith.constant 0 : i32
    %c0_i32_0 = arith.constant 0 : i32
    %c0_i32_1 = arith.constant 0 : i32
    return %arg0, %c0_i32, %c0_i32_0 : i32, i32, i32
  }
  func.func @transform_1(%arg0: i32) -> (i32, i32) {
    %c0_i32 = arith.constant 0 : i32
    %c0_i32_0 = arith.constant 0 : i32
    %c0_i32_1 = arith.constant 0 : i32
    return %c0_i32, %c0_i32_0 : i32, i32
  }
  func.func @transform_2(%arg0: i32) -> (i32, i32) {
    %c0_i32 = arith.constant 0 : i32
    %c0_i32_0 = arith.constant 0 : i32
    %c0_i32_1 = arith.constant 0 : i32
    return %c0_i32, %c0_i32_0 : i32, i32
  }
  func.func @transform_3(%arg0: i32) -> (i32, i32) {
    %c0_i32 = arith.constant 0 : i32
    %c0_i32_0 = arith.constant 0 : i32
    %c0_i32_1 = arith.constant 0 : i32
    return %c0_i32, %c0_i32_0 : i32, i32
  }
  func.func @transform_4(%arg0: i32) -> (i32, i32) {
    %c0_i32 = arith.constant 0 : i32
    %c0_i32_0 = arith.constant 0 : i32
    %c0_i32_1 = arith.constant 0 : i32
    return %c0_i32, %c0_i32_0 : i32, i32
  }
  func.func @transform_5(%arg0: i32) -> (i32, i32) {
    %c0_i32 = arith.constant 0 : i32
    %c0_i32_0 = arith.constant 0 : i32
    %c0_i32_1 = arith.constant 0 : i32
    return %c0_i32, %c0_i32_0 : i32, i32
  }
  func.func @transform_6(%arg0: i32) -> (i32, i32) {
    %c0_i32 = arith.constant 0 : i32
    %c0_i32_0 = arith.constant 0 : i32
    %c0_i32_1 = arith.constant 0 : i32
    return %c0_i32, %c0_i32_0 : i32, i32
  }
  func.func @transform_7(%arg0: i32) -> (i32, i32) {
    %c0_i32 = arith.constant 0 : i32
    %c0_i32_0 = arith.constant 0 : i32
    %c0_i32_1 = arith.constant 0 : i32
    return %c0_i32, %c0_i32_0 : i32, i32
  }
  func.func @transform_8(%arg0: i32) -> (i32, i32) {
    %c0_i32 = arith.constant 0 : i32
    %c0_i32_0 = arith.constant 0 : i32
    %c0_i32_1 = arith.constant 0 : i32
    return %c0_i32, %c0_i32_0 : i32, i32
  }
  func.func @transform_9(%arg0: i32) -> (i32, i32) {
    %c0_i32 = arith.constant 0 : i32
    %c0_i32_0 = arith.constant 0 : i32
    %c0_i32_1 = arith.constant 0 : i32
    return %c0_i32, %c0_i32_0 : i32, i32
  }
  func.func @transform_10(%arg0: i32) -> (i32, i32) {
    %c0_i32 = arith.constant 0 : i32
    %c0_i32_0 = arith.constant 0 : i32
    %c0_i32_1 = arith.constant 0 : i32
    return %c0_i32, %c0_i32_0 : i32, i32
  }
  func.func @transform_11(%arg0: i32) -> (i32, i32) {
    %c0_i32 = arith.constant 0 : i32
    %c0_i32_0 = arith.constant 0 : i32
    %c0_i32_1 = arith.constant 0 : i32
    return %c0_i32, %c0_i32_0 : i32, i32
  }
  func.func @transform_12(%arg0: i32) -> (i32, i32) {
    %c0_i32 = arith.constant 0 : i32
    %c0_i32_0 = arith.constant 0 : i32
    %c0_i32_1 = arith.constant 0 : i32
    return %c0_i32, %c0_i32_0 : i32, i32
  }
  func.func @transform_13(%arg0: i32) -> (i32, i32) {
    %c0_i32 = arith.constant 0 : i32
    %c0_i32_0 = arith.constant 0 : i32
    %c0_i32_1 = arith.constant 0 : i32
    return %c0_i32, %c0_i32_0 : i32, i32
  }
  func.func @transform_14(%arg0: i32) -> (i32, i32) {
    %c0_i32 = arith.constant 0 : i32
    %c0_i32_0 = arith.constant 0 : i32
    %c0_i32_1 = arith.constant 0 : i32
    return %c0_i32, %c0_i32_0 : i32, i32
  }
  func.func @transform_15(%arg0: i32) -> (i32, i32) {
    %c0_i32 = arith.constant 0 : i32
    %c0_i32_0 = arith.constant 0 : i32
    %c0_i32_1 = arith.constant 0 : i32
    return %c0_i32, %c0_i32_0 : i32, i32
  }
  func.func @transform_16(%arg0: i32) -> (i32, i32) {
    %c0_i32 = arith.constant 0 : i32
    %c0_i32_0 = arith.constant 0 : i32
    %c0_i32_1 = arith.constant 0 : i32
    return %c0_i32, %c0_i32_0 : i32, i32
  }
  func.func @transform_17(%arg0: i32) -> (i32, i32) {
    %c0_i32 = arith.constant 0 : i32
    %c0_i32_0 = arith.constant 0 : i32
    %c0_i32_1 = arith.constant 0 : i32
    return %c0_i32, %c0_i32_0 : i32, i32
  }
  func.func @transform_18(%arg0: i32) -> (i32, i32) {
    %c0_i32 = arith.constant 0 : i32
    %c0_i32_0 = arith.constant 0 : i32
    %c0_i32_1 = arith.constant 0 : i32
    return %c0_i32, %c0_i32_0 : i32, i32
  }
  func.func @transform_19(%arg0: i32) -> (i32, i32) {
    %c0_i32 = arith.constant 0 : i32
    %c0_i32_0 = arith.constant 0 : i32
    %c0_i32_1 = arith.constant 0 : i32
    return %c0_i32, %c0_i32_0 : i32, i32
  }
  func.func @transform_20(%arg0: i32) -> (i32, i32) {
    %c0_i32 = arith.constant 0 : i32
    %c0_i32_0 = arith.constant 0 : i32
    %c0_i32_1 = arith.constant 0 : i32
    return %c0_i32, %c0_i32_0 : i32, i32
  }
  func.func @transform_21(%arg0: i32) -> (i32, i32) {
    %c0_i32 = arith.constant 0 : i32
    %c0_i32_0 = arith.constant 0 : i32
    %c0_i32_1 = arith.constant 0 : i32
    return %c0_i32, %c0_i32_0 : i32, i32
  }
  func.func @transform_22(%arg0: i32) -> (i32, i32) {
    %c0_i32 = arith.constant 0 : i32
    %c0_i32_0 = arith.constant 0 : i32
    %c0_i32_1 = arith.constant 0 : i32
    return %c0_i32, %c0_i32_0 : i32, i32
  }
  func.func @transform_23(%arg0: i32) -> (i32, i32) {
    %c0_i32 = arith.constant 0 : i32
    %c0_i32_0 = arith.constant 0 : i32
    %c0_i32_1 = arith.constant 0 : i32
    return %c0_i32, %c0_i32_0 : i32, i32
  }
  func.func @transform_24(%arg0: i32) -> (i32, i32) {
    %c0_i32 = arith.constant 0 : i32
    %c0_i32_0 = arith.constant 0 : i32
    %c0_i32_1 = arith.constant 0 : i32
    return %c0_i32, %c0_i32_0 : i32, i32
  }
  func.func @transform_25(%arg0: i32) -> (i32, i32) {
    %c0_i32 = arith.constant 0 : i32
    %c0_i32_0 = arith.constant 0 : i32
    %c0_i32_1 = arith.constant 0 : i32
    return %c0_i32, %c0_i32_0 : i32, i32
  }
  func.func @transform_26(%arg0: i32) -> (i32, i32) {
    %c0_i32 = arith.constant 0 : i32
    %c0_i32_0 = arith.constant 0 : i32
    %c0_i32_1 = arith.constant 0 : i32
    return %c0_i32, %c0_i32_0 : i32, i32
  }
  func.func @transform_27(%arg0: i32) -> (i32, i32) {
    %c0_i32 = arith.constant 0 : i32
    %c0_i32_0 = arith.constant 0 : i32
    %c0_i32_1 = arith.constant 0 : i32
    return %c0_i32, %c0_i32_0 : i32, i32
  }
  func.func @transform_28(%arg0: i32) -> (i32, i32) {
    %c0_i32 = arith.constant 0 : i32
    %c0_i32_0 = arith.constant 0 : i32
    %c0_i32_1 = arith.constant 0 : i32
    return %c0_i32, %c0_i32_0 : i32, i32
  }
  func.func @transform_29(%arg0: i32) -> (i32, i32) {
    %c0_i32 = arith.constant 0 : i32
    %c0_i32_0 = arith.constant 0 : i32
    %c0_i32_1 = arith.constant 0 : i32
    return %c0_i32, %c0_i32_0 : i32, i32
  }
  func.func @transform_30(%arg0: i32) -> (i32, i32) {
    %c0_i32 = arith.constant 0 : i32
    %c0_i32_0 = arith.constant 0 : i32
    %c0_i32_1 = arith.constant 0 : i32
    return %c0_i32, %c0_i32_0 : i32, i32
  }
  func.func @transform_31(%arg0: i32) -> (i32, i32) {
    %c0_i32 = arith.constant 0 : i32
    %c0_i32_0 = arith.constant 0 : i32
    %c0_i32_1 = arith.constant 0 : i32
    return %c0_i32, %c0_i32_0 : i32, i32
  }
  func.func @transform_32(%arg0: i32) -> (i32, i32) {
    %c0_i32 = arith.constant 0 : i32
    %c0_i32_0 = arith.constant 0 : i32
    %c0_i32_1 = arith.constant 0 : i32
    return %c0_i32, %c0_i32_0 : i32, i32
  }
  func.func @transform_33(%arg0: i32) -> (i32, i32) {
    %c0_i32 = arith.constant 0 : i32
    %c0_i32_0 = arith.constant 0 : i32
    %c0_i32_1 = arith.constant 0 : i32
    return %c0_i32, %c0_i32_0 : i32, i32
  }
  func.func @transform_34(%arg0: i32) -> (i32, i32) {
    %c0_i32 = arith.constant 0 : i32
    %c0_i32_0 = arith.constant 0 : i32
    %c0_i32_1 = arith.constant 0 : i32
    return %c0_i32, %c0_i32_0 : i32, i32
  }
  func.func @transform_35(%arg0: i32) -> (i32, i32) {
    %c0_i32 = arith.constant 0 : i32
    %c0_i32_0 = arith.constant 0 : i32
    %c0_i32_1 = arith.constant 0 : i32
    return %c0_i32, %c0_i32_0 : i32, i32
  }
  func.func @transform_36(%arg0: i32) -> (i32, i32) {
    %c0_i32 = arith.constant 0 : i32
    %c0_i32_0 = arith.constant 0 : i32
    %c0_i32_1 = arith.constant 0 : i32
    return %c0_i32, %c0_i32_0 : i32, i32
  }
  func.func @transform_37(%arg0: i32) -> (i32, i32) {
    %c0_i32 = arith.constant 0 : i32
    %c0_i32_0 = arith.constant 0 : i32
    %c0_i32_1 = arith.constant 0 : i32
    return %c0_i32, %c0_i32_0 : i32, i32
  }
  func.func @transform_38(%arg0: i32) -> (i32, i32) {
    %c0_i32 = arith.constant 0 : i32
    %c0_i32_0 = arith.constant 0 : i32
    %c0_i32_1 = arith.constant 0 : i32
    return %c0_i32, %c0_i32_0 : i32, i32
  }
  func.func @transform_39(%arg0: i32) -> (i32, i32) {
    %c0_i32 = arith.constant 0 : i32
    %c0_i32_0 = arith.constant 0 : i32
    %c0_i32_1 = arith.constant 0 : i32
    return %c0_i32, %c0_i32_0 : i32, i32
  }
  func.func @transform_40(%arg0: i32) -> (i32, i32) {
    %c0_i32 = arith.constant 0 : i32
    %c0_i32_0 = arith.constant 0 : i32
    %c0_i32_1 = arith.constant 0 : i32
    return %c0_i32, %c0_i32_0 : i32, i32
  }
  func.func @transform_41(%arg0: i32) -> (i32, i32) {
    %c0_i32 = arith.constant 0 : i32
    %c0_i32_0 = arith.constant 0 : i32
    %c0_i32_1 = arith.constant 0 : i32
    return %c0_i32, %c0_i32_0 : i32, i32
  }
  func.func @transform_42(%arg0: i32) -> (i32, i32) {
    %c0_i32 = arith.constant 0 : i32
    %c0_i32_0 = arith.constant 0 : i32
    %c0_i32_1 = arith.constant 0 : i32
    return %c0_i32, %c0_i32_0 : i32, i32
  }
  func.func @transform_43(%arg0: i32) -> (i32, i32) {
    %c0_i32 = arith.constant 0 : i32
    %c0_i32_0 = arith.constant 0 : i32
    %c0_i32_1 = arith.constant 0 : i32
    return %c0_i32, %c0_i32_0 : i32, i32
  }
  func.func @transform_44(%arg0: i32) -> (i32, i32, i32) {
    %c0_i32 = arith.constant 0 : i32
    %c0_i32_0 = arith.constant 0 : i32
    %c0_i32_1 = arith.constant 0 : i32
    return %arg0, %c0_i32, %c0_i32_0 : i32, i32, i32
  }
}

</mosaic_0001>

<bundles_post_ra>
// kernel: segmentation2_forward.1
= control target key start
LH: loop header
LB: loop body
LE: loop exit
PB: predicated region body
PF: predicated region fallthrough
CT: control target
= control target key end

     0   :  { %s13771_s6 = smov 1   ;;  %s13772_s10 = smov 2   ;;  %s15788_s0 = inlined_call_operand.smem [shape: u32[45], index: -1, kind: input, shape index: {}] }
   0x1   :  { %s13869_s5 = sld [smem:[%s15788_s0]]   ;;  %s13773_s14 = smov 3  }
   0x2   :  { %s13874_s9 = sld [smem:[%s15788_s0 + %s13771_s6]]   ;;  %s13774_s18 = smov 4  }
   0x3   :  { %s13879_s13 = sld [smem:[%s15788_s0 + %s13772_s10]]   ;;  %s13775_s22 = smov 5  }
   0x4   :  { %s13884_s17 = sld [smem:[%s15788_s0 + %s13773_s14]]   ;;  %s13776_s26 = smov 6  }
   0x5   :  { %s13889_s21 = sld [smem:[%s15788_s0 + %s13774_s18]]   ;;  %s13777_s30 = smov 7  }
   0x6   :  { %s13894_s25 = sld [smem:[%s15788_s0 + %s13775_s22]]   ;;  %s13778_s4 = smov 8  }
   0x7   :  { %15843 = sst [smem:[#allocation12_spill]] %s13869_s5  ;;  %s13779_s10 = smov 9  }
   0x8   :  { %15844 = sst [smem:[#allocation13_spill]] %s13874_s9  ;;  %s13780_s15 = smov 10  }
   0x9   :  { %15845 = sst [smem:[#allocation14_spill]] %s13879_s13  ;;  %s13781_s20 = smov 11  }
   0xa   :  { %s13899_s29 = sld [smem:[%s15788_s0 + %s13776_s26]]   ;;  %s13782_s26 = smov 12  }
   0xb   :  { %15846 = sst [smem:[#allocation15_spill]] %s13889_s21  ;;  %s13783_s1 = smov 13  }
   0xc   :  { %15847 = sst [smem:[#allocation16_spill]] %s13894_s25  ;;  %s13784_s7 = smov 14  }
   0xd   :  { %s13904_s3 = sld [smem:[%s15788_s0 + %s13777_s30]]   ;;  %s13786_s22 = smov 16  }
   0xe   :  { %s13909_s8 = sld [smem:[%s15788_s0 + %s13778_s4]]   ;;  %s13787_s28 = smov 17  }
   0xf   :  { %s13914_s14 = sld [smem:[%s15788_s0 + %s13779_s10]]  }
  0x10   :  { %15848 = sst [smem:[#allocation17_spill]] %s13899_s29 }
  0x11   :  { %s13919_s19 = sld [smem:[%s15788_s0 + %s13780_s15]]   ;;  %s13785_s15 = smov 15  }
  0x12   :  { %s13924_s24 = sld [smem:[%s15788_s0 + %s13781_s20]]  }
  0x13   :  { %15849 = sst [smem:[#allocation18_spill]] %s13904_s3 }
  0x14   :  { %15850 = sst [smem:[#allocation19_spill]] %s13909_s8 }
  0x15   :  { %15851 = sst [smem:[#allocation20_spill]] %s13914_s14 }
  0x16   :  { %s13929_s30 = sld [smem:[%s15788_s0 + %s13782_s26]]  }
  0x17   :  { %15852 = sst [smem:[#allocation21_spill]] %s13919_s19 }
  0x18   :  { %s13934_s6 = sld [smem:[%s15788_s0 + %s13783_s1]]  }
  0x19   :  { %s13939_s12 = sld [smem:[%s15788_s0 + %s13784_s7]]   ;;  %s13788_s7 = smov 18  }
  0x1a   :  { %s13944_s20 = sld [smem:[%s15788_s0 + %s13785_s15]]   ;;  %s13789_s15 = smov 19  }
  0x1b   :  { %s13949_s27 = sld [smem:[%s15788_s0 + %s13786_s22]]   ;;  %s13790_s22 = smov 20  }
  0x1c   :  { %s13954_s4 = sld [smem:[%s15788_s0 + %s13787_s28]]   ;;  %s13791_s28 = smov 21  }
  0x1d   :  { %s13959_s25 = sld [smem:[%s15788_s0 + %s13788_s7]]   ;;  %s13792_s7 = smov 22  }
  0x1e   :  { %15853 = sst [smem:[#allocation22_spill]] %s13934_s6 }
  0x1f   :  { %15854 = sst [smem:[#allocation23_spill]] %s13939_s12 }
  0x20   :  { %s13964_s29 = sld [smem:[%s15788_s0 + %s13789_s15]]   ;;  %s13793_s15 = smov 23  }
  0x21   :  { %s13969_s3 = sld [smem:[%s15788_s0 + %s13790_s22]]   ;;  %s13794_s22 = smov 24  }
  0x22   :  { %15855 = sst [smem:[#allocation24_spill]] %s13954_s4 }
  0x23   :  { %s13974_s21 = sld [smem:[%s15788_s0 + %s13791_s28]]   ;;  %s13795_s28 = smov 25  }
  0x24   :  { %s13979_s4 = sld [smem:[%s15788_s0 + %s13792_s7]]   ;;  %s13796_s7 = smov 26  }
  0x26   :  { %15856 = sst [smem:[#allocation25_spill]] %s13964_s29 }
  0x27   :  { %15857 = sst [smem:[#allocation26_spill]] %s13969_s3 }
  0x28   :  { %s13984_s29 = sld [smem:[%s15788_s0 + %s13793_s15]]   ;;  %s13797_s15 = smov 27  }
  0x29   :  { %15858 = sst [smem:[#allocation27_spill]] %s13974_s21 }
  0x2a   :  { %15859 = sst [smem:[#allocation28_spill]] %s13979_s4 }
  0x2b   :  { %s13989_s3 = sld [smem:[%s15788_s0 + %s13794_s22]]   ;;  %s13798_s22 = smov 28  }
  0x2c   :  { %s13994_s21 = sld [smem:[%s15788_s0 + %s13795_s28]]   ;;  %s13799_s28 = smov 29  }
  0x2d   :  { %s13999_s4 = sld [smem:[%s15788_s0 + %s13796_s7]]   ;;  %s13800_s7 = smov 30  }
  0x2e   :  { %15860 = sst [smem:[#allocation29_spill]] %s13984_s29 }
  0x2f   :  { %s14004_s29 = sld [smem:[%s15788_s0 + %s13797_s15]]   ;;  %s13801_s15 = smov 31  }
  0x31   :  { %15861 = sst [smem:[#allocation30_spill]] %s13989_s3 }
  0x32   :  { %15862 = sst [smem:[#allocation31_spill]] %s13994_s21 }
  0x33   :  { %15863 = sst [smem:[#allocation32_spill]] %s13999_s4 }
  0x34   :  { %s14009_s3 = sld [smem:[%s15788_s0 + %s13798_s22]]   ;;  %s13802_s22 = smov 32  }
  0x35   :  { %15864 = sst [smem:[#allocation33_spill]] %s14004_s29 }
  0x36   :  { %s14014_s21 = sld [smem:[%s15788_s0 + %s13799_s28]]   ;;  %s13803_s28 = smov 33  }
  0x37   :  { %s14019_s4 = sld [smem:[%s15788_s0 + %s13800_s7]]   ;;  %s13804_s7 = smov 34  }
  0x38   :  { %s14024_s29 = sld [smem:[%s15788_s0 + %s13801_s15]]   ;;  %s13805_s15 = smov 35  }
  0x3a   :  { %15865 = sst [smem:[#allocation34_spill]] %s14009_s3 }
  0x3b   :  { %s14029_s3 = sld [smem:[%s15788_s0 + %s13802_s22]]   ;;  %s13806_s22 = smov 36  }
  0x3c   :  { %15866 = sst [smem:[#allocation35_spill]] %s14014_s21 }
  0x3d   :  { %15867 = sst [smem:[#allocation36_spill]] %s14019_s4 }
  0x3e   :  { %15868 = sst [smem:[#allocation37_spill]] %s14024_s29 }
  0x3f   :  { %s14034_s21 = sld [smem:[%s15788_s0 + %s13803_s28]]   ;;  %s13807_s28 = smov 37  }
  0x40   :  { %s14039_s4 = sld [smem:[%s15788_s0 + %s13804_s7]]   ;;  %s13808_s7 = smov 38  }
  0x41   :  { %15869 = sst [smem:[#allocation38_spill]] %s14029_s3 }
  0x42   :  { %s14044_s29 = sld [smem:[%s15788_s0 + %s13805_s15]]   ;;  %s13809_s15 = smov 39  }
  0x43   :  { %s14049_s3 = sld [smem:[%s15788_s0 + %s13806_s22]]   ;;  %s13810_s22 = smov 40  }
  0x45   :  { %15870 = sst [smem:[#allocation39_spill]] %s14034_s21 }
  0x46   :  { %15871 = sst [smem:[#allocation40_spill]] %s14039_s4 }
  0x47   :  { %s14054_s21 = sld [smem:[%s15788_s0 + %s13807_s28]]   ;;  %s13811_s28 = smov 41  }
  0x48   :  { %15872 = sst [smem:[#allocation41_spill]] %s14044_s29 }
  0x49   :  { %15873 = sst [smem:[#allocation42_spill]] %s14049_s3 }
  0x4a   :  { %s14059_s4 = sld [smem:[%s15788_s0 + %s13808_s7]]   ;;  %s13812_s7 = smov 42  }
  0x4b   :  { %s14064_s29 = sld [smem:[%s15788_s0 + %s13809_s15]]   ;;  %s13813_s15 = smov 43  }
  0x4c   :  { %s14069_s3 = sld [smem:[%s15788_s0 + %s13810_s22]]   ;;  %s13814_s22 = smov 44  }
  0x4d   :  { %15874 = sst [smem:[#allocation43_spill]] %s14054_s21 }
  0x4e   :  { %s14074_s21 = sld [smem:[%s15788_s0 + %s13811_s28]]  }
  0x50   :  { %15875 = sst [smem:[#allocation44_spill]] %s14059_s4 }
  0x51   :  { %15876 = sst [smem:[#allocation45_spill]] %s14064_s29 }
  0x52   :  { %15877 = sst [smem:[#allocation46_spill]] %s14069_s3 }
  0x53   :  { %s14079_s4 = sld [smem:[%s15788_s0 + %s13812_s7]]  }
  0x54   :  { %s14084_s29 = sld [smem:[%s15788_s0 + %s13813_s15]]  }
  0x55   :  { %s14089_s3 = sld [smem:[%s15788_s0 + %s13814_s22]]  }
  0x56   :  { %94 = vsyncpa [#allocation10], 0  ;;  %s14091_s28 = smov 0  }
  0x57 LB: > { %s15878_s13 = sld [smem:[#allocation14_spill]]  ;;  %s15879_s9 = sld [smem:[#allocation13_spill]]  ;;  %s13769_s28 = sphi %s14091_s28, %s100_s28  }
  0x58   : > { %s15880_s8 = sld [smem:[#allocation19_spill]]  ;;  %s14097_s1 = sadd.s32 4294967295, %s13769_s28  }
  0x59   : > { %p11646_p0 = scmp.ge.s32.totalorder %s13769_s28, 1  ;;  %p1060_p1 = scmp.lt.s32.totalorder %s13769_s28, 3 }
  0x5a   : > { %s13815_s0 = smov [#allocation9]   ;;  %p15802_p3 = scmp.eq.s32.totalorder %s14097_s1, 0 }
  0x5b   : > { %s1075_s2 = sshll.u32 %s13815_s0, 4  ;;  %p14101_p2 = pnand %p11646_p0, %p1060_p1  ;;  %s1076_s2 = int_to_ptr.vmem [resolvable:$true] %s1075_s2 }
  0x5d   : > { %s15881_s7 = scalar_select %p14101_p2, 1, 0 }
  0x5e   : > { %p13559_p4 = pneg %p14101_p2  ;;  %s13731_s11 = scalar_lea.hbm %s15878_s13, 15360 }
  0x5f   : > { %p13732_p6 = scmp.ne.s32.totalorder %s15878_s13, %s13731_s11  ;;  %p13738_p10 = scmp.lt.u32.totalorder %s13731_s11, %s15878_s13 }
  0x60   : > { %p14110_p5 = pnand %p15802_p3, %p13559_p4 }
  0x62   : > { %p13733_p7 = pneg %p14110_p5 }
  0x64   : > { %p13734_p8 = pnand %p13733_p7, %p13732_p6 }
  0x66   : > { %p13735_p9 = pneg %p13734_p8 }
  0x68   : > { %p13740_p11 = pnand %p13738_p10, %p13735_p9 }
  0x6a   : > { %13743 = shalt.err (!%p13740_p11)
}
  0x6b   : > { %s13744_s15 = scalar_lea.vmem %s1076_s2, 15360  ;;  %p13752_p1 = scmp.lt.s32.totalorder %s1076_s2, %s1076_s2 }
  0x6c   : > { %p13745_p12 = scmp.ne.s32.totalorder %s1076_s2, %s13744_s15  ;;  %p13753_p2 = scmp.lt.s32.totalorder %s13744_s15, %s13744_s15 }
  0x6e   : > { %p13747_p13 = pnand %p13745_p12, %p13733_p7  ;;  %p13754_p4 = por %p13753_p2, %p13752_p1 }
  0x70   : > { %p13748_p0 = pneg %p13747_p13 }
  0x72   : > { %p13755_p3 = pnand %p13754_p4, %p13748_p0 }
  0x74   : > { %13758 = shalt.err (!%p13755_p3)
}
  0x75   : > { %s13816_s16 = smov 384   ;;  %s13817_s18 = smov 24  }
  0x76   : > { %13562 = dma.hbm_to_vmem [thread:$0]  (!%p14110_p5), %s15878_s13, 15360, %s1076_s2, [#allocation10], %s13816_s16, %s13816_s16, %s13817_s18  }
  0x77   : > { %p15883_p6 = scmp.ne.s32.totalorder %s15881_s7, 0 }
  0x78   : > { %p15884_p8 = scmp.eq.s32.totalorder (!%p15883_p6), %s14097_s1, 0 }
  0x79   : > { %1222 = sbr.rel (%p15883_p6) target bundleno = 6221 (0x184d), region = 196 }
  0x80   : > { %13764 = dma.done.wait (%p15884_p8), [#allocation10], 15360   ;;  %p15885_p7 = pmov %p15884_p8 }
  0x81   : > { %s15886_s5 = sld [smem:[#allocation12_spill]]  ;;  %p1328_p2 = scmp.lt.s32.totalorder %s14097_s1, 1  ;;  %v13818_v0 = vmov 0.0   ;;  %vm1340_vm0 = vcmask 699392   ;;  %vm1360_vm1 = vcmask 281752   ;;  %vm1365_vm2 = vcmask 429352  }
  0x82   : > { %13766 = vsyncadd (%p15885_p7), [#allocation10], 4294951936  ;;  %1339 = vst [vmem:[#allocation2] sm:$0xff] %v13818_v0  ;;  %12194 = vmatprep.subr.bf16.mxu1 %v13818_v0  ;;  %s13819_s26 = smov 23   ;;  %s15806_s0 = smov 19   ;;  %vm1370_vm3 = vcmask 576952  }
  0x83   : > { %1342 = vst [vmem:[#allocation3] sm:$0xff] %v13818_v0  ;;  %1346 = vst [vmem:[#allocation4] sm:$0xff] %v13818_v0  ;;  %s15979_s1 = smov (!%p1328_p2, %s14097_s1), 1  ;;  %s13821_s2 = smov 25   ;;  %vm1375_vm4 = vcmask 724552   ;;  %vm1380_vm5 = vcmask 872152  }
  0x84   : > { %1349 = vst [vmem:[#allocation6] sm:$0xff] %v13818_v0  ;;  %s15805_s22 = sshll.u32 %s15979_s1, 3  ;;  %s13822_s7 = smov 21   ;;  %1341 = vst.msk [vmem:[#allocation2 + $0x8] sm:$0xf] %vm1340_vm0, %v13818_v0  ;;  %vm1393_vm6 = vcmask 1044472  }
  0x85   : > { %s13823_s10 = smov 27   ;;  %s13824_s11 = smov 31   ;;  %vm1394_vm7 = vcmask 121860   ;;  %vm1390_vm8 = vcmask 252928   ;;  %vm1385_vm9 = vcmask 1019752   ;;  %vm1405_vm11 = vcmask 285696  }
  0x86   : > { %s13825_s15 = smov 35   ;;  %s13826_s16 = smov 29   ;;  %vm1395_vm10 = vmor %vm1394_vm7, %vm1393_vm6  ;;  %vm1400_vm12 = vcmask 265352   ;;  %vm1408_vm13 = vcmask 412952   ;;  %vm1413_vm14 = vcmask 302080   ;;  %vm1416_vm15 = vcmask 560552  }
  0x87   : > { %s1332_s23 = scalar_lea.vmem %s15886_s5, %s15805_s22  ;;  %s13827_s18 = smov 33   ;;  %vm1429_vm0 = vcmask 334848   ;;  %vm1445_vm6 = vcmask 367616   ;;  %vm1437_vm7 = vcmask 351232   ;;  %v13836_v34 = vmov 0  }
  0x88   : > { %v1355_v1 = vld [vmem:[%s1332_s23] sm:$0xff]  ;;  %s13828_s23 = smov 37   ;;  %1532 = vmatprep.mubr.bf16.mxu0 %v13836_v34  ;;  %13663 = vset.pattern.permute.xlu0 %v13836_v34  ;;  %s15887_s14 = sld [smem:[#allocation20_spill]] }
  0x89   : > { %1367 = vrot.lane.b32.xlu1 %v1355_v1, %s13819_s26  ;;  %1357 = vrot.lane.b32.xlu0 %v1355_v1, %s15806_s0  ;;  %s13829_s26 = smov 41   ;;  %s15888_s19 = sld [smem:[#allocation21_spill]] }
  0x8a   : > { %13664 = vset.pattern.permute.xlu1 %v13836_v34  ;;  %s15889_s12 = sld [smem:[#allocation23_spill]]  ;;  %s15890_s6 = sld [smem:[#allocation22_spill]] }
  0x8b   : > { %s13846_s22 = smov 117   ;;  %s15899_s5 = sld [smem:[#allocation28_spill]] }
  0x8c   : > { %s15922_s13 = sld [smem:[#allocation39_spill]] }
  0x8d   : > { %1372 = vrot.lane.b32.xlu1 %v1355_v1, %s13821_s2  ;;  %1362 = vrot.lane.b32.xlu0 %v1355_v1, %s13822_s7  ;;  %s13830_s2 = smov 39   ;;  %s13831_s7 = smov 45  }
  0x8e   : > { %v2493_v55 = vld [vmem:[%s15887_s14] sm:$0xff]  ;;  %s15923_s14 = sld [smem:[#allocation37_spill]] }
  0x8f   : > { %v2502_v56 = vld [vmem:[%s15888_s19] sm:$0xff]  ;;  %s15925_s19 = sld [smem:[#allocation35_spill]] }
  0x91   : > { %1377 = vrot.lane.b32.xlu1 %v1355_v1, %s13823_s10  ;;  %1387 = vrot.lane.b32.xlu0 %v1355_v1, %s13824_s11  ;;  %s13832_s10 = smov 43   ;;  %s13833_s11 = smov 47  }
  0x95   : > { %1402 = vrot.lane.b32.xlu1 %v1355_v1, %s13825_s15  ;;  %1382 = vrot.lane.b32.xlu0 %v1355_v1, %s13826_s16  ;;  %s13834_s15 = smov 49   ;;  %s15829_s16 = smov 127  }
  0x99   : > { %1397 = vrot.lane.b32.xlu1 %v1355_v1, %s13827_s18  ;;  %1410 = vrot.lane.b32.xlu0 %v1355_v1, %s13828_s23  ;;  %s15824_s18 = smov 126   ;;  %s15816_s23 = smov 110  }
  0x9d   : > { %1426 = vrot.lane.b32.xlu1 %v1355_v1, %s13829_s26  ;;  %1418 = vrot.lane.b32.xlu0 %v1355_v1, %s13830_s2  ;;  %s15814_s26 = smov 109   ;;  %s15831_s2 = smov 108  }
  0xa1   : > { %1442 = vrot.lane.b32.xlu1 %v1355_v1, %s13831_s7  ;;  %1434 = vrot.lane.b32.xlu0 %v1355_v1, %s13832_s10  ;;  %s15812_s7 = smov 92   ;;  %s15810_s10 = smov 91  }
  0xa5   : > { %1452 = vrot.lane.b32.xlu0 %v1355_v1, %s13833_s11  ;;  %1458 = vrot.lane.b32.xlu1 %v1355_v1, %s13834_s15  ;;  %s15808_s11 = smov 90   ;;  %s15891_s15 = sld [smem:[#allocation25_spill]] }
  0xfb   : > { %v1368_v2 = vpop.permute.xlu1 %1367  ;;  %v1358_v3 = vpop.permute.xlu0 %1357 }
  0xfc   : > { %1361 = vst.msk [vmem:[#allocation2] sm:$0xf] %vm1360_vm1, %v1358_v3  ;;  %vm1421_vm1 = vcmask 318464  }
  0xff   : > { %v1373_v4 = vpop.permute.xlu1 %1372  ;;  %v1363_v5 = vpop.permute.xlu0 %1362 }
 0x100   : > { %1366 = vst.msk [vmem:[#allocation2] sm:$0xf] %vm1365_vm2, %v1363_v5  ;;  %vm1424_vm2 = vcmask 708152  }
 0x101   : > { %1371 = vst.msk [vmem:[#allocation2] sm:$0xf] %vm1370_vm3, %v1368_v2  ;;  %vm1432_vm3 = vcmask 855752   ;;  %v1473_v2 = vld [vmem:[%s15880_s8 + $0x4] sm:$0xf] }
 0x102   : > { %1376 = vst.msk [vmem:[#allocation2] sm:$0xf] %vm1375_vm4, %v1373_v4  ;;  %vm1448_vm4 = vcmask 1044456  }
 0x103   : > { %v1378_v6 = vpop.permute.xlu1 %1377  ;;  %v1388_v7 = vpop.permute.xlu0 %1387 }
 0x104   : > { %1381 = vst.msk [vmem:[#allocation2] sm:$0xf] %vm1380_vm5, %v1378_v6  ;;  %v1389_v8 = vrot.slane %v1388_v7, 4  ;;  %vm1449_vm5 = vcmask 105476  }
 0x106   : > { %v1391_v11 = vsel %vm1390_vm8, %v1389_v8, %v1388_v7  ;;  %vm1440_vm8 = vcmask 1003352  }
 0x107   : > { %v1403_v9 = vpop.permute.xlu1 %1402  ;;  %v1383_v10 = vpop.permute.xlu0 %1382 }
 0x108   : > { %v1404_v12 = vrot.slane %v1403_v9, 4  ;;  %1386 = vst.msk [vmem:[#allocation2] sm:$0xf] %vm1385_vm9, %v1383_v10  ;;  %vm1450_vm9 = vmor %vm1449_vm5, %vm1448_vm4  ;;  %vm2160_vm4 = vcmask 752640   ;;  %vm2277_vm5 = vcmask 744448  }
 0x109   : > { %1396 = vst.msk [vmem:[#allocation2] sm:$0xff] %vm1395_vm10, %v1391_v11  ;;  %vm1456_vm10 = vcmask 248952  }
 0x10a   : > { %v1406_v15 = vsel %vm1405_vm11, %v1403_v9, %v1404_v12  ;;  %vm1462_vm11 = vcmask 396552   ;;  %v1464_v9 = vld [vmem:[%s15880_s8] sm:$0xf] }
 0x10b   : > { %v1398_v13 = vpop.permute.xlu1 %1397  ;;  %v1411_v14 = vpop.permute.xlu0 %1410 }
 0x10c   : > { %1401 = vst.msk [vmem:[#allocation2 + $0x4] sm:$0xf] %vm1400_vm12, %v1398_v13  ;;  %v1412_v16 = vrot.slane %v1411_v14, 4  ;;  %vm13835_vm12 = vmmov 0  }
 0x10d   : > { %1409 = vst.msk [vmem:[#allocation2 + $0x4] sm:$0xf] %vm1408_vm13, %v1406_v15  ;;  %12196 = vmatprep.mubr.msk.bf16.mxu1 %vm13835_vm12, %v13818_v0  ;;  %vm1352_vm13 = vcmask 900096  }
 0x10e   : > { %v1414_v17 = vsel %vm1413_vm14, %v1411_v14, %v1412_v16  ;;  %1353 = vst.msk [vmem:[#allocation8] sm:$0xff] %vm1352_vm13, %v13818_v0  ;;  %1354 = vst.msk [vmem:[#allocation8 + $0x8] sm:$0xff] %vm1352_vm13, %v13818_v0  ;;  %vm1483_vm14 = vcmask 1039360  }
 0x10f   : > { %1417 = vst.msk [vmem:[#allocation2 + $0x4] sm:$0xf] %vm1416_vm15, %v1414_v17  ;;  %v1427_v18 = vpop.permute.xlu1 %1426  ;;  %v1419_v19 = vpop.permute.xlu0 %1418  ;;  %vm15804_vm15 = vcmask 1041408   ;;  %v1674_v17 = vld [vmem:[%s15880_s8 + $0x8] sm:$0xf] }
 0x110   : > { %v1428_v20 = vrot.slane %v1427_v18, 4  ;;  %v1420_v21 = vrot.slane %v1419_v19, 4 }
 0x112   : > { %v1430_v22 = vsel %vm1429_vm0, %v1427_v18, %v1428_v20  ;;  %v1422_v23 = vsel %vm1421_vm1, %v1419_v19, %v1420_v21  ;;  %vm15803_vm0 = vcmask 31744   ;;  %vm1692_vm1 = vcmask 1031168  }
 0x113   : > { %1425 = vst.msk [vmem:[#allocation2 + $0x4] sm:$0xf] %vm1424_vm2, %v1422_v23  ;;  %v1443_v24 = vpop.permute.xlu1 %1442  ;;  %v1435_v25 = vpop.permute.xlu0 %1434  ;;  %vm1926_vm2 = vcmask 891904  }
 0x114   : > { %v1444_v26 = vrot.slane %v1443_v24, 4  ;;  %1433 = vst.msk [vmem:[#allocation2 + $0x4] sm:$0xf] %vm1432_vm3, %v1430_v22  ;;  %v1436_v27 = vrot.slane %v1435_v25, 4  ;;  %vm2043_vm3 = vcmask 883712  }
 0x116   : > { %v1446_v28 = vsel %vm1445_vm6, %v1443_v24, %v1444_v26  ;;  %v1438_v29 = vsel %vm1437_vm7, %v1435_v25, %v1436_v27  ;;  %v1791_v25 = vld [vmem:[%s15880_s8 + $0xc] sm:$0xf]  ;;  %vm2394_vm6 = vcmask 736256   ;;  %vm1344_vm7 = vcmask 703488  }
 0x117   : > { %1441 = vst.msk [vmem:[#allocation2 + $0x4] sm:$0xf] %vm1440_vm8, %v1438_v29  ;;  %v1453_v30 = vpop.permute.xlu0 %1452  ;;  %v1459_v31 = vpop.permute.xlu1 %1458  ;;  %vm2549_vm8 = vcmask 1047704  }
 0x118   : > { %1451 = vst.msk [vmem:[#allocation2 + $0x4] sm:$0xff] %vm1450_vm9, %v1446_v28  ;;  %v1454_v32 = vrot.slane %v1453_v30, 4  ;;  %v1460_v33 = vrot.slane %v1459_v31, 4  ;;  %vm2543_vm9 = vcmask 154624  }
 0x119   : > { %1348 = vst.msk [vmem:[#allocation4 + $0x10] sm:$0xff] %vm1344_vm7, %v13818_v0  ;;  %1345 = vst.msk [vmem:[#allocation3 + $0x10] sm:$0xff] %vm1344_vm7, %v13818_v0 }
 0x11a   : > { %1457 = vst.msk [vmem:[#allocation2 + $0x8] sm:$0xf] %vm1456_vm10, %v1454_v32  ;;  %vm15827_vm10 = vcmask 416768  }
 0x11b   : > { %1463 = vst.msk [vmem:[#allocation2 + $0x8] sm:$0xf] %vm1462_vm11, %v1460_v33  ;;  %v1908_v33 = vld [vmem:[%s15880_s8 + $0x10] sm:$0xf]  ;;  %vm2708_vm11 = vcmask 1043456  }
 0x11c   : > { %1351 = vst.msk [vmem:[#allocation6 + $0x10] sm:$0xff] %vm1344_vm7, %v13818_v0 }
 0x11f   : > { %v1465_v35 = vld [vmem:[#allocation2] sm:$0xff] }
 0x120   : > { %v14148_v36 = vpack.c.bf16 %v1465_v35, %v1465_v35  ;;  %v1468_v37 = vcombine.high %v1465_v35, %v1465_v35 }
 0x122   : > { %1477 = vrot.lane.b32.xlu0 %v14148_v36, %s15829_s16  ;;  %v14156_v38 = vpack.c.bf16 %v1468_v37, %v1468_v37  ;;  %v1466_v39 = vld [vmem:[#allocation2 + $0x8] sm:$0xf]  ;;  %v1585_v6 = vsel %vm15804_vm15, %v14148_v36, 0 }
 0x123   : > { %v14158_v40 = vpack.c.bf16 %v1466_v39, %v1466_v39  ;;  %v1676_v41 = vld [vmem:[#allocation2 + $0x8] sm:$0xf] }
 0x124   : > { %1479 = vrot.lane.b32.xlu1 %v14156_v38, %s15829_s16  ;;  %v1682_v42 = vpack.c.bf16 %v1676_v41, %v1676_v41  ;;  %v1793_v43 = vld [vmem:[#allocation2 + $0x8] sm:$0xf] }
 0x125   : > { %v1799_v44 = vpack.c.bf16 %v1793_v43, %v1793_v43  ;;  %v1910_v45 = vld [vmem:[#allocation2 + $0x8] sm:$0xf]  ;;  %v1591_v4 = vsel %vm15804_vm15, %v14158_v40, 0 }
 0x126   : > { %1481 = vrot.lane.b32.xlu0 %v14158_v40, %s15829_s16  ;;  %v1916_v46 = vpack.c.bf16 %v1910_v45, %v1910_v45  ;;  %v2027_v47 = vld [vmem:[#allocation2 + $0x8] sm:$0xf] }
 0x127   : > { %v2033_v48 = vpack.c.bf16 %v2027_v47, %v2027_v47  ;;  %v2144_v49 = vld [vmem:[#allocation2 + $0x8] sm:$0xf] }
 0x128   : > { %1686 = vrot.lane.b32.xlu1 %v14148_v36, %s15824_s18  ;;  %v2150_v50 = vpack.c.bf16 %v2144_v49, %v2144_v49  ;;  %v2261_v51 = vld [vmem:[#allocation2 + $0x8] sm:$0xf] }
 0x129   : > { %v2267_v52 = vpack.c.bf16 %v2261_v51, %v2261_v51  ;;  %v2378_v53 = vld [vmem:[#allocation2 + $0x8] sm:$0xf] }
 0x12a   : > { %1688 = vrot.lane.b32.xlu0 %v14156_v38, %s15824_s18  ;;  %v2384_v54 = vpack.c.bf16 %v2378_v53, %v2378_v53 }
 0x12c   : > { %1690 = vrot.lane.b32.xlu1 %v1682_v42, %s15824_s18 }
 0x12e   : > { %1803 = vrot.lane.b32.xlu0 %v14148_v36, %s15816_s23 }
 0x130   : > { %1805 = vrot.lane.b32.xlu1 %v14156_v38, %s15816_s23 }
 0x132   : > { %1807 = vrot.lane.b32.xlu0 %v1799_v44, %s15816_s23  ;;  %v2025_v44 = vld [vmem:[%s15880_s8 + $0x14] sm:$0xf] }
 0x134   : > { %1920 = vrot.lane.b32.xlu1 %v14148_v36, %s15814_s26 }
 0x136   : > { %1922 = vrot.lane.b32.xlu0 %v14156_v38, %s15814_s26 }
 0x138   : > { %1924 = vrot.lane.b32.xlu1 %v1916_v46, %s15814_s26 }
 0x13a   : > { %2037 = vrot.lane.b32.xlu0 %v14148_v36, %s15831_s2 }
 0x13c   : > { %2039 = vrot.lane.b32.xlu1 %v14156_v38, %s15831_s2 }
 0x13e   : > { %2041 = vrot.lane.b32.xlu0 %v2033_v48, %s15831_s2 }
 0x140   : > { %2154 = vrot.lane.b32.xlu1 %v14148_v36, %s15812_s7 }
 0x142   : > { %2156 = vrot.lane.b32.xlu0 %v14156_v38, %s15812_s7 }
 0x144   : > { %2158 = vrot.lane.b32.xlu1 %v2150_v50, %s15812_s7 }
 0x146   : > { %2271 = vrot.lane.b32.xlu0 %v14148_v36, %s15810_s10 }
 0x148   : > { %2273 = vrot.lane.b32.xlu1 %v14156_v38, %s15810_s10 }
 0x14a   : > { %2275 = vrot.lane.b32.xlu0 %v2267_v52, %s15810_s10  ;;  %v2142_v52 = vld [vmem:[%s15880_s8 + $0x18] sm:$0xf] }
 0x14c   : > { %2388 = vrot.lane.b32.xlu1 %v14148_v36, %s15808_s11 }
 0x14e   : > { %2390 = vrot.lane.b32.xlu0 %v14156_v38, %s15808_s11 }
 0x150   : > { %2392 = vrot.lane.b32.xlu1 %v2384_v54, %s15808_s11 }
 0x152   : > { %2496 = vperm.xlu0 %13663, %v2493_v55  }
 0x154   : > { %2505 = vperm.xlu1 %13664, %v2502_v56  }
 0x194   : > { %v1478_v57 = vpop.permute.xlu0 %1477 }
 0x196   : > { %v1480_v58 = vpop.permute.xlu1 %1479 }
 0x197   : > { %v1484_v59 = vsel %vm1483_vm14, %v1478_v57, %v1480_v58 }
 0x198   : > { %v1482_v60 = vpop.permute.xlu0 %1481  ;;  %v1492_v1 = vsel %vm15804_vm15, %v1484_v59, 0  ;;  %v2259_v59 = vld [vmem:[%s15880_s8 + $0x1c] sm:$0xf] }
 0x199   : > { %v1485_v61 = vsel %vm1483_vm14, %v1480_v58, %v1482_v60  ;;  %v1498_v62 = vsel %vm15804_vm15, %v1482_v60, 0 }
 0x19a   : > { %v1687_v63 = vpop.permute.xlu1 %1686  ;;  %11655 = vmatprep.subr.msk.bf16.mxu0 %vm15804_vm15, %v1485_v61  ;;  %12195 = vmatpush3.bf16.msra.mxu1 %v1498_v62 }
 0x19b   : > { %1501 = vmatpush1.bf16.msra.mxu0 %v1492_v1  ;;  %12200 = vmatprep.subr.bf16.mxu1 %v13818_v0  ;;  %v2516_v1 = vlaneseq }
 0x19c   : > { %11658 = vmatprep.subr.msk.bf16.mxu0 %vm15804_vm15, %v14156_v38  ;;  %v1689_v3 = vpop.permute.xlu0 %1688 }
 0x19d   : > { %12197 = vmatmul.mubr.msk.bf16.vlgmr.msra.gmra.mrb[0].mxu1 %vm15803_vm0, %v1473_v2  ;;  %v1693_v10 = vsel %vm1692_vm1, %v1687_v63, %v1689_v3  ;;  %v2376_v63 = vld [vmem:[%s15880_s8 + $0x20] sm:$0xf]  ;;  %s15901_s8 = smov 107  }
 0x19e   : > { %v1691_v5 = vpop.permute.xlu1 %1690  ;;  %11656 = vmatmul.mubr.msk.bf16.vlgmr.msra.gmra.mrb[0].mxu0 %vm15803_vm0, %v1473_v2  ;;  %12201 = vmatpush3.bf16.msra.mxu1 %v1591_v4  ;;  %v1699_v14 = vsel %vm15804_vm15, %v1693_v10, 0  ;;  %v2517_v2 = vshrl.u32 %v2516_v1, 7  ;;  %v2514_v10 = vld [vmem:[%s13884_s17] sm:$0x7] }
 0x19f   : > { %1594 = vmatpush1.bf16.msra.mxu0 %v1585_v6  ;;  %v1694_v7 = vsel %vm1692_vm1, %v1689_v3, %v1691_v5  ;;  %12202 = vmatprep.mubr.msk.bf16.mxu1 %vm13835_vm12, %v13818_v0  ;;  %v1705_v13 = vsel %vm15804_vm15, %v1691_v5, 0 }
 0x1a0   : > { %11661 = vmatprep.subr.msk.bf16.mxu0 %vm15804_vm15, %v1694_v7  ;;  %12206 = vmatprep.subr.bf16.mxu1 %v13818_v0  ;;  %v1804_v8 = vpop.permute.xlu0 %1803  ;;  %v14310_v6 = vsub.s32 0, %v2517_v2 }
 0x1a1   : > { %1625 = vmatprep.mubr.bf16.mxu0 %v13836_v34 }
 0x1a2   : > { %v1806_v11 = vpop.permute.xlu1 %1805 }
 0x1a3   : > { %v1810_v18 = vsel %vm1352_vm13, %v1804_v8, %v1806_v11 }
 0x1a4   : > { %v1808_v12 = vpop.permute.xlu0 %1807  ;;  %v1816_v22 = vsel %vm15804_vm15, %v1810_v18, 0 }
 0x1a5   : > { %v1811_v15 = vsel %vm1352_vm13, %v1806_v11, %v1808_v12  ;;  %v1822_v21 = vsel %vm15804_vm15, %v1808_v12, 0  ;;  %v14313_v11 = vsub.s32 1, %v2517_v2 }
 0x1a6   : > { %v1921_v16 = vpop.permute.xlu1 %1920 }
 0x1a8   : > { %v1923_v19 = vpop.permute.xlu0 %1922 }
 0x1a9   : > { %12203 = vmatmul.mubr.msk.bf16.vlgmr.msra.gmra.mrb[0].mxu1 %vm15803_vm0, %v1464_v9  ;;  %v1927_v26 = vsel %vm1926_vm2, %v1921_v16, %v1923_v19 }
 0x1aa   : > { %12207 = vmatpush3.bf16.msra.mxu1 %v1705_v13  ;;  %11659 = vmatmul.mubr.msk.bf16.vlgmr.msra.gmra.mrb[0].mxu0 %vm15803_vm0, %v1464_v9  ;;  %v1925_v20 = vpop.permute.xlu1 %1924  ;;  %v1933_v30 = vsel %vm15804_vm15, %v1927_v26, 0 }
 0x1ab   : > { %1708 = vmatpush1.bf16.msra.mxu0 %v1699_v14  ;;  %12208 = vmatprep.mubr.msk.bf16.mxu1 %vm13835_vm12, %v13818_v0  ;;  %v1928_v23 = vsel %vm1926_vm2, %v1923_v19, %v1925_v20  ;;  %v1939_v29 = vsel %vm15804_vm15, %v1925_v20, 0 }
 0x1ac   : > { %11664 = vmatprep.subr.msk.bf16.mxu0 %vm15804_vm15, %v1811_v15  ;;  %12212 = vmatprep.subr.bf16.mxu1 %v13818_v0  ;;  %v2038_v24 = vpop.permute.xlu0 %2037 }
 0x1ad   : > { %1739 = vmatprep.mubr.bf16.mxu0 %v13836_v34 }
 0x1ae   : > { %v2040_v27 = vpop.permute.xlu1 %2039 }
 0x1af   : > { %v2044_v35 = vsel %vm2043_vm3, %v2038_v24, %v2040_v27  ;;  %v2523_v24 = vrot.slane %v2514_v10, %v14313_v11 }
 0x1b0   : > { %v2042_v28 = vpop.permute.xlu0 %2041  ;;  %v2050_v41 = vsel %vm15804_vm15, %v2044_v35, 0 }
 0x1b1   : > { %v2045_v31 = vsel %vm2043_vm3, %v2040_v27, %v2042_v28  ;;  %v2056_v40 = vsel %vm15804_vm15, %v2042_v28, 0 }
 0x1b2   : > { %v2155_v32 = vpop.permute.xlu1 %2154 }
 0x1b4   : > { %v2157_v37 = vpop.permute.xlu0 %2156 }
 0x1b5   : > { %12209 = vmatmul.mubr.msk.bf16.vlgmr.msra.gmra.mrb[0].mxu1 %vm15803_vm0, %v1674_v17  ;;  %v2161_v45 = vsel %vm2160_vm4, %v2155_v32, %v2157_v37  ;;  %v2556_v32 = vld [vmem:[#allocation2 + $0x8] sm:$0xf] }
 0x1b6   : > { %12213 = vmatpush3.bf16.msra.mxu1 %v1822_v21  ;;  %11662 = vmatmul.mubr.msk.bf16.vlgmr.msra.gmra.mrb[0].mxu0 %vm15803_vm0, %v1674_v17  ;;  %v2159_v39 = vpop.permute.xlu1 %2158  ;;  %v2167_v49 = vsel %vm15804_vm15, %v2161_v45, 0  ;;  %v2519_v21 = vrot.slane %v2514_v10, %v14310_v6 }
 0x1b7   : > { %1825 = vmatpush1.bf16.msra.mxu0 %v1816_v22  ;;  %12214 = vmatprep.mubr.msk.bf16.mxu1 %vm13835_vm12, %v13818_v0  ;;  %v2162_v42 = vsel %vm2160_vm4, %v2157_v37, %v2159_v39  ;;  %v2173_v48 = vsel %vm15804_vm15, %v2159_v39, 0  ;;  %v14322_v22 = vsub.s32 2, %v2517_v2  ;;  %v2692_v2 = vld [vmem:[%s13924_s24 + $0x4] sm:$0xf] }
 0x1b8   : > { %11667 = vmatprep.subr.msk.bf16.mxu0 %vm15804_vm15, %v1928_v23  ;;  %12218 = vmatprep.subr.bf16.mxu1 %v13818_v0  ;;  %v2272_v43 = vpop.permute.xlu0 %2271 }
 0x1b9   : > { %1856 = vmatprep.mubr.bf16.mxu0 %v13836_v34 }
 0x1ba   : > { %v2274_v46 = vpop.permute.xlu1 %2273 }
 0x1bb   : > { %v2278_v53 = vsel %vm2277_vm5, %v2272_v43, %v2274_v46 }
 0x1bc   : > { %v2276_v47 = vpop.permute.xlu0 %2275  ;;  %v2284_v57 = vsel %vm15804_vm15, %v2278_v53, 0  ;;  %v3627_v53 = vld [vmem:[%s13929_s30] sm:$0xff] }
 0x1bd   : > { %v2279_v50 = vsel %vm2277_vm5, %v2274_v46, %v2276_v47  ;;  %v2290_v55 = vsel %vm15804_vm15, %v2276_v47, 0 }
 0x1be   : > { %v2389_v51 = vpop.permute.xlu1 %2388 }
 0x1c0   : > { %v2391_v56 = vpop.permute.xlu0 %2390 }
 0x1c1   : > { %12215 = vmatmul.mubr.msk.bf16.vlgmr.msra.gmra.mrb[0].mxu1 %vm15803_vm0, %v1791_v25  ;;  %v2395_v60 = vsel %vm2394_vm6, %v2389_v51, %v2391_v56 }
 0x1c2   : > { %12219 = vmatpush3.bf16.msra.mxu1 %v1939_v29  ;;  %11665 = vmatmul.mubr.msk.bf16.vlgmr.msra.gmra.mrb[0].mxu0 %vm15803_vm0, %v1791_v25  ;;  %v2393_v54 = vpop.permute.xlu1 %2392  ;;  %v2401_v62 = vsel %vm15804_vm15, %v2395_v60, 0  ;;  %v2527_v29 = vrot.slane %v2514_v10, %v14322_v22  ;;  %v2685_v10 = vld [vmem:[%s13924_s24] sm:$0xf] }
 0x1c3   : > { %1942 = vmatpush1.bf16.msra.mxu0 %v1933_v30  ;;  %12220 = vmatprep.mubr.msk.bf16.mxu1 %vm13835_vm12, %v13818_v0  ;;  %v2396_v58 = vsel %vm2394_vm6, %v2391_v56, %v2393_v54  ;;  %v2407_v61 = vsel %vm15804_vm15, %v2393_v54, 0  ;;  %v2667_v54 = vld [vmem:[%s13944_s20] sm:$0xff] }
 0x1c4   : > { %11670 = vmatprep.subr.msk.bf16.mxu0 %vm15804_vm15, %v2045_v31  ;;  %12224 = vmatprep.subr.bf16.mxu1 %v13818_v0  ;;  %v2676_v56 = vld [vmem:[%s13949_s27] sm:$0xff] }
 0x1c5   : > { %1973 = vmatprep.mubr.bf16.mxu0 %v13836_v34 }
 0x1cd   : > { %12221 = vmatmul.mubr.msk.bf16.vlgmr.msra.gmra.mrb[0].mxu1 %vm15803_vm0, %v1908_v33 }
 0x1ce   : > { %12225 = vmatpush3.bf16.msra.mxu1 %v2056_v40  ;;  %11668 = vmatmul.mubr.msk.bf16.vlgmr.msra.gmra.mrb[0].mxu0 %vm15803_vm0, %v1908_v33  ;;  %v2562_v33 = vpack.c.bf16 %v2556_v32, %v2556_v32 }
 0x1cf   : > { %2059 = vmatpush1.bf16.msra.mxu0 %v2050_v41  ;;  %12226 = vmatprep.mubr.msk.bf16.mxu1 %vm13835_vm12, %v13818_v0 }
 0x1d0   : > { %11673 = vmatprep.subr.msk.bf16.mxu0 %vm15804_vm15, %v2162_v42  ;;  %12230 = vmatprep.subr.bf16.mxu1 %v13818_v0 }
 0x1d1   : > { %2090 = vmatprep.mubr.bf16.mxu0 %v13836_v34  ;;  %v2497_v3 = vpop.permute.xlu0 %2496 }
 0x1d3   : > { %v2506_v5 = vpop.permute.xlu1 %2505 }
 0x1d9   : > { %12227 = vmatmul.mubr.msk.bf16.vlgmr.msra.gmra.mrb[0].mxu1 %vm15803_vm0, %v2025_v44 }
 0x1da   : > { %12231 = vmatpush3.bf16.msra.mxu1 %v2173_v48  ;;  %11671 = vmatmul.mubr.msk.bf16.vlgmr.msra.gmra.mrb[0].mxu0 %vm15803_vm0, %v2025_v44 }
 0x1db   : > { %2176 = vmatpush1.bf16.msra.mxu0 %v2167_v49  ;;  %12232 = vmatprep.mubr.msk.bf16.mxu1 %vm13835_vm12, %v13818_v0 }
 0x1dc   : > { %11676 = vmatprep.subr.msk.bf16.mxu0 %vm15804_vm15, %v2279_v50  ;;  %12236 = vmatprep.subr.bf16.mxu1 %v13818_v0  ;;  %v2554_v50 = vld [vmem:[%s15889_s12] sm:$0xf]  ;;  %s15916_s12 = smov 90  }
 0x1dd   : > { %2207 = vmatprep.mubr.bf16.mxu0 %v13836_v34 }
 0x1e5   : > { %12233 = vmatmul.mubr.msk.bf16.vlgmr.msra.gmra.mrb[0].mxu1 %vm15803_vm0, %v2142_v52 }
 0x1e6   : > { %12237 = vmatpush3.bf16.msra.mxu1 %v2290_v55  ;;  %11674 = vmatmul.mubr.msk.bf16.vlgmr.msra.gmra.mrb[0].mxu0 %vm15803_vm0, %v2142_v52  ;;  %v3636_v55 = vld [vmem:[%s15890_s6] sm:$0xff]  ;;  %s15900_s6 = smov 106  }
 0x1e7   : > { %2293 = vmatpush1.bf16.msra.mxu0 %v2284_v57  ;;  %12238 = vmatprep.mubr.msk.bf16.mxu1 %vm13835_vm12, %v13818_v0 }
 0x1e8   : > { %11679 = vmatprep.subr.msk.bf16.mxu0 %vm15804_vm15, %v2396_v58  ;;  %12242 = vmatprep.subr.bf16.mxu1 %v13818_v0 }
 0x1e9   : > { %2324 = vmatprep.mubr.bf16.mxu0 %v13836_v34 }
 0x1f1   : > { %12239 = vmatmul.mubr.msk.bf16.vlgmr.msra.gmra.mrb[0].mxu1 %vm15803_vm0, %v2259_v59 }
 0x1f2   : > { %12243 = vmatpush3.bf16.msra.mxu1 %v2407_v61  ;;  %11677 = vmatmul.mubr.msk.bf16.vlgmr.msra.gmra.mrb[0].mxu0 %vm15803_vm0, %v2259_v59 }
 0x1f3   : > { %2410 = vmatpush1.bf16.msra.mxu0 %v2401_v62  ;;  %12244 = vmatprep.mubr.msk.bf16.mxu1 %vm13835_vm12, %v13818_v0 }
 0x1f4   : > { %2441 = vmatprep.mubr.bf16.mxu0 %v13836_v34  ;;  %12248 = vmatprep.subr.bf16.mxu1 %v13818_v0 }
 0x1fd   : > { %12245 = vmatmul.mubr.msk.bf16.vlgmr.msra.gmra.mrb[0].mxu1 %vm15803_vm0, %v2376_v63 }
 0x1fe   : > { %11680 = vmatmul.mubr.msk.bf16.vlgmr.msra.gmra.mrb[0].mxu0 %vm15803_vm0, %v2376_v63  ;;  %12250 = vmatprep.mubr.msk.bf16.mxu1 %vm13835_vm12, %v13818_v0 }
 0x1ff   : > { %2618 = vmatprep.mubr.bf16.mxu0 %v13836_v34 }
 0x2d0   : > { %v2484_v4 = vpop.f32.mrb[0].mxu1 }
 0x2d1   : > { %v2501_v7 = vmul.f32 %v2497_v3, %v2484_v4  ;;  %v2443_v8 = vpop.f32.mrb[0].mxu0  ;;  %v12246_v9 = vpop.f32.mrb[1].mxu1 }
 0x2d2   : > { %v2499_v12 = vmul.f32 %v2497_v3, %v2443_v8  ;;  %v2445_v13 = vpop.f32.mrb[1].mxu0  ;;  %v2487_v14 = vpop.f32.mrb[2].mxu1 }
 0x2d3   : > { %v2500_v15 = vmul.f32 %v2497_v3, %v2445_v13  ;;  %v2447_v16 = vpop.f32.mrb[2].mxu0  ;;  %v12247_v17 = vpop.f32.mrb[3].mxu1  ;;  %v2510_v19 = vadd.f32 %v2506_v5, %v2501_v7 }
 0x2d4   : > { %v2508_v18 = vadd.f32 %v2506_v5, %v2499_v12  ;;  %v2448_v20 = vpop.f32.mrb[3].mxu0  ;;  %v14425_v17 = vld [vmem:[#allocation3] sm:$0xff] }
 0x2d5   : > { %v2509_v23 = vadd.f32 %v2506_v5, %v2500_v15  ;;  %v2513_v28 = vmax.f32 %v2510_v19, 0.0  ;;  %v2892_v19 = vld [vmem:[%s13924_s24 + $0x8] sm:$0xf] }
 0x2d6   : > { %v2511_v25 = vmax.f32 %v2508_v18, 0.0 }
 0x2d7   : > { %v2512_v26 = vmax.f32 %v2509_v23, 0.0  ;;  %v2533_v31 = vmul.f32 %v2527_v29, %v2513_v28  ;;  %v2997_v28 = vld [vmem:[%s13924_s24 + $0xc] sm:$0xf] }
 0x2d8   : > { %v2531_v27 = vmul.f32 %v2519_v21, %v2511_v25 }
 0x2d9   : > { %v2532_v30 = vmul.f32 %v2523_v24, %v2512_v26 }
 0x2da   : > { %2537 = vrot.lane.b32.xlu1 %v2531_v27, %s15806_s0 }
 0x2db   : > { %2539 = vrot.lane.b32.xlu0 %v2532_v30, %s15806_s0 }
 0x2de   : > { %2541 = vrot.lane.b32.xlu1 %v2533_v31, %s15806_s0 }
 0x2df   : > { %2566 = vrot.lane.b32.xlu0 %v14148_v36, %s15814_s26 }
 0x2e2   : > { %2568 = vrot.lane.b32.xlu1 %v14156_v38, %s15814_s26 }
 0x2e3   : > { %2570 = vrot.lane.b32.xlu0 %v2562_v33, %s15814_s26 }
 0x34c   : > { %v2538_v35 = vpop.permute.xlu1 %2537 }
 0x34d   : > { %2550 = vst.msk [vmem:[#allocation4] sm:$0xff] %vm2549_vm8, %v2538_v35  ;;  %v2540_v37 = vpop.permute.xlu0 %2539 }
 0x34e   : > { %v2544_v39 = vsel %vm2543_vm9, %v2538_v35, %v2540_v37 }
 0x34f   : > { %v14336_v40 = vpack.c.bf16 %v2544_v39, %v2544_v39  ;;  %v3102_v39 = vld [vmem:[%s13924_s24 + $0x10] sm:$0xf] }
 0x350   : > { %v2542_v41 = vpop.permute.xlu1 %2541 }
 0x351   : > { %v2545_v36 = vsel %vm2543_vm9, %v2540_v37, %v2542_v41  ;;  %v2567_v42 = vpop.permute.xlu0 %2566  ;;  %2698 = vrot.lane.b32.xlu0 %v14336_v40, %s15829_s16 }
 0x352   : > { %2553 = vst.msk [vmem:[#allocation4 + $0x10] sm:$0xff] %vm15827_vm10, %v2545_v36 }
 0x354   : > { %v2686_v38 = vld [vmem:[#allocation4] sm:$0xff]  ;;  %v2569_v43 = vpop.permute.xlu1 %2568 }
 0x355   : > { %v14342_v44 = vpack.c.bf16 %v2686_v38, %v2686_v38  ;;  %v2572_v45 = vsel %vm1926_vm2, %v2567_v42, %v2569_v43  ;;  %v2571_v46 = vpop.permute.xlu0 %2570 }
 0x356   : > { %v2584_v47 = vsel %vm15804_vm15, %v2571_v46, 0  ;;  %v2573_v48 = vsel %vm1926_vm2, %v2569_v43, %v2571_v46  ;;  %v2578_v49 = vsel %vm15804_vm15, %v2572_v45, 0  ;;  %v3207_v45 = vld [vmem:[%s13924_s24 + $0x14] sm:$0xf] }
 0x357   : > { %12249 = vmatpush3.bf16.msra.mxu1 %v2584_v47  ;;  %2696 = vrot.lane.b32.xlu1 %v14342_v44, %s15829_s16  ;;  %v2803_v7 = vsel %vm2708_vm11, %v14342_v44, 0 }
 0x358   : > { %11682 = vmatprep.subr.msk.bf16.mxu0 %vm15804_vm15, %v2573_v48  ;;  %2893 = vrot.lane.b32.xlu0 %v14342_v44, %s15824_s18  ;;  %vm3762_vm15 = vcmask 261120  }
 0x359   : > { %v2688_v51 = vld [vmem:[#allocation4 + $0x10] sm:$0xff]  ;;  %2587 = vmatpush1.bf16.msra.mxu0 %v2578_v49  ;;  %12254 = vmatprep.subr.bf16.mxu1 %v13818_v0 }
 0x35a   : > { %v2691_v52 = vpack.c.bf16 %v2688_v51, %v2688_v51  ;;  %12251 = vmatmul.mubr.msk.bf16.vlgmr.msra.gmra.mrb[4].mxu1 %vm15803_vm0, %v2554_v50 }
 0x35b   : > { %12256 = vmatprep.mubr.msk.bf16.mxu1 %vm13835_vm12, %v13818_v0 }
 0x35c   : > { %11683 = vmatmul.mubr.msk.bf16.vlgmr.msra.gmra.mrb[4].mxu0 %vm15803_vm0, %v2554_v50  ;;  %2700 = vrot.lane.b32.xlu1 %v2691_v52, %s15829_s16  ;;  %vm2704_vm0 = vcmask 64512   ;;  %v2809_v4 = vsel %vm2708_vm11, %v2691_v52, 0 }
 0x35d   : > { %2897 = vrot.lane.b32.xlu0 %v2691_v52, %s15824_s18  ;;  %2750 = vmatprep.mubr.bf16.mxu0 %v13836_v34 }
 0x360   : > { %2895 = vrot.lane.b32.xlu1 %v14336_v40, %s15824_s18 }
 0x361   : > { %3000 = vrot.lane.b32.xlu0 %v14336_v40, %s15816_s23 }
 0x364   : > { %2998 = vrot.lane.b32.xlu1 %v14342_v44, %s15816_s23 }
 0x365   : > { %3103 = vrot.lane.b32.xlu0 %v14342_v44, %s15814_s26 }
 0x368   : > { %3002 = vrot.lane.b32.xlu1 %v2691_v52, %s15816_s23 }
 0x369   : > { %3107 = vrot.lane.b32.xlu0 %v2691_v52, %s15814_s26 }
 0x36c   : > { %3105 = vrot.lane.b32.xlu1 %v14336_v40, %s15814_s26  ;;  %s15818_s26 = smov 107  }
 0x36d   : > { %3210 = vrot.lane.b32.xlu0 %v14336_v40, %s15831_s2 }
 0x370   : > { %3208 = vrot.lane.b32.xlu1 %v14342_v44, %s15831_s2 }
 0x371   : > { %3313 = vrot.lane.b32.xlu0 %v14342_v44, %s15812_s7 }
 0x374   : > { %3212 = vrot.lane.b32.xlu1 %v2691_v52, %s15831_s2 }
 0x375   : > { %3317 = vrot.lane.b32.xlu0 %v2691_v52, %s15812_s7 }
 0x378   : > { %3315 = vrot.lane.b32.xlu1 %v14336_v40, %s15812_s7  ;;  %s15819_s7 = smov 106  }
 0x379   : > { %3420 = vrot.lane.b32.xlu0 %v14336_v40, %s15810_s10 }
 0x37c   : > { %3418 = vrot.lane.b32.xlu1 %v14342_v44, %s15810_s10 }
 0x37d   : > { %3523 = vrot.lane.b32.xlu0 %v14342_v44, %s15808_s11 }
 0x380   : > { %3422 = vrot.lane.b32.xlu1 %v2691_v52, %s15810_s10  ;;  %s15892_s10 = sld [smem:[#allocation24_spill]] }
 0x381   : > { %3527 = vrot.lane.b32.xlu0 %v2691_v52, %s15808_s11 }
 0x384   : > { %3525 = vrot.lane.b32.xlu1 %v14336_v40, %s15808_s11  ;;  %s15821_s11 = smov 116  }
 0x385   : > { %3630 = vperm.xlu0 %13663, %v3627_v53   ;;  %v3312_v53 = vld [vmem:[%s13924_s24 + $0x18] sm:$0xf] }
 0x388   : > { %2670 = vperm.xlu1 %13664, %v2667_v54  }
 0x389   : > { %3639 = vperm.xlu0 %13663, %v3636_v55  }
 0x38c   : > { %2679 = vperm.xlu1 %13664, %v2676_v56  }
 0x3c3   : > { %v2699_v58 = vpop.permute.xlu0 %2698 }
 0x3c9   : > { %v2697_v57 = vpop.permute.xlu1 %2696 }
 0x3ca   : > { %v2702_v59 = vsel %vm1483_vm14, %v2697_v57, %v2699_v58  ;;  %v2894_v61 = vpop.permute.xlu0 %2893 }
 0x3cb   : > { %v2710_v1 = vsel %vm2708_vm11, %v2702_v59, 0 }
 0x3ce   : > { %v2701_v60 = vpop.permute.xlu1 %2700 }
 0x3cf   : > { %v2703_v62 = vsel %vm1483_vm14, %v2699_v58, %v2701_v60  ;;  %v2716_v63 = vsel %vm2708_vm11, %v2701_v60, 0  ;;  %v2898_v5 = vpop.permute.xlu0 %2897  ;;  %v3417_v60 = vld [vmem:[%s13924_s24 + $0x1c] sm:$0xf] }
 0x3d0   : > { %11685 = vmatprep.subr.msk.bf16.mxu0 %vm2708_vm11, %v2703_v62  ;;  %12255 = vmatpush3.bf16.msra.mxu1 %v2716_v63  ;;  %v2911_v14 = vsel %vm2708_vm11, %v2898_v5, 0 }
 0x3d1   : > { %2719 = vmatpush1.bf16.msra.mxu0 %v2710_v1  ;;  %12260 = vmatprep.subr.bf16.mxu1 %v13818_v0 }
 0x3d2   : > { %11688 = vmatprep.subr.msk.bf16.mxu0 %vm2708_vm11, %v14336_v40  ;;  %v2896_v3 = vpop.permute.xlu1 %2895 }
 0x3d3   : > { %12257 = vmatmul.mubr.msk.bf16.vlgmr.msra.gmra.mrb[8].mxu1 %vm2704_vm0, %v2692_v2  ;;  %v2900_v8 = vsel %vm1692_vm1, %v2896_v3, %v2898_v5  ;;  %v2899_v12 = vsel %vm1692_vm1, %v2894_v61, %v2896_v3  ;;  %v3001_v15 = vpop.permute.xlu0 %3000 }
 0x3d4   : > { %11686 = vmatmul.mubr.msk.bf16.vlgmr.msra.gmra.mrb[8].mxu0 %vm2704_vm0, %v2692_v2  ;;  %12261 = vmatpush3.bf16.msra.mxu1 %v2809_v4  ;;  %v2905_v16 = vsel %vm2708_vm11, %v2899_v12, 0 }
 0x3d5   : > { %2812 = vmatpush1.bf16.msra.mxu0 %v2803_v7  ;;  %12262 = vmatprep.mubr.msk.bf16.mxu1 %vm13835_vm12, %v13818_v0  ;;  %v3522_v7 = vld [vmem:[%s13924_s24 + $0x20] sm:$0xf] }
 0x3d6   : > { %11691 = vmatprep.subr.msk.bf16.mxu0 %vm2708_vm11, %v2900_v8  ;;  %12266 = vmatprep.subr.bf16.mxu1 %v13818_v0  ;;  %v2999_v9 = vpop.permute.xlu1 %2998 }
 0x3d7   : > { %2843 = vmatprep.mubr.bf16.mxu0 %v13836_v34  ;;  %v3104_v18 = vpop.permute.xlu0 %3103  ;;  %v3004_v20 = vsel %vm1352_vm13, %v2999_v9, %v3001_v15 }
 0x3d8   : > { %v3010_v25 = vsel %vm2708_vm11, %v3004_v20, 0 }
 0x3da   : > { %v3003_v13 = vpop.permute.xlu1 %3002 }
 0x3db   : > { %v3005_v0 = vsel %vm1352_vm13, %v3001_v15, %v3003_v13  ;;  %v3016_v23 = vsel %vm2708_vm11, %v3003_v13, 0  ;;  %v3108_v24 = vpop.permute.xlu0 %3107 }
 0x3dc   : > { %v3121_v31 = vsel %vm2708_vm11, %v3108_v24, 0 }
 0x3de   : > { %v3106_v21 = vpop.permute.xlu1 %3105 }
 0x3df   : > { %12263 = vmatmul.mubr.msk.bf16.vlgmr.msra.gmra.mrb[8].mxu1 %vm2704_vm0, %v2685_v10  ;;  %v3110_v26 = vsel %vm1926_vm2, %v3106_v21, %v3108_v24  ;;  %v3109_v29 = vsel %vm1926_vm2, %v3104_v18, %v3106_v21  ;;  %v3211_v32 = vpop.permute.xlu0 %3210 }
 0x3e0   : > { %12267 = vmatpush3.bf16.msra.mxu1 %v2911_v14  ;;  %11689 = vmatmul.mubr.msk.bf16.vlgmr.msra.gmra.mrb[8].mxu0 %vm2704_vm0, %v2685_v10  ;;  %v3115_v33 = vsel %vm2708_vm11, %v3109_v29, 0 }
 0x3e1   : > { %2914 = vmatpush1.bf16.msra.mxu0 %v2905_v16  ;;  %12268 = vmatprep.mubr.msk.bf16.mxu1 %vm13835_vm12, %v14425_v17 }
 0x3e2   : > { %11694 = vmatprep.subr.msk.bf16.mxu0 %vm2708_vm11, %v3005_v0  ;;  %12272 = vmatprep.subr.bf16.mxu1 %v14425_v17  ;;  %v3209_v27 = vpop.permute.xlu1 %3208 }
 0x3e3   : > { %2945 = vmatprep.mubr.bf16.mxu0 %v13836_v34  ;;  %v3314_v37 = vpop.permute.xlu0 %3313  ;;  %v3214_v40 = vsel %vm2043_vm3, %v3209_v27, %v3211_v32 }
 0x3e4   : > { %v3220_v38 = vsel %vm2708_vm11, %v3214_v40, 0 }
 0x3e6   : > { %v3213_v30 = vpop.permute.xlu1 %3212 }
 0x3e7   : > { %v3215_v35 = vsel %vm2043_vm3, %v3211_v32, %v3213_v30  ;;  %v3226_v36 = vsel %vm2708_vm11, %v3213_v30, 0  ;;  %v3318_v42 = vpop.permute.xlu0 %3317  ;;  %v3651_v32 = vld [vmem:[%s13884_s17] sm:$0x7] }
 0x3e8   : > { %v3331_v48 = vsel %vm2708_vm11, %v3318_v42, 0 }
 0x3ea   : > { %v3316_v41 = vpop.permute.xlu1 %3315 }
 0x3eb   : > { %12269 = vmatmul.mubr.msk.bf16.vlgmr.msra.gmra.mrb[8].mxu1 %vm2704_vm0, %v2892_v19  ;;  %v3320_v43 = vsel %vm2160_vm4, %v3316_v41, %v3318_v42  ;;  %v3319_v46 = vsel %vm2160_vm4, %v3314_v37, %v3316_v41  ;;  %v3421_v49 = vpop.permute.xlu0 %3420  ;;  %v3656_v42 = vrot.slane %v3651_v32, %v14310_v6 }
 0x3ec   : > { %12273 = vmatpush3.bf16.msra.mxu1 %v3016_v23  ;;  %11692 = vmatmul.mubr.msk.bf16.vlgmr.msra.gmra.mrb[8].mxu0 %vm2704_vm0, %v2892_v19  ;;  %v3325_v50 = vsel %vm2708_vm11, %v3319_v46, 0 }
 0x3ed   : > { %3019 = vmatpush1.bf16.msra.mxu0 %v3010_v25  ;;  %12274 = vmatprep.mubr.msk.bf16.mxu1 %vm13835_vm12, %v14425_v17 }
 0x3ee   : > { %11697 = vmatprep.subr.msk.bf16.mxu0 %vm2708_vm11, %v3110_v26  ;;  %12278 = vmatprep.subr.bf16.mxu1 %v14425_v17  ;;  %v3419_v44 = vpop.permute.xlu1 %3418 }
 0x3ef   : > { %3050 = vmatprep.mubr.bf16.mxu0 %v13836_v34  ;;  %v3524_v52 = vpop.permute.xlu0 %3523  ;;  %v3424_v54 = vsel %vm2277_vm5, %v3419_v44, %v3421_v49 }
 0x3f0   : > { %v3430_v58 = vsel %vm2708_vm11, %v3424_v54, 0 }
 0x3f2   : > { %v3423_v47 = vpop.permute.xlu1 %3422 }
 0x3f3   : > { %v3425_v51 = vsel %vm2277_vm5, %v3421_v49, %v3423_v47  ;;  %v3436_v56 = vsel %vm2708_vm11, %v3423_v47, 0  ;;  %v3528_v57 = vpop.permute.xlu0 %3527 }
 0x3f4   : > { %v3541_v62 = vsel %vm2708_vm11, %v3528_v57, 0 }
 0x3f6   : > { %v3526_v55 = vpop.permute.xlu1 %3525 }
 0x3f7   : > { %12275 = vmatmul.mubr.msk.bf16.vlgmr.msra.gmra.mrb[8].mxu1 %vm2704_vm0, %v2997_v28  ;;  %v3530_v59 = vsel %vm2394_vm6, %v3526_v55, %v3528_v57  ;;  %v3529_v61 = vsel %vm2394_vm6, %v3524_v52, %v3526_v55  ;;  %v3743_v57 = vld [vmem:[%s15879_s9 + $0x88] sm:$0xff] }
 0x3f8   : > { %12279 = vmatpush3.bf16.msra.mxu1 %v3121_v31  ;;  %11695 = vmatmul.mubr.msk.bf16.vlgmr.msra.gmra.mrb[8].mxu0 %vm2704_vm0, %v2997_v28  ;;  %v3535_v63 = vsel %vm2708_vm11, %v3529_v61, 0  ;;  %v3744_v61 = vld [vmem:[%s15879_s9 + $0x90] sm:$0xff] }
 0x3f9   : > { %3124 = vmatpush1.bf16.msra.mxu0 %v3115_v33  ;;  %12280 = vmatprep.mubr.msk.bf16.mxu1 %vm13835_vm12, %v14425_v17 }
 0x3fa   : > { %11700 = vmatprep.subr.msk.bf16.mxu0 %vm2708_vm11, %v3215_v35  ;;  %12284 = vmatprep.subr.bf16.mxu1 %v14425_v17 }
 0x3fb   : > { %3155 = vmatprep.mubr.bf16.mxu0 %v13836_v34 }
 0x403   : > { %12281 = vmatmul.mubr.msk.bf16.vlgmr.msra.gmra.mrb[8].mxu1 %vm2704_vm0, %v3102_v39 }
 0x404   : > { %12285 = vmatpush3.bf16.msra.mxu1 %v3226_v36  ;;  %11698 = vmatmul.mubr.msk.bf16.vlgmr.msra.gmra.mrb[8].mxu0 %vm2704_vm0, %v3102_v39  ;;  %v3631_v12 = vpop.permute.xlu0 %3630 }
 0x405   : > { %3229 = vmatpush1.bf16.msra.mxu0 %v3220_v38  ;;  %12286 = vmatprep.mubr.msk.bf16.mxu1 %vm13835_vm12, %v14425_v17 }
 0x406   : > { %11703 = vmatprep.subr.msk.bf16.mxu0 %vm2708_vm11, %v3320_v43  ;;  %12290 = vmatprep.subr.bf16.mxu1 %v14425_v17  ;;  %v3660_v43 = vrot.slane %v3651_v32, %v14313_v11 }
 0x407   : > { %3260 = vmatprep.mubr.bf16.mxu0 %v13836_v34  ;;  %v2671_v13 = vpop.permute.xlu1 %2670 }
 0x408   : > { %v3640_v14 = vpop.permute.xlu0 %3639 }
 0x40b   : > { %v2680_v16 = vpop.permute.xlu1 %2679 }
 0x40f   : > { %12287 = vmatmul.mubr.msk.bf16.vlgmr.msra.gmra.mrb[8].mxu1 %vm2704_vm0, %v3207_v45 }
 0x410   : > { %12291 = vmatpush3.bf16.msra.mxu1 %v3331_v48  ;;  %11701 = vmatmul.mubr.msk.bf16.vlgmr.msra.gmra.mrb[8].mxu0 %vm2704_vm0, %v3207_v45  ;;  %v3664_v48 = vrot.slane %v3651_v32, %v14322_v22 }
 0x411   : > { %3334 = vmatpush1.bf16.msra.mxu0 %v3325_v50  ;;  %12292 = vmatprep.mubr.msk.bf16.mxu1 %vm13835_vm12, %v14425_v17 }
 0x412   : > { %11706 = vmatprep.subr.msk.bf16.mxu0 %vm2708_vm11, %v3425_v51  ;;  %12296 = vmatprep.subr.bf16.mxu1 %v14425_v17 }
 0x413   : > { %3365 = vmatprep.mubr.bf16.mxu0 %v13836_v34 }
 0x41b   : > { %12293 = vmatmul.mubr.msk.bf16.vlgmr.msra.gmra.mrb[8].mxu1 %vm2704_vm0, %v3312_v53 }
 0x41c   : > { %12297 = vmatpush3.bf16.msra.mxu1 %v3436_v56  ;;  %11704 = vmatmul.mubr.msk.bf16.vlgmr.msra.gmra.mrb[8].mxu0 %vm2704_vm0, %v3312_v53  ;;  %v3742_v56 = vld [vmem:[%s15879_s9 + $0x80] sm:$0xff] }
 0x41d   : > { %3439 = vmatpush1.bf16.msra.mxu0 %v3430_v58  ;;  %12298 = vmatprep.mubr.msk.bf16.mxu1 %vm13835_vm12, %v14425_v17  ;;  %v3726_v58 = vld [vmem:[%s15879_s9] sm:$0xff] }
 0x41e   : > { %11709 = vmatprep.subr.msk.bf16.mxu0 %vm2708_vm11, %v3530_v59  ;;  %12302 = vmatprep.subr.bf16.mxu1 %v14425_v17  ;;  %v12837_v59 = vpack.c.bf16 %v3743_v57, %v3742_v56 }
 0x41f   : > { %3470 = vmatprep.mubr.bf16.mxu0 %v13836_v34 }
 0x427   : > { %12299 = vmatmul.mubr.msk.bf16.vlgmr.msra.gmra.mrb[8].mxu1 %vm2704_vm0, %v3417_v60 }
 0x428   : > { %12303 = vmatpush3.bf16.msra.mxu1 %v3541_v62  ;;  %11707 = vmatmul.mubr.msk.bf16.vlgmr.msra.gmra.mrb[8].mxu0 %vm2704_vm0, %v3417_v60  ;;  %v3727_v60 = vld [vmem:[%s15879_s9 + $0x8] sm:$0xff]  ;;  %v3745_v62 = vld [vmem:[%s15879_s9 + $0x98] sm:$0xff] }
 0x429   : > { %3544 = vmatpush1.bf16.msra.mxu0 %v3535_v63  ;;  %12304 = vmatprep.mubr.msk.bf16.mxu1 %vm13835_vm12, %v14425_v17  ;;  %v13845_v63 = vmov 0.0|0.0  }
 0x42a   : > { %3575 = vmatprep.mubr.bf16.mxu0 %v13836_v34  ;;  %12869 = vmatprep.subr.bf16.mxu1 %v13845_v63 }
 0x42b   : > { %12838 = vmatprep.subr.bf16.mxu0 %v12837_v59 }
 0x42d   : > { %v2661_v1 = vpop.f32.mrb[4].mxu1 }
 0x42e   : > { %v12252_v2 = vpop.f32.mrb[5].mxu1  ;;  %v2675_v15 = vmul.f32 %v2671_v13, %v2661_v1 }
 0x42f   : > { %v2620_v3 = vpop.f32.mrb[4].mxu0  ;;  %v2664_v4 = vpop.f32.mrb[6].mxu1  ;;  %v12839_v2 = vpack.c.bf16 %v3727_v60, %v3726_v58 }
 0x430   : > { %v2622_v5 = vpop.f32.mrb[5].mxu0  ;;  %v12253_v8 = vpop.f32.mrb[7].mxu1  ;;  %v2673_v0 = vmul.f32 %v2671_v13, %v2620_v3  ;;  %v2684_v27 = vadd.f32 %v2680_v16, %v2675_v15  ;;  %v12841_v3 = vpack.c.bf16 %v3745_v62, %v3744_v61  ;;  %v3728_v4 = vld [vmem:[%s15879_s9 + $0x10] sm:$0xff] }
 0x431   : > { %v2624_v9 = vpop.f32.mrb[6].mxu0  ;;  %v2674_v19 = vmul.f32 %v2671_v13, %v2622_v5  ;;  %v3729_v5 = vld [vmem:[%s15879_s9 + $0x18] sm:$0xff]  ;;  %v3746_v8 = vld [vmem:[%s15879_s9 + $0xa0] sm:$0xff]  ;;  %v3748_v15 = vld [vmem:[%s15879_s9 + $0xb0] sm:$0xff] }
 0x432   : > { %v2625_v10 = vpop.f32.mrb[7].mxu0  ;;  %v2682_v33 = vadd.f32 %v2680_v16, %v2673_v0  ;;  %v3747_v9 = vld [vmem:[%s15879_s9 + $0xa8] sm:$0xff]  ;;  %v3730_v13 = vld [vmem:[%s15879_s9 + $0x20] sm:$0xff] }
 0x433   : > { %12305 = vmatmul.mubr.msk.bf16.vlgmr.msra.gmra.mrb[8].mxu1 %vm2704_vm0, %v3522_v7  ;;  %v2683_v39 = vadd.f32 %v2680_v16, %v2674_v19  ;;  %v12843_v10 = vpack.c.bf16 %v3729_v5, %v3728_v4  ;;  %v3749_v16 = vld [vmem:[%s15879_s9 + $0xb8] sm:$0xff]  ;;  %v3759_v19 = vld [vmem:[%s15879_s9 + $0x108] sm:$0xff] }
 0x434   : > { %11710 = vmatmul.mubr.msk.bf16.vlgmr.msra.gmra.mrb[8].mxu0 %vm2704_vm0, %v3522_v7  ;;  %12316 = vmatprep.mubr.msk.f32.mxu1 %vm13835_vm12, %v14425_v17 }
 0x435   : > { %12840 = vmatpush3.bf16.msra.mxu0 %v12839_v2 }
 0x436   : > { %12842 = vmatprep.subr.bf16.mxu0 %v12841_v3 }
 0x439   : > { %12844 = vmatpush3.bf16.msra.mxu0 %v12843_v10 }
 0x506   : > { %v3618_v18 = vpop.f32.mrb[8].mxu1 }
 0x507   : > { %v3635_v20 = vmul.f32 %v3631_v12, %v3618_v18  ;;  %v3577_v21 = vpop.f32.mrb[8].mxu0  ;;  %v12306_v23 = vpop.f32.mrb[9].mxu1  ;;  %v3758_v18 = vld [vmem:[%s15879_s9 + $0x100] sm:$0xff] }
 0x508   : > { %v3633_v24 = vmul.f32 %v3631_v12, %v3577_v21  ;;  %v3579_v25 = vpop.f32.mrb[9].mxu0  ;;  %v3621_v26 = vpop.f32.mrb[10].mxu1  ;;  %v3732_v21 = vld [vmem:[%s15879_s9 + $0x30] sm:$0xff]  ;;  %v12870_v23 = vpack.c.bf16 %v3759_v19, %v3758_v18 }
 0x509   : > { %v3644_v28 = vadd.f32 %v3640_v14, %v3635_v20  ;;  %v3634_v29 = vmul.f32 %v3631_v12, %v3579_v25  ;;  %v3581_v30 = vpop.f32.mrb[10].mxu0  ;;  %v12307_v31 = vpop.f32.mrb[11].mxu1  ;;  %v12845_v12 = vpack.c.bf16 %v3747_v9, %v3746_v8  ;;  %v3733_v25 = vld [vmem:[%s15879_s9 + $0x38] sm:$0xff]  ;;  %v3760_v26 = vld [vmem:[%s15879_s9 + $0x110] sm:$0xff] }
 0x50a   : > { %v3642_v35 = vadd.f32 %v3640_v14, %v3633_v24  ;;  %v3582_v37 = vpop.f32.mrb[11].mxu0  ;;  %v12849_v24 = vpack.c.bf16 %v3749_v16, %v3748_v15  ;;  %12871 = vmatpush3.bf16.msra.mxu1 %v12870_v23  ;;  %v12851_v31 = vpack.c.bf16 %v3733_v25, %v3732_v21  ;;  %v4427_v23 = vld [vmem:[%s13959_s25 + $0x8] sm:$0xff] }
 0x50b   : > { %v3647_v40 = vadd.f32 %v3644_v28, %v2684_v27  ;;  %v3643_v41 = vadd.f32 %v3640_v14, %v3634_v29  ;;  %v3731_v14 = vld [vmem:[%s15879_s9 + $0x28] sm:$0xff]  ;;  %12846 = vmatprep.subr.bf16.mxu0 %v12845_v12  ;;  %v3761_v27 = vld [vmem:[%s15879_s9 + $0x118] sm:$0xff]  ;;  %v3750_v28 = vld [vmem:[%s15879_s9 + $0xc0] sm:$0xff]  ;;  %12872 = vmatprep.subr.bf16.mxu1 %v13845_v63 }
 0x50c   : > { %v3645_v36 = vadd.f32 %v3642_v35, %v2682_v33  ;;  %v12847_v20 = vpack.c.bf16 %v3731_v14, %v3730_v13  ;;  %v3751_v29 = vld [vmem:[%s15879_s9 + $0xc8] sm:$0xff]  ;;  %v12873_v30 = vpack.c.bf16 %v3761_v27, %v3760_v26  ;;  %v3734_v33 = vld [vmem:[%s15879_s9 + $0x40] sm:$0xff]  ;;  %v3752_v37 = vld [vmem:[%s15879_s9 + $0xd0] sm:$0xff] }
 0x50d   : > { %v3646_v38 = vadd.f32 %v3643_v41, %v2683_v39  ;;  %v3650_v46 = vmax.f32 %v3647_v40, 0.0  ;;  %v12853_v32 = vpack.c.bf16 %v3751_v29, %v3750_v28  ;;  %v3735_v35 = vld [vmem:[%s15879_s9 + $0x48] sm:$0xff]  ;;  %v3753_v39 = vld [vmem:[%s15879_s9 + $0xd8] sm:$0xff]  ;;  %v4440_v26 = vld [vmem:[%s15891_s15] sm:$0xff] }
 0x50e   : > { %v3648_v44 = vmax.f32 %v3645_v36, 0.0  ;;  %12848 = vmatpush3.bf16.msra.mxu0 %v12847_v20  ;;  %12874 = vmatpush3.bf16.msra.mxu1 %v12873_v30  ;;  %v12855_v40 = vpack.c.bf16 %v3735_v35, %v3734_v33  ;;  %v12857_v41 = vpack.c.bf16 %v3753_v39, %v3752_v37  ;;  %v3736_v36 = vld [vmem:[%s15879_s9 + $0x50] sm:$0xff]  ;;  %v4441_v25 = vld [vmem:[%s15891_s15 + $0x8] sm:$0xff]  ;;  %s15924_s15 = sld [smem:[#allocation40_spill]] }
 0x50f   : > { %v3649_v45 = vmax.f32 %v3646_v38, 0.0  ;;  %v3670_v50 = vmul.f32 %v3664_v48, %v3650_v46  ;;  %12850 = vmatprep.subr.bf16.mxu0 %v12849_v24  ;;  %12319 = vmatprep.subr.bf16.mxu1 %v14425_v17  ;;  %v3738_v46 = vld [vmem:[%s15879_s9 + $0x60] sm:$0xff]  ;;  %v13676_v29 = vld [vmem:[%s15892_s10 + $0x8] sm:$0xff]   ;;  %v13678_v35 = vld [vmem:[%s15892_s10 + $0x10] sm:$0xff]  }
 0x510   : > { %v3668_v47 = vmul.f32 %v3656_v42, %v3648_v44  ;;  %v3737_v42 = vld [vmem:[%s15879_s9 + $0x58] sm:$0xff]  ;;  %v3755_v44 = vld [vmem:[%s15879_s9 + $0xe8] sm:$0xff]  ;;  %v4426_v24 = vld [vmem:[%s13959_s25] sm:$0xff] }
 0x511   : > { %v3669_v49 = vmul.f32 %v3660_v43, %v3649_v45  ;;  %v12859_v38 = vpack.c.bf16 %v3737_v42, %v3736_v36  ;;  %v3754_v43 = vld [vmem:[%s15879_s9 + $0xe0] sm:$0xff] }
 0x512   : > { %3674 = vrot.lane.b32.xlu1 %v3668_v47, %s15806_s0  ;;  %12852 = vmatpush3.bf16.msra.mxu0 %v12851_v31  ;;  %v12861_v45 = vpack.c.bf16 %v3755_v44, %v3754_v43  ;;  %v3739_v47 = vld [vmem:[%s15879_s9 + $0x68] sm:$0xff]  ;;  %v13677_v31 = vld [vmem:[%s15892_s10] sm:$0xff]  }
 0x513   : > { %3676 = vrot.lane.b32.xlu0 %v3669_v49, %s15806_s0  ;;  %12854 = vmatprep.subr.bf16.mxu0 %v12853_v32  ;;  %v12863_v48 = vpack.c.bf16 %v3739_v47, %v3738_v46  ;;  %v3756_v49 = vld [vmem:[%s15879_s9 + $0xf0] sm:$0xff]  ;;  %v13680_v42 = vld [vmem:[%s15892_s10 + $0x20] sm:$0xff]   ;;  %v13681_v44 = vld [vmem:[%s15892_s10 + $0x28] sm:$0xff]  }
 0x514   : > { %v13682_v47 = vld [vmem:[%s15892_s10 + $0x30] sm:$0xff]  }
 0x516   : > { %3678 = vrot.lane.b32.xlu1 %v3670_v50, %s15806_s0  ;;  %12856 = vmatpush3.bf16.msra.mxu0 %v12855_v40  ;;  %v3757_v50 = vld [vmem:[%s15879_s9 + $0xf8] sm:$0xff]  ;;  %s15828_s0 = smov 118  }
 0x517   : > { %12858 = vmatprep.subr.bf16.mxu0 %v12857_v41  ;;  %v13679_v40 = vld [vmem:[%s15892_s10 + $0x18] sm:$0xff]  }
 0x51a   : > { %12860 = vmatpush3.bf16.msra.mxu0 %v12859_v38 }
 0x51b   : > { %12862 = vmatprep.subr.bf16.mxu0 %v12861_v45 }
 0x51e   : > { %12864 = vmatpush3.bf16.msra.mxu0 %v12863_v48 }
 0x584   : > { %v3675_v51 = vpop.permute.xlu1 %3674 }
 0x585   : > { %3685 = vst.msk [vmem:[#allocation3] sm:$0xff] %vm2549_vm8, %v3675_v51  ;;  %v3677_v52 = vpop.permute.xlu0 %3676 }
 0x586   : > { %v14515_v53 = vsel %vm2543_vm9, %v3675_v51, %v3677_v52  ;;  %v12865_v51 = vpack.c.bf16 %v3757_v50, %v3756_v49  ;;  %v13683_v50 = vld [vmem:[%s15892_s10 + $0x38] sm:$0xff]  }
 0x587   : > { %3686 = vst [vmem:[#allocation3 + $0x8] sm:$0xff] %v14515_v53 }
 0x588   : > { %v3679_v54 = vpop.permute.xlu1 %3678  ;;  %12866 = vmatprep.subr.bf16.mxu0 %v12865_v51 }
 0x589   : > { %v3681_v55 = vsel %vm2543_vm9, %v3677_v52, %v3679_v54  ;;  %v3740_v52 = vld [vmem:[%s15879_s9 + $0x70] sm:$0xff]  ;;  %v3741_v54 = vld [vmem:[%s15879_s9 + $0x78] sm:$0xff]  ;;  %s15903_s9 = sld [smem:[#allocation17_spill]] }
 0x58a   : > { %3687 = vst.msk [vmem:[#allocation3 + $0x10] sm:$0xff] %vm15827_vm10, %v3681_v55  ;;  %v12867_v55 = vpack.c.bf16 %v3741_v54, %v3740_v52  ;;  %v13684_v54 = vld [vmem:[%s15892_s10 + $0x40] sm:$0xff]   ;;  %vm5264_vm10 = vcmask 654336   ;;  %s15914_s10 = sld [smem:[#allocation34_spill]] }
 0x58c   : > { %v14527_v1 = vld [vmem:[#allocation3] sm:$0xff]  ;;  %12868 = vmatpush3.bf16.msra.mxu0 %v12867_v55 }
 0x58d   : > { %v13665_v7 = vpack.i.bf16 %v14527_v1, %v14515_v53  ;;  %12373 = vmatprep.subr.bf16.mxu0 %v14425_v17 }
 0x58f   : > { %13666 = vrot.lane.b32.xlu0 %v13665_v7, %s15829_s16 }
 0x591   : > { %v6013_v0 = vld [vmem:[#allocation3 + $0x10] sm:$0xff] }
 0x592   : > { %3698 = vrot.lane.b32.xlu1 %v6013_v0, %s15829_s16 }
 0x601   : > { %v13667_v56 = vpop.permute.xlu0 %13666 }
 0x602   : > { %v13669_v57 = vunpack.i.h.bf16 %v13667_v56  ;;  %v13668_v58 = vunpack.i.l.bf16 %v13667_v56 }
 0x604   : > { %v3699_v59 = vpop.permute.xlu1 %3698  ;;  %v3701_v60 = vsel %vm1483_vm14, %v13669_v57, %v13668_v58 }
 0x605   : > { %v3702_v61 = vsel %vm1483_vm14, %v13668_v58, %v3699_v59  ;;  %v3708_v62 = vmax.f32 %v6013_v0, %v3699_v59  ;;  %v3706_v2 = vmax.f32 %v14527_v1, %v3701_v60 }
 0x606   : > { %v3707_v3 = vmax.f32 %v14515_v53, %v3702_v61 }
 0x607   : > { %3716 = vrot.lane.b32.xlu1 %v3708_v62, %s15816_s23 }
 0x608   : > { %v13670_v4 = vpack.i.bf16 %v3706_v2, %v3707_v3 }
 0x60a   : > { %13671 = vrot.lane.b32.xlu0 %v13670_v4, %s15816_s23  ;;  %s15893_s23 = sld [smem:[#allocation15_spill]] }
 0x679   : > { %v3717_v5 = vpop.permute.xlu1 %3716 }
 0x67a   : > { %v3725_v7 = vmax.f32 %v3708_v62, %v3717_v5 }
 0x67c   : > { %12317 = vmatmul.mubr.msk.f32.vlgmr.msra.gmra.mrb[12].mxu1 %vm3762_vm15, %v3725_v7  ;;  %v13672_v8 = vpop.permute.xlu0 %13671  ;;  %vm4473_vm15 = vcmask 744536  }
 0x67d   : > { %v13674_v9 = vunpack.i.h.bf16 %v13672_v8  ;;  %v13673_v10 = vunpack.i.l.bf16 %v13672_v8  ;;  %12321 = vmatprep.mubr.msk.bf16.mxu1 %vm13835_vm12, %v14425_v17 }
 0x67f   : > { %v3718_v12 = vsel %vm1352_vm13, %v13674_v9, %v13673_v10  ;;  %v3719_v1 = vsel %vm1352_vm13, %v13673_v10, %v3717_v5  ;;  %v11731_v5 = vld [vmem:[%s15893_s23] ss:$0 sm:$0xff]  ;;  %s15895_s23 = sld [smem:[#allocation30_spill]] }
 0x680   : > { %v3724_v53 = vmax.f32 %v3707_v3, %v3719_v1  ;;  %v3723_v13 = vmax.f32 %v3706_v2, %v3718_v12 }
 0x682   : > { %3830 = vmatprep.mubr.f32.mxu0 %v3724_v53 }
 0x683   : > { %3831 = vmatmul.mubr.f32.vlgmr.msra.gmra.mrb[12].mxu0 %v3723_v13 }
 0x684   : > { %12375 = vmatprep.mubr.msk.bf16.mxu0 %vm13835_vm12, %v14425_v17 }
 0x74f   : > { %v3902_v14 = vpop.f32.mrb[12].mxu1 }
 0x750   : > { %v12318_v15 = vpop.f32.mrb[13].mxu1 }
 0x756   : > { %v12000_v16 = vpop.f32.mrb[12].mxu0 }
 0x757   : > { %v12001_v0 = vpop.f32.mrb[13].mxu0 }
 0x758   : > { %v12002_v18 = vadd.f32 %v12001_v0, %v12000_v16 }
 0x75a   : > { %v3903_v19 = vadd.f32 %v12002_v18, %v3902_v14 }
 0x75c   : > { %3906 = vst.msk [vmem:[#allocation7] sm:$0xff] %vm1352_vm13, %v3903_v19  ;;  %v4536_v19 = vld [vmem:[%s15895_s23 + $0x8] sm:$0xff] }
 0x763   : > { %v3909_v20 = vld [vmem:[#allocation7] sm:$0xff] }
 0x764   : > { %v14579_v21 = vpack.c.bf16 %v3909_v20, %v3909_v20  ;;  %v4535_v20 = vld [vmem:[%s15895_s23] sm:$0xff] }
 0x766   : > { %4027 = vrot.lane.b32.xlu1 %v14579_v21, %s15824_s18  ;;  %3919 = vrot.lane.b32.xlu0 %v14579_v21, %s15829_s16  ;;  %v3977_v30 = vsel %vm2708_vm11, %v14579_v21, 0 }
 0x76a   : > { %4143 = vrot.lane.b32.xlu1 %v14579_v21, %s13846_s22  ;;  %4085 = vrot.lane.b32.xlu0 %v14579_v21, %s15828_s0 }
 0x76e   : > { %4259 = vrot.lane.b32.xlu1 %v14579_v21, %s15831_s2  ;;  %4201 = vrot.lane.b32.xlu0 %v14579_v21, %s15821_s11  ;;  %s15897_s11 = sld [smem:[#allocation31_spill]] }
 0x772   : > { %4375 = vrot.lane.b32.xlu1 %v14579_v21, %s15819_s7  ;;  %4317 = vrot.lane.b32.xlu0 %v14579_v21, %s15818_s26  ;;  %s15894_s26 = sld [smem:[#allocation29_spill]]  ;;  %s13851_s7 = smov 11  }
 0x776   : > { %4435 = vperm.xlu1 %13664, %v4427_v23   ;;  %4430 = vperm.xlu0 %13663, %v4426_v24   ;;  %v4550_v24 = vld [vmem:[%s15897_s11 + $0x8] sm:$0xff] }
 0x778   : > { %v13685_v15 = vld [vmem:[%s15894_s26] sm:$0xff]   ;;  %s15898_s26 = smov 116  }
 0x77a   : > { %4449 = vperm.xlu1 %13664, %v4441_v25   ;;  %4444 = vperm.xlu0 %13663, %v4440_v26   ;;  %v4549_v25 = vld [vmem:[%s15897_s11] sm:$0xff]  ;;  %v5080_v26 = vld [vmem:[%s15899_s5 + $0x8] sm:$0xff]  ;;  %s15915_s11 = sld [smem:[#allocation33_spill]] }
 0x7d8   : > { %v3920_v27 = vpop.permute.xlu0 %3919  ;;  %v4028_v32 = vpop.permute.xlu1 %4027 }
 0x7d9   : > { %v3925_v28 = vsel %vm2708_vm11, %v3920_v27, 0  ;;  %v4033_v33 = vsel %vm2708_vm11, %v4028_v32, 0  ;;  %v5079_v27 = vld [vmem:[%s15899_s5] sm:$0xff]  ;;  %s15910_s5 = smov 108  }
 0x7da   : > { %12320 = vmatpush3.bf16.msra.mxu1 %v3925_v28 }
 0x7db   : > { %12325 = vmatprep.subr.bf16.mxu1 %v14425_v17 }
 0x7dc   : > { %v4086_v37 = vpop.permute.xlu0 %4085  ;;  %v4144_v41 = vpop.permute.xlu1 %4143 }
 0x7dd   : > { %12322 = vmatmul.mubr.msk.bf16.vlgmr.msra.gmra.mrb[16].mxu1 %vm2704_vm0, %v13676_v29  ;;  %v4091_v39 = vsel %vm2708_vm11, %v4086_v37, 0  ;;  %v4149_v36 = vsel %vm2708_vm11, %v4144_v41, 0  ;;  %v5142_v29 = vld [vmem:[%s15903_s9] sm:$0xff]  ;;  %s15905_s9 = sld [smem:[#allocation16_spill]] }
 0x7de   : > { %12326 = vmatpush3.bf16.msra.mxu1 %v3977_v30  ;;  %12327 = vmatprep.mubr.msk.bf16.mxu1 %vm13835_vm12, %v14425_v17 }
 0x7df   : > { %12331 = vmatprep.subr.bf16.mxu1 %v14425_v17 }
 0x7e0   : > { %v4202_v38 = vpop.permute.xlu0 %4201  ;;  %v4260_v45 = vpop.permute.xlu1 %4259 }
 0x7e1   : > { %v4207_v43 = vsel %vm2708_vm11, %v4202_v38, 0  ;;  %v4265_v46 = vsel %vm2708_vm11, %v4260_v45, 0 }
 0x7e4   : > { %v4318_v48 = vpop.permute.xlu0 %4317  ;;  %v4376_v51 = vpop.permute.xlu1 %4375 }
 0x7e5   : > { %v4323_v49 = vsel %vm2708_vm11, %v4318_v48, 0  ;;  %v4381_v52 = vsel %vm2708_vm11, %v4376_v51, 0 }
 0x7e9   : > { %12328 = vmatmul.mubr.msk.bf16.vlgmr.msra.gmra.mrb[16].mxu1 %vm2704_vm0, %v13677_v31 }
 0x7ea   : > { %12332 = vmatpush3.bf16.msra.mxu1 %v4033_v33  ;;  %12333 = vmatprep.mubr.msk.bf16.mxu1 %vm13835_vm12, %v14425_v17 }
 0x7eb   : > { %12337 = vmatprep.subr.bf16.mxu1 %v14425_v17 }
 0x7f5   : > { %12334 = vmatmul.mubr.msk.bf16.vlgmr.msra.gmra.mrb[16].mxu1 %vm2704_vm0, %v13678_v35  ;;  %v4431_v55 = vpop.permute.xlu0 %4430  ;;  %v4436_v56 = vpop.permute.xlu1 %4435 }
 0x7f6   : > { %12338 = vmatpush3.bf16.msra.mxu1 %v4091_v39  ;;  %12339 = vmatprep.mubr.msk.bf16.mxu1 %vm13835_vm12, %v14425_v17 }
 0x7f7   : > { %12343 = vmatprep.subr.bf16.mxu1 %v14425_v17 }
 0x7f9   : > { %v4445_v60 = vpop.permute.xlu0 %4444  ;;  %v4450_v4 = vpop.permute.xlu1 %4449 }
 0x801   : > { %12340 = vmatmul.mubr.msk.bf16.vlgmr.msra.gmra.mrb[16].mxu1 %vm2704_vm0, %v13679_v40 }
 0x802   : > { %12344 = vmatpush3.bf16.msra.mxu1 %v4149_v36  ;;  %12345 = vmatprep.mubr.msk.bf16.mxu1 %vm13835_vm12, %v14425_v17 }
 0x803   : > { %12349 = vmatprep.subr.bf16.mxu1 %v14425_v17 }
 0x80d   : > { %12346 = vmatmul.mubr.msk.bf16.vlgmr.msra.gmra.mrb[16].mxu1 %vm2704_vm0, %v13680_v42 }
 0x80e   : > { %12350 = vmatpush3.bf16.msra.mxu1 %v4207_v43  ;;  %12351 = vmatprep.mubr.msk.bf16.mxu1 %vm13835_vm12, %v14425_v17 }
 0x80f   : > { %12355 = vmatprep.subr.bf16.mxu1 %v14425_v17 }
 0x819   : > { %12352 = vmatmul.mubr.msk.bf16.vlgmr.msra.gmra.mrb[16].mxu1 %vm2704_vm0, %v13681_v44 }
 0x81a   : > { %12356 = vmatpush3.bf16.msra.mxu1 %v4265_v46  ;;  %12357 = vmatprep.mubr.msk.bf16.mxu1 %vm13835_vm12, %v14425_v17 }
 0x81b   : > { %12361 = vmatprep.subr.bf16.mxu1 %v14425_v17 }
 0x825   : > { %12358 = vmatmul.mubr.msk.bf16.vlgmr.msra.gmra.mrb[16].mxu1 %vm2704_vm0, %v13682_v47 }
 0x826   : > { %12362 = vmatpush3.bf16.msra.mxu1 %v4323_v49  ;;  %12363 = vmatprep.mubr.msk.bf16.mxu1 %vm13835_vm12, %v14425_v17 }
 0x827   : > { %12367 = vmatprep.subr.bf16.mxu1 %v14425_v17 }
 0x831   : > { %12364 = vmatmul.mubr.msk.bf16.vlgmr.msra.gmra.mrb[16].mxu1 %vm2704_vm0, %v13683_v50 }
 0x832   : > { %12368 = vmatpush3.bf16.msra.mxu1 %v4381_v52  ;;  %12369 = vmatprep.mubr.msk.bf16.mxu1 %vm13835_vm12, %v14425_v17  ;;  %v5236_v52 = vld [vmem:[#allocation9 + $0x100] sm:$0xff] }
 0x833   : > { %12433 = vmatprep.subr.bf16.mxu1 %v14425_v17 }
 0x83d   : > { %12370 = vmatmul.mubr.msk.bf16.vlgmr.msra.gmra.mrb[16].mxu1 %vm2704_vm0, %v13684_v54  ;;  %v5239_v54 = vld [vmem:[#allocation9 + $0x118] sm:$0xff] }
 0x83e   : > { %12435 = vmatprep.mubr.msk.bf16.mxu1 %vm13835_vm12, %v14425_v17 }
 0x910   : > { %v4417_v57 = vpop.f32.mrb[16].mxu1 }
 0x911   : > { %v4438_v58 = vmul.f32 %v4431_v55, %v4417_v57  ;;  %v12371_v59 = vpop.f32.mrb[17].mxu1  ;;  %v12896_v55 = vpack.c.bf16 %v5239_v54, %v5236_v52  ;;  %v5245_v57 = vld [vmem:[#allocation9 + $0x148] sm:$0xff]  ;;  %v5255_v52 = vld [vmem:[#allocation9 + $0x198] sm:$0xff]  ;;  %v5254_v54 = vld [vmem:[#allocation9 + $0x190] sm:$0xff] }
 0x912   : > { %v4420_v61 = vpop.f32.mrb[18].mxu1 }
 0x913   : > { %v4452_v62 = vadd.f32 %v4445_v60, %v4438_v58  ;;  %v4439_v2 = vmul.f32 %v4436_v56, %v4420_v61  ;;  %v12372_v3 = vpop.f32.mrb[19].mxu1  ;;  %v5242_v56 = vld [vmem:[#allocation9 + $0x130] sm:$0xff] }
 0x914   : > { %v12899_v58 = vpack.c.bf16 %v5245_v57, %v5242_v56 }
 0x915   : > { %v4454_v7 = vmax.f32 %v4452_v62, 0.0  ;;  %v4453_v8 = vadd.f32 %v4450_v4, %v4439_v2 }
 0x917   : > { %v4455_v9 = vmax.f32 %v4453_v8, 0.0  ;;  %v4463_v10 = vmul.f32 %v11731_v5, %v4454_v7 }
 0x919   : > { %4467 = vrot.lane.b32.xlu0 %v4463_v10, %s13851_s7  ;;  %v4464_v12 = vmul.f32 %v11731_v5, %v4455_v9 }
 0x91b   : > { %4469 = vrot.lane.b32.xlu1 %v4464_v12, %s13851_s7  ;;  %s15896_s7 = sld [smem:[#allocation27_spill]] }
 0x91d   : > { %4486 = vrot.lane.b32.xlu0 %v14579_v21, %s13846_s22 }
 0x921   : > { %v5066_v21 = vld [vmem:[%s15896_s7 + $0x8] sm:$0xff]  ;;  %v5065_v23 = vld [vmem:[%s15896_s7] sm:$0xff]  ;;  %s15912_s7 = smov 120  }
 0x98b   : > { %v4468_v1 = vpop.permute.xlu0 %4467 }
 0x98c   : > { %4474 = vst.msk [vmem:[#allocation8] sm:$0xff] %vm4473_vm15, %v4468_v1 }
 0x98d   : > { %v4470_v53 = vpop.permute.xlu1 %4469 }
 0x98e   : > { %4475 = vst.msk [vmem:[#allocation8 + $0x8] sm:$0xff] %vm4473_vm15, %v4470_v53  ;;  %vm4579_vm15 = vcmask 130048  }
 0x98f   : > { %v4487_v13 = vpop.permute.xlu0 %4486 }
 0x990   : > { %v4492_v14 = vsel %vm2708_vm11, %v4487_v13, 0 }
 0x991   : > { %12374 = vmatpush3.bf16.msra.mxu0 %v4492_v14 }
 0x992   : > { %12379 = vmatprep.subr.bf16.mxu0 %v14425_v17 }
 0x993   : > { %v4565_v16 = vld [vmem:[#allocation8] sm:$0xff] }
 0x994   : > { %12376 = vmatmul.mubr.msk.bf16.vlgmr.msra.gmra.mrb[16].mxu0 %vm2704_vm0, %v13685_v15 }
 0x995   : > { %v4566_v0 = vld [vmem:[#allocation8 + $0x8] sm:$0xff]  ;;  %12381 = vmatprep.mubr.msk.bf16.mxu0 %vm13835_vm12, %v14425_v17 }
 0x996   : > { %v4567_v18 = vpack.c.bf16 %v4566_v0, %v4565_v16 }
 0x998   : > { %4680 = vrot.lane.b32.xlu0 %v4567_v18, %s15824_s18  ;;  %4576 = vrot.lane.b32.xlu1 %v4567_v18, %s15829_s16  ;;  %s15902_s18 = sld [smem:[#allocation18_spill]] }
 0x99c   : > { %4792 = vrot.lane.b32.xlu0 %v4567_v18, %s13846_s22  ;;  %4736 = vrot.lane.b32.xlu1 %v4567_v18, %s15828_s0  ;;  %s15904_s22 = sld [smem:[#allocation26_spill]]  ;;  %s15907_s0 = smov 126  }
 0x99e   : > { %v5149_v28 = vld [vmem:[%s15902_s18] sm:$0xff]  ;;  %s15834_s18 = smov 120  }
 0x9a0   : > { %4904 = vrot.lane.b32.xlu0 %v4567_v18, %s15831_s2  ;;  %4848 = vrot.lane.b32.xlu1 %v4567_v18, %s15898_s26  ;;  %s15909_s2 = smov 109  }
 0x9a2   : > { %v13686_v31 = vld [vmem:[%s15904_s22 + $0x8] sm:$0xff]   ;;  %v13687_v32 = vld [vmem:[%s15904_s22] sm:$0xff]   ;;  %v13688_v35 = vld [vmem:[%s15904_s22 + $0x10] sm:$0xff]  }
 0x9a3   : > { %v13689_v39 = vld [vmem:[%s15904_s22 + $0x18] sm:$0xff]   ;;  %v13690_v41 = vld [vmem:[%s15904_s22 + $0x20] sm:$0xff]   ;;  %v13691_v42 = vld [vmem:[%s15904_s22 + $0x28] sm:$0xff]  }
 0x9a4   : > { %5016 = vrot.lane.b32.xlu0 %v4567_v18, %s15900_s6  ;;  %4960 = vrot.lane.b32.xlu1 %v4567_v18, %s15901_s8  ;;  %v13692_v43 = vld [vmem:[%s15904_s22 + $0x30] sm:$0xff]   ;;  %v13693_v45 = vld [vmem:[%s15904_s22 + $0x38] sm:$0xff]   ;;  %s15906_s8 = sld [smem:[#allocation32_spill]] }
 0x9a5   : > { %v13694_v50 = vld [vmem:[%s15904_s22 + $0x40] sm:$0xff]  }
 0x9a8   : > { %4544 = vperm.xlu0 %13663, %v4536_v19   ;;  %4539 = vperm.xlu1 %13664, %v4535_v20  }
 0x9ac   : > { %5074 = vperm.xlu0 %13663, %v5066_v21   ;;  %5069 = vperm.xlu1 %13664, %v5065_v23   ;;  %v5235_v23 = vld [vmem:[#allocation9 + $0xf8] sm:$0xff] }
 0x9b0   : > { %4558 = vperm.xlu0 %13663, %v4550_v24   ;;  %4553 = vperm.xlu1 %13664, %v4549_v25   ;;  %v5238_v24 = vld [vmem:[#allocation9 + $0x110] sm:$0xff]  ;;  %v5097_v25 = vld [vmem:[%s15905_s9] sm:$0xf] }
 0x9b4   : > { %5088 = vperm.xlu0 %13663, %v5080_v26   ;;  %5083 = vperm.xlu1 %13664, %v5079_v27   ;;  %v14734_v26 = vld [vmem:[#allocation6] sm:$0xff]  ;;  %v12875_v27 = vpack.c.bf16 %v5238_v24, %v5235_v23  ;;  %v5164_v24 = vld [vmem:[#allocation9 + $0x38] sm:$0xff] }
 0x9b8   : > { %5152 = vperm.xlu0 %13663, %v5149_v28   ;;  %5145 = vperm.xlu1 %13664, %v5142_v29   ;;  %v5234_v28 = vld [vmem:[#allocation9 + $0xf0] sm:$0xff]  ;;  %v5237_v29 = vld [vmem:[#allocation9 + $0x108] sm:$0xff] }
 0xa0a   : > { %v4577_v30 = vpop.permute.xlu1 %4576  ;;  %v4681_v33 = vpop.permute.xlu0 %4680 }
 0xa0b   : > { %12380 = vmatpush3.bf16.msra.mxu0 %v4577_v30  ;;  %v5241_v30 = vld [vmem:[#allocation9 + $0x128] sm:$0xff] }
 0xa0c   : > { %12385 = vmatprep.subr.bf16.mxu0 %v14425_v17 }
 0xa0e   : > { %12382 = vmatmul.mubr.msk.bf16.vlgmr.msra.gmra.mrb[20].mxu0 %vm4579_vm15, %v13686_v31  ;;  %v4737_v37 = vpop.permute.xlu1 %4736  ;;  %v4793_v40 = vpop.permute.xlu0 %4792  ;;  %v5244_v31 = vld [vmem:[#allocation9 + $0x140] sm:$0xff] }
 0xa0f   : > { %12386 = vmatpush3.bf16.msra.mxu0 %v4567_v18  ;;  %12387 = vmatprep.mubr.msk.bf16.mxu0 %vm13835_vm12, %v14425_v17 }
 0xa10   : > { %12391 = vmatprep.subr.bf16.mxu0 %v14425_v17 }
 0xa12   : > { %v4849_v36 = vpop.permute.xlu1 %4848  ;;  %v4905_v38 = vpop.permute.xlu0 %4904 }
 0xa16   : > { %v4961_v44 = vpop.permute.xlu1 %4960  ;;  %v5017_v46 = vpop.permute.xlu0 %5016 }
 0xa1a   : > { %12388 = vmatmul.mubr.msk.bf16.vlgmr.msra.gmra.mrb[20].mxu0 %vm4579_vm15, %v13687_v32  ;;  %v5187_v32 = vld [vmem:[%s15905_s9 + $0x4] sm:$0xf] }
 0xa1b   : > { %12392 = vmatpush3.bf16.msra.mxu0 %v4681_v33  ;;  %12393 = vmatprep.mubr.msk.bf16.mxu0 %vm13835_vm12, %v14425_v17  ;;  %v12877_v33 = vpack.c.bf16 %v5237_v29, %v5234_v28 }
 0xa1c   : > { %12397 = vmatprep.subr.bf16.mxu0 %v14425_v17 }
 0xa26   : > { %12394 = vmatmul.mubr.msk.bf16.vlgmr.msra.gmra.mrb[20].mxu0 %vm4579_vm15, %v13688_v35  ;;  %v12879_v35 = vpack.c.bf16 %v5244_v31, %v5241_v30  ;;  %v5163_v31 = vld [vmem:[#allocation9 + $0x30] sm:$0xff] }
 0xa27   : > { %12398 = vmatpush3.bf16.msra.mxu0 %v4737_v37  ;;  %12399 = vmatprep.mubr.msk.bf16.mxu0 %vm13835_vm12, %v14425_v17  ;;  %v4540_v59 = vpop.permute.xlu1 %4539  ;;  %v4545_v60 = vpop.permute.xlu0 %4544  ;;  %v5240_v37 = vld [vmem:[#allocation9 + $0x120] sm:$0xff] }
 0xa28   : > { %12403 = vmatprep.subr.bf16.mxu0 %v14425_v17 }
 0xa2b   : > { %v5070_v61 = vpop.permute.xlu1 %5069  ;;  %v5075_v62 = vpop.permute.xlu0 %5074 }
 0xa2f   : > { %v4554_v2 = vpop.permute.xlu1 %4553  ;;  %v4559_v3 = vpop.permute.xlu0 %4558 }
 0xa32   : > { %12400 = vmatmul.mubr.msk.bf16.vlgmr.msra.gmra.mrb[20].mxu0 %vm4579_vm15, %v13689_v39  ;;  %v5243_v39 = vld [vmem:[#allocation9 + $0x138] sm:$0xff] }
 0xa33   : > { %12404 = vmatpush3.bf16.msra.mxu0 %v4793_v40  ;;  %12405 = vmatprep.mubr.msk.bf16.mxu0 %vm13835_vm12, %v14425_v17  ;;  %v5084_v9 = vpop.permute.xlu1 %5083  ;;  %v5089_v14 = vpop.permute.xlu0 %5088  ;;  %v12881_v40 = vpack.c.bf16 %v5243_v39, %v5240_v37  ;;  %v5165_v37 = vld [vmem:[#allocation9 + $0x40] sm:$0xff]  ;;  %v5168_v39 = vld [vmem:[#allocation9 + $0x58] sm:$0xff] }
 0xa34   : > { %12409 = vmatprep.subr.bf16.mxu0 %v14425_v17 }
 0xa3e   : > { %12406 = vmatmul.mubr.msk.bf16.vlgmr.msra.gmra.mrb[20].mxu0 %vm4579_vm15, %v13690_v41  ;;  %v5247_v41 = vld [vmem:[#allocation9 + $0x158] sm:$0xff] }
 0xa3f   : > { %12410 = vmatpush3.bf16.msra.mxu0 %v4849_v36  ;;  %12411 = vmatprep.mubr.msk.bf16.mxu0 %vm13835_vm12, %v14425_v17  ;;  %v5250_v36 = vld [vmem:[#allocation9 + $0x170] sm:$0xff] }
 0xa40   : > { %12415 = vmatprep.subr.bf16.mxu0 %v14425_v17 }
 0xa4a   : > { %12412 = vmatmul.mubr.msk.bf16.vlgmr.msra.gmra.mrb[20].mxu0 %vm4579_vm15, %v13691_v42  ;;  %v12883_v42 = vpack.c.bf16 %v5250_v36, %v5247_v41  ;;  %v5173_v41 = vld [vmem:[#allocation9 + $0x80] sm:$0xff] }
 0xa4b   : > { %12416 = vmatpush3.bf16.msra.mxu0 %v4905_v38  ;;  %12417 = vmatprep.mubr.msk.bf16.mxu0 %vm13835_vm12, %v14425_v17  ;;  %v5246_v38 = vld [vmem:[#allocation9 + $0x150] sm:$0xff] }
 0xa4c   : > { %12421 = vmatprep.subr.bf16.mxu0 %v14425_v17 }
 0xa56   : > { %12418 = vmatmul.mubr.msk.bf16.vlgmr.msra.gmra.mrb[20].mxu0 %vm4579_vm15, %v13692_v43  ;;  %v5249_v43 = vld [vmem:[#allocation9 + $0x168] sm:$0xff] }
 0xa57   : > { %12422 = vmatpush3.bf16.msra.mxu0 %v4961_v44  ;;  %12423 = vmatprep.mubr.msk.bf16.mxu0 %vm13835_vm12, %v14425_v17  ;;  %v5248_v44 = vld [vmem:[#allocation9 + $0x160] sm:$0xff] }
 0xa58   : > { %12427 = vmatprep.subr.bf16.mxu0 %v14425_v17 }
 0xa62   : > { %12424 = vmatmul.mubr.msk.bf16.vlgmr.msra.gmra.mrb[20].mxu0 %vm4579_vm15, %v13693_v45  ;;  %v12885_v45 = vpack.c.bf16 %v5249_v43, %v5246_v38  ;;  %v5169_v38 = vld [vmem:[#allocation9 + $0x60] sm:$0xff] }
 0xa63   : > { %12428 = vmatpush3.bf16.msra.mxu0 %v5017_v46  ;;  %12429 = vmatprep.mubr.msk.bf16.mxu0 %vm13835_vm12, %v14425_v17  ;;  %v5251_v46 = vld [vmem:[#allocation9 + $0x178] sm:$0xff] }
 0xa64   : > { %12895 = vmatprep.subr.bf16.mxu0 %v13845_v63 }
 0xa67   : > { %v4528_v47 = vpop.f32.mrb[16].mxu0 }
 0xa68   : > { %v12377_v48 = vpop.f32.mrb[17].mxu0  ;;  %v4547_v4 = vmul.f32 %v4540_v59, %v4528_v47  ;;  %v12902_v47 = vpack.c.bf16 %v5251_v46, %v5248_v44  ;;  %v5262_v59 = vld [vmem:[#allocation9 + $0x1d0] sm:$0xff]  ;;  %v5172_v44 = vld [vmem:[#allocation9 + $0x78] sm:$0xff]  ;;  %v5174_v46 = vld [vmem:[#allocation9 + $0x88] sm:$0xff] }
 0xa69   : > { %v4531_v49 = vpop.f32.mrb[18].mxu0  ;;  %v5253_v48 = vld [vmem:[#allocation9 + $0x188] sm:$0xff] }
 0xa6a   : > { %v12378_v51 = vpop.f32.mrb[19].mxu0  ;;  %v4548_v5 = vmul.f32 %v4545_v60, %v4531_v49  ;;  %v4561_v12 = vadd.f32 %v4554_v2, %v4547_v4  ;;  %v5256_v49 = vld [vmem:[#allocation9 + $0x1a0] sm:$0xff]  ;;  %v5263_v4 = vld [vmem:[#allocation9 + $0x1d8] sm:$0xff] }
 0xa6b   : > { %v12887_v51 = vpack.c.bf16 %v5256_v49, %v5253_v48  ;;  %v5260_v2 = vld [vmem:[#allocation9 + $0x1c0] sm:$0xff]  ;;  %v5179_v48 = vld [vmem:[#allocation9 + $0xb0] sm:$0xff]  ;;  %v12920_v49 = vpack.c.bf16 %v5172_v44, %v5169_v38  ;;  %v5619_v38 = vld [vmem:[#allocation9 + $0x278] sm:$0xff] }
 0xa6c   : > { %v4562_v15 = vadd.f32 %v4559_v3, %v4548_v5  ;;  %v5158_v5 = vld [vmem:[#allocation9 + $0x8] sm:$0xff] }
 0xa6e   : > { %12430 = vmatmul.mubr.msk.bf16.vlgmr.msra.gmra.mrb[20].mxu0 %vm4579_vm15, %v13694_v50  ;;  %v5252_v50 = vld [vmem:[#allocation9 + $0x180] sm:$0xff] }
 0xa6f   : > { %12465 = vmatprep.mubr.msk.f32.mxu0 %vm13835_vm12, %v14425_v17  ;;  %12897 = vmatpush3.bf16.msra.mxu0 %v12896_v55  ;;  %v5257_v55 = vld [vmem:[#allocation9 + $0x1a8] sm:$0xff]  ;;  %v12889_v56 = vpack.c.bf16 %v5255_v52, %v5252_v50 }
 0xa70   : > { %12898 = vmatprep.subr.bf16.mxu0 %v13845_v63  ;;  %v12905_v57 = vpack.c.bf16 %v5257_v55, %v5254_v54  ;;  %v5178_v54 = vld [vmem:[#allocation9 + $0xa8] sm:$0xff]  ;;  %v5177_v55 = vld [vmem:[#allocation9 + $0xa0] sm:$0xff] }
 0xa73   : > { %12900 = vmatpush3.bf16.msra.mxu0 %v12899_v58  ;;  %v5259_v58 = vld [vmem:[#allocation9 + $0x1b8] sm:$0xff] }
 0xa74   : > { %12901 = vmatprep.subr.bf16.mxu0 %v13845_v63  ;;  %v12891_v60 = vpack.c.bf16 %v5262_v59, %v5259_v58  ;;  %v5185_v58 = vld [vmem:[#allocation9 + $0xe0] sm:$0xff] }
 0xa77   : > { %12903 = vmatpush3.bf16.msra.mxu0 %v12902_v47  ;;  %v5176_v47 = vld [vmem:[#allocation9 + $0x98] sm:$0xff] }
 0xa78   : > { %12904 = vmatprep.subr.bf16.mxu0 %v13845_v63  ;;  %v12922_v52 = vpack.c.bf16 %v5179_v48, %v5176_v47  ;;  %v5621_v47 = vld [vmem:[#allocation9 + $0x288] sm:$0xff] }
 0xa7b   : > { %12906 = vmatpush3.bf16.msra.mxu0 %v12905_v57  ;;  %v5182_v57 = vld [vmem:[#allocation9 + $0xc8] sm:$0xff] }
 0xa7c   : > { %12907 = vmatprep.subr.bf16.mxu0 %v13845_v63 }
 0xb41   : > { %v5056_v17 = vpop.f32.mrb[20].mxu0 }
 0xb42   : > { %v5077_v7 = vmul.f32 %v5070_v61, %v5056_v17  ;;  %v12431_v8 = vpop.f32.mrb[21].mxu0  ;;  %v5258_v61 = vld [vmem:[#allocation9 + $0x1b0] sm:$0xff]  ;;  %v12908_v17 = vpack.c.bf16 %v5263_v4, %v5260_v2  ;;  %v12926_v2 = vpack.c.bf16 %v5185_v58, %v5182_v57  ;;  %v5627_v57 = vld [vmem:[#allocation9 + $0x2b8] sm:$0xff] }
 0xb43   : > { %v5059_v10 = vpop.f32.mrb[22].mxu0  ;;  %v5183_v4 = vld [vmem:[#allocation9 + $0xd0] sm:$0xff] }
 0xb44   : > { %v5091_v1 = vadd.f32 %v5084_v9, %v5077_v7  ;;  %v5078_v53 = vmul.f32 %v5075_v62, %v5059_v10  ;;  %v12432_v13 = vpop.f32.mrb[23].mxu0  ;;  %v5261_v62 = vld [vmem:[#allocation9 + $0x1c8] sm:$0xff]  ;;  %v5161_v7 = vld [vmem:[#allocation9 + $0x20] sm:$0xff]  ;;  %12909 = vmatpush3.bf16.msra.mxu0 %v12908_v17 }
 0xb45   : > { %v12893_v3 = vpack.c.bf16 %v5261_v62, %v5258_v61  ;;  %v12910_v8 = vpack.c.bf16 %v5161_v7, %v5158_v5  ;;  %12930 = vmatprep.subr.bf16.mxu0 %v13845_v63  ;;  %v5181_v61 = vld [vmem:[#allocation9 + $0xc0] sm:$0xff]  ;;  %v5186_v17 = vld [vmem:[#allocation9 + $0xe8] sm:$0xff] }
 0xb46   : > { %v5093_v16 = vadd.f32 %v5091_v1, %v4561_v12  ;;  %v5092_v0 = vadd.f32 %v5089_v14, %v5078_v53  ;;  %v14749_v53 = vpop.permute.xlu1 %5145  ;;  %v5157_v14 = vld [vmem:[#allocation9] sm:$0xff]  ;;  %v12943_v7 = vpack.c.bf16 %v5186_v17, %v5183_v4  ;;  %v5825_v4 = vld [vmem:[#allocation9 + $0x2d8] sm:$0xff] }
 0xb48   : > { %v5094_v18 = vadd.f32 %v5092_v0, %v4562_v15  ;;  %v5095_v19 = vmax.f32 %v5093_v16, 0.0  ;;  %v5160_v0 = vld [vmem:[#allocation9 + $0x18] sm:$0xff] }
 0xb49   : > { %v12912_v29 = vpack.c.bf16 %v5160_v0, %v5157_v14 }
 0xb4a   : > { %v5096_v20 = vmax.f32 %v5094_v18, 0.0  ;;  %v5159_v18 = vld [vmem:[#allocation9 + $0x10] sm:$0xff] }
 0xb4c   : > { %v14730_v21 = vpack.c.bf16 %v5096_v20, %v5095_v19  ;;  %v5162_v19 = vld [vmem:[#allocation9 + $0x28] sm:$0xff]  ;;  %v14752_v20 = vpop.permute.xlu0 %5152 }
 0xb4d   : > { %v12931_v30 = vpack.c.bf16 %v5162_v19, %v5159_v18  ;;  %v5607_v18 = vld [vmem:[#allocation9 + $0x218] sm:$0xff]  ;;  %v5610_v19 = vld [vmem:[#allocation9 + $0x230] sm:$0xff] }
 0xb4e   : > { %12434 = vmatpush3.bf16.msra.mxu1 %v14730_v21 }
 0xb4f   : > { %12439 = vmatprep.subr.bf16.mxu1 %v14734_v26 }
 0xb51   : > { %12436 = vmatmul.mubr.msk.bf16.vlgmr.msra.gmra.mrb[20].mxu1 %vm4579_vm15, %v5097_v25  ;;  %v5167_v25 = vld [vmem:[#allocation9 + $0x50] sm:$0xff] }
 0xb52   : > { %12440 = vmatpush3.bf16.msra.mxu1 %v14730_v21  ;;  %12441 = vmatprep.mubr.msk.bf16.mxu1 %vm13835_vm12, %v14734_v26 }
 0xb53   : > { %12876 = vmatprep.subr.bf16.mxu1 %v12875_v27 }
 0xb59   : > { %12442 = vmatmul.mubr.msk.bf16.vlgmr.msra.gmra.mrb[24].mxu1 %vm4579_vm15, %v5187_v32 }
 0xb5a   : > { %12878 = vmatpush1.bf16.msra.mxu1 %v12877_v33  ;;  %5332 = vmatprep.mubr.f32.mxu1 %v14734_v26  ;;  %v12914_v33 = vpack.c.bf16 %v5167_v25, %v5164_v24  ;;  %v5611_v24 = vld [vmem:[#allocation9 + $0x238] sm:$0xff]  ;;  %v5553_v25 = vld [vmem:[%s15905_s9 + $0x8] sm:$0xf] }
 0xb5b   : > { %12880 = vmatprep.subr.bf16.mxu1 %v12879_v35  ;;  %v5166_v35 = vld [vmem:[#allocation9 + $0x48] sm:$0xff] }
 0xb5c   : > { %v12916_v36 = vpack.c.bf16 %v5166_v35, %v5163_v31  ;;  %v5614_v35 = vld [vmem:[#allocation9 + $0x250] sm:$0xff] }
 0xb5e   : > { %12882 = vmatpush1.bf16.msra.mxu1 %v12881_v40  ;;  %v5170_v40 = vld [vmem:[#allocation9 + $0x68] sm:$0xff] }
 0xb5f   : > { %12884 = vmatprep.subr.bf16.mxu1 %v12883_v42  ;;  %v12934_v42 = vpack.c.bf16 %v5168_v39, %v5165_v37  ;;  %v12918_v43 = vpack.c.bf16 %v5173_v41, %v5170_v40  ;;  %v5617_v37 = vld [vmem:[#allocation9 + $0x268] sm:$0xff]  ;;  %v5612_v41 = vld [vmem:[#allocation9 + $0x240] sm:$0xff] }
 0xb62   : > { %12886 = vmatpush1.bf16.msra.mxu1 %v12885_v45  ;;  %v5171_v45 = vld [vmem:[#allocation9 + $0x70] sm:$0xff] }
 0xb63   : > { %12888 = vmatprep.subr.bf16.mxu1 %v12887_v51  ;;  %v12937_v50 = vpack.c.bf16 %v5174_v46, %v5171_v45  ;;  %v5175_v51 = vld [vmem:[#allocation9 + $0x90] sm:$0xff] }
 0xb64   : > { %v12924_v59 = vpack.c.bf16 %v5178_v54, %v5175_v51  ;;  %v5618_v46 = vld [vmem:[#allocation9 + $0x270] sm:$0xff]  ;;  %v5628_v54 = vld [vmem:[#allocation9 + $0x2c0] sm:$0xff] }
 0xb65   : > { %v12959_v48 = vpack.c.bf16 %v5621_v47, %v5618_v46  ;;  %v5845_v46 = vld [vmem:[#allocation9 + $0x378] sm:$0xff] }
 0xb66   : > { %12890 = vmatpush1.bf16.msra.mxu1 %v12889_v56  ;;  %v5180_v56 = vld [vmem:[#allocation9 + $0xb8] sm:$0xff] }
 0xb67   : > { %12892 = vmatprep.subr.bf16.mxu1 %v12891_v60  ;;  %v12940_v60 = vpack.c.bf16 %v5180_v56, %v5177_v55  ;;  %v5624_v56 = vld [vmem:[#allocation9 + $0x2a0] sm:$0xff] }
 0xb68   : > { %v12963_v58 = vpack.c.bf16 %v5627_v57, %v5624_v56  ;;  %v13727_v56 = vld [vmem:[#allocation3 + $0x8] sm:$0xff] }
 0xb69   : > { %v14801_v57 = vpack.c.bf16 %v13727_v56, %v13727_v56 }
 0xb6a   : > { %12894 = vmatpush1.bf16.msra.mxu1 %v12893_v3  ;;  %v5184_v3 = vld [vmem:[#allocation9 + $0xd8] sm:$0xff] }
 0xb6b   : > { %12911 = vmatprep.subr.bf16.mxu1 %v12910_v8  ;;  %v12928_v5 = vpack.c.bf16 %v5184_v3, %v5181_v61 }
 0xc24   : > { %v14747_v9 = vpop.f32.mrb[20].mxu1 }
 0xc25   : > { %v12437_v10 = vpop.f32.mrb[21].mxu1  ;;  %v5148_v62 = vmul.f32 %v14749_v53, %v14747_v9  ;;  %v5605_v9 = vld [vmem:[#allocation9 + $0x208] sm:$0xff] }
 0xc26   : > { %v5139_v12 = vpop.f32.mrb[22].mxu1  ;;  %v5601_v10 = vld [vmem:[#allocation9 + $0x1e8] sm:$0xff] }
 0xc27   : > { %v12438_v1 = vpop.f32.mrb[23].mxu1  ;;  %v5155_v8 = vadd.f32 %v14752_v20, %v5148_v62  ;;  %v5604_v12 = vld [vmem:[#allocation9 + $0x200] sm:$0xff] }
 0xc28   : > { %v5602_v1 = vld [vmem:[#allocation9 + $0x1f0] sm:$0xff]  ;;  %v12945_v14 = vpack.c.bf16 %v5604_v12, %v5601_v10 }
 0xc29   : > { %v12966_v0 = vpack.c.bf16 %v5605_v9, %v5602_v1 }
 0xc2c   : > { %v5225_v13 = vpop.f32.mrb[24].mxu1 }
 0xc2d   : > { %v5231_v15 = vmul.f32 %v5225_v13, %v14749_v53  ;;  %v12443_v16 = vpop.f32.mrb[25].mxu1  ;;  %v5156_v13 = vmax.f32 %v5155_v8, 0.0  ;;  %v5829_v8 = vld [vmem:[#allocation9 + $0x2f8] sm:$0xff] }
 0xc2e   : > { %v5228_v23 = vpop.f32.mrb[26].mxu1  ;;  %v5603_v16 = vld [vmem:[#allocation9 + $0x1f8] sm:$0xff] }
 0xc2f   : > { %v5232_v27 = vadd.f32 %v5231_v15, %v14752_v20  ;;  %v12444_v28 = vpop.f32.mrb[27].mxu1  ;;  %v5600_v15 = vld [vmem:[#allocation9 + $0x1e0] sm:$0xff] }
 0xc30   : > { %v5608_v23 = vld [vmem:[#allocation9 + $0x220] sm:$0xff]  ;;  %v12949_v28 = vpack.c.bf16 %v5610_v19, %v5607_v18  ;;  %v5832_v18 = vld [vmem:[#allocation9 + $0x310] sm:$0xff]  ;;  %v5835_v19 = vld [vmem:[#allocation9 + $0x328] sm:$0xff] }
 0xc31   : > { %v5233_v32 = vmax.f32 %v5232_v27, 0.0  ;;  %v12947_v27 = vpack.c.bf16 %v5603_v16, %v5600_v15  ;;  %v12969_v31 = vpack.c.bf16 %v5611_v24, %v5608_v23  ;;  %v5831_v15 = vld [vmem:[#allocation9 + $0x308] sm:$0xff] }
 0xc32   : > { %v5777_v23 = vld [vmem:[%s15905_s9 + $0xc] sm:$0xf]  ;;  %s15913_s9 = smov 91  }
 0xc33   : > { %11754 = vmatmul.mubr.msk.f32.vlgmr.msra.gmra.mrb[14].mxu1 %vm5264_vm10, %v5233_v32  ;;  %12466 = vmatmul.mubr.msk.f32.vlgmr.msra.gmra.mrb[14].mxu0 %vm5264_vm10, %v5233_v32  ;;  %v5613_v32 = vld [vmem:[#allocation9 + $0x248] sm:$0xff] }
 0xc34   : > { %12913 = vmatpush1.bf16.msra.mxu1 %v12912_v29  ;;  %12932 = vmatpush3.bf16.msra.mxu0 %v12931_v30  ;;  %v5606_v29 = vld [vmem:[#allocation9 + $0x210] sm:$0xff]  ;;  %v5609_v30 = vld [vmem:[#allocation9 + $0x228] sm:$0xff] }
 0xc35   : > { %12915 = vmatprep.subr.bf16.mxu1 %v12914_v33  ;;  %12933 = vmatprep.subr.bf16.mxu0 %v13845_v63  ;;  %v5616_v33 = vld [vmem:[#allocation9 + $0x260] sm:$0xff]  ;;  %v12951_v39 = vpack.c.bf16 %v5609_v30, %v5606_v29  ;;  %v5837_v29 = vld [vmem:[#allocation9 + $0x338] sm:$0xff]  ;;  %v13004_v30 = vpack.c.bf16 %v5835_v19, %v5832_v18 }
 0xc36   : > { %5476 = vmatprep.mubr.f32.mxu1 %v14734_v26  ;;  %12488 = vmatprep.mubr.msk.f32.mxu0 %vm13835_vm12, %v14734_v26  ;;  %v12953_v40 = vpack.c.bf16 %v5616_v33, %v5613_v32  ;;  %v5838_v32 = vld [vmem:[#allocation9 + $0x340] sm:$0xff]  ;;  %v5841_v33 = vld [vmem:[#allocation9 + $0x358] sm:$0xff] }
 0xc38   : > { %12917 = vmatpush1.bf16.msra.mxu1 %v12916_v36  ;;  %12935 = vmatpush3.bf16.msra.mxu0 %v12934_v42  ;;  %v5615_v36 = vld [vmem:[#allocation9 + $0x258] sm:$0xff]  ;;  %v12972_v42 = vpack.c.bf16 %v5617_v37, %v5614_v35  ;;  %v5836_v37 = vld [vmem:[#allocation9 + $0x330] sm:$0xff] }
 0xc39   : > { %12919 = vmatprep.subr.bf16.mxu1 %v12918_v43  ;;  %12936 = vmatprep.subr.bf16.mxu0 %v13845_v63  ;;  %v5622_v43 = vld [vmem:[#allocation9 + $0x290] sm:$0xff]  ;;  %v12955_v44 = vpack.c.bf16 %v5615_v36, %v5612_v41  ;;  %v13007_v41 = vpack.c.bf16 %v5841_v33, %v5838_v32  ;;  %v5846_v36 = vld [vmem:[#allocation9 + $0x380] sm:$0xff]  ;;  %v14907_v33 = vld [vmem:[%s15906_s8 + $0x10] sm:$0xf] }
 0xc3a   : > { %v12957_v45 = vpack.c.bf16 %v5622_v43, %v5619_v38  ;;  %v5847_v38 = vld [vmem:[#allocation9 + $0x388] sm:$0xff] }
 0xc3c   : > { %12921 = vmatpush1.bf16.msra.mxu1 %v12920_v49  ;;  %12938 = vmatpush3.bf16.msra.mxu0 %v12937_v50  ;;  %v5620_v49 = vld [vmem:[#allocation9 + $0x280] sm:$0xff]  ;;  %v5623_v50 = vld [vmem:[#allocation9 + $0x298] sm:$0xff] }
 0xc3d   : > { %12923 = vmatprep.subr.bf16.mxu1 %v12922_v52  ;;  %12939 = vmatprep.subr.bf16.mxu0 %v13845_v63  ;;  %v12975_v51 = vpack.c.bf16 %v5623_v50, %v5620_v49  ;;  %v5625_v52 = vld [vmem:[#allocation9 + $0x2a8] sm:$0xff]  ;;  %v5852_v49 = vld [vmem:[#allocation9 + $0x3b0] sm:$0xff] }
 0xc3e   : > { %v12961_v55 = vpack.c.bf16 %v5628_v54, %v5625_v52  ;;  %v5848_v52 = vld [vmem:[#allocation9 + $0x390] sm:$0xff]  ;;  %v5851_v54 = vld [vmem:[#allocation9 + $0x3a8] sm:$0xff] }
 0xc40   : > { %12925 = vmatpush1.bf16.msra.mxu1 %v12924_v59  ;;  %12941 = vmatpush3.bf16.msra.mxu0 %v12940_v60  ;;  %v5626_v59 = vld [vmem:[#allocation9 + $0x2b0] sm:$0xff]  ;;  %v5629_v60 = vld [vmem:[#allocation9 + $0x2c8] sm:$0xff] }
 0xc41   : > { %12927 = vmatprep.subr.bf16.mxu1 %v12926_v2  ;;  %12942 = vmatprep.subr.bf16.mxu0 %v13845_v63  ;;  %v12978_v61 = vpack.c.bf16 %v5629_v60, %v5626_v59  ;;  %v5853_v59 = vld [vmem:[#allocation9 + $0x3b8] sm:$0xff] }
 0xc44   : > { %12929 = vmatpush1.bf16.msra.mxu1 %v12928_v5  ;;  %12944 = vmatpush3.bf16.msra.mxu0 %v12943_v7  ;;  %v5828_v5 = vld [vmem:[#allocation9 + $0x2f0] sm:$0xff]  ;;  %v5826_v7 = vld [vmem:[#allocation9 + $0x2e0] sm:$0xff] }
 0xc45   : > { %12491 = vmatprep.subr.bf16.mxu1 %v14734_v26  ;;  %12965 = vmatprep.subr.bf16.mxu0 %v13845_v63  ;;  %v12980_v9 = vpack.c.bf16 %v5828_v5, %v5825_v4  ;;  %v13001_v16 = vpack.c.bf16 %v5829_v8, %v5826_v7  ;;  %v13729_v7 = vld [vmem:[#allocation3 + $0x10] sm:$0xff] }
 0xc46   : > { %v14811_v8 = vpack.c.bf16 %v13729_v7, %v13729_v7 }
 0xc47   : > { %11756 = vmatmul.mubr.msk.f32.vlgmr.msra.gmra.mrb[14].mxu1 %vm5264_vm10, %v5156_v13  ;;  %12489 = vmatmul.mubr.msk.f32.vlgmr.msra.gmra.mrb[14].mxu0 %vm5264_vm10, %v5156_v13  ;;  %v5824_v13 = vld [vmem:[#allocation9 + $0x2d0] sm:$0xff] }
 0xc48   : > { %12492 = vmatpush3.bf16.msra.mxu1 %v14730_v21  ;;  %12493 = vmatprep.mubr.msk.bf16.mxu1 %vm13835_vm12, %v14734_v26 }
 0xc49   : > { %12946 = vmatprep.subr.bf16.mxu1 %v12945_v14  ;;  %12967 = vmatpush3.bf16.msra.mxu0 %v12966_v0  ;;  %v5827_v14 = vld [vmem:[#allocation9 + $0x2e8] sm:$0xff]  ;;  %v5834_v0 = vld [vmem:[#allocation9 + $0x320] sm:$0xff] }
 0xc4a   : > { %12968 = vmatprep.subr.bf16.mxu0 %v13845_v63  ;;  %12517 = vmatprep.mubr.msk.f32.mxu0 %vm13835_vm12, %v14734_v26  ;;  %v12982_v24 = vpack.c.bf16 %v5827_v14, %v5824_v13 }
 0xc4b   : > { %12494 = vmatmul.mubr.msk.bf16.vlgmr.msra.gmra.mrb[28].mxu1 %vm4579_vm15, %v5553_v25  ;;  %v12984_v25 = vpack.c.bf16 %v5834_v0, %v5831_v15 }
 0xc4c   : > { %12948 = vmatpush1.bf16.msra.mxu1 %v12947_v27  ;;  %5697 = vmatprep.mubr.f32.mxu1 %v14734_v26  ;;  %v5830_v27 = vld [vmem:[#allocation9 + $0x300] sm:$0xff] }
 0xc4d   : > { %12950 = vmatprep.subr.bf16.mxu1 %v12949_v28  ;;  %12970 = vmatpush3.bf16.msra.mxu0 %v12969_v31  ;;  %v5833_v28 = vld [vmem:[#allocation9 + $0x318] sm:$0xff]  ;;  %v5840_v31 = vld [vmem:[#allocation9 + $0x350] sm:$0xff] }
 0xc4e   : > { %12971 = vmatprep.subr.bf16.mxu0 %v13845_v63  ;;  %v12988_v35 = vpack.c.bf16 %v5840_v31, %v5837_v29  ;;  %v14871_v29 = vld [vmem:[%s15906_s8 + $0x8] sm:$0xf]  ;;  %v14895_v31 = vld [vmem:[%s15906_s8 + $0xc] sm:$0xf] }
 0xc4f   : > { %v11788_v32 = vcombine.low %v14895_v31, %v14895_v31 }
 0xc50   : > { %12952 = vmatpush1.bf16.msra.mxu1 %v12951_v39  ;;  %v5839_v39 = vld [vmem:[#allocation9 + $0x348] sm:$0xff] }
 0xc51   : > { %12954 = vmatprep.subr.bf16.mxu1 %v12953_v40  ;;  %12973 = vmatpush3.bf16.msra.mxu0 %v12972_v42  ;;  %v5843_v40 = vld [vmem:[#allocation9 + $0x368] sm:$0xff]  ;;  %v5844_v42 = vld [vmem:[#allocation9 + $0x370] sm:$0xff]  ;;  %v12990_v43 = vpack.c.bf16 %v5839_v39, %v5836_v37 }
 0xc52   : > { %12974 = vmatprep.subr.bf16.mxu0 %v13845_v63  ;;  %v13010_v47 = vpack.c.bf16 %v5847_v38, %v5844_v42  ;;  %v14943_v39 = vld [vmem:[%s15906_s8 + $0x18] sm:$0xf]  ;;  %v14979_v42 = vld [vmem:[%s15906_s8 + $0x20] sm:$0xf] }
 0xc53   : > { %v11823_v38 = vcombine.low %v14979_v42, %v14979_v42 }
 0xc54   : > { %12956 = vmatpush1.bf16.msra.mxu1 %v12955_v44  ;;  %v12992_v44 = vpack.c.bf16 %v5846_v36, %v5843_v40  ;;  %v11809_v40 = vcombine.low %v14943_v39, %v14943_v39 }
 0xc55   : > { %12958 = vmatprep.subr.bf16.mxu1 %v12957_v45  ;;  %12976 = vmatpush3.bf16.msra.mxu0 %v12975_v51  ;;  %v5842_v45 = vld [vmem:[#allocation9 + $0x360] sm:$0xff] }
 0xc56   : > { %12977 = vmatprep.subr.bf16.mxu0 %v13845_v63  ;;  %v12994_v50 = vpack.c.bf16 %v5845_v46, %v5842_v45 }
 0xc58   : > { %12960 = vmatpush1.bf16.msra.mxu1 %v12959_v48  ;;  %v5849_v48 = vld [vmem:[#allocation9 + $0x398] sm:$0xff] }
 0xc59   : > { %12962 = vmatprep.subr.bf16.mxu1 %v12961_v55  ;;  %12979 = vmatpush3.bf16.msra.mxu0 %v12978_v61  ;;  %v12996_v51 = vpack.c.bf16 %v5852_v49, %v5849_v48  ;;  %v12998_v55 = vpack.c.bf16 %v5851_v54, %v5848_v52  ;;  %v6004_v61 = vld [vmem:[%s15906_s8] sm:$0xf] }
 0xc5a   : > { %13000 = vmatprep.subr.bf16.mxu0 %v13845_v63 }
 0xc5c   : > { %12964 = vmatpush1.bf16.msra.mxu1 %v12963_v58  ;;  %v5850_v58 = vld [vmem:[#allocation9 + $0x3a0] sm:$0xff] }
 0xc5d   : > { %12520 = vmatprep.subr.bf16.mxu1 %v14734_v26  ;;  %v13013_v60 = vpack.c.bf16 %v5853_v59, %v5850_v58 }
 0xd1e   : > { %v5591_v62 = vpop.f32.mrb[28].mxu1 }
 0xd1f   : > { %v5597_v2 = vmul.f32 %v5591_v62, %v14749_v53  ;;  %v12495_v3 = vpop.f32.mrb[29].mxu1  ;;  %v11764_v62 = vcombine.low %v6004_v61, %v6004_v61 }
 0xd20   : > { %v5594_v17 = vpop.f32.mrb[30].mxu1 }
 0xd21   : > { %v5598_v10 = vadd.f32 %v5597_v2, %v14752_v20  ;;  %v12496_v12 = vpop.f32.mrb[31].mxu1  ;;  %6020 = vrot.lane.b32.xlu1 %v11764_v62, %s15834_s18  ;;  %v13728_v17 = vld [vmem:[#allocation3] sm:$0xff] }
 0xd22   : > { %v14809_v5 = vpack.c.bf16 %v13728_v17, %v13728_v17 }
 0xd23   : > { %v5599_v1 = vmax.f32 %v5598_v10, 0.0 }
 0xd25   : > { %11759 = vmatmul.mubr.msk.f32.vlgmr.msra.gmra.mrb[14].mxu1 %vm5264_vm10, %v5599_v1  ;;  %12518 = vmatmul.mubr.msk.f32.vlgmr.msra.gmra.mrb[14].mxu0 %vm5264_vm10, %v5599_v1 }
 0xd26   : > { %12521 = vmatpush3.bf16.msra.mxu1 %v14730_v21  ;;  %12522 = vmatprep.mubr.msk.bf16.mxu1 %vm13835_vm12, %v14734_v26  ;;  %v12986_v21 = vpack.c.bf16 %v5833_v28, %v5830_v27  ;;  %v14855_v27 = vld [vmem:[%s15906_s8 + $0x4] sm:$0xf] }
 0xd27   : > { %12981 = vmatprep.subr.bf16.mxu1 %v12980_v9  ;;  %13002 = vmatpush3.bf16.msra.mxu0 %v13001_v16  ;;  %v6026_v9 = vsel %vm2708_vm11, %v14809_v5, 0  ;;  %v11774_v28 = vcombine.low %v14855_v27, %v14855_v27 }
 0xd28   : > { %13003 = vmatprep.subr.bf16.mxu0 %v13845_v63  ;;  %12546 = vmatprep.mubr.msk.f32.mxu0 %vm13835_vm12, %v14734_v26 }
 0xd29   : > { %12523 = vmatmul.mubr.msk.bf16.vlgmr.msra.gmra.mrb[32].mxu1 %vm4579_vm15, %v5777_v23  ;;  %vm10243_vm15 = vcmask 412672  }
 0xd2a   : > { %12983 = vmatpush1.bf16.msra.mxu1 %v12982_v24  ;;  %5921 = vmatprep.mubr.f32.mxu1 %v14734_v26 }
 0xd2b   : > { %12985 = vmatprep.subr.bf16.mxu1 %v12984_v25  ;;  %13005 = vmatpush3.bf16.msra.mxu0 %v13004_v30  ;;  %v11781_v30 = vcombine.low %v14871_v29, %v14871_v29 }
 0xd2c   : > { %13006 = vmatprep.subr.bf16.mxu0 %v13845_v63 }
 0xd2e   : > { %12987 = vmatpush1.bf16.msra.mxu1 %v12986_v21  ;;  %v11795_v21 = vcombine.low %v14907_v33, %v14907_v33 }
 0xd2f   : > { %12989 = vmatprep.subr.bf16.mxu1 %v12988_v35  ;;  %13008 = vmatpush3.bf16.msra.mxu0 %v13007_v41  ;;  %v14931_v35 = vld [vmem:[%s15906_s8 + $0x14] sm:$0xf]  ;;  %v14967_v41 = vld [vmem:[%s15906_s8 + $0x1c] sm:$0xf]  ;;  %s15921_s8 = sld [smem:[#allocation36_spill]] }
 0xd30   : > { %13009 = vmatprep.subr.bf16.mxu0 %v13845_v63  ;;  %v11802_v37 = vcombine.low %v14931_v35, %v14931_v35  ;;  %v11816_v36 = vcombine.low %v14967_v41, %v14967_v41 }
 0xd32   : > { %12991 = vmatpush1.bf16.msra.mxu1 %v12990_v43  ;;  %v7935_v43 = vld [vmem:[%s15914_s10] sm:$0xff]  ;;  %s15917_s10 = sld [smem:[#allocation38_spill]] }
 0xd33   : > { %12993 = vmatprep.subr.bf16.mxu1 %v12992_v44  ;;  %13011 = vmatpush3.bf16.msra.mxu0 %v13010_v47  ;;  %v7926_v44 = vld [vmem:[%s15915_s11] sm:$0xff]  ;;  %s15918_s11 = smov 19  }
 0xd34   : > { %13012 = vmatprep.subr.bf16.mxu0 %v13845_v63 }
 0xd36   : > { %12995 = vmatpush1.bf16.msra.mxu1 %v12994_v50 }
 0xd37   : > { %12997 = vmatprep.subr.bf16.mxu1 %v12996_v51  ;;  %13014 = vmatpush3.bf16.msra.mxu0 %v13013_v60 }
 0xd38   : > { %12549 = vmatprep.subr.bf16.mxu0 %v14734_v26 }
 0xd3a   : > { %12999 = vmatpush1.bf16.msra.mxu1 %v12998_v55 }
 0xd3b   : > { %11765 = vmatprep.subr.msk.bf16.mxu1 %vm2708_vm11, %v14801_v57 }
 0xdfc   : > { %v5815_v63 = vpop.f32.mrb[32].mxu1 }
 0xdfd   : > { %v5821_v2 = vmul.f32 %v5815_v63, %v14749_v53  ;;  %v12524_v3 = vpop.f32.mrb[33].mxu1  ;;  %v6032_v53 = vsel %vm2708_vm11, %v14811_v8, 0 }
 0xdfe   : > { %v5818_v4 = vpop.f32.mrb[34].mxu1 }
 0xdff   : > { %v5822_v10 = vadd.f32 %v5821_v2, %v14752_v20  ;;  %v12525_v12 = vpop.f32.mrb[35].mxu1  ;;  %v6021_v20 = vpop.permute.xlu1 %6020 }
 0xe01   : > { %v5823_v1 = vmax.f32 %v5822_v10, 0.0 }
 0xe03   : > { %11762 = vmatmul.mubr.msk.f32.vlgmr.msra.gmra.mrb[14].mxu1 %vm5264_vm10, %v5823_v1  ;;  %12547 = vmatmul.mubr.msk.f32.vlgmr.msra.gmra.mrb[14].mxu0 %vm5264_vm10, %v5823_v1 }
 0xe04   : > { %6035 = vmatpush1.bf16.msra.mxu1 %v6026_v9  ;;  %12550 = vmatpush3.bf16.msra.mxu0 %v6032_v53 }
 0xe05   : > { %12551 = vmatprep.mubr.msk.bf16.mxu0 %vm13835_vm12, %v14734_v26  ;;  %12555 = vmatprep.subr.bf16.mxu0 %v14734_v26 }
 0xe06   : > { %6066 = vmatprep.mubr.bf16.mxu1 %v13836_v34 }
 0xe07   : > { %12552 = vmatmul.mubr.msk.bf16.vlgmr.msra.gmra.mrb[24].mxu0 %vm2704_vm0, %v6021_v20  ;;  %11766 = vmatmul.mubr.msk.bf16.vlgmr.msra.gmra.mrb[36].mxu1 %vm2704_vm0, %v6021_v20 }
 0xe08   : > { %12557 = vmatprep.mubr.msk.bf16.mxu0 %vm13835_vm12, %v14734_v26  ;;  %6159 = vmatprep.mubr.bf16.mxu1 %v13836_v34 }
 0xed6   : > { %v5923_v13 = vpop.f32.mrb[14].mxu1  ;;  %v5994_v14 = vpop.f32.mrb[14].mxu0 }
 0xed7   : > { %v14829_v15 = vpack.c.bf16 %v5923_v13, %v5923_v13  ;;  %6003 = vst.msk [vmem:[#allocation5 + $0x10] sm:$0xff] %vm1344_vm7, %v5994_v14  ;;  %v5925_v16 = vpop.f32.mrb[15].mxu1  ;;  %v12548_v0 = vpop.f32.mrb[15].mxu0  ;;  %vm15920_vm7 = vcmask 416768  }
 0xed8   : > { %v14832_v18 = vpack.c.bf16 %v5925_v16, %v5925_v16  ;;  %vm15926_vm10 = vmmov %vm15920_vm7 }
 0xed9   : > { %6212 = vrot.lane.b32.xlu0 %v14829_v15, %s15829_s16  ;;  %v6119_v19 = vsel %vm2708_vm11, %v14829_v15, 0 }
 0xeda   : > { %6214 = vrot.lane.b32.xlu1 %v14832_v18, %s15829_s16  ;;  %11768 = vmatprep.subr.msk.bf16.mxu1 %vm2708_vm11, %v14832_v18 }
 0xedb   : > { %6128 = vmatpush1.bf16.msra.mxu1 %v6119_v19 }
 0xede   : > { %v6007_v23 = vld [vmem:[#allocation5 + $0x10] sm:$0xff]  ;;  %6324 = vrot.lane.b32.xlu1 %v14809_v5, %s15829_s16  ;;  %11769 = vmatmul.mubr.msk.bf16.vlgmr.msra.gmra.mrb[36].mxu1 %vm2704_vm0, %v6004_v61 }
 0xedf   : > { %v14845_v24 = vpack.c.bf16 %v6007_v23, %v6007_v23  ;;  %6264 = vmatprep.mubr.bf16.mxu1 %v13836_v34 }
 0xee1   : > { %v6125_v25 = vsel %vm2708_vm11, %v14845_v24, 0  ;;  %6216 = vrot.lane.b32.xlu0 %v14845_v24, %s15829_s16 }
 0xee2   : > { %12556 = vmatpush3.bf16.msra.mxu0 %v6125_v25  ;;  %6328 = vrot.lane.b32.xlu1 %v14811_v8, %s15829_s16 }
 0xee3   : > { %12561 = vmatprep.subr.bf16.mxu0 %v14734_v26 }
 0xee5   : > { %6326 = vrot.lane.b32.xlu0 %v14801_v57, %s15829_s16  ;;  %12558 = vmatmul.mubr.msk.bf16.vlgmr.msra.gmra.mrb[24].mxu0 %vm2704_vm0, %v6004_v61  ;;  %s15908_s16 = smov 110  }
 0xee6   : > { %6429 = vrot.lane.b32.xlu1 %v14829_v15, %s15907_s0  ;;  %12563 = vmatprep.mubr.msk.bf16.mxu0 %vm13835_vm12, %v14734_v26 }
 0xee9   : > { %6319 = vrot.lane.b32.xlu0 %v11774_v28, %s15834_s18 }
 0xeea   : > { %6433 = vrot.lane.b32.xlu1 %v14845_v24, %s15907_s0 }
 0xeed   : > { %6431 = vrot.lane.b32.xlu0 %v14832_v18, %s15907_s0 }
 0xeee   : > { %6540 = vrot.lane.b32.xlu1 %v14801_v57, %s15907_s0 }
 0xef1   : > { %6538 = vrot.lane.b32.xlu0 %v14809_v5, %s15907_s0 }
 0xef2   : > { %6536 = vrot.lane.b32.xlu1 %v11781_v30, %s15834_s18 }
 0xef5   : > { %6542 = vrot.lane.b32.xlu0 %v14811_v8, %s15907_s0 }
 0xef6   : > { %6645 = vrot.lane.b32.xlu1 %v14832_v18, %s15908_s16 }
 0xef9   : > { %6643 = vrot.lane.b32.xlu0 %v14829_v15, %s15908_s16 }
 0xefa   : > { %6752 = vrot.lane.b32.xlu1 %v14809_v5, %s15908_s16 }
 0xefd   : > { %6647 = vrot.lane.b32.xlu0 %v14845_v24, %s15908_s16 }
 0xefe   : > { %6756 = vrot.lane.b32.xlu1 %v14811_v8, %s15908_s16 }
 0xf01   : > { %6754 = vrot.lane.b32.xlu0 %v14801_v57, %s15908_s16 }
 0xf02   : > { %6857 = vrot.lane.b32.xlu1 %v14829_v15, %s15909_s2 }
 0xf05   : > { %6750 = vrot.lane.b32.xlu0 %v11788_v32, %s15834_s18 }
 0xf06   : > { %6861 = vrot.lane.b32.xlu1 %v14845_v24, %s15909_s2 }
 0xf09   : > { %6859 = vrot.lane.b32.xlu0 %v14832_v18, %s15909_s2 }
 0xf0a   : > { %6968 = vrot.lane.b32.xlu1 %v14801_v57, %s15909_s2 }
 0xf0d   : > { %6966 = vrot.lane.b32.xlu0 %v14809_v5, %s15909_s2 }
 0xf0e   : > { %6964 = vrot.lane.b32.xlu1 %v11795_v21, %s15834_s18  ;;  %s15911_s18 = smov 92  }
 0xf11   : > { %6970 = vrot.lane.b32.xlu0 %v14811_v8, %s15909_s2 }
 0xf12   : > { %7073 = vrot.lane.b32.xlu1 %v14832_v18, %s15910_s5 }
 0xf15   : > { %7071 = vrot.lane.b32.xlu0 %v14829_v15, %s15910_s5 }
 0xf16   : > { %7180 = vrot.lane.b32.xlu1 %v14809_v5, %s15910_s5 }
 0xf19   : > { %7075 = vrot.lane.b32.xlu0 %v14845_v24, %s15910_s5 }
 0xf1a   : > { %7184 = vrot.lane.b32.xlu1 %v14811_v8, %s15910_s5 }
 0xf1d   : > { %7182 = vrot.lane.b32.xlu0 %v14801_v57, %s15910_s5 }
 0xf1e   : > { %7285 = vrot.lane.b32.xlu1 %v14829_v15, %s15911_s18 }
 0xf21   : > { %7178 = vrot.lane.b32.xlu0 %v11802_v37, %s15912_s7 }
 0xf22   : > { %7289 = vrot.lane.b32.xlu1 %v14845_v24, %s15911_s18 }
 0xf25   : > { %7287 = vrot.lane.b32.xlu0 %v14832_v18, %s15911_s18 }
 0xf26   : > { %7396 = vrot.lane.b32.xlu1 %v14801_v57, %s15911_s18 }
 0xf29   : > { %7394 = vrot.lane.b32.xlu0 %v14809_v5, %s15911_s18 }
 0xf2a   : > { %7392 = vrot.lane.b32.xlu1 %v11809_v40, %s15912_s7 }
 0xf2d   : > { %7398 = vrot.lane.b32.xlu0 %v14811_v8, %s15911_s18 }
 0xf2e   : > { %7501 = vrot.lane.b32.xlu1 %v14832_v18, %s15913_s9 }
 0xf31   : > { %7499 = vrot.lane.b32.xlu0 %v14829_v15, %s15913_s9 }
 0xf32   : > { %7608 = vrot.lane.b32.xlu1 %v14809_v5, %s15913_s9 }
 0xf35   : > { %7503 = vrot.lane.b32.xlu0 %v14845_v24, %s15913_s9 }
 0xf36   : > { %7612 = vrot.lane.b32.xlu1 %v14811_v8, %s15913_s9 }
 0xf39   : > { %7610 = vrot.lane.b32.xlu0 %v14801_v57, %s15913_s9 }
 0xf3a   : > { %7713 = vrot.lane.b32.xlu1 %v14829_v15, %s15916_s12 }
 0xf3d   : > { %7606 = vrot.lane.b32.xlu0 %v11816_v36, %s15912_s7 }
 0xf3e   : > { %7717 = vrot.lane.b32.xlu1 %v14845_v24, %s15916_s12 }
 0xf41   : > { %7715 = vrot.lane.b32.xlu0 %v14832_v18, %s15916_s12 }
 0xf42   : > { %7824 = vrot.lane.b32.xlu1 %v14801_v57, %s15916_s12 }
 0xf45   : > { %7822 = vrot.lane.b32.xlu0 %v14809_v5, %s15916_s12 }
 0xf46   : > { %7820 = vrot.lane.b32.xlu1 %v11823_v38, %s15912_s7 }
 0xf49   : > { %7826 = vrot.lane.b32.xlu0 %v14811_v8, %s15916_s12 }
 0xf4a   : > { %7938 = vperm.xlu1 %13664, %v7935_v43   ;;  %v15058_v43 = vld [vmem:[#allocation6] sm:$0xff] }
 0xf4b   : > { %v6213_v46 = vpop.permute.xlu0 %6212 }
 0xf4c   : > { %v6215_v45 = vpop.permute.xlu1 %6214 }
 0xf4d   : > { %7929 = vperm.xlu0 %13663, %v7926_v44   ;;  %v6218_v48 = vsel %vm1483_vm14, %v6213_v46, %v6215_v45 }
 0xf4e   : > { %v6224_v54 = vsel %vm2708_vm11, %v6218_v48, 0 }
 0xf50   : > { %v6325_v47 = vpop.permute.xlu1 %6324 }
 0xf53   : > { %v6217_v49 = vpop.permute.xlu0 %6216 }
 0xf54   : > { %v6219_v50 = vsel %vm1483_vm14, %v6215_v45, %v6217_v49  ;;  %v6230_v51 = vsel %vm2708_vm11, %v6217_v49, 0  ;;  %v6329_v52 = vpop.permute.xlu1 %6328 }
 0xf55   : > { %11771 = vmatprep.subr.msk.bf16.mxu1 %vm2708_vm11, %v6219_v50  ;;  %12562 = vmatpush3.bf16.msra.mxu0 %v6230_v51  ;;  %v6342_v59 = vsel %vm2708_vm11, %v6329_v52, 0 }
 0xf56   : > { %6233 = vmatpush1.bf16.msra.mxu1 %v6224_v54  ;;  %12567 = vmatprep.subr.bf16.mxu0 %v14734_v26 }
 0xf57   : > { %v6327_v55 = vpop.permute.xlu0 %6326 }
 0xf58   : > { %v6330_v56 = vsel %vm1483_vm14, %v6325_v47, %v6327_v55  ;;  %12564 = vmatmul.mubr.msk.bf16.vlgmr.msra.gmra.mrb[24].mxu0 %vm2704_vm0, %v14855_v27  ;;  %v6331_v57 = vsel %vm1483_vm14, %v6327_v55, %v6329_v52  ;;  %v6430_v58 = vpop.permute.xlu1 %6429 }
 0xf59   : > { %11772 = vmatmul.mubr.msk.bf16.vlgmr.msra.gmra.mrb[36].mxu1 %vm2704_vm0, %v14855_v27  ;;  %11775 = vmatprep.subr.msk.bf16.mxu1 %vm2708_vm11, %v6331_v57  ;;  %v6336_v60 = vsel %vm2708_vm11, %v6330_v56, 0 }
 0xf5a   : > { %12568 = vmatpush3.bf16.msra.mxu0 %v6342_v59  ;;  %6345 = vmatpush1.bf16.msra.mxu1 %v6336_v60 }
 0xf5b   : > { %v6320_v61 = vpop.permute.xlu0 %6319  ;;  %12569 = vmatprep.mubr.msk.bf16.mxu0 %vm13835_vm12, %v14734_v26  ;;  %12573 = vmatprep.subr.bf16.mxu0 %v14734_v26 }
 0xf5c   : > { %6376 = vmatprep.mubr.bf16.mxu1 %v13836_v34  ;;  %v6434_v62 = vpop.permute.xlu1 %6433 }
 0xf5d   : > { %v6447_v5 = vsel %vm2708_vm11, %v6434_v62, 0 }
 0xf5f   : > { %v6432_v63 = vpop.permute.xlu0 %6431 }
 0xf60   : > { %v6436_v2 = vsel %vm1692_vm1, %v6432_v63, %v6434_v62  ;;  %v6435_v3 = vsel %vm1692_vm1, %v6430_v58, %v6432_v63  ;;  %v6541_v17 = vpop.permute.xlu1 %6540 }
 0xf61   : > { %11778 = vmatprep.subr.msk.bf16.mxu1 %vm2708_vm11, %v6436_v2  ;;  %v6441_v7 = vsel %vm2708_vm11, %v6435_v3, 0 }
 0xf63   : > { %v6539_v4 = vpop.permute.xlu0 %6538 }
 0xf64   : > { %12570 = vmatmul.mubr.msk.bf16.vlgmr.msra.gmra.mrb[24].mxu0 %vm2704_vm0, %v6320_v61  ;;  %v6537_v12 = vpop.permute.xlu1 %6536  ;;  %v6544_v9 = vsel %vm1692_vm1, %v6539_v4, %v6541_v17 }
 0xf65   : > { %12574 = vmatpush3.bf16.msra.mxu0 %v6447_v5  ;;  %11776 = vmatmul.mubr.msk.bf16.vlgmr.msra.gmra.mrb[36].mxu1 %vm2704_vm0, %v6320_v61  ;;  %v6550_v16 = vsel %vm2708_vm11, %v6544_v9, 0 }
 0xf66   : > { %6450 = vmatpush1.bf16.msra.mxu1 %v6441_v7  ;;  %12575 = vmatprep.mubr.msk.bf16.mxu0 %vm13835_vm12, %v14734_v26 }
 0xf67   : > { %v6543_v8 = vpop.permute.xlu0 %6542  ;;  %12579 = vmatprep.subr.bf16.mxu0 %v14734_v26  ;;  %6481 = vmatprep.mubr.bf16.mxu1 %v13836_v34 }
 0xf68   : > { %v6545_v10 = vsel %vm1692_vm1, %v6541_v17, %v6543_v8  ;;  %v6646_v53 = vpop.permute.xlu1 %6645  ;;  %v6556_v13 = vsel %vm2708_vm11, %v6543_v8, 0 }
 0xf69   : > { %11782 = vmatprep.subr.msk.bf16.mxu1 %vm2708_vm11, %v6545_v10 }
 0xf6b   : > { %v6644_v1 = vpop.permute.xlu0 %6643 }
 0xf6c   : > { %v6753_v0 = vpop.permute.xlu1 %6752  ;;  %v6649_v19 = vsel %vm1352_vm13, %v6644_v1, %v6646_v53 }
 0xf6d   : > { %v6655_v28 = vsel %vm2708_vm11, %v6649_v19, 0 }
 0xf6f   : > { %v6648_v20 = vpop.permute.xlu0 %6647 }
 0xf70   : > { %12576 = vmatmul.mubr.msk.bf16.vlgmr.msra.gmra.mrb[24].mxu0 %vm2704_vm0, %v14871_v29  ;;  %v6650_v14 = vsel %vm1352_vm13, %v6646_v53, %v6648_v20  ;;  %v6661_v25 = vsel %vm2708_vm11, %v6648_v20, 0  ;;  %v6757_v27 = vpop.permute.xlu1 %6756 }
 0xf71   : > { %12580 = vmatpush3.bf16.msra.mxu0 %v6556_v13  ;;  %11779 = vmatmul.mubr.msk.bf16.vlgmr.msra.gmra.mrb[36].mxu1 %vm2704_vm0, %v14871_v29  ;;  %v6770_v40 = vsel %vm2708_vm11, %v6757_v27, 0 }
 0xf72   : > { %6559 = vmatpush1.bf16.msra.mxu1 %v6550_v16  ;;  %12581 = vmatprep.mubr.msk.bf16.mxu0 %vm13835_vm12, %v14734_v26 }
 0xf73   : > { %11785 = vmatprep.subr.msk.bf16.mxu1 %vm2708_vm11, %v6650_v14  ;;  %12585 = vmatprep.subr.bf16.mxu0 %v14734_v26  ;;  %v6755_v23 = vpop.permute.xlu0 %6754 }
 0xf74   : > { %6590 = vmatprep.mubr.bf16.mxu1 %v13836_v34  ;;  %v6759_v29 = vsel %vm1352_vm13, %v6755_v23, %v6757_v27  ;;  %v6858_v32 = vpop.permute.xlu1 %6857  ;;  %v6758_v21 = vsel %vm1352_vm13, %v6753_v0, %v6755_v23 }
 0xf75   : > { %v6764_v38 = vsel %vm2708_vm11, %v6758_v21, 0 }
 0xf77   : > { %v6751_v30 = vpop.permute.xlu0 %6750 }
 0xf78   : > { %v6862_v36 = vpop.permute.xlu1 %6861 }
 0xf79   : > { %v6875_v46 = vsel %vm2708_vm11, %v6862_v36, 0 }
 0xf7b   : > { %v6860_v37 = vpop.permute.xlu0 %6859 }
 0xf7c   : > { %12582 = vmatmul.mubr.msk.bf16.vlgmr.msra.gmra.mrb[24].mxu0 %vm2704_vm0, %v6537_v12  ;;  %v6863_v45 = vsel %vm1926_vm2, %v6858_v32, %v6860_v37  ;;  %v6969_v47 = vpop.permute.xlu1 %6968 }
 0xf7d   : > { %12586 = vmatpush3.bf16.msra.mxu0 %v6661_v25  ;;  %11783 = vmatmul.mubr.msk.bf16.vlgmr.msra.gmra.mrb[36].mxu1 %vm2704_vm0, %v6537_v12  ;;  %v6869_v48 = vsel %vm2708_vm11, %v6863_v45, 0 }
 0xf7e   : > { %6664 = vmatpush1.bf16.msra.mxu1 %v6655_v28  ;;  %12587 = vmatprep.mubr.msk.bf16.mxu0 %vm13835_vm12, %v14734_v26 }
 0xf7f   : > { %11789 = vmatprep.subr.msk.bf16.mxu1 %vm2708_vm11, %v6759_v29  ;;  %12591 = vmatprep.subr.bf16.mxu0 %v14734_v26  ;;  %v6864_v26 = vsel %vm1926_vm2, %v6860_v37, %v6862_v36  ;;  %v6967_v44 = vpop.permute.xlu0 %6966 }
 0xf80   : > { %6695 = vmatprep.mubr.bf16.mxu1 %v13836_v34  ;;  %v6965_v51 = vpop.permute.xlu1 %6964  ;;  %v6972_v52 = vsel %vm1926_vm2, %v6967_v44, %v6969_v47 }
 0xf81   : > { %v6978_v57 = vsel %vm2708_vm11, %v6972_v52, 0 }
 0xf84   : > { %v7074_v56 = vpop.permute.xlu1 %7073 }
 0xf88   : > { %12588 = vmatmul.mubr.msk.bf16.vlgmr.msra.gmra.mrb[24].mxu0 %vm2704_vm0, %v14895_v31  ;;  %v7181_v59 = vpop.permute.xlu1 %7180 }
 0xf89   : > { %12592 = vmatpush3.bf16.msra.mxu0 %v6770_v40  ;;  %11786 = vmatmul.mubr.msk.bf16.vlgmr.msra.gmra.mrb[36].mxu1 %vm2704_vm0, %v14895_v31  ;;  %v6971_v31 = vpop.permute.xlu0 %6970 }
 0xf8a   : > { %6773 = vmatpush1.bf16.msra.mxu1 %v6764_v38  ;;  %12593 = vmatprep.mubr.msk.bf16.mxu0 %vm13835_vm12, %v15058_v43  ;;  %v6973_v49 = vsel %vm1926_vm2, %v6969_v47, %v6971_v31  ;;  %v6984_v55 = vsel %vm2708_vm11, %v6971_v31, 0 }
 0xf8b   : > { %11792 = vmatprep.subr.msk.bf16.mxu1 %vm2708_vm11, %v6864_v26  ;;  %12597 = vmatprep.subr.bf16.mxu0 %v15058_v43 }
 0xf8c   : > { %6804 = vmatprep.mubr.bf16.mxu1 %v13836_v34  ;;  %v7185_v62 = vpop.permute.xlu1 %7184 }
 0xf8d   : > { %v7072_v50 = vpop.permute.xlu0 %7071  ;;  %v7198_v7 = vsel %vm2708_vm11, %v7185_v62, 0 }
 0xf8e   : > { %v7077_v60 = vsel %vm2043_vm3, %v7072_v50, %v7074_v56 }
 0xf8f   : > { %v7083_v63 = vsel %vm2708_vm11, %v7077_v60, 0 }
 0xf90   : > { %v7286_v4 = vpop.permute.xlu1 %7285 }
 0xf91   : > { %v7076_v54 = vpop.permute.xlu0 %7075 }
 0xf92   : > { %v7078_v58 = vsel %vm2043_vm3, %v7074_v56, %v7076_v54 }
 0xf94   : > { %12594 = vmatmul.mubr.msk.bf16.vlgmr.msra.gmra.mrb[24].mxu0 %vm2704_vm0, %v6751_v30  ;;  %v7290_v8 = vpop.permute.xlu1 %7289 }
 0xf95   : > { %12598 = vmatpush3.bf16.msra.mxu0 %v6875_v46  ;;  %11790 = vmatmul.mubr.msk.bf16.vlgmr.msra.gmra.mrb[36].mxu1 %vm2704_vm0, %v6751_v30  ;;  %v7183_v61 = vpop.permute.xlu0 %7182 }
 0xf96   : > { %6878 = vmatpush1.bf16.msra.mxu1 %v6869_v48  ;;  %12599 = vmatprep.mubr.msk.bf16.mxu0 %vm13835_vm12, %v15058_v43  ;;  %v7187_v2 = vsel %vm2043_vm3, %v7183_v61, %v7185_v62  ;;  %v7186_v17 = vsel %vm2043_vm3, %v7181_v59, %v7183_v61  ;;  %v7947_v62 = vld [vmem:[%s13884_s17] sm:$0x7] }
 0xf97   : > { %11796 = vmatprep.subr.msk.bf16.mxu1 %vm2708_vm11, %v6973_v49  ;;  %12603 = vmatprep.subr.bf16.mxu0 %v15058_v43  ;;  %v7192_v10 = vsel %vm2708_vm11, %v7186_v17, 0 }
 0xf98   : > { %6909 = vmatprep.mubr.bf16.mxu1 %v13836_v34  ;;  %v7397_v20 = vpop.permute.xlu1 %7396 }
 0xf99   : > { %v7179_v3 = vpop.permute.xlu0 %7178 }
 0xf9c   : > { %v7393_v0 = vpop.permute.xlu1 %7392 }
 0xf9d   : > { %v7288_v5 = vpop.permute.xlu0 %7287 }
 0xf9e   : > { %v7292_v12 = vsel %vm2160_vm4, %v7288_v5, %v7290_v8  ;;  %v7291_v9 = vsel %vm2160_vm4, %v7286_v4, %v7288_v5 }
 0xf9f   : > { %v7297_v13 = vsel %vm2708_vm11, %v7291_v9, 0 }
 0xfa0   : > { %12600 = vmatmul.mubr.msk.bf16.vlgmr.msra.gmra.mrb[24].mxu0 %vm2704_vm0, %v14907_v33  ;;  %v7502_v27 = vpop.permute.xlu1 %7501 }
 0xfa1   : > { %12604 = vmatpush3.bf16.msra.mxu0 %v6984_v55  ;;  %11793 = vmatmul.mubr.msk.bf16.vlgmr.msra.gmra.mrb[36].mxu1 %vm2704_vm0, %v14907_v33  ;;  %v7089_v33 = vsel %vm2708_vm11, %v7076_v54, 0  ;;  %v7395_v1 = vpop.permute.xlu0 %7394 }
 0xfa2   : > { %6987 = vmatpush1.bf16.msra.mxu1 %v6978_v57  ;;  %12605 = vmatprep.mubr.msk.bf16.mxu0 %vm13835_vm12, %v15058_v43  ;;  %v7400_v19 = vsel %vm2160_vm4, %v7395_v1, %v7397_v20  ;;  %v7952_v1 = vrot.slane %v7947_v62, %v14310_v6 }
 0xfa3   : > { %11799 = vmatprep.subr.msk.bf16.mxu1 %vm2708_vm11, %v7078_v58  ;;  %12609 = vmatprep.subr.bf16.mxu0 %v15058_v43  ;;  %v7406_v28 = vsel %vm2708_vm11, %v7400_v19, 0 }
 0xfa4   : > { %7018 = vmatprep.mubr.bf16.mxu1 %v13836_v34  ;;  %v7609_v30 = vpop.permute.xlu1 %7608 }
 0xfa5   : > { %v7399_v53 = vpop.permute.xlu0 %7398 }
 0xfa6   : > { %v7401_v14 = vsel %vm2160_vm4, %v7397_v20, %v7399_v53  ;;  %v7412_v25 = vsel %vm2708_vm11, %v7399_v53, 0 }
 0xfa8   : > { %v7613_v37 = vpop.permute.xlu1 %7612 }
 0xfa9   : > { %v7500_v16 = vpop.permute.xlu0 %7499  ;;  %v7626_v31 = vsel %vm2708_vm11, %v7613_v37, 0 }
 0xfaa   : > { %v7505_v32 = vsel %vm2277_vm5, %v7500_v16, %v7502_v27  ;;  %v7960_v16 = vrot.slane %v7947_v62, %v14322_v22 }
 0xfab   : > { %v7511_v40 = vsel %vm2708_vm11, %v7505_v32, 0 }
 0xfac   : > { %12606 = vmatmul.mubr.msk.bf16.vlgmr.msra.gmra.mrb[24].mxu0 %vm2704_vm0, %v6965_v51  ;;  %v7714_v26 = vpop.permute.xlu1 %7713 }
 0xfad   : > { %12610 = vmatpush3.bf16.msra.mxu0 %v7089_v33  ;;  %11797 = vmatmul.mubr.msk.bf16.vlgmr.msra.gmra.mrb[36].mxu1 %vm2704_vm0, %v6965_v51  ;;  %v7504_v23 = vpop.permute.xlu0 %7503 }
 0xfae   : > { %7092 = vmatpush1.bf16.msra.mxu1 %v7083_v63  ;;  %12611 = vmatprep.mubr.msk.bf16.mxu0 %vm13835_vm12, %v15058_v43  ;;  %v7506_v29 = vsel %vm2277_vm5, %v7502_v27, %v7504_v23 }
 0xfaf   : > { %11803 = vmatprep.subr.msk.bf16.mxu1 %vm2708_vm11, %v7187_v2  ;;  %12615 = vmatprep.subr.bf16.mxu0 %v15058_v43 }
 0xfb0   : > { %7123 = vmatprep.mubr.bf16.mxu1 %v13836_v34  ;;  %v7718_v46 = vpop.permute.xlu1 %7717 }
 0xfb1   : > { %v7611_v21 = vpop.permute.xlu0 %7610 }
 0xfb2   : > { %v7615_v36 = vsel %vm2277_vm5, %v7611_v21, %v7613_v37  ;;  %v7614_v44 = vsel %vm2277_vm5, %v7609_v30, %v7611_v21  ;;  %v7984_v30 = vld [vmem:[%s15917_s10] sm:$0xf]  ;;  %s15919_s10 = smov 127  }
 0xfb3   : > { %v7620_v47 = vsel %vm2708_vm11, %v7614_v44, 0 }
 0xfb4   : > { %v7825_v52 = vpop.permute.xlu1 %7824 }
 0xfb5   : > { %v7607_v38 = vpop.permute.xlu0 %7606 }
 0xfb8   : > { %12612 = vmatmul.mubr.msk.bf16.vlgmr.msra.gmra.mrb[24].mxu0 %vm2704_vm0, %v14931_v35  ;;  %v7821_v59 = vpop.permute.xlu1 %7820 }
 0xfb9   : > { %12616 = vmatpush3.bf16.msra.mxu0 %v7198_v7  ;;  %11800 = vmatmul.mubr.msk.bf16.vlgmr.msra.gmra.mrb[36].mxu1 %vm2704_vm0, %v14931_v35  ;;  %v7303_v35 = vsel %vm2708_vm11, %v7290_v8, 0  ;;  %v7716_v45 = vpop.permute.xlu0 %7715 }
 0xfba   : > { %7201 = vmatpush1.bf16.msra.mxu1 %v7192_v10  ;;  %12617 = vmatprep.mubr.msk.bf16.mxu0 %vm13835_vm12, %v15058_v43  ;;  %v7720_v48 = vsel %vm2394_vm6, %v7716_v45, %v7718_v46  ;;  %v7719_v50 = vsel %vm2394_vm6, %v7714_v26, %v7716_v45 }
 0xfbb   : > { %11806 = vmatprep.subr.msk.bf16.mxu1 %vm2708_vm11, %v7292_v12  ;;  %12621 = vmatprep.subr.bf16.mxu0 %v15058_v43  ;;  %v7725_v54 = vsel %vm2708_vm11, %v7719_v50, 0 }
 0xfbc   : > { %7232 = vmatprep.mubr.bf16.mxu1 %v13836_v34 }
 0xfbd   : > { %v7823_v49 = vpop.permute.xlu0 %7822 }
 0xfbe   : > { %v7828_v56 = vsel %vm2394_vm6, %v7823_v49, %v7825_v52 }
 0xfbf   : > { %v7834_v58 = vsel %vm2708_vm11, %v7828_v56, 0 }
 0xfc1   : > { %v7827_v51 = vpop.permute.xlu0 %7826 }
 0xfc2   : > { %v7829_v55 = vsel %vm2394_vm6, %v7825_v52, %v7827_v51  ;;  %v7840_v57 = vsel %vm2708_vm11, %v7827_v51, 0 }
 0xfc4   : > { %12618 = vmatmul.mubr.msk.bf16.vlgmr.msra.gmra.mrb[24].mxu0 %vm2704_vm0, %v7179_v3 }
 0xfc5   : > { %12622 = vmatpush3.bf16.msra.mxu0 %v7303_v35  ;;  %11804 = vmatmul.mubr.msk.bf16.vlgmr.msra.gmra.mrb[36].mxu1 %vm2704_vm0, %v7179_v3  ;;  %v7956_v35 = vrot.slane %v7947_v62, %v14313_v11 }
 0xfc6   : > { %7306 = vmatpush1.bf16.msra.mxu1 %v7297_v13  ;;  %12623 = vmatprep.mubr.msk.bf16.mxu0 %vm13835_vm12, %v15058_v43 }
 0xfc7   : > { %11810 = vmatprep.subr.msk.bf16.mxu1 %vm2708_vm11, %v7401_v14  ;;  %12627 = vmatprep.subr.bf16.mxu0 %v15058_v43 }
 0xfc8   : > { %7337 = vmatprep.mubr.bf16.mxu1 %v13836_v34 }
 0xfcc   : > { %v7930_v60 = vpop.permute.xlu0 %7929 }
 0xfd0   : > { %12624 = vmatmul.mubr.msk.bf16.vlgmr.msra.gmra.mrb[24].mxu0 %vm2704_vm0, %v14943_v39 }
 0xfd1   : > { %12628 = vmatpush3.bf16.msra.mxu0 %v7412_v25  ;;  %11807 = vmatmul.mubr.msk.bf16.vlgmr.msra.gmra.mrb[36].mxu1 %vm2704_vm0, %v14943_v39  ;;  %v7517_v39 = vsel %vm2708_vm11, %v7504_v23, 0  ;;  %v7991_v23 = vld [vmem:[#allocation3] sm:$0xff] }
 0xfd2   : > { %7415 = vmatpush1.bf16.msra.mxu1 %v7406_v28  ;;  %12629 = vmatprep.mubr.msk.bf16.mxu0 %vm13835_vm12, %v15058_v43  ;;  %v7994_v27 = vpack.c.bf16 %v7991_v23, %v7991_v23  ;;  %v7992_v28 = vld [vmem:[#allocation3 + $0x8] sm:$0xff] }
 0xfd3   : > { %11813 = vmatprep.subr.msk.bf16.mxu1 %vm2708_vm11, %v7506_v29  ;;  %12633 = vmatprep.subr.bf16.mxu0 %v15058_v43  ;;  %v7993_v29 = vld [vmem:[#allocation3 + $0x10] sm:$0xff]  ;;  %v7995_v32 = vpack.c.bf16 %v7992_v28, %v7992_v28 }
 0xfd4   : > { %7446 = vmatprep.mubr.bf16.mxu1 %v13836_v34  ;;  %v7996_v21 = vpack.c.bf16 %v7993_v29, %v7993_v29 }
 0xfdc   : > { %12630 = vmatmul.mubr.msk.bf16.vlgmr.msra.gmra.mrb[24].mxu0 %vm2704_vm0, %v7393_v0 }
 0xfdd   : > { %12634 = vmatpush3.bf16.msra.mxu0 %v7517_v39  ;;  %11811 = vmatmul.mubr.msk.bf16.vlgmr.msra.gmra.mrb[36].mxu1 %vm2704_vm0, %v7393_v0  ;;  %v11827_v39 = vcombine.low %v7984_v30, %v7984_v30 }
 0xfde   : > { %7520 = vmatpush1.bf16.msra.mxu1 %v7511_v40  ;;  %12635 = vmatprep.mubr.msk.bf16.mxu0 %vm13835_vm12, %v15058_v43 }
 0xfdf   : > { %11817 = vmatprep.subr.msk.bf16.mxu1 %vm2708_vm11, %v7615_v36  ;;  %12639 = vmatprep.subr.bf16.mxu0 %v15058_v43 }
 0xfe0   : > { %7551 = vmatprep.mubr.bf16.mxu1 %v13836_v34 }
 0xfe8   : > { %12636 = vmatmul.mubr.msk.bf16.vlgmr.msra.gmra.mrb[24].mxu0 %vm2704_vm0, %v14967_v41 }
 0xfe9   : > { %12640 = vmatpush3.bf16.msra.mxu0 %v7626_v31  ;;  %11814 = vmatmul.mubr.msk.bf16.vlgmr.msra.gmra.mrb[36].mxu1 %vm2704_vm0, %v14967_v41  ;;  %v7731_v41 = vsel %vm2708_vm11, %v7718_v46, 0 }
 0xfea   : > { %7629 = vmatpush1.bf16.msra.mxu1 %v7620_v47  ;;  %12641 = vmatprep.mubr.msk.bf16.mxu0 %vm13835_vm12, %v15058_v43 }
 0xfeb   : > { %11820 = vmatprep.subr.msk.bf16.mxu1 %vm2708_vm11, %v7720_v48  ;;  %12645 = vmatprep.subr.bf16.mxu0 %v15058_v43 }
 0xfec   : > { %7660 = vmatprep.mubr.bf16.mxu1 %v13836_v34 }
 0xff4   : > { %12642 = vmatmul.mubr.msk.bf16.vlgmr.msra.gmra.mrb[24].mxu0 %vm2704_vm0, %v7607_v38 }
 0xff5   : > { %12646 = vmatpush3.bf16.msra.mxu0 %v7731_v41  ;;  %11818 = vmatmul.mubr.msk.bf16.vlgmr.msra.gmra.mrb[36].mxu1 %vm2704_vm0, %v7607_v38 }
 0xff6   : > { %7734 = vmatpush1.bf16.msra.mxu1 %v7725_v54  ;;  %12647 = vmatprep.mubr.msk.bf16.mxu0 %vm13835_vm12, %v15058_v43 }
 0xff7   : > { %11824 = vmatprep.subr.msk.bf16.mxu1 %vm2708_vm11, %v7829_v55  ;;  %12651 = vmatprep.subr.bf16.mxu0 %v15058_v43 }
 0xff8   : > { %7765 = vmatprep.mubr.bf16.mxu1 %v13836_v34 }
0x1000   : > { %12648 = vmatmul.mubr.msk.bf16.vlgmr.msra.gmra.mrb[24].mxu0 %vm2704_vm0, %v14979_v42 }
0x1001   : > { %12652 = vmatpush3.bf16.msra.mxu0 %v7840_v57  ;;  %11821 = vmatmul.mubr.msk.bf16.vlgmr.msra.gmra.mrb[36].mxu1 %vm2704_vm0, %v14979_v42  ;;  %v7939_v42 = vpop.permute.xlu1 %7938 }
0x1002   : > { %7843 = vmatpush1.bf16.msra.mxu1 %v7834_v58  ;;  %12653 = vmatprep.mubr.msk.bf16.mxu0 %vm13835_vm12, %v15058_v43 }
0x1003   : > { %7874 = vmatprep.mubr.bf16.mxu1 %v13836_v34  ;;  %12657 = vmatprep.subr.bf16.mxu0 %v15058_v43 }
0x100c   : > { %12654 = vmatmul.mubr.msk.bf16.vlgmr.msra.gmra.mrb[24].mxu0 %vm2704_vm0, %v7821_v59 }
0x100d   : > { %11825 = vmatmul.mubr.msk.bf16.vlgmr.msra.gmra.mrb[36].mxu1 %vm2704_vm0, %v7821_v59  ;;  %12659 = vmatprep.mubr.msk.bf16.mxu0 %vm13835_vm12, %v15058_v43 }
0x100e   : > { %8057 = vmatprep.mubr.bf16.mxu1 %v13836_v34 }
0x10df   : > { %v7917_v61 = vpop.f32.mrb[24].mxu0 }
0x10e0   : > { %v7934_v33 = vmul.f32 %v7930_v60, %v7917_v61  ;;  %v7876_v63 = vpop.f32.mrb[36].mxu1  ;;  %v12655_v2 = vpop.f32.mrb[25].mxu0  ;;  %v9177_v61 = vld [vmem:[%s15923_s14] sm:$0xff]  ;;  %s15928_s14 = sld [smem:[#allocation42_spill]] }
0x10e1   : > { %v7932_v3 = vmul.f32 %v7930_v60, %v7876_v63  ;;  %v7878_v4 = vpop.f32.mrb[37].mxu1  ;;  %v7920_v17 = vpop.f32.mrb[26].mxu0 }
0x10e2   : > { %v7933_v5 = vmul.f32 %v7930_v60, %v7878_v4  ;;  %v7880_v7 = vpop.f32.mrb[38].mxu1  ;;  %v12656_v8 = vpop.f32.mrb[27].mxu0  ;;  %v7943_v10 = vadd.f32 %v7939_v42, %v7934_v33  ;;  %v8210_v60 = vld [vmem:[%s15922_s13] sm:$0xff]  ;;  %s15927_s13 = sld [smem:[#allocation43_spill]] }
0x10e3   : > { %v7941_v12 = vadd.f32 %v7939_v42, %v7932_v3  ;;  %v7881_v9 = vpop.f32.mrb[39].mxu1  ;;  %v8219_v33 = vld [vmem:[%s15924_s15] sm:$0xff]  ;;  %s15929_s15 = sld [smem:[#allocation41_spill]] }
0x10e4   : > { %v7942_v53 = vadd.f32 %v7939_v42, %v7933_v5  ;;  %v7946_v14 = vmax.f32 %v7943_v10, 0.0  ;;  %v9168_v42 = vld [vmem:[%s15921_s8] sm:$0xff]  ;;  %s15930_s8 = sld [smem:[#allocation45_spill]] }
0x10e5   : > { %v7944_v20 = vmax.f32 %v7941_v12, 0.0  ;;  %v8235_v8 = vld [vmem:[%s15925_s19 + $0x4] sm:$0xf] }
0x10e6   : > { %v7945_v13 = vmax.f32 %v7942_v53, 0.0  ;;  %v7966_v25 = vmul.f32 %v7960_v16, %v7946_v14 }
0x10e7   : > { %v7964_v0 = vmul.f32 %v7952_v1, %v7944_v20  ;;  %v8228_v20 = vld [vmem:[%s15925_s19] sm:$0xf] }
0x10e8   : > { %v7965_v19 = vmul.f32 %v7956_v35, %v7945_v13 }
0x10e9   : > { %7970 = vrot.lane.b32.xlu0 %v7964_v0, %s15918_s11 }
0x10ea   : > { %7972 = vrot.lane.b32.xlu1 %v7965_v19, %s15918_s11 }
0x10ed   : > { %7974 = vrot.lane.b32.xlu0 %v7966_v25, %s15918_s11 }
0x10ee   : > { %8005 = vrot.lane.b32.xlu1 %v7994_v27, %s15909_s2  ;;  %v8433_v27 = vld [vmem:[%s15925_s19 + $0x8] sm:$0xf] }
0x10f1   : > { %8007 = vrot.lane.b32.xlu0 %v7995_v32, %s15909_s2 }
0x10f2   : > { %8009 = vrot.lane.b32.xlu1 %v7996_v21, %s15909_s2 }
0x10f5   : > { %8000 = vrot.lane.b32.xlu0 %v11827_v39, %s15912_s7 }
0x10f6   : > { %8109 = vrot.lane.b32.xlu1 %v14829_v15, %s15909_s2 }
0x10f9   : > { %8111 = vrot.lane.b32.xlu0 %v14832_v18, %s15909_s2 }
0x10fa   : > { %8113 = vrot.lane.b32.xlu1 %v14845_v24, %s15909_s2 }
0x115b   : > { %v7971_v37 = vpop.permute.xlu0 %7970 }
0x115c   : > { %7981 = vst.msk [vmem:[#allocation4] sm:$0xff] %vm2549_vm8, %v7971_v37  ;;  %v7973_v40 = vpop.permute.xlu1 %7972 }
0x115d   : > { %v7976_v36 = vsel %vm2543_vm9, %v7971_v37, %v7973_v40 }
0x115e   : > { %7982 = vst [vmem:[#allocation4 + $0x8] sm:$0xff] %v7976_v36  ;;  %v15208_v38 = vpack.c.bf16 %v7976_v36, %v7976_v36 }
0x115f   : > { %v7975_v26 = vpop.permute.xlu0 %7974 }
0x1160   : > { %v7977_v44 = vsel %vm2543_vm9, %v7973_v40, %v7975_v26  ;;  %v8006_v45 = vpop.permute.xlu1 %8005  ;;  %8241 = vrot.lane.b32.xlu1 %v15208_v38, %s15919_s10  ;;  %v8538_v40 = vld [vmem:[%s15925_s19 + $0xc] sm:$0xf] }
0x1161   : > { %7983 = vst.msk [vmem:[#allocation4 + $0x10] sm:$0xff] %vm15920_vm7, %v7977_v44 }
0x1163   : > { %v8229_v15 = vld [vmem:[#allocation4] sm:$0xff]  ;;  %v8008_v18 = vpop.permute.xlu0 %8007 }
0x1164   : > { %v15214_v24 = vpack.c.bf16 %v8229_v15, %v8229_v15  ;;  %v8011_v31 = vsel %vm1926_vm2, %v8006_v45, %v8008_v18  ;;  %v8010_v46 = vpop.permute.xlu1 %8009 }
0x1165   : > { %v8012_v47 = vsel %vm1926_vm2, %v8008_v18, %v8010_v46  ;;  %v8023_v48 = vsel %vm2708_vm11, %v8010_v46, 0  ;;  %v8017_v49 = vsel %vm2708_vm11, %v8011_v31, 0 }
0x1166   : > { %8239 = vrot.lane.b32.xlu0 %v15214_v24, %s15919_s10  ;;  %11828 = vmatprep.subr.msk.bf16.mxu1 %vm2708_vm11, %v8012_v47  ;;  %v8344_v9 = vsel %vm2708_vm11, %v15214_v24, 0 }
0x1167   : > { %12658 = vmatpush3.bf16.msra.mxu0 %v8023_v48  ;;  %v8001_v50 = vpop.permute.xlu0 %8000  ;;  %8026 = vmatpush1.bf16.msra.mxu1 %v8017_v49 }
0x1168   : > { %v8231_v51 = vld [vmem:[#allocation4 + $0x10] sm:$0xff]  ;;  %v8110_v41 = vpop.permute.xlu1 %8109  ;;  %8434 = vrot.lane.b32.xlu1 %v15214_v24, %s15907_s0  ;;  %12663 = vmatprep.subr.bf16.mxu0 %v15058_v43 }
0x1169   : > { %v15226_v52 = vpack.c.bf16 %v8231_v51, %v8231_v51 }
0x116a   : > { %12660 = vmatmul.mubr.msk.bf16.vlgmr.msra.gmra.mrb[28].mxu0 %vm2704_vm0, %v8001_v50  ;;  %11829 = vmatmul.mubr.msk.bf16.vlgmr.msra.gmra.mrb[40].mxu1 %vm2704_vm0, %v8001_v50 }
0x116b   : > { %v8112_v54 = vpop.permute.xlu0 %8111  ;;  %8243 = vrot.lane.b32.xlu0 %v15226_v52, %s15919_s10  ;;  %12665 = vmatprep.mubr.msk.bf16.mxu0 %vm13835_vm12, %v15058_v43  ;;  %v8350_v12 = vsel %vm2708_vm11, %v15226_v52, 0 }
0x116c   : > { %v8115_v55 = vsel %vm1926_vm2, %v8110_v41, %v8112_v54  ;;  %v8114_v56 = vpop.permute.xlu1 %8113  ;;  %8438 = vrot.lane.b32.xlu1 %v15226_v52, %s15907_s0  ;;  %8161 = vmatprep.mubr.bf16.mxu1 %v13836_v34  ;;  %v8748_v41 = vld [vmem:[%s15925_s19 + $0x14] sm:$0xf] }
0x116d   : > { %v8116_v57 = vsel %vm1926_vm2, %v8112_v54, %v8114_v56  ;;  %v8127_v58 = vsel %vm2708_vm11, %v8114_v56, 0  ;;  %v8121_v59 = vsel %vm2708_vm11, %v8115_v55, 0 }
0x116e   : > { %11831 = vmatprep.subr.msk.bf16.mxu1 %vm2708_vm11, %v8116_v57  ;;  %12664 = vmatpush3.bf16.msra.mxu0 %v8127_v58 }
0x116f   : > { %8436 = vrot.lane.b32.xlu0 %v15208_v38, %s15907_s0  ;;  %8130 = vmatpush1.bf16.msra.mxu1 %v8121_v59 }
0x1170   : > { %8541 = vrot.lane.b32.xlu1 %v15208_v38, %s15908_s16  ;;  %12669 = vmatprep.subr.bf16.mxu0 %v15058_v43 }
0x1173   : > { %8539 = vrot.lane.b32.xlu0 %v15214_v24, %s15908_s16 }
0x1174   : > { %8644 = vrot.lane.b32.xlu1 %v15214_v24, %s15909_s2 }
0x1176   : > { %12666 = vmatmul.mubr.msk.bf16.vlgmr.msra.gmra.mrb[28].mxu0 %vm2704_vm0, %v7984_v30  ;;  %11832 = vmatmul.mubr.msk.bf16.vlgmr.msra.gmra.mrb[40].mxu1 %vm2704_vm0, %v7984_v30 }
0x1177   : > { %8543 = vrot.lane.b32.xlu0 %v15226_v52, %s15908_s16  ;;  %12671 = vmatprep.mubr.msk.bf16.mxu0 %vm13835_vm12, %v15058_v43 }
0x1178   : > { %8648 = vrot.lane.b32.xlu1 %v15226_v52, %s15909_s2  ;;  %8291 = vmatprep.mubr.bf16.mxu1 %v13836_v34 }
0x117b   : > { %8646 = vrot.lane.b32.xlu0 %v15208_v38, %s15909_s2 }
0x117c   : > { %8751 = vrot.lane.b32.xlu1 %v15208_v38, %s15910_s5 }
0x117f   : > { %8749 = vrot.lane.b32.xlu0 %v15214_v24, %s15910_s5 }
0x1180   : > { %8854 = vrot.lane.b32.xlu1 %v15214_v24, %s15911_s18 }
0x1183   : > { %8753 = vrot.lane.b32.xlu0 %v15226_v52, %s15910_s5 }
0x1184   : > { %8858 = vrot.lane.b32.xlu1 %v15226_v52, %s15911_s18 }
0x1187   : > { %8856 = vrot.lane.b32.xlu0 %v15208_v38, %s15911_s18 }
0x1188   : > { %8961 = vrot.lane.b32.xlu1 %v15208_v38, %s15913_s9 }
0x118b   : > { %8959 = vrot.lane.b32.xlu0 %v15214_v24, %s15913_s9 }
0x118c   : > { %9064 = vrot.lane.b32.xlu1 %v15214_v24, %s15916_s12  ;;  %v8643_v24 = vld [vmem:[%s15925_s19 + $0x10] sm:$0xf] }
0x118f   : > { %8963 = vrot.lane.b32.xlu0 %v15226_v52, %s15913_s9 }
0x1190   : > { %9068 = vrot.lane.b32.xlu1 %v15226_v52, %s15916_s12 }
0x1193   : > { %9066 = vrot.lane.b32.xlu0 %v15208_v38, %s15916_s12 }
0x1194   : > { %9171 = vperm.xlu1 %13664, %v9168_v42   ;;  %v8853_v42 = vld [vmem:[%s15925_s19 + $0x18] sm:$0xf] }
0x1197   : > { %8213 = vperm.xlu0 %13663, %v8210_v60  }
0x1198   : > { %9180 = vperm.xlu1 %13664, %v9177_v61  }
0x119b   : > { %8222 = vperm.xlu0 %13663, %v8219_v33  }
0x11d2   : > { %v8242_v63 = vpop.permute.xlu1 %8241 }
0x11d8   : > { %v8240_v62 = vpop.permute.xlu0 %8239 }
0x11d9   : > { %v8245_v2 = vsel %vm1483_vm14, %v8240_v62, %v8242_v63 }
0x11da   : > { %v8435_v4 = vpop.permute.xlu1 %8434  ;;  %v8251_v7 = vsel %vm2708_vm11, %v8245_v2, 0 }
0x11dd   : > { %v8244_v3 = vpop.permute.xlu0 %8243 }
0x11de   : > { %v8246_v17 = vsel %vm1483_vm14, %v8242_v63, %v8244_v3  ;;  %v8257_v5 = vsel %vm2708_vm11, %v8244_v3, 0  ;;  %v8439_v1 = vpop.permute.xlu1 %8438  ;;  %v8958_v3 = vld [vmem:[%s15925_s19 + $0x1c] sm:$0xf] }
0x11df   : > { %11834 = vmatprep.subr.msk.bf16.mxu1 %vm2708_vm11, %v8246_v17  ;;  %12670 = vmatpush3.bf16.msra.mxu0 %v8257_v5  ;;  %v8452_v16 = vsel %vm2708_vm11, %v8439_v1, 0 }
0x11e0   : > { %8260 = vmatpush1.bf16.msra.mxu1 %v8251_v7  ;;  %12675 = vmatprep.subr.bf16.mxu0 %v15058_v43  ;;  %v9063_v7 = vld [vmem:[%s15925_s19 + $0x20] sm:$0xf] }
0x11e1   : > { %v8437_v10 = vpop.permute.xlu0 %8436  ;;  %11837 = vmatprep.subr.msk.bf16.mxu1 %vm2708_vm11, %v15208_v38 }
0x11e2   : > { %12672 = vmatmul.mubr.msk.bf16.vlgmr.msra.gmra.mrb[32].mxu0 %vm2704_vm0, %v8235_v8  ;;  %v8441_v53 = vsel %vm1692_vm1, %v8437_v10, %v8439_v1  ;;  %v8440_v13 = vsel %vm1692_vm1, %v8435_v4, %v8437_v10  ;;  %v8542_v0 = vpop.permute.xlu1 %8541 }
0x11e3   : > { %11835 = vmatmul.mubr.msk.bf16.vlgmr.msra.gmra.mrb[44].mxu1 %vm2704_vm0, %v8235_v8  ;;  %12676 = vmatpush3.bf16.msra.mxu0 %v8350_v12  ;;  %v8446_v19 = vsel %vm2708_vm11, %v8440_v13, 0 }
0x11e4   : > { %8353 = vmatpush1.bf16.msra.mxu1 %v8344_v9  ;;  %12677 = vmatprep.mubr.msk.bf16.mxu0 %vm13835_vm12, %v15058_v43 }
0x11e5   : > { %11840 = vmatprep.subr.msk.bf16.mxu1 %vm2708_vm11, %v8441_v53  ;;  %12681 = vmatprep.subr.bf16.mxu0 %v15058_v43  ;;  %v8540_v35 = vpop.permute.xlu0 %8539 }
0x11e6   : > { %8384 = vmatprep.mubr.bf16.mxu1 %v13836_v34  ;;  %v8645_v25 = vpop.permute.xlu1 %8644  ;;  %v8545_v28 = vsel %vm1352_vm13, %v8540_v35, %v8542_v0 }
0x11e7   : > { %v8551_v21 = vsel %vm2708_vm11, %v8545_v28, 0 }
0x11e9   : > { %v8544_v14 = vpop.permute.xlu0 %8543 }
0x11ea   : > { %v8546_v23 = vsel %vm1352_vm13, %v8542_v0, %v8544_v14  ;;  %v8557_v30 = vsel %vm2708_vm11, %v8544_v14, 0  ;;  %v8649_v32 = vpop.permute.xlu1 %8648 }
0x11eb   : > { %v8662_v26 = vsel %vm2708_vm11, %v8649_v32, 0 }
0x11ed   : > { %v8647_v29 = vpop.permute.xlu0 %8646 }
0x11ee   : > { %12678 = vmatmul.mubr.msk.bf16.vlgmr.msra.gmra.mrb[32].mxu0 %vm2704_vm0, %v8228_v20  ;;  %v8651_v39 = vsel %vm1926_vm2, %v8647_v29, %v8649_v32  ;;  %v8650_v36 = vsel %vm1926_vm2, %v8645_v25, %v8647_v29  ;;  %v8752_v45 = vpop.permute.xlu1 %8751 }
0x11ef   : > { %12682 = vmatpush3.bf16.msra.mxu0 %v8452_v16  ;;  %11838 = vmatmul.mubr.msk.bf16.vlgmr.msra.gmra.mrb[44].mxu1 %vm2704_vm0, %v8228_v20  ;;  %v8656_v44 = vsel %vm2708_vm11, %v8650_v36, 0  ;;  %v9192_v36 = vld [vmem:[%s13884_s17] sm:$0x7] }
0x11f0   : > { %8455 = vmatpush1.bf16.msra.mxu1 %v8446_v19  ;;  %12683 = vmatprep.mubr.msk.bf16.mxu0 %vm13835_vm12, %v15058_v43 }
0x11f1   : > { %11843 = vmatprep.subr.msk.bf16.mxu1 %vm2708_vm11, %v8546_v23  ;;  %12687 = vmatprep.subr.bf16.mxu0 %v15058_v43  ;;  %v8750_v37 = vpop.permute.xlu0 %8749 }
0x11f2   : > { %8486 = vmatprep.mubr.bf16.mxu1 %v13836_v34  ;;  %v8855_v18 = vpop.permute.xlu1 %8854  ;;  %v8755_v31 = vsel %vm2043_vm3, %v8750_v37, %v8752_v45 }
0x11f3   : > { %v8761_v48 = vsel %vm2708_vm11, %v8755_v31, 0 }
0x11f5   : > { %v8754_v38 = vpop.permute.xlu0 %8753 }
0x11f6   : > { %v8756_v15 = vsel %vm2043_vm3, %v8752_v45, %v8754_v38  ;;  %v8767_v47 = vsel %vm2708_vm11, %v8754_v38, 0  ;;  %v8859_v49 = vpop.permute.xlu1 %8858 }
0x11f7   : > { %v8872_v55 = vsel %vm2708_vm11, %v8859_v49, 0 }
0x11f9   : > { %v8857_v46 = vpop.permute.xlu0 %8856 }
0x11fa   : > { %12684 = vmatmul.mubr.msk.bf16.vlgmr.msra.gmra.mrb[32].mxu0 %vm2704_vm0, %v8433_v27  ;;  %v8861_v50 = vsel %vm2160_vm4, %v8857_v46, %v8859_v49  ;;  %v8860_v52 = vsel %vm2160_vm4, %v8855_v18, %v8857_v46  ;;  %v8962_v57 = vpop.permute.xlu1 %8961 }
0x11fb   : > { %12688 = vmatpush3.bf16.msra.mxu0 %v8557_v30  ;;  %11841 = vmatmul.mubr.msk.bf16.vlgmr.msra.gmra.mrb[44].mxu1 %vm2704_vm0, %v8433_v27  ;;  %v8866_v56 = vsel %vm2708_vm11, %v8860_v52, 0 }
0x11fc   : > { %8560 = vmatpush1.bf16.msra.mxu1 %v8551_v21  ;;  %12689 = vmatprep.mubr.msk.bf16.mxu0 %vm13835_vm12, %v15058_v43 }
0x11fd   : > { %11846 = vmatprep.subr.msk.bf16.mxu1 %vm2708_vm11, %v8651_v39  ;;  %12693 = vmatprep.subr.bf16.mxu0 %v15058_v43  ;;  %v8960_v51 = vpop.permute.xlu0 %8959 }
0x11fe   : > { %8591 = vmatprep.mubr.bf16.mxu1 %v13836_v34  ;;  %v9065_v59 = vpop.permute.xlu1 %9064  ;;  %v8965_v60 = vsel %vm2277_vm5, %v8960_v51, %v8962_v57 }
0x11ff   : > { %v8971_v62 = vsel %vm2708_vm11, %v8965_v60, 0 }
0x1201   : > { %v8964_v54 = vpop.permute.xlu0 %8963 }
0x1202   : > { %v8966_v58 = vsel %vm2277_vm5, %v8962_v57, %v8964_v54  ;;  %v8977_v33 = vsel %vm2708_vm11, %v8964_v54, 0  ;;  %v9069_v63 = vpop.permute.xlu1 %9068  ;;  %v9205_v54 = vrot.slane %v9192_v36, %v14322_v22 }
0x1203   : > { %v9082_v17 = vsel %vm2708_vm11, %v9069_v63, 0 }
0x1205   : > { %v9067_v61 = vpop.permute.xlu0 %9066 }
0x1206   : > { %12690 = vmatmul.mubr.msk.bf16.vlgmr.msra.gmra.mrb[32].mxu0 %vm2704_vm0, %v8538_v40  ;;  %v9071_v2 = vsel %vm2394_vm6, %v9067_v61, %v9069_v63  ;;  %v9070_v4 = vsel %vm2394_vm6, %v9065_v59, %v9067_v61 }
0x1207   : > { %12694 = vmatpush3.bf16.msra.mxu0 %v8662_v26  ;;  %11844 = vmatmul.mubr.msk.bf16.vlgmr.msra.gmra.mrb[44].mxu1 %vm2704_vm0, %v8538_v40  ;;  %v9076_v5 = vsel %vm2708_vm11, %v9070_v4, 0  ;;  %v10194_v4 = vld [vmem:[%s15927_s13] sm:$0xf]  ;;  %s15977_s13 = smov 118  }
0x1208   : > { %8665 = vmatpush1.bf16.msra.mxu1 %v8656_v44  ;;  %12695 = vmatprep.mubr.msk.bf16.mxu0 %vm13835_vm12, %v15058_v43 }
0x1209   : > { %11849 = vmatprep.subr.msk.bf16.mxu1 %vm2708_vm11, %v8756_v15  ;;  %12699 = vmatprep.subr.bf16.mxu0 %v15058_v43 }
0x120a   : > { %8696 = vmatprep.mubr.bf16.mxu1 %v13836_v34 }
0x1212   : > { %12696 = vmatmul.mubr.msk.bf16.vlgmr.msra.gmra.mrb[32].mxu0 %vm2704_vm0, %v8643_v24 }
0x1213   : > { %12700 = vmatpush3.bf16.msra.mxu0 %v8767_v47  ;;  %11847 = vmatmul.mubr.msk.bf16.vlgmr.msra.gmra.mrb[44].mxu1 %vm2704_vm0, %v8643_v24  ;;  %v9172_v13 = vpop.permute.xlu1 %9171 }
0x1214   : > { %8770 = vmatpush1.bf16.msra.mxu1 %v8761_v48  ;;  %12701 = vmatprep.mubr.msk.bf16.mxu0 %vm13835_vm12, %v15058_v43  ;;  %v9197_v48 = vrot.slane %v9192_v36, %v14310_v6 }
0x1215   : > { %11852 = vmatprep.subr.msk.bf16.mxu1 %vm2708_vm11, %v8861_v50  ;;  %12705 = vmatprep.subr.bf16.mxu0 %v15058_v43  ;;  %v9201_v50 = vrot.slane %v9192_v36, %v14313_v11 }
0x1216   : > { %8801 = vmatprep.mubr.bf16.mxu1 %v13836_v34  ;;  %v8214_v14 = vpop.permute.xlu0 %8213 }
0x1217   : > { %v9181_v16 = vpop.permute.xlu1 %9180 }
0x121a   : > { %v8223_v19 = vpop.permute.xlu0 %8222 }
0x121e   : > { %12702 = vmatmul.mubr.msk.bf16.vlgmr.msra.gmra.mrb[32].mxu0 %vm2704_vm0, %v8748_v41 }
0x121f   : > { %12706 = vmatpush3.bf16.msra.mxu0 %v8872_v55  ;;  %11850 = vmatmul.mubr.msk.bf16.vlgmr.msra.gmra.mrb[44].mxu1 %vm2704_vm0, %v8748_v41 }
0x1220   : > { %8875 = vmatpush1.bf16.msra.mxu1 %v8866_v56  ;;  %12707 = vmatprep.mubr.msk.bf16.mxu0 %vm13835_vm12, %v15058_v43 }
0x1221   : > { %11855 = vmatprep.subr.msk.bf16.mxu1 %vm2708_vm11, %v8966_v58  ;;  %12711 = vmatprep.subr.bf16.mxu0 %v15058_v43 }
0x1222   : > { %8906 = vmatprep.mubr.bf16.mxu1 %v13836_v34 }
0x122a   : > { %12708 = vmatmul.mubr.msk.bf16.vlgmr.msra.gmra.mrb[32].mxu0 %vm2704_vm0, %v8853_v42 }
0x122b   : > { %12712 = vmatpush3.bf16.msra.mxu0 %v8977_v33  ;;  %11853 = vmatmul.mubr.msk.bf16.vlgmr.msra.gmra.mrb[44].mxu1 %vm2704_vm0, %v8853_v42 }
0x122c   : > { %8980 = vmatpush1.bf16.msra.mxu1 %v8971_v62  ;;  %12713 = vmatprep.mubr.msk.bf16.mxu0 %vm13835_vm12, %v15058_v43 }
0x122d   : > { %11858 = vmatprep.subr.msk.bf16.mxu1 %vm2708_vm11, %v9071_v2  ;;  %12717 = vmatprep.subr.bf16.mxu0 %v15058_v43 }
0x122e   : > { %9011 = vmatprep.mubr.bf16.mxu1 %v13836_v34 }
0x1236   : > { %12714 = vmatmul.mubr.msk.bf16.vlgmr.msra.gmra.mrb[32].mxu0 %vm2704_vm0, %v8958_v3 }
0x1237   : > { %12718 = vmatpush3.bf16.msra.mxu0 %v9082_v17  ;;  %11856 = vmatmul.mubr.msk.bf16.vlgmr.msra.gmra.mrb[44].mxu1 %vm2704_vm0, %v8958_v3  ;;  %v10185_v17 = vld [vmem:[%s15928_s14] sm:$0xf]  ;;  %s13858_s14 = smov 114  }
0x1238   : > { %9085 = vmatpush1.bf16.msra.mxu1 %v9076_v5  ;;  %12719 = vmatprep.mubr.msk.bf16.mxu0 %vm13835_vm12, %v15058_v43 }
0x1239   : > { %9116 = vmatprep.mubr.bf16.mxu1 %v13836_v34  ;;  %12723 = vmatprep.subr.bf16.mxu0 %v15058_v43 }
0x1242   : > { %12720 = vmatmul.mubr.msk.bf16.vlgmr.msra.gmra.mrb[32].mxu0 %vm2704_vm0, %v9063_v7 }
0x1243   : > { %11859 = vmatmul.mubr.msk.bf16.vlgmr.msra.gmra.mrb[44].mxu1 %vm2704_vm0, %v9063_v7  ;;  %12725 = vmatprep.mubr.msk.bf16.mxu0 %vm13835_vm12, %v15058_v43 }
0x1244   : > { %9296 = vmatprep.mubr.bf16.mxu1 %v13836_v34 }
0x1249   : > { %v8204_v8 = vpop.f32.mrb[28].mxu0  ;;  %v8163_v10 = vpop.f32.mrb[40].mxu1 }
0x124a   : > { %v8165_v12 = vpop.f32.mrb[41].mxu1  ;;  %v12667_v1 = vpop.f32.mrb[29].mxu0  ;;  %v8218_v0 = vmul.f32 %v8214_v14, %v8204_v8  ;;  %v8216_v23 = vmul.f32 %v8214_v14, %v8163_v10  ;;  %v13705_v8 = vld [vmem:[%s15929_s15] ss:$0 sps:$4 sm:$0xcc]  }
0x124b   : > { %v8167_v9 = vpop.f32.mrb[42].mxu1  ;;  %v8207_v53 = vpop.f32.mrb[30].mxu0  ;;  %v8217_v27 = vmul.f32 %v8214_v14, %v8165_v12 }
0x124c   : > { %v8168_v35 = vpop.f32.mrb[43].mxu1  ;;  %v12668_v20 = vpop.f32.mrb[31].mxu0  ;;  %v8227_v37 = vadd.f32 %v8223_v19, %v8218_v0  ;;  %v8225_v45 = vadd.f32 %v8223_v19, %v8216_v23 }
0x124d   : > { %v8226_v24 = vadd.f32 %v8223_v19, %v8217_v27  ;;  %v9240_v35 = vrot.slane %v13705_v8, 2  ;;  %v9866_v8 = vld [vmem:[%s15929_s15 + $0xc] sm:$0x3] }
0x1315   : > { %v9159_v25 = vpop.f32.mrb[32].mxu0 }
0x1316   : > { %v9176_v28 = vmul.f32 %v9172_v13, %v9159_v25  ;;  %v9118_v29 = vpop.f32.mrb[44].mxu1  ;;  %v12721_v30 = vpop.f32.mrb[33].mxu0  ;;  %v9229_v25 = vld [vmem:[%s15929_s15] sm:$0x3] }
0x1317   : > { %v9174_v32 = vmul.f32 %v9172_v13, %v9118_v29  ;;  %v9120_v21 = vpop.f32.mrb[45].mxu1  ;;  %v9162_v39 = vpop.f32.mrb[34].mxu0 }
0x1318   : > { %v9185_v40 = vadd.f32 %v9181_v16, %v9176_v28  ;;  %v9175_v38 = vmul.f32 %v9172_v13, %v9120_v21  ;;  %v9122_v26 = vpop.f32.mrb[46].mxu1  ;;  %v12722_v44 = vpop.f32.mrb[35].mxu0 }
0x1319   : > { %v9183_v15 = vadd.f32 %v9181_v16, %v9174_v32  ;;  %v9123_v18 = vpop.f32.mrb[47].mxu1 }
0x131a   : > { %v9188_v31 = vadd.f32 %v9185_v40, %v8227_v37  ;;  %v9184_v46 = vadd.f32 %v9181_v16, %v9175_v38  ;;  %v9438_v37 = vld [vmem:[%s15929_s15 + $0x4] sm:$0x3] }
0x131b   : > { %v9186_v47 = vadd.f32 %v9183_v15, %v8225_v45  ;;  %v13706_v15 = vld [vmem:[%s15929_s15 + $0x4] ss:$0 sps:$4 sm:$0xcc]  }
0x131c   : > { %v9187_v49 = vadd.f32 %v9184_v46, %v8226_v24  ;;  %v9191_v52 = vmax.f32 %v9188_v31, 0.0  ;;  %v9547_v24 = vrot.slane %v13706_v15, 2 }
0x131d   : > { %v9189_v51 = vmax.f32 %v9186_v47, 0.0 }
0x131e   : > { %v9190_v41 = vmax.f32 %v9187_v49, 0.0  ;;  %v9211_v57 = vmul.f32 %v9205_v54, %v9191_v52 }
0x131f   : > { %v9209_v55 = vmul.f32 %v9197_v48, %v9189_v51 }
0x1320   : > { %v9210_v56 = vmul.f32 %v9201_v50, %v9190_v41  ;;  %v9652_v41 = vld [vmem:[%s15929_s15 + $0x8] sm:$0x3] }
0x1321   : > { %9215 = vrot.lane.b32.xlu0 %v9209_v55, %s15918_s11 }
0x1322   : > { %9217 = vrot.lane.b32.xlu1 %v9210_v56, %s15918_s11 }
0x1325   : > { %9219 = vrot.lane.b32.xlu0 %v9211_v57, %s15918_s11 }
0x1393   : > { %v9216_v58 = vpop.permute.xlu0 %9215 }
0x1394   : > { %9226 = vst.msk [vmem:[#allocation6] sm:$0xff] %vm2549_vm8, %v9216_v58  ;;  %v9218_v59 = vpop.permute.xlu1 %9217  ;;  %vm10240_vm8 = vcmask 1043608  }
0x1395   : > { %v9221_v42 = vsel %vm2543_vm9, %v9216_v58, %v9218_v59 }
0x1396   : > { %v15408_v60 = vpack.c.bf16 %v9221_v42, %v9221_v42 }
0x1397   : > { %v9220_v61 = vpop.permute.xlu0 %9219 }
0x1398   : > { %v9222_v33 = vsel %vm2543_vm9, %v9218_v59, %v9220_v61  ;;  %9246 = vrot.lane.b32.xlu0 %v15408_v60, %s15919_s10  ;;  %v13707_v59 = vld [vmem:[%s15929_s15 + $0x8] ss:$0 sps:$4 sm:$0xcc]  }
0x1399   : > { %9228 = vst.msk [vmem:[#allocation6 + $0x10] sm:$0xff] %vm15926_vm10, %v9222_v33  ;;  %v9761_v61 = vrot.slane %v13707_v59, 2  ;;  %vm15937_vm10 = vcmask 31744  }
0x139b   : > { %v9230_v62 = vld [vmem:[#allocation6] sm:$0xff] }
0x139c   : > { %v15414_v63 = vpack.c.bf16 %v9230_v62, %v9230_v62 }
0x139e   : > { %9244 = vrot.lane.b32.xlu1 %v15414_v63, %s15919_s10  ;;  %9439 = vrot.lane.b32.xlu0 %v15414_v63, %s15907_s0  ;;  %v9349_v0 = vsel %vm2708_vm11, %v15414_v63, 0 }
0x13a0   : > { %v9232_v2 = vld [vmem:[#allocation6 + $0x10] sm:$0xff] }
0x13a1   : > { %v15420_v3 = vpack.c.bf16 %v9232_v2, %v9232_v2 }
0x13a3   : > { %9248 = vrot.lane.b32.xlu1 %v15420_v3, %s15919_s10  ;;  %9443 = vrot.lane.b32.xlu0 %v15420_v3, %s15907_s0  ;;  %v9355_v14 = vsel %vm2708_vm11, %v15420_v3, 0 }
0x13a7   : > { %9441 = vrot.lane.b32.xlu1 %v15408_v60, %s15907_s0  ;;  %9550 = vrot.lane.b32.xlu0 %v15408_v60, %s15908_s16 }
0x13ab   : > { %9548 = vrot.lane.b32.xlu1 %v15414_v63, %s15908_s16  ;;  %9653 = vrot.lane.b32.xlu0 %v15414_v63, %s15909_s2 }
0x13af   : > { %9552 = vrot.lane.b32.xlu1 %v15420_v3, %s15908_s16  ;;  %9657 = vrot.lane.b32.xlu0 %v15420_v3, %s15909_s2 }
0x13b3   : > { %9655 = vrot.lane.b32.xlu1 %v15408_v60, %s15909_s2  ;;  %9764 = vrot.lane.b32.xlu0 %v15408_v60, %s15910_s5 }
0x13b7   : > { %9762 = vrot.lane.b32.xlu1 %v15414_v63, %s15910_s5  ;;  %9867 = vrot.lane.b32.xlu0 %v15414_v63, %s15911_s18 }
0x13bb   : > { %9766 = vrot.lane.b32.xlu1 %v15420_v3, %s15910_s5  ;;  %9871 = vrot.lane.b32.xlu0 %v15420_v3, %s15911_s18 }
0x13bf   : > { %9869 = vrot.lane.b32.xlu1 %v15408_v60, %s15911_s18  ;;  %9978 = vrot.lane.b32.xlu0 %v15408_v60, %s15913_s9 }
0x13c3   : > { %9976 = vrot.lane.b32.xlu1 %v15414_v63, %s15913_s9  ;;  %10081 = vrot.lane.b32.xlu0 %v15414_v63, %s15916_s12 }
0x13c7   : > { %9980 = vrot.lane.b32.xlu1 %v15420_v3, %s15913_s9  ;;  %10085 = vrot.lane.b32.xlu0 %v15420_v3, %s15916_s12 }
0x13cb   : > { %10083 = vrot.lane.b32.xlu1 %v15408_v60, %s15916_s12  ;;  %10197 = vperm.xlu0 %13663, %v10194_v4  }
0x13cf   : > { %10188 = vperm.xlu1 %13664, %v10185_v17  }
0x140a   : > { %v9247_v7 = vpop.permute.xlu0 %9246 }
0x1410   : > { %v9245_v5 = vpop.permute.xlu1 %9244  ;;  %v9440_v1 = vpop.permute.xlu0 %9439 }
0x1411   : > { %v9250_v10 = vsel %vm1483_vm14, %v9245_v5, %v9247_v7 }
0x1412   : > { %v9256_v20 = vsel %vm2708_vm11, %v9250_v10, 0 }
0x1415   : > { %v9249_v12 = vpop.permute.xlu1 %9248  ;;  %v9444_v16 = vpop.permute.xlu0 %9443 }
0x1416   : > { %v9251_v9 = vsel %vm1483_vm14, %v9247_v7, %v9249_v12  ;;  %v9262_v53 = vsel %vm2708_vm11, %v9249_v12, 0  ;;  %v9457_v29 = vsel %vm2708_vm11, %v9444_v16, 0 }
0x1417   : > { %11862 = vmatprep.subr.msk.bf16.mxu1 %vm2708_vm11, %v9251_v9  ;;  %12724 = vmatpush3.bf16.msra.mxu0 %v9262_v53 }
0x1418   : > { %9265 = vmatpush1.bf16.msra.mxu1 %v9256_v20  ;;  %12729 = vmatprep.subr.bf16.mxu0 %v15058_v43  ;;  %v13708_v20 = vld [vmem:[%s15929_s15 + $0xc] ss:$0 sps:$4 sm:$0xcc]  }
0x1419   : > { %11865 = vmatprep.subr.msk.bf16.mxu1 %vm2708_vm11, %v15408_v60  ;;  %v9442_v13 = vpop.permute.xlu1 %9441  ;;  %v9551_v32 = vpop.permute.xlu0 %9550 }
0x141a   : > { %12726 = vmatmul.mubr.msk.bf16.vlgmr.msra.gmra.mrb[36].mxu0 %vm2704_vm0, %v9240_v35  ;;  %v9446_v19 = vsel %vm1692_vm1, %v9442_v13, %v9444_v16  ;;  %v9445_v27 = vsel %vm1692_vm1, %v9440_v1, %v9442_v13  ;;  %v9975_v13 = vrot.slane %v13708_v20, 2 }
0x141b   : > { %11863 = vmatmul.mubr.msk.bf16.vlgmr.msra.gmra.mrb[48].mxu1 %vm2704_vm0, %v9240_v35  ;;  %12730 = vmatpush3.bf16.msra.mxu0 %v9355_v14  ;;  %v9451_v30 = vsel %vm2708_vm11, %v9445_v27, 0 }
0x141c   : > { %9358 = vmatpush1.bf16.msra.mxu1 %v9349_v0  ;;  %12731 = vmatprep.mubr.msk.bf16.mxu0 %vm13835_vm12, %v15058_v43 }
0x141d   : > { %11868 = vmatprep.subr.msk.bf16.mxu1 %vm2708_vm11, %v9446_v19  ;;  %12735 = vmatprep.subr.bf16.mxu0 %v15058_v43  ;;  %v9549_v23 = vpop.permute.xlu1 %9548  ;;  %v9654_v39 = vpop.permute.xlu0 %9653  ;;  %v10080_v19 = vld [vmem:[%s15929_s15 + $0x10] sm:$0x3] }
0x141e   : > { %9389 = vmatprep.mubr.bf16.mxu1 %v13836_v34  ;;  %v9554_v40 = vsel %vm1352_vm13, %v9549_v23, %v9551_v32 }
0x141f   : > { %v9560_v26 = vsel %vm2708_vm11, %v9554_v40, 0 }
0x1421   : > { %v9553_v28 = vpop.permute.xlu1 %9552  ;;  %v9658_v44 = vpop.permute.xlu0 %9657 }
0x1422   : > { %v9555_v21 = vsel %vm1352_vm13, %v9551_v32, %v9553_v28  ;;  %v9566_v38 = vsel %vm2708_vm11, %v9553_v28, 0  ;;  %v9671_v47 = vsel %vm2708_vm11, %v9658_v44, 0 }
0x1425   : > { %v9656_v36 = vpop.permute.xlu1 %9655  ;;  %v9765_v49 = vpop.permute.xlu0 %9764 }
0x1426   : > { %12732 = vmatmul.mubr.msk.bf16.vlgmr.msra.gmra.mrb[36].mxu0 %vm2704_vm0, %v9229_v25  ;;  %v9660_v45 = vsel %vm1926_vm2, %v9656_v36, %v9658_v44  ;;  %v9659_v31 = vsel %vm1926_vm2, %v9654_v39, %v9656_v36 }
0x1427   : > { %12736 = vmatpush3.bf16.msra.mxu0 %v9457_v29  ;;  %11866 = vmatmul.mubr.msk.bf16.vlgmr.msra.gmra.mrb[48].mxu1 %vm2704_vm0, %v9229_v25  ;;  %v9665_v48 = vsel %vm2708_vm11, %v9659_v31, 0  ;;  %v10206_v29 = vld [vmem:[%s13884_s17] sm:$0x7] }
0x1428   : > { %9460 = vmatpush1.bf16.msra.mxu1 %v9451_v30  ;;  %12737 = vmatprep.mubr.msk.bf16.mxu0 %vm13835_vm12, %v15058_v43 }
0x1429   : > { %11872 = vmatprep.subr.msk.bf16.mxu1 %vm2708_vm11, %v9555_v21  ;;  %12741 = vmatprep.subr.bf16.mxu0 %v15058_v43  ;;  %v9763_v18 = vpop.permute.xlu1 %9762  ;;  %v9868_v51 = vpop.permute.xlu0 %9867 }
0x142a   : > { %9491 = vmatprep.mubr.bf16.mxu1 %v13836_v34  ;;  %v9768_v52 = vsel %vm2043_vm3, %v9763_v18, %v9765_v49 }
0x142b   : > { %v9774_v56 = vsel %vm2708_vm11, %v9768_v52, 0 }
0x142d   : > { %v9767_v46 = vpop.permute.xlu1 %9766  ;;  %v9872_v57 = vpop.permute.xlu0 %9871 }
0x142e   : > { %v9769_v50 = vsel %vm2043_vm3, %v9765_v49, %v9767_v46  ;;  %v9780_v55 = vsel %vm2708_vm11, %v9767_v46, 0  ;;  %v9885_v2 = vsel %vm2708_vm11, %v9872_v57, 0 }
0x1431   : > { %v9870_v54 = vpop.permute.xlu1 %9869  ;;  %v9979_v17 = vpop.permute.xlu0 %9978 }
0x1432   : > { %12738 = vmatmul.mubr.msk.bf16.vlgmr.msra.gmra.mrb[36].mxu0 %vm2704_vm0, %v9438_v37  ;;  %v9874_v58 = vsel %vm2160_vm4, %v9870_v54, %v9872_v57  ;;  %v9873_v33 = vsel %vm2160_vm4, %v9868_v51, %v9870_v54 }
0x1433   : > { %12742 = vmatpush3.bf16.msra.mxu0 %v9566_v38  ;;  %11869 = vmatmul.mubr.msk.bf16.vlgmr.msra.gmra.mrb[48].mxu1 %vm2704_vm0, %v9438_v37  ;;  %v9879_v4 = vsel %vm2708_vm11, %v9873_v33, 0 }
0x1434   : > { %9569 = vmatpush1.bf16.msra.mxu1 %v9560_v26  ;;  %12743 = vmatprep.mubr.msk.bf16.mxu0 %vm13835_vm12, %v15058_v43 }
0x1435   : > { %11875 = vmatprep.subr.msk.bf16.mxu1 %vm2708_vm11, %v9660_v45  ;;  %12747 = vmatprep.subr.bf16.mxu0 %v15058_v43  ;;  %v9977_v42 = vpop.permute.xlu1 %9976  ;;  %v10082_v7 = vpop.permute.xlu0 %10081  ;;  %v10211_v45 = vrot.slane %v10206_v29, %v14310_v6 }
0x1436   : > { %9600 = vmatprep.mubr.bf16.mxu1 %v13836_v34  ;;  %v9982_v10 = vsel %vm2277_vm5, %v9977_v42, %v9979_v17 }
0x1437   : > { %v9988_v9 = vsel %vm2708_vm11, %v9982_v10, 0 }
0x1439   : > { %v9981_v62 = vpop.permute.xlu1 %9980  ;;  %v10086_v53 = vpop.permute.xlu0 %10085 }
0x143a   : > { %v9983_v5 = vsel %vm2277_vm5, %v9979_v17, %v9981_v62  ;;  %v9994_v1 = vsel %vm2708_vm11, %v9981_v62, 0  ;;  %v10099_v16 = vsel %vm2708_vm11, %v10086_v53, 0  ;;  %v10245_v62 = vld [vmem:[%s14074_s21] sm:$0x3] }
0x143b   : > { %v10356_v17 = vld [vmem:[%s14079_s4] sm:$0xf] }
0x143d   : > { %v10084_v12 = vpop.permute.xlu1 %10083 }
0x143e   : > { %12744 = vmatmul.mubr.msk.bf16.vlgmr.msra.gmra.mrb[36].mxu0 %vm2704_vm0, %v9547_v24  ;;  %v10088_v35 = vsel %vm2394_vm6, %v10084_v12, %v10086_v53  ;;  %v10087_v14 = vsel %vm2394_vm6, %v10082_v7, %v10084_v12  ;;  %v10365_v7 = vld [vmem:[%s14084_s29] sm:$0xf] }
0x143f   : > { %12748 = vmatpush3.bf16.msra.mxu0 %v9671_v47  ;;  %11873 = vmatmul.mubr.msk.bf16.vlgmr.msra.gmra.mrb[48].mxu1 %vm2704_vm0, %v9547_v24  ;;  %v10093_v0 = vsel %vm2708_vm11, %v10087_v14, 0  ;;  %v10215_v24 = vrot.slane %v10206_v29, %v14313_v11 }
0x1440   : > { %9674 = vmatpush1.bf16.msra.mxu1 %v9665_v48  ;;  %12749 = vmatprep.mubr.msk.bf16.mxu0 %vm13835_vm12, %v15058_v43  ;;  %v10219_v48 = vrot.slane %v10206_v29, %v14322_v22 }
0x1441   : > { %11879 = vmatprep.subr.msk.bf16.mxu1 %vm2708_vm11, %v9769_v50  ;;  %12753 = vmatprep.subr.bf16.mxu0 %v15058_v43 }
0x1442   : > { %9705 = vmatprep.mubr.bf16.mxu1 %v13836_v34 }
0x144a   : > { %12750 = vmatmul.mubr.msk.bf16.vlgmr.msra.gmra.mrb[36].mxu0 %vm2704_vm0, %v9652_v41  ;;  %v10198_v23 = vpop.permute.xlu0 %10197 }
0x144b   : > { %12754 = vmatpush3.bf16.msra.mxu0 %v9780_v55  ;;  %11876 = vmatmul.mubr.msk.bf16.vlgmr.msra.gmra.mrb[48].mxu1 %vm2704_vm0, %v9652_v41 }
0x144c   : > { %9783 = vmatpush1.bf16.msra.mxu1 %v9774_v56  ;;  %12755 = vmatprep.mubr.msk.bf16.mxu0 %vm13835_vm12, %v15058_v43 }
0x144d   : > { %11882 = vmatprep.subr.msk.bf16.mxu1 %vm2708_vm11, %v9874_v58  ;;  %12759 = vmatprep.subr.bf16.mxu0 %v15058_v43 }
0x144e   : > { %9814 = vmatprep.mubr.bf16.mxu1 %v13836_v34  ;;  %v10189_v25 = vpop.permute.xlu1 %10188 }
0x1456   : > { %12756 = vmatmul.mubr.msk.bf16.vlgmr.msra.gmra.mrb[36].mxu0 %vm2704_vm0, %v9761_v61 }
0x1457   : > { %12760 = vmatpush3.bf16.msra.mxu0 %v9885_v2  ;;  %11880 = vmatmul.mubr.msk.bf16.vlgmr.msra.gmra.mrb[48].mxu1 %vm2704_vm0, %v9761_v61 }
0x1458   : > { %9888 = vmatpush1.bf16.msra.mxu1 %v9879_v4  ;;  %12761 = vmatprep.mubr.msk.bf16.mxu0 %vm13835_vm12, %v15058_v43 }
0x1459   : > { %11886 = vmatprep.subr.msk.bf16.mxu1 %vm2708_vm11, %v9983_v5  ;;  %12765 = vmatprep.subr.bf16.mxu0 %v15058_v43  ;;  %v11330_v5 = vld [vmem:[%s15930_s8] sm:$0xf]  ;;  %s13859_s8 = smov 102  }
0x145a   : > { %9919 = vmatprep.mubr.bf16.mxu1 %v13836_v34 }
0x1462   : > { %12762 = vmatmul.mubr.msk.bf16.vlgmr.msra.gmra.mrb[36].mxu0 %vm2704_vm0, %v9866_v8 }
0x1463   : > { %12766 = vmatpush3.bf16.msra.mxu0 %v9994_v1  ;;  %11883 = vmatmul.mubr.msk.bf16.vlgmr.msra.gmra.mrb[48].mxu1 %vm2704_vm0, %v9866_v8 }
0x1464   : > { %9997 = vmatpush1.bf16.msra.mxu1 %v9988_v9  ;;  %12767 = vmatprep.mubr.msk.bf16.mxu0 %vm13835_vm12, %v15058_v43 }
0x1465   : > { %11889 = vmatprep.subr.msk.bf16.mxu1 %vm2708_vm11, %v10088_v35  ;;  %12771 = vmatprep.subr.bf16.mxu0 %v15058_v43 }
0x1466   : > { %10028 = vmatprep.mubr.bf16.mxu1 %v13836_v34 }
0x146e   : > { %12768 = vmatmul.mubr.msk.bf16.vlgmr.msra.gmra.mrb[36].mxu0 %vm2704_vm0, %v9975_v13 }
0x146f   : > { %12772 = vmatpush3.bf16.msra.mxu0 %v10099_v16  ;;  %11887 = vmatmul.mubr.msk.bf16.vlgmr.msra.gmra.mrb[48].mxu1 %vm2704_vm0, %v9975_v13 }
0x1470   : > { %10102 = vmatpush1.bf16.msra.mxu1 %v10093_v0  ;;  %12773 = vmatprep.mubr.msk.bf16.mxu0 %vm13835_vm12, %v15058_v43 }
0x1471   : > { %10133 = vmatprep.mubr.bf16.mxu1 %v13836_v34  ;;  %12777 = vmatprep.subr.bf16.mxu0 %v15058_v43 }
0x147a   : > { %12774 = vmatmul.mubr.msk.bf16.vlgmr.msra.gmra.mrb[36].mxu0 %vm2704_vm0, %v10080_v19 }
0x147b   : > { %11890 = vmatmul.mubr.msk.bf16.vlgmr.msra.gmra.mrb[48].mxu1 %vm2704_vm0, %v10080_v19  ;;  %12779 = vmatprep.mubr.msk.bf16.mxu0 %vm13835_vm12, %v15058_v43 }
0x147c   : > { %10307 = vmatprep.mubr.bf16.mxu1 %v13836_v34 }
0x154d   : > { %v10176_v27 = vpop.f32.mrb[36].mxu0 }
0x154e   : > { %v10193_v28 = vmul.f32 %v10189_v25, %v10176_v27  ;;  %v10135_v30 = vpop.f32.mrb[48].mxu1  ;;  %v12775_v32 = vpop.f32.mrb[37].mxu0 }
0x154f   : > { %v10191_v21 = vmul.f32 %v10189_v25, %v10135_v30  ;;  %v10137_v39 = vpop.f32.mrb[49].mxu1  ;;  %v10179_v37 = vpop.f32.mrb[38].mxu0 }
0x1550   : > { %v10192_v40 = vmul.f32 %v10189_v25, %v10137_v39  ;;  %v10139_v36 = vpop.f32.mrb[50].mxu1  ;;  %v12776_v38 = vpop.f32.mrb[39].mxu0  ;;  %v10202_v26 = vadd.f32 %v10198_v23, %v10193_v28 }
0x1551   : > { %v10200_v44 = vadd.f32 %v10198_v23, %v10191_v21  ;;  %v10140_v15 = vpop.f32.mrb[51].mxu1 }
0x1552   : > { %v10201_v18 = vadd.f32 %v10198_v23, %v10192_v40  ;;  %v10205_v47 = vmax.f32 %v10202_v26, 0.0 }
0x1553   : > { %v10203_v31 = vmax.f32 %v10200_v44, 0.0 }
0x1554   : > { %v10204_v46 = vmax.f32 %v10201_v18, 0.0  ;;  %v10225_v51 = vmul.f32 %v10219_v48, %v10205_v47 }
0x1555   : > { %v10223_v49 = vmul.f32 %v10211_v45, %v10203_v31 }
0x1556   : > { %v10224_v50 = vmul.f32 %v10215_v24, %v10204_v46 }
0x1557   : > { %10229 = vrot.lane.b32.xlu1 %v10223_v49, %s15918_s11 }
0x1558   : > { %10231 = vrot.lane.b32.xlu0 %v10224_v50, %s15918_s11 }
0x155b   : > { %10233 = vrot.lane.b32.xlu1 %v10225_v51, %s15918_s11  ;;  %s15931_s11 = sld [smem:[#allocation46_spill]] }
0x155c   : > { %10255 = vrot.lane.b32.xlu0 %v15414_v63, %s15909_s2 }
0x155f   : > { %10257 = vrot.lane.b32.xlu1 %v15408_v60, %s15909_s2 }
0x1560   : > { %10259 = vrot.lane.b32.xlu0 %v15420_v3, %s15909_s2 }
0x1561   : > { %v11339_v8 = vld [vmem:[%s15931_s11] sm:$0xf] }
0x15c9   : > { %v10230_v11 = vpop.permute.xlu1 %10229 }
0x15ca   : > { %10241 = vst.msk [vmem:[#allocation4] sm:$0xf] %vm10240_vm8, %v10230_v11  ;;  %v10232_v22 = vpop.permute.xlu0 %10231  ;;  %vm15939_vm8 = vmmov %vm15937_vm10 }
0x15cb   : > { %v10235_v41 = vsel %vm2543_vm9, %v10230_v11, %v10232_v22 }
0x15cc   : > { %10242 = vst [vmem:[#allocation4 + $0x8] sm:$0xf] %v10235_v41 }
0x15cd   : > { %v10234_v52 = vpop.permute.xlu1 %10233 }
0x15ce   : > { %v10236_v54 = vsel %vm2543_vm9, %v10232_v22, %v10234_v52  ;;  %v10256_v55 = vpop.permute.xlu0 %10255 }
0x15cf   : > { %10244 = vst.msk [vmem:[#allocation4 + $0x10] sm:$0xf] %vm10243_vm15, %v10236_v54 }
0x15d1   : > { %v10375_v63 = vld [vmem:[#allocation4] sm:$0xf]  ;;  %v10258_v56 = vpop.permute.xlu1 %10257 }
0x15d2   : > { %v15590_v60 = vpack.c.bf16 %v10375_v63, %v10375_v63  ;;  %v10261_v3 = vsel %vm1926_vm2, %v10256_v55, %v10258_v56  ;;  %v10260_v57 = vpop.permute.xlu0 %10259 }
0x15d3   : > { %v10376_v58 = vld [vmem:[#allocation4 + $0x8] sm:$0xf]  ;;  %v10267_v59 = vsel %vm2708_vm11, %v10261_v3, 0  ;;  %v10262_v42 = vsel %vm1926_vm2, %v10258_v56, %v10260_v57  ;;  %v10273_v61 = vsel %vm2708_vm11, %v10260_v57, 0 }
0x15d4   : > { %v10379_v33 = vpack.c.bf16 %v10376_v58, %v10376_v58  ;;  %10389 = vrot.lane.b32.xlu1 %v15590_v60, %s15919_s10  ;;  %11892 = vmatprep.subr.msk.bf16.mxu1 %vm2708_vm11, %v10262_v42 }
0x15d5   : > { %12778 = vmatpush3.bf16.msra.mxu0 %v10273_v61  ;;  %10276 = vmatpush1.bf16.msra.mxu1 %v10267_v59 }
0x15d6   : > { %v10377_v2 = vld [vmem:[#allocation4 + $0x10] sm:$0xf]  ;;  %10391 = vrot.lane.b32.xlu0 %v10379_v33, %s15919_s10  ;;  %12783 = vmatprep.subr.bf16.mxu0 %v15058_v43 }
0x15d7   : > { %v10380_v4 = vpack.c.bf16 %v10377_v2, %v10377_v2 }
0x15d8   : > { %12780 = vmatmul.mubr.msk.bf16.vlgmr.msra.gmra.mrb[40].mxu0 %vm2704_vm0, %v10245_v62  ;;  %11893 = vmatmul.mubr.msk.bf16.vlgmr.msra.gmra.mrb[52].mxu1 %vm2704_vm0, %v10245_v62  ;;  %vm15933_vm0 = vcmask 1041408  }
0x15d9   : > { %10393 = vrot.lane.b32.xlu1 %v10380_v4, %s15919_s10  ;;  %12785 = vmatprep.mubr.msk.bf16.mxu0 %vm13835_vm12, %v15058_v43  ;;  %vm15934_vm9 = vmmov %vm15933_vm0  ;;  %s13854_s10 = smov 112  }
0x15da   : > { %10584 = vrot.lane.b32.xlu0 %v15590_v60, %s15907_s0  ;;  %10441 = vmatprep.mubr.bf16.mxu1 %v13836_v34  ;;  %vm15935_vm11 = vmmov %vm15933_vm0 }
0x15db   : > { %vm15936_vm7 = vmmov %vm15933_vm0 }
0x15dc   : > { %vm15940_vm15 = vmmov %vm15933_vm0 }
0x15dd   : > { %10586 = vrot.lane.b32.xlu1 %v10379_v33, %s15907_s0  ;;  %v10494_v27 = vsel %vm15940_vm15, %v15590_v60, 0  ;;  %vm15947_vm15 = vmmov %vm15933_vm0 }
0x15de   : > { %10588 = vrot.lane.b32.xlu0 %v10380_v4, %s15907_s0 }
0x15e1   : > { %10693 = vrot.lane.b32.xlu1 %v15590_v60, %s15908_s16 }
0x15e2   : > { %10695 = vrot.lane.b32.xlu0 %v10379_v33, %s15908_s16 }
0x15e5   : > { %10697 = vrot.lane.b32.xlu1 %v10380_v4, %s15908_s16 }
0x15e6   : > { %10798 = vrot.lane.b32.xlu0 %v15590_v60, %s15909_s2 }
0x15e9   : > { %10800 = vrot.lane.b32.xlu1 %v10379_v33, %s15909_s2 }
0x15ea   : > { %10802 = vrot.lane.b32.xlu0 %v10380_v4, %s15909_s2  ;;  %s15932_s2 = sld [smem:[#allocation44_spill]] }
0x15ed   : > { %10907 = vrot.lane.b32.xlu1 %v15590_v60, %s15910_s5 }
0x15ee   : > { %10909 = vrot.lane.b32.xlu0 %v10379_v33, %s15910_s5 }
0x15f0   : > { %v13709_v1 = vld [vmem:[%s15932_s2] ss:$0 sps:$4 sm:$0xcc]   ;;  %v10583_v38 = vld [vmem:[%s15932_s2 + $0x4] sm:$0x3] }
0x15f1   : > { %10911 = vrot.lane.b32.xlu1 %v10380_v4, %s15910_s5  ;;  %v10385_v14 = vrot.slane %v13709_v1, 2  ;;  %v10374_v29 = vld [vmem:[%s15932_s2] sm:$0x3]  ;;  %v13710_v31 = vld [vmem:[%s15932_s2 + $0x4] ss:$0 sps:$4 sm:$0xcc]  }
0x15f2   : > { %11012 = vrot.lane.b32.xlu0 %v15590_v60, %s15911_s18  ;;  %v10692_v47 = vrot.slane %v13710_v31, 2  ;;  %v10797_v52 = vld [vmem:[%s15932_s2 + $0x8] sm:$0x3] }
0x15f3   : > { %v13711_v57 = vld [vmem:[%s15932_s2 + $0x8] ss:$0 sps:$4 sm:$0xcc]  }
0x15f4   : > { %v10906_v59 = vrot.slane %v13711_v57, 2 }
0x15f5   : > { %11014 = vrot.lane.b32.xlu1 %v10379_v33, %s15911_s18 }
0x15f6   : > { %11016 = vrot.lane.b32.xlu0 %v10380_v4, %s15911_s18  ;;  %s13853_s18 = smov 124  }
0x15f9   : > { %11121 = vrot.lane.b32.xlu1 %v15590_v60, %s15913_s9 }
0x15fa   : > { %11123 = vrot.lane.b32.xlu0 %v10379_v33, %s15913_s9 }
0x15fd   : > { %11125 = vrot.lane.b32.xlu1 %v10380_v4, %s15913_s9 }
0x15fe   : > { %11226 = vrot.lane.b32.xlu0 %v15590_v60, %s15916_s12 }
0x1601   : > { %11228 = vrot.lane.b32.xlu1 %v10379_v33, %s15916_s12 }
0x1602   : > { %11230 = vrot.lane.b32.xlu0 %v10380_v4, %s15916_s12  ;;  %s15976_s12 = sshll.u32 %s15979_s1, 3  ;;  %s13855_s1 = smov 122  }
0x1603   : > { %s15752_s9 = scalar_lea.vmem %s14089_s3, %s15976_s12 }
0x1605   : > { %10359 = vperm.xlu1 %13664, %v10356_v17  }
0x1606   : > { %11333 = vperm.xlu0 %13663, %v11330_v5   ;;  %v11011_v5 = vld [vmem:[%s15932_s2 + $0xc] sm:$0x3] }
0x1609   : > { %10368 = vperm.xlu1 %13664, %v10365_v7  }
0x160a   : > { %11342 = vperm.xlu0 %13663, %v11339_v8  }
0x1646   : > { %v10390_v10 = vpop.permute.xlu1 %10389 }
0x1648   : > { %v10392_v12 = vpop.permute.xlu0 %10391 }
0x1649   : > { %v10395_v9 = vsel %vm1483_vm14, %v10390_v10, %v10392_v12 }
0x164a   : > { %v10401_v16 = vsel %vm15934_vm9, %v10395_v9, 0  ;;  %vm15941_vm9 = vmmov %vm15933_vm0 }
0x164b   : > { %v10394_v53 = vpop.permute.xlu1 %10393 }
0x164c   : > { %v10396_v35 = vsel %vm1483_vm14, %v10392_v12, %v10394_v53  ;;  %v10407_v20 = vsel %vm15933_vm0, %v10394_v53, 0  ;;  %v10585_v13 = vpop.permute.xlu0 %10584  ;;  %vm15938_vm14 = vmmov %vm15933_vm0  ;;  %v13712_v53 = vld [vmem:[%s15932_s2 + $0xc] ss:$0 sps:$4 sm:$0xcc]  }
0x164d   : > { %11896 = vmatprep.subr.msk.bf16.mxu1 %vm15935_vm11, %v10396_v35  ;;  %12784 = vmatpush3.bf16.msra.mxu0 %v10407_v20  ;;  %v10500_v23 = vsel %vm15938_vm14, %v10380_v4, 0  ;;  %vm15942_vm11 = vmmov %vm15939_vm8  ;;  %v11120_v35 = vrot.slane %v13712_v53, 2 }
0x164e   : > { %10410 = vmatpush1.bf16.msra.mxu1 %v10401_v16  ;;  %12789 = vmatprep.subr.bf16.mxu0 %v15058_v43  ;;  %vm15945_vm14 = vmmov %vm15933_vm0 }
0x164f   : > { %v10587_v0 = vpop.permute.xlu1 %10586  ;;  %11899 = vmatprep.subr.msk.bf16.mxu1 %vm15936_vm7, %v10379_v33  ;;  %vm15943_vm7 = vmmov %vm15933_vm0 }
0x1650   : > { %12786 = vmatmul.mubr.msk.bf16.vlgmr.msra.gmra.mrb[44].mxu0 %vm15937_vm10, %v10385_v14  ;;  %v10589_v19 = vpop.permute.xlu0 %10588  ;;  %v10590_v30 = vsel %vm1692_vm1, %v10585_v13, %v10587_v0  ;;  %vm15944_vm10 = vmmov %vm15939_vm8 }
0x1651   : > { %v10591_v25 = vsel %vm1692_vm1, %v10587_v0, %v10589_v19  ;;  %11897 = vmatmul.mubr.msk.bf16.vlgmr.msra.gmra.mrb[56].mxu1 %vm15939_vm8, %v10385_v14  ;;  %12790 = vmatpush3.bf16.msra.mxu0 %v10500_v23  ;;  %v10602_v39 = vsel %vm15941_vm9, %v10589_v19, 0  ;;  %v10596_v37 = vsel %vm15943_vm7, %v10590_v30, 0  ;;  %vm15946_vm1 = vmmov %vm15933_vm0 }
0x1652   : > { %10503 = vmatpush1.bf16.msra.mxu1 %v10494_v27  ;;  %12791 = vmatprep.mubr.msk.bf16.mxu0 %vm13835_vm12, %v15058_v43  ;;  %vm15949_vm9 = vmmov %vm15946_vm1 }
0x1653   : > { %11902 = vmatprep.subr.msk.bf16.mxu1 %vm15933_vm0, %v10591_v25  ;;  %12795 = vmatprep.subr.bf16.mxu0 %v15058_v43  ;;  %v10694_v28 = vpop.permute.xlu1 %10693  ;;  %vm15948_vm0 = vmmov %vm15939_vm8  ;;  %v11225_v25 = vld [vmem:[%s15932_s2 + $0x10] sm:$0x3] }
0x1654   : > { %10534 = vmatprep.mubr.bf16.mxu1 %v13836_v34  ;;  %v10696_v32 = vpop.permute.xlu0 %10695  ;;  %vm15952_vm7 = vmmov %vm15946_vm1 }
0x1655   : > { %v10699_v26 = vsel %vm1352_vm13, %v10694_v28, %v10696_v32 }
0x1656   : > { %v10705_v18 = vsel %vm15947_vm15, %v10699_v26, 0  ;;  %vm15958_vm15 = vmmov %vm15948_vm0 }
0x1657   : > { %v10698_v21 = vpop.permute.xlu1 %10697 }
0x1658   : > { %v10700_v40 = vsel %vm1352_vm13, %v10696_v32, %v10698_v21  ;;  %v10799_v36 = vpop.permute.xlu0 %10798  ;;  %v10711_v15 = vsel %vm15946_vm1, %v10698_v21, 0  ;;  %vm15950_vm13 = vmmov %vm15946_vm1 }
0x165b   : > { %v10801_v44 = vpop.permute.xlu1 %10800 }
0x165c   : > { %12792 = vmatmul.mubr.msk.bf16.vlgmr.msra.gmra.mrb[44].mxu0 %vm15942_vm11, %v10374_v29  ;;  %v10803_v45 = vpop.permute.xlu0 %10802  ;;  %v10804_v48 = vsel %vm1926_vm2, %v10799_v36, %v10801_v44  ;;  %vm15951_vm11 = vmmov %vm15948_vm0 }
0x165d   : > { %12796 = vmatpush3.bf16.msra.mxu0 %v10602_v39  ;;  %11900 = vmatmul.mubr.msk.bf16.vlgmr.msra.gmra.mrb[56].mxu1 %vm15944_vm10, %v10374_v29  ;;  %v10805_v24 = vsel %vm1926_vm2, %v10801_v44, %v10803_v45  ;;  %v10816_v51 = vsel %vm15950_vm13, %v10803_v45, 0  ;;  %v10810_v11 = vsel %vm15952_vm7, %v10804_v48, 0  ;;  %vm15953_vm10 = vmmov %vm15948_vm0 }
0x165e   : > { %10605 = vmatpush1.bf16.msra.mxu1 %v10596_v37  ;;  %12797 = vmatprep.mubr.msk.bf16.mxu0 %vm13835_vm12, %v15058_v43  ;;  %vm15955_vm2 = vmmov %vm15946_vm1 }
0x165f   : > { %11906 = vmatprep.subr.msk.bf16.mxu1 %vm15945_vm14, %v10700_v40  ;;  %12801 = vmatprep.subr.bf16.mxu0 %v15058_v43  ;;  %v10908_v46 = vpop.permute.xlu1 %10907  ;;  %vm15954_vm14 = vmmov %vm15946_vm1 }
0x1660   : > { %10636 = vmatprep.mubr.bf16.mxu1 %v13836_v34  ;;  %v10910_v49 = vpop.permute.xlu0 %10909  ;;  %vm15956_vm1 = vmmov %vm15948_vm0 }
0x1661   : > { %v10913_v54 = vsel %vm2043_vm3, %v10908_v46, %v10910_v49 }
0x1663   : > { %v10912_v50 = vpop.permute.xlu1 %10911 }
0x1664   : > { %v10914_v22 = vsel %vm2043_vm3, %v10910_v49, %v10912_v50  ;;  %v11013_v41 = vpop.permute.xlu0 %11012  ;;  %v10925_v56 = vsel %vm15955_vm2, %v10912_v50, 0 }
0x1667   : > { %v11015_v55 = vpop.permute.xlu1 %11014 }
0x1668   : > { %12798 = vmatmul.mubr.msk.bf16.vlgmr.msra.gmra.mrb[44].mxu0 %vm15939_vm8, %v10583_v38  ;;  %v11017_v63 = vpop.permute.xlu0 %11016  ;;  %vm15957_vm8 = vmmov %vm15955_vm2  ;;  %v11018_v42 = vsel %vm2160_vm4, %v11013_v41, %v11015_v55 }
0x1669   : > { %12802 = vmatpush3.bf16.msra.mxu0 %v10711_v15  ;;  %11903 = vmatmul.mubr.msk.bf16.vlgmr.msra.gmra.mrb[56].mxu1 %vm15948_vm0, %v10583_v38  ;;  %v10919_v60 = vsel %vm15957_vm8, %v10913_v54, 0  ;;  %v11019_v3 = vsel %vm2160_vm4, %v11015_v55, %v11017_v63  ;;  %vm15959_vm0 = vmmov %vm15955_vm2 }
0x166a   : > { %10714 = vmatpush1.bf16.msra.mxu1 %v10705_v18  ;;  %12803 = vmatprep.mubr.msk.bf16.mxu0 %vm13835_vm12, %v15058_v43  ;;  %vm15960_vm3 = vmmov %vm15959_vm0 }
0x166b   : > { %11909 = vmatprep.subr.msk.bf16.mxu1 %vm15949_vm9, %v10805_v24  ;;  %12807 = vmatprep.subr.bf16.mxu0 %v15058_v43  ;;  %v11122_v58 = vpop.permute.xlu1 %11121  ;;  %v11030_v62 = vsel %vm15960_vm3, %v11017_v63, 0  ;;  %vm15961_vm9 = vmmov %vm15956_vm1 }
0x166c   : > { %10745 = vmatprep.mubr.bf16.mxu1 %v13836_v34  ;;  %v11124_v61 = vpop.permute.xlu0 %11123  ;;  %vm15962_vm13 = vmmov %vm15959_vm0 }
0x166d   : > { %v11024_v2 = vsel %vm15962_vm13, %v11018_v42, 0  ;;  %vm15964_vm7 = vmmov %vm15959_vm0  ;;  %v11127_v7 = vsel %vm2277_vm5, %v11122_v58, %v11124_v61  ;;  %vm11464_vm13 = vcmask 388352  }
0x166e   : > { %vm15965_vm4 = vmmov %vm15959_vm0 }
0x166f   : > { %v11126_v33 = vpop.permute.xlu1 %11125  ;;  %vm15968_vm2 = vmmov %vm15956_vm1 }
0x1670   : > { %v11128_v4 = vsel %vm2277_vm5, %v11124_v61, %v11126_v33  ;;  %v11227_v17 = vpop.permute.xlu0 %11226  ;;  %v11139_v12 = vsel %vm15965_vm4, %v11126_v33, 0  ;;  %vm15970_vm5 = vmmov %vm15959_vm0  ;;  %vm11479_vm4 = vcmask 781952  }
0x1671   : > { %vm15971_vm8 = vmmov %vm15968_vm2 }
0x1673   : > { %v11229_v8 = vpop.permute.xlu1 %11228 }
0x1674   : > { %12804 = vmatmul.mubr.msk.bf16.vlgmr.msra.gmra.mrb[44].mxu0 %vm15951_vm11, %v10692_v47  ;;  %vm15963_vm11 = vmmov %vm15956_vm1  ;;  %v11231_v10 = vpop.permute.xlu0 %11230  ;;  %v11232_v20 = vsel %vm2394_vm6, %v11227_v17, %v11229_v8 }
0x1675   : > { %12808 = vmatpush3.bf16.msra.mxu0 %v10816_v51  ;;  %11907 = vmatmul.mubr.msk.bf16.vlgmr.msra.gmra.mrb[56].mxu1 %vm15953_vm10, %v10692_v47  ;;  %vm15966_vm10 = vmmov %vm15956_vm1  ;;  %v11233_v9 = vsel %vm2394_vm6, %v11229_v8, %v11231_v10  ;;  %v11244_v13 = vsel %vm15970_vm5, %v11231_v10, 0 }
0x1676   : > { %10819 = vmatpush1.bf16.msra.mxu1 %v10810_v11  ;;  %12809 = vmatprep.mubr.msk.bf16.mxu0 %vm13835_vm12, %v15058_v43 }
0x1677   : > { %11913 = vmatprep.subr.msk.bf16.mxu1 %vm15954_vm14, %v10914_v22  ;;  %12813 = vmatprep.subr.bf16.mxu0 %v15058_v43  ;;  %vm15967_vm14 = vmmov %vm15959_vm0 }
0x1678   : > { %10850 = vmatprep.mubr.bf16.mxu1 %v13836_v34  ;;  %v11133_v1 = vsel %vm15967_vm14, %v11127_v7, 0  ;;  %vm11491_vm14 = vcmask 932864  }
0x1680   : > { %12810 = vmatmul.mubr.msk.bf16.vlgmr.msra.gmra.mrb[44].mxu0 %vm15956_vm1, %v10797_v52  ;;  %vm15969_vm1 = vmmov %vm15959_vm0 }
0x1681   : > { %12814 = vmatpush3.bf16.msra.mxu0 %v10925_v56  ;;  %11910 = vmatmul.mubr.msk.bf16.vlgmr.msra.gmra.mrb[56].mxu1 %vm15958_vm15, %v10797_v52  ;;  %vm15972_vm15 = vmmov %vm15959_vm0 }
0x1682   : > { %10928 = vmatpush1.bf16.msra.mxu1 %v10919_v60  ;;  %12815 = vmatprep.mubr.msk.bf16.mxu0 %vm13835_vm12, %v15058_v43  ;;  %v11238_v14 = vsel %vm15972_vm15, %v11232_v20, 0 }
0x1683   : > { %11916 = vmatprep.subr.msk.bf16.mxu1 %vm15959_vm0, %v11019_v3  ;;  %12819 = vmatprep.subr.bf16.mxu0 %v15058_v43  ;;  %vm15973_vm0 = vmmov %vm15968_vm2 }
0x1684   : > { %10959 = vmatprep.mubr.bf16.mxu1 %v13836_v34  ;;  %vm15974_vm6 = vmmov %vm15973_vm0  ;;  %v10360_v32 = vpop.permute.xlu1 %10359 }
0x1685   : > { %vm15975_vm3 = vmmov %vm15973_vm0  ;;  %v11334_v21 = vpop.permute.xlu0 %11333 }
0x1688   : > { %v10369_v39 = vpop.permute.xlu1 %10368 }
0x168c   : > { %12816 = vmatmul.mubr.msk.bf16.vlgmr.msra.gmra.mrb[44].mxu0 %vm15961_vm9, %v10906_v59  ;;  %vm11459_vm9 = vcmask 257152  }
0x168d   : > { %12820 = vmatpush3.bf16.msra.mxu0 %v11030_v62  ;;  %11914 = vmatmul.mubr.msk.bf16.vlgmr.msra.gmra.mrb[56].mxu1 %vm15963_vm11, %v10906_v59  ;;  %vm11469_vm11 = vcmask 519552  }
0x168e   : > { %11033 = vmatpush1.bf16.msra.mxu1 %v11024_v2  ;;  %12821 = vmatprep.mubr.msk.bf16.mxu0 %vm13835_vm12, %v15058_v43 }
0x168f   : > { %11920 = vmatprep.subr.msk.bf16.mxu1 %vm15964_vm7, %v11128_v4  ;;  %12825 = vmatprep.subr.bf16.mxu0 %v15058_v43  ;;  %vm11474_vm7 = vcmask 650752  }
0x1690   : > { %11064 = vmatprep.mubr.bf16.mxu1 %v13836_v34 }
0x1698   : > { %12822 = vmatmul.mubr.msk.bf16.vlgmr.msra.gmra.mrb[44].mxu0 %vm15966_vm10, %v11011_v5  ;;  %vm11525_vm10 = vcmask 818176  }
0x1699   : > { %12826 = vmatpush3.bf16.msra.mxu0 %v11139_v12  ;;  %11917 = vmatmul.mubr.msk.bf16.vlgmr.msra.gmra.mrb[56].mxu1 %vm15968_vm2, %v11011_v5  ;;  %vm11484_vm2 = vcmask 913152  }
0x169a   : > { %11142 = vmatpush1.bf16.msra.mxu1 %v11133_v1  ;;  %12827 = vmatprep.mubr.msk.bf16.mxu0 %vm13835_vm12, %v15058_v43 }
0x169b   : > { %11923 = vmatprep.subr.msk.bf16.mxu1 %vm15969_vm1, %v11233_v9  ;;  %12831 = vmatprep.subr.bf16.mxu0 %v15058_v43  ;;  %vm11494_vm1 = vcmask 1044352  }
0x169c   : > { %11173 = vmatprep.mubr.bf16.mxu1 %v13836_v34 }
0x16a4   : > { %12828 = vmatmul.mubr.msk.bf16.vlgmr.msra.gmra.mrb[44].mxu0 %vm15971_vm8, %v11120_v35 }
0x16a5   : > { %12832 = vmatpush3.bf16.msra.mxu0 %v11244_v13  ;;  %11921 = vmatmul.mubr.msk.bf16.vlgmr.msra.gmra.mrb[56].mxu1 %vm15973_vm0, %v11120_v35 }
0x16a6   : > { %11247 = vmatpush1.bf16.msra.mxu1 %v11238_v14  ;;  %12833 = vmatprep.mubr.msk.bf16.mxu0 %vm13835_vm12, %v15058_v43  ;;  %v11343_v43 = vpop.permute.xlu0 %11342  ;;  %vm11453_vm12 = vcmask 125952  }
0x16a7   : > { %11278 = vmatprep.mubr.bf16.mxu1 %v13836_v34 }
0x16ab   : > { %v10350_v16 = vpop.f32.mrb[40].mxu0  ;;  %v10309_v0 = vpop.f32.mrb[52].mxu1 }
0x16ac   : > { %v10311_v19 = vpop.f32.mrb[53].mxu1  ;;  %v12781_v23 = vpop.f32.mrb[41].mxu0  ;;  %v10364_v37 = vmul.f32 %v10360_v32, %v10350_v16  ;;  %v10362_v40 = vmul.f32 %v10360_v32, %v10309_v0 }
0x16ad   : > { %v10313_v27 = vpop.f32.mrb[54].mxu1  ;;  %v10353_v28 = vpop.f32.mrb[42].mxu0  ;;  %v10363_v36 = vmul.f32 %v10360_v32, %v10311_v19 }
0x16ae   : > { %v10314_v29 = vpop.f32.mrb[55].mxu1  ;;  %v12782_v30 = vpop.f32.mrb[43].mxu0  ;;  %v10373_v24 = vadd.f32 %v10369_v39, %v10364_v37  ;;  %v10371_v49 = vadd.f32 %v10369_v39, %v10362_v40 }
0x16af   : > { %v10372_v11 = vadd.f32 %v10369_v39, %v10363_v36 }
0x16b0   : > { %12834 = vmatmul.mubr.msk.bf16.vlgmr.msra.gmra.mrb[44].mxu0 %vm15974_vm6, %v11225_v25 }
0x16b1   : > { %11924 = vmatmul.mubr.msk.bf16.vlgmr.msra.gmra.mrb[56].mxu1 %vm15975_vm3, %v11225_v25 }
0x1783   : > { %v11321_v34 = vpop.f32.mrb[44].mxu0 }
0x1784   : > { %v11338_v38 = vmul.f32 %v11334_v21, %v11321_v34  ;;  %v11280_v26 = vpop.f32.mrb[56].mxu1  ;;  %v12835_v44 = vpop.f32.mrb[45].mxu0 }
0x1785   : > { %v11336_v45 = vmul.f32 %v11334_v21, %v11280_v26  ;;  %v11282_v15 = vpop.f32.mrb[57].mxu1  ;;  %v11324_v18 = vpop.f32.mrb[46].mxu0 }
0x1786   : > { %v11347_v31 = vadd.f32 %v11343_v43, %v11338_v38  ;;  %v11337_v46 = vmul.f32 %v11334_v21, %v11282_v15  ;;  %v11284_v47 = vpop.f32.mrb[58].mxu1  ;;  %v12836_v48 = vpop.f32.mrb[47].mxu0 }
0x1787   : > { %v11345_v50 = vadd.f32 %v11343_v43, %v11336_v45  ;;  %v11285_v51 = vpop.f32.mrb[59].mxu1 }
0x1788   : > { %v11350_v22 = vadd.f32 %v11347_v31, %v10373_v24  ;;  %v11346_v41 = vadd.f32 %v11343_v43, %v11337_v46 }
0x1789   : > { %v11348_v52 = vadd.f32 %v11345_v50, %v10371_v49 }
0x178a   : > { %v11353_v54 = vmax.f32 %v11350_v22, 0.0  ;;  %v11349_v55 = vadd.f32 %v11346_v41, %v10372_v11 }
0x178b   : > { %v11351_v63 = vmax.f32 %v11348_v52, 0.0 }
0x178c   : > { %v11359_v56 = vrot.slane %v11353_v54, 1  ;;  %v11352_v60 = vmax.f32 %v11349_v55, 0.0  ;;  %v11368_v58 = vrot.slane %v11353_v54, 2  ;;  %v11377_v62 = vrot.slane %v11353_v54, 3 }
0x178d   : > { %v11357_v3 = vrot.slane %v11351_v63, 1  ;;  %v11366_v61 = vrot.slane %v11351_v63, 2  ;;  %v11375_v5 = vrot.slane %v11351_v63, 3 }
0x178e   : > { %v11365_v57 = vmax.f32 %v11353_v54, %v11359_v56  ;;  %v11358_v59 = vrot.slane %v11352_v60, 1  ;;  %v11367_v4 = vrot.slane %v11352_v60, 2  ;;  %v11376_v10 = vrot.slane %v11352_v60, 3 }
0x178f   : > { %v11363_v42 = vmax.f32 %v11351_v63, %v11357_v3 }
0x1790   : > { %v11374_v33 = vmax.f32 %v11365_v57, %v11368_v58  ;;  %v11364_v2 = vmax.f32 %v11352_v60, %v11358_v59 }
0x1791   : > { %v11372_v17 = vmax.f32 %v11363_v42, %v11366_v61 }
0x1792   : > { %v11383_v7 = vmax.f32 %v11374_v33, %v11377_v62  ;;  %v11373_v8 = vmax.f32 %v11364_v2, %v11367_v4 }
0x1793   : > { %v11381_v12 = vmax.f32 %v11372_v17, %v11375_v5 }
0x1794   : > { %v11395_v1 = vrot.slane %v11383_v7, %v14310_v6  ;;  %v11382_v9 = vmax.f32 %v11373_v8, %v11376_v10 }
0x1795   : > { %v11387_v53 = vrot.slane %v11381_v12, %v14310_v6 }
0x1796   : > { %v11398_v35 = vsub.f32 %v11353_v54, %v11395_v1  ;;  %v11391_v20 = vrot.slane %v11382_v9, %v14310_v6 }
0x1797   : > { %v11396_v13 = vsub.f32 %v11351_v63, %v11387_v53 }
0x1798   : > { %v11403_v14 = vmul.f32 1.442695, %v11398_v35  ;;  %v11397_v16 = vsub.f32 %v11352_v60, %v11391_v20 }
0x1799   : > { %v11399_v0 = vmul.f32 1.442695, %v11396_v13 }
0x179a   : > { %13713 = vpow2.f32 %v11403_v14  ;;  %v11401_v19 = vmul.f32 1.442695, %v11397_v16 }
0x179b   : > { %13715 = vpow2.f32 %v11399_v0 }
0x179c   : > { %13717 = vpow2.f32 %v11401_v19 }
0x17a4   : > { %v13714_v23 = vpop.eup %13713 }
0x17a5   : > { %v13716_v25 = vpop.eup %13715  ;;  %v11410_v27 = vrot.slane %v13714_v23, 1  ;;  %v11419_v21 = vrot.slane %v13714_v23, 2  ;;  %v11428_v36 = vrot.slane %v13714_v23, 3 }
0x17a6   : > { %v13718_v28 = vpop.eup %13717  ;;  %v11408_v29 = vrot.slane %v13716_v25, 1  ;;  %v11417_v37 = vrot.slane %v13716_v25, 2  ;;  %v11426_v26 = vrot.slane %v13716_v25, 3 }
0x17a7   : > { %v11409_v30 = vrot.slane %v13718_v28, 1  ;;  %v11416_v32 = vadd.f32 %v13714_v23, %v11410_v27  ;;  %v11418_v40 = vrot.slane %v13718_v28, 2  ;;  %v11427_v45 = vrot.slane %v13718_v28, 3 }
0x17a8   : > { %v11414_v39 = vadd.f32 %v13716_v25, %v11408_v29 }
0x17a9   : > { %v11415_v43 = vadd.f32 %v13718_v28, %v11409_v30  ;;  %v11425_v34 = vadd.f32 %v11419_v21, %v11416_v32 }
0x17aa   : > { %v11423_v38 = vadd.f32 %v11417_v37, %v11414_v39 }
0x17ab   : > { %v11424_v44 = vadd.f32 %v11418_v40, %v11415_v43  ;;  %v11434_v15 = vadd.f32 %v11428_v36, %v11425_v34 }
0x17ac   : > { %v11432_v18 = vadd.f32 %v11426_v26, %v11423_v38 }
0x17ad   : > { %v11433_v24 = vadd.f32 %v11427_v45, %v11424_v44  ;;  %v11446_v31 = vrot.slane %v11434_v15, %v14310_v6 }
0x17ae   : > { %v11438_v46 = vrot.slane %v11432_v18, %v14310_v6 }
0x17af   : > { %v11442_v47 = vrot.slane %v11433_v24, %v14310_v6  ;;  %13719 = vrcp.f32 %v11446_v31 }
0x17b0   : > { %13721 = vrcp.f32 %v11438_v46 }
0x17b1   : > { %13723 = vrcp.f32 %v11442_v47 }
0x17b9   : > { %v13720_v48 = vpop.eup %13719 }
0x17ba   : > { %v13722_v49 = vpop.eup %13721  ;;  %v11452_v22 = vmul.f32 %v13720_v48, %v13714_v23 }
0x17bb   : > { %v13724_v50 = vpop.eup %13723  ;;  %v11448_v51 = vmul.f32 %v13722_v49, %v13716_v25 }
0x17bc   : > { %v11450_v11 = vmul.f32 %v13724_v50, %v13718_v28 }
0x17bd   : > { %11471 = vrot.lane.b32.xlu1 %v11448_v51, %s15912_s7  ;;  %11456 = vrot.lane.b32.xlu0 %v11448_v51, %s15907_s0  ;;  %11454 = vst.msk [vmem:[%s15752_s9] sm:$0xf] %vm11453_vm12, %v11448_v51  ;;  %s13856_s0 = smov 100   ;;  %s13857_s7 = smov 104  }
0x17be   : > { %v11521_v6 = vcombine.low %v11450_v11, %v11452_v22  ;;  %v11487_v41 = vcombine.low %v11448_v51, %v11450_v11 }
0x17c1   : > { %11461 = vrot.lane.b32.xlu0 %v11448_v51, %s13853_s18  ;;  %11496 = vrot.lane.b32.xlu1 %v11450_v11, %s13854_s10 }
0x17c5   : > { %11466 = vrot.lane.b32.xlu0 %v11448_v51, %s13855_s1  ;;  %11500 = vrot.lane.b32.xlu1 %v11450_v11, %s15908_s16  ;;  %s13860_s16 = smov 98  }
0x17c9   : > { %11476 = vrot.lane.b32.xlu0 %v11448_v51, %s15977_s13  ;;  %11504 = vrot.lane.b32.xlu1 %v11450_v11, %s15910_s5 }
0x17cd   : > { %11508 = vrot.lane.b32.xlu1 %v11450_v11, %s15900_s6  ;;  %11522 = vrot.lane.b32.xlu0 %v11521_v6, %s13856_s0 }
0x17d1   : > { %11512 = vrot.lane.b32.xlu1 %v11450_v11, %s13857_s7  ;;  %11488 = vrot.lane.b32.xlu0 %v11487_v41, %s13858_s14 }
0x17d5   : > { %11516 = vrot.lane.b32.xlu1 %v11450_v11, %s13859_s8  ;;  %11481 = vrot.lane.b32.xlu0 %v11448_v51, %s15898_s26 }
0x17d9   : > { %11529 = vrot.lane.b32.xlu1 %v11452_v22, %s13860_s16 }
0x182f   : > { %v11472_v52 = vpop.permute.xlu1 %11471  ;;  %v11457_v54 = vpop.permute.xlu0 %11456 }
0x1830   : > { %11460 = vst.msk [vmem:[%s15752_s9] sm:$0xf] %vm11459_vm9, %v11457_v54 }
0x1833   : > { %v11462_v55 = vpop.permute.xlu0 %11461  ;;  %v11497_v63 = vpop.permute.xlu1 %11496 }
0x1834   : > { %11465 = vst.msk [vmem:[%s15752_s9] sm:$0xf] %vm11464_vm13, %v11462_v55 }
0x1835   : > { %11499 = vst.msk [vmem:[%s15752_s9 + $0x4] sm:$0xf] %vm11453_vm12, %v11497_v63 }
0x1837   : > { %v11467_v56 = vpop.permute.xlu0 %11466  ;;  %v11501_v60 = vpop.permute.xlu1 %11500 }
0x1838   : > { %11470 = vst.msk [vmem:[%s15752_s9] sm:$0xf] %vm11469_vm11, %v11467_v56 }
0x1839   : > { %11503 = vst.msk [vmem:[%s15752_s9 + $0x4] sm:$0xf] %vm11459_vm9, %v11501_v60 }
0x183a   : > { %11475 = vst.msk [vmem:[%s15752_s9] sm:$0xf] %vm11474_vm7, %v11472_v52 }
0x183b   : > { %v11477_v3 = vpop.permute.xlu0 %11476  ;;  %v11505_v57 = vpop.permute.xlu1 %11504 }
0x183c   : > { %11480 = vst.msk [vmem:[%s15752_s9] sm:$0xf] %vm11479_vm4, %v11477_v3 }
0x183d   : > { %11507 = vst.msk [vmem:[%s15752_s9 + $0x4] sm:$0xf] %vm11464_vm13, %v11505_v57 }
0x183f   : > { %v11509_v58 = vpop.permute.xlu1 %11508  ;;  %v11523_v59 = vpop.permute.xlu0 %11522 }
0x1840   : > { %11511 = vst.msk [vmem:[%s15752_s9 + $0x4] sm:$0xf] %vm11469_vm11, %v11509_v58  ;;  %v11524_v33 = vrot.slane %v11523_v59, 4 }
0x1842   : > { %v11526_v17 = vsel %vm11525_vm10, %v11523_v59, %v11524_v33 }
0x1843   : > { %v11513_v42 = vpop.permute.xlu1 %11512  ;;  %v11489_v61 = vpop.permute.xlu0 %11488 }
0x1844   : > { %11515 = vst.msk [vmem:[%s15752_s9 + $0x4] sm:$0xf] %vm11474_vm7, %v11513_v42  ;;  %v11490_v62 = vrot.slane %v11489_v61, 4 }
0x1846   : > { %v11492_v5 = vsel %vm11491_vm14, %v11489_v61, %v11490_v62 }
0x1847   : > { %v11517_v2 = vpop.permute.xlu1 %11516  ;;  %v11482_v4 = vpop.permute.xlu0 %11481 }
0x1848   : > { %11519 = vst.msk [vmem:[%s15752_s9 + $0x4] sm:$0xf] %vm11479_vm4, %v11517_v2 }
0x1849   : > { %11485 = vst.msk [vmem:[%s15752_s9] sm:$0xf] %vm11484_vm2, %v11482_v4  ;;  %11528 = vst.msk [vmem:[%s15752_s9 + $0x4] sm:$0xf] %vm11484_vm2, %v11526_v17 }
0x184a   : > { %11495 = vst.msk [vmem:[%s15752_s9] sm:$0xf] %vm11494_vm1, %v11492_v5 }
0x184b   : > { %v11530_v7 = vpop.permute.xlu1 %11529 }
0x184c   : > { %11532 = vst.msk [vmem:[%s15752_s9 + $0x4] sm:$0xf] %vm11494_vm1, %v11530_v7 }
0x184d PF: > { %s100_s28 = sadd.s32 1, %s13769_s28  }
0x184e   : > { %p97_p3 = scmp.ge.s32.totalorder %s100_s28, 4  }
0x1850   :  { %99 = sbr.rel (!%p97_p3) target bundleno = 87 (0x57), region = 275 }
0x1857   :  { %11554 = vsyncpa [#allocation10], 1 }
0x1858   :  { %11556 = vsyncpa [#allocation10 + $0x1], 1 }

</bundles_post_ra>
